<compile_context>
chip_gen: v5e
topology: v5e:2x2
jax: 0.10.0
libtpu: 0.0.40
codegen_flags: <defaults>
</compile_context>

<pallas_src>
import functools

import numpy as np

import jax
import jax.numpy as jnp
from jax.experimental import pallas as pl
from jax.experimental.pallas import tpu as pltpu

_VMEM = pl.BlockSpec(memory_space=pltpu.MemorySpace.VMEM)
_LANE = 128
_SUBLANE = 8


def _round_up(x, m):
    return (x + m - 1) // m * m


# ----------------------------------------------------------------------------
# Pallas kernels
# ----------------------------------------------------------------------------
def _linear_kernel(x_ref, w_ref, b_ref, o_ref, *, apply_relu):
    """(rows, K) @ (K, Fp) + (1, Fp) -> (rows, Fp). bf16 MXU, f32 accumulate."""
    x = x_ref[...]
    if apply_relu:
        x = jnp.maximum(x, 0.0)
    o_ref[...] = (jnp.dot(x.astype(jnp.bfloat16), w_ref[...],
                          preferred_element_type=jnp.float32) + b_ref[...])


def _gru_recurrence_kernel(gi_ref, h0_ref, whh_ref, bhn_ref, out_ref, hlast_ref,
                           *, seq_len, hp, num_dirs, unroll):
    """Fused (optionally bidirectional) GRU recurrence.

    gi_ref    : (S, Bp, nd*3Hp) f32  precomputed x @ W_ih^T + b_ih + [b_hr,b_hz,0]
    h0_ref    : (nd, Bp, Hp)    f32  initial hidden (zero-padded beyond H / B)
    whh_ref   : (nd, Hp, 3Hp)   bf16 hidden->gate weights, gate g at cols g*Hp
    bhn_ref   : (nd, 1, Hp)     f32  hidden bias of the n-gate only
    out_ref   : (S, Bp, nd*Hp)  f32  fwd dir in cols [0:Hp], bwd dir in [Hp:2Hp]
    hlast_ref : (nd, Bp, Hp)    f32
    """
    # Hoist the per-direction n-gate biases and weights out of the loop body.
    bhn = [bhn_ref[d] for d in range(num_dirs)]
    whh = [whh_ref[d] for d in range(num_dirs)]

    def step(t, carry):
        new_carry = []
        for d in range(num_dirs):
            # Forward walks t = 0..S-1; backward walks S-1..0 and writes its
            # outputs straight into their final positions (no jnp.flip).
            t_idx = t if d == 0 else seq_len - 1 - t
            gi = gi_ref[t_idx, :, d * 3 * hp:(d + 1) * 3 * hp]   # (Bp, 3Hp) lane-aligned
            h = carry[d]                                          # (Bp, Hp) f32
            gh = jnp.dot(h.astype(jnp.bfloat16), whh[d],
                         preferred_element_type=jnp.float32)      # (Bp, 3Hp)
            r = jax.nn.sigmoid(gi[:, :hp] + gh[:, :hp])
            z = jax.nn.sigmoid(gi[:, hp:2 * hp] + gh[:, hp:2 * hp])
            n = jnp.tanh(gi[:, 2 * hp:] + r * (gh[:, 2 * hp:] + bhn[d]))
            h_new = (1.0 - z) * n + z * h
            out_ref[t_idx, :, d * hp:(d + 1) * hp] = h_new        # (8k,128m) dense store
            new_carry.append(h_new)
        return tuple(new_carry)

    h_fin = jax.lax.fori_loop(
        0, seq_len, step, tuple(h0_ref[d] for d in range(num_dirs)),
        unroll=unroll)
    for d in range(num_dirs):
        hlast_ref[d] = h_fin[d]


# ----------------------------------------------------------------------------
# Kernel wrappers
# ----------------------------------------------------------------------------
def _linear(x2d, w_t, b_row, *, apply_relu=False):
    """x2d: (N, K) f32, w_t: (K, Fp) bf16 (pre-transposed/padded), b_row: (1, Fp)."""
    N, K = x2d.shape
    Fp = w_t.shape[1]
    row_tile = 256 if N >= 256 else _round_up(max(N, _SUBLANE), _SUBLANE)
    n_pad = _round_up(N, row_tile)
    if n_pad != N:
        x2d = jnp.pad(x2d, ((0, n_pad - N), (0, 0)))
    y = pl.pallas_call(
        functools.partial(_linear_kernel, apply_relu=apply_relu),
        out_shape=jax.ShapeDtypeStruct((n_pad, Fp), jnp.float32),
        grid=(n_pad // row_tile,),
        in_specs=[pl.BlockSpec((row_tile, K), lambda i: (i, 0)),
                  pl.BlockSpec((K, Fp), lambda i: (0, 0)),
                  pl.BlockSpec((1, Fp), lambda i: (0, 0))],
        out_specs=pl.BlockSpec((row_tile, Fp), lambda i: (i, 0)),
        compiler_params=pltpu.CompilerParams(dimension_semantics=("parallel",)),
    )(x2d, w_t, b_row)
    return y if n_pad == N else y[:N]


def _gru_layer(gi, h0_pad, whh_t, b_hn, *, hp, num_dirs):
    """gi: (S, Bp, nd*3Hp) precomputed input projection. Returns (out, h_last)."""
    S, Bp, _ = gi.shape
    if S <= 32:
        unroll = True
    else:
        unroll = next(u for u in (8, 4, 2, 1) if S % u == 0)
    kernel = functools.partial(_gru_recurrence_kernel, seq_len=S, hp=hp,
                               num_dirs=num_dirs, unroll=unroll)
    # TODO(synk): for v7x (64 MiB VMEM) with very long sequences, stream GI/out
    # in S-chunks (hidden carried in VMEM scratch across an "arbitrary" grid
    # axis) and shard the two independent directions across the 2 TensorCores.
    out, h_last = pl.pallas_call(
        kernel,
        out_shape=(jax.ShapeDtypeStruct((S, Bp, num_dirs * hp), jnp.float32),
                   jax.ShapeDtypeStruct((num_dirs, Bp, hp), jnp.float32)),
        in_specs=[_VMEM] * 4,
        out_specs=(_VMEM, _VMEM),
    )(gi, h0_pad, whh_t, b_hn)
    return out, h_last


# ----------------------------------------------------------------------------
# Parameter preparation (pre-transpose / pad / cast ONCE, outside the hot path)
# ----------------------------------------------------------------------------
def _pad_gate_cols(w_t, H, Hp):
    """(K, 3H) -> (K, 3Hp) with gate g placed at columns [g*Hp, g*Hp+H)."""
    K = w_t.shape[0]
    out = jnp.zeros((K, 3 * Hp), w_t.dtype)
    for g in range(3):
        out = out.at[:, g * Hp:g * Hp + H].set(w_t[:, g * H:(g + 1) * H])
    return out


def _pad_gate_vec(b, H, Hp):
    out = jnp.zeros((3 * Hp,), b.dtype)
    for g in range(3):
        out = out.at[g * Hp:g * Hp + H].set(b[g * H:(g + 1) * H])
    return out


def _scatter_rows(w_t, H, Hp, num_dirs):
    """(nd*H, C) -> (nd*Hp, C); row segment d placed at rows [d*Hp, d*Hp+H)."""
    C = w_t.shape[1]
    out = jnp.zeros((num_dirs * Hp, C), w_t.dtype)
    for d in range(num_dirs):
        out = out.at[d * Hp:d * Hp + H, :].set(w_t[d * H:(d + 1) * H, :])
    return out


def prepare_params(params, *, n_dimensions, n_classes, hidden_size, num_layers,
                   is_bidirectional):
    H = hidden_size
    Hp = _round_up(H, _LANE)
    nd = 2 if is_bidirectional else 1
    F = n_classes * n_dimensions
    Fp = _round_up(F, _LANE)

    rz_mask = jnp.concatenate(
        [jnp.ones((2 * Hp,), jnp.float32), jnp.zeros((Hp,), jnp.float32)])

    prep = {"embedding": params["embedding"].astype(jnp.float32), "layers": []}
    for l in range(num_layers):
        wih_cols, bias_cols, whh_list, bhn_list = [], [], [], []
        for d in range(nd):
            w_ih, w_hh, b_ih, b_hh = params["gru"][l * nd + d]
            wih_t = w_ih.T                                   # (In, 3H)
            if l > 0:
                # layer input is the lane-padded concat of direction outputs
                wih_t = _scatter_rows(wih_t, H, Hp, nd)      # (nd*Hp, 3H)
            wih_cols.append(_pad_gate_cols(wih_t, H, Hp))    # (In_pad, 3Hp)

            b_ih_pad = _pad_gate_vec(b_ih, H, Hp)
            b_hh_pad = _pad_gate_vec(b_hh, H, Hp)
            # fold b_ih fully and b_hr/b_hz (NOT b_hn) into the projection bias
            bias_cols.append(b_ih_pad + b_hh_pad * rz_mask)

            whh_t = _pad_gate_cols(w_hh.T, H, Hp)            # (H, 3Hp)
            whh_t = jnp.pad(whh_t, ((0, Hp - H), (0, 0)))    # (Hp, 3Hp)
            whh_list.append(whh_t)

            bhn_list.append(
                jnp.zeros((Hp,), jnp.float32).at[:H].set(b_hh[2 * H:3 * H]))

        prep["layers"].append({
            "wih_t": jnp.concatenate(wih_cols, axis=1).astype(jnp.bfloat16),    # (In_pad, nd*3Hp)
            "b_proj": jnp.concatenate(bias_cols)[None, :].astype(jnp.float32),  # (1, nd*3Hp)
            "whh_t": jnp.stack(whh_list, 0).astype(jnp.bfloat16),               # (nd, Hp, 3Hp)
            "b_hn": jnp.stack(bhn_list, 0)[:, None, :].astype(jnp.float32),     # (nd, 1, Hp)
        })

    out_w_t = _scatter_rows(params["out_w"].T, H, Hp, nd)    # (nd*Hp, F)
    out_w_t = jnp.pad(out_w_t, ((0, 0), (0, Fp - F)))
    prep["out_w_t"] = out_w_t.astype(jnp.bfloat16)
    prep["out_b"] = jnp.pad(params["out_b"], (0, Fp - F))[None, :].astype(jnp.float32)
    return prep


# ----------------------------------------------------------------------------
# GraphDecoderRNN forward
# ----------------------------------------------------------------------------
def graph_decoder_rnn_forward(prep, x_idx, h0, *, n_dimensions, n_classes,
                              hidden_size, num_layers, is_bidirectional):
    B, S, D = x_idx.shape
    assert D == n_dimensions
    nd = 2 if is_bidirectional else 1
    H = hidden_size
    Hp = _round_up(H, _LANE)
    Bp = _round_up(B, _SUBLANE)          # sublane-aligned batch inside kernels
    F = n_classes * n_dimensions

    # Embedding lookup (gather) + view(B, S, D*E) -- plain-JAX glue.
    emb = jnp.take(prep["embedding"], x_idx, axis=0)          # (B, S, D, E)
    emb = emb.reshape(B, S, -1).astype(jnp.float32)
    layer_in = jnp.transpose(emb, (1, 0, 2))                  # (S, B, In) time-major
    if Bp != B:
        layer_in = jnp.pad(layer_in, ((0, 0), (0, Bp - B), (0, 0)))

    h_last_list = []
    for l, lyr in enumerate(prep["layers"]):
        In = layer_in.shape[-1]
        # Hoisted input projection over the whole sequence (one big matmul);
        # layer-0 ReLU is fused into it.
        gi_flat = _linear(layer_in.reshape(S * Bp, In), lyr["wih_t"],
                          lyr["b_proj"], apply_relu=(l == 0))
        gi = gi_flat.reshape(S, Bp, nd * 3 * Hp)

        h0_l = h0[l * nd:(l + 1) * nd].astype(jnp.float32)    # (nd, B, H)
        h0_pad = jnp.pad(h0_l, ((0, 0), (0, Bp - B), (0, Hp - H)))

        out, h_last = _gru_layer(gi, h0_pad, lyr["whh_t"], lyr["b_hn"],
                                 hp=Hp, num_dirs=nd)
        layer_in = out                                        # (S, Bp, nd*Hp)
        h_last_list.append(h_last[:, :B, :H])

    hidden_next = jnp.concatenate(h_last_list, axis=0)        # (L*nd, B, H)

    # Output projection in time-major (no pre-matmul transpose); reorder in the
    # final reshape instead.
    y = _linear(layer_in.reshape(S * Bp, nd * Hp), prep["out_w_t"], prep["out_b"])
    y = y.reshape(S, Bp, -1)[:, :B, :F].reshape(S, B, n_dimensions, n_classes)
    output = jnp.transpose(y, (1, 0, 2, 3))                   # (B, S, D, C)
    return output, hidden_next


# ----------------------------------------------------------------------------
# Deterministic parameter construction (matches nn.Module shapes)
# ----------------------------------------------------------------------------
def make_params(key, *, n_dimensions, n_classes, hidden_size, num_layers,
                embedding_size, is_bidirectional):
    num_dirs = 2 if is_bidirectional else 1
    keys = iter(jax.random.split(key, 4 + 4 * num_layers * num_dirs))

    params = {}
    params["embedding"] = 0.1 * jax.random.normal(
        next(keys), (n_classes, embedding_size), jnp.float32)

    gru = []
    for l in range(num_layers):
        in_size = embedding_size * n_dimensions if l == 0 else hidden_size * num_dirs
        for _ in range(num_dirs):
            w_ih = 0.1 * jax.random.normal(next(keys), (3 * hidden_size, in_size), jnp.float32)
            w_hh = 0.1 * jax.random.normal(next(keys), (3 * hidden_size, hidden_size), jnp.float32)
            b_ih = 0.1 * jax.random.normal(next(keys), (3 * hidden_size,), jnp.float32)
            b_hh = 0.1 * jax.random.normal(next(keys), (3 * hidden_size,), jnp.float32)
            gru.append((w_ih, w_hh, b_ih, b_hh))
    params["gru"] = gru

    params["out_w"] = 0.1 * jax.random.normal(
        next(keys), (n_classes * n_dimensions, hidden_size * num_dirs), jnp.float32)
    params["out_b"] = 0.1 * jax.random.normal(
        next(keys), (n_classes * n_dimensions,), jnp.float32)
    return params


# ----------------------------------------------------------------------------
# Pure-JAX reference (mirrors the PyTorch module, f32) for correctness check
# ----------------------------------------------------------------------------
def _reference_forward(params, x_idx, h0, *, n_dimensions, hidden_size,
                       num_layers, is_bidirectional):
    nd = 2 if is_bidirectional else 1
    H = hidden_size
    B, S, _ = x_idx.shape
    emb = jnp.take(params["embedding"], x_idx, axis=0).reshape(B, S, -1)
    layer_in = jax.nn.relu(emb)                                # (B, S, In)
    h_next = []
    for l in range(num_layers):
        dir_outs = []
        for d in range(nd):
            w_ih, w_hh, b_ih, b_hh = params["gru"][l * nd + d]
            h = h0[l * nd + d]                                 # (B, H)
            ts = range(S) if d == 0 else range(S - 1, -1, -1)
            outs = [None] * S
            for t in ts:
                xt = layer_in[:, t, :]
                gi = xt @ w_ih.T + b_ih
                gh = h @ w_hh.T + b_hh
                r = jax.nn.sigmoid(gi[:, :H] + gh[:, :H])
                z = jax.nn.sigmoid(gi[:, H:2 * H] + gh[:, H:2 * H])
                n = jnp.tanh(gi[:, 2 * H:] + r * gh[:, 2 * H:])
                h = (1.0 - z) * n + z * h
                outs[t] = h
            dir_outs.append(jnp.stack(outs, axis=1))           # (B, S, H)
            h_next.append(h)
        layer_in = jnp.concatenate(dir_outs, axis=-1)          # (B, S, nd*H)
    hidden_next = jnp.stack(h_next, axis=0)
    y = layer_in @ params["out_w"].T + params["out_b"]
    return y.reshape(B, S, n_dimensions, -1), hidden_next


# ----------------------------------------------------------------------------
# Demo
# ----------------------------------------------------------------------------
if __name__ == "__main__":
    n_dimensions = 3
    n_classes = 8
    hidden_size = 32
    num_layers = 2
    embedding_size = 8
    is_bidirectional = True
    num_dirs = 2 if is_bidirectional else 1

    B, S = 2, 8

    key = jax.random.PRNGKey(0)
    k_params, k_x, k_h = jax.random.split(key, 3)

    params = make_params(
        k_params, n_dimensions=n_dimensions, n_classes=n_classes,
        hidden_size=hidden_size, num_layers=num_layers,
        embedding_size=embedding_size, is_bidirectional=is_bidirectional)

    # Pre-transpose / pad / bf16-cast weights once (outside the hot path).
    prep = prepare_params(
        params, n_dimensions=n_dimensions, n_classes=n_classes,
        hidden_size=hidden_size, num_layers=num_layers,
        is_bidirectional=is_bidirectional)

    x = jax.random.randint(k_x, (B, S, n_dimensions), 0, n_classes, dtype=jnp.int32)
    h = 0.1 * jax.random.normal(k_h, (num_layers * num_dirs, B, hidden_size), jnp.float32)

    fwd = jax.jit(functools.partial(
        graph_decoder_rnn_forward,
        n_dimensions=n_dimensions, n_classes=n_classes, hidden_size=hidden_size,
        num_layers=num_layers, is_bidirectional=is_bidirectional))

    output, hidden_next = fwd(prep, x, h)
    jax.block_until_ready((output, hidden_next))

    assert output.shape == (B, S, n_dimensions, n_classes)
    assert hidden_next.shape == (num_layers * num_dirs, B, hidden_size)

    # Numerical check vs f32 reference (bf16 weights -> loose tolerance).
    ref_out, ref_hid = _reference_forward(
        params, x, h, n_dimensions=n_dimensions, hidden_size=hidden_size,
        num_layers=num_layers, is_bidirectional=is_bidirectional)
    np.testing.assert_allclose(np.asarray(output), np.asarray(ref_out),
                               atol=5e-2, rtol=5e-2)
    np.testing.assert_allclose(np.asarray(hidden_next), np.asarray(ref_hid),
                               atol=5e-2, rtol=5e-2)

    print("KERNEL_OK")
</pallas_src>

<mosaic_0001>
module attributes {stable_mosaic.version = 11 : i64} {
  func.func @_linear_kernel(%arg0: i32, %arg1: memref<64x24xf32, #tpu.memory_space<vmem>>, %arg2: memref<24x768xbf16, #tpu.memory_space<vmem>>, %arg3: memref<1x768xf32, #tpu.memory_space<vmem>>, %arg4: memref<64x768xf32, #tpu.memory_space<vmem>>) attributes {dimension_semantics = [#tpu.dimension_semantics<parallel>], iteration_bounds = array<i64: 1>, scalar_prefetch = 0 : i64, scratch_operands = 0 : i64, tpu.core_type = #tpu.core_type<tc>, window_params = [{transform_indices = @transform_0, window_bounds = array<i64: 64, 24>}, {pipeline_mode = #tpu.pipeline_mode<synchronous>, transform_indices = @transform_1, window_bounds = array<i64: 24, 768>}, {pipeline_mode = #tpu.pipeline_mode<synchronous>, transform_indices = @transform_2, window_bounds = array<i64: 1, 768>}, {transform_indices = @transform_3, window_bounds = array<i64: 64, 768>}]} {
    %c0 = arith.constant 0 : index
    %c0_0 = arith.constant 0 : index
    %0 = vector.load %arg1[%c0, %c0_0] : memref<64x24xf32, #tpu.memory_space<vmem>>, vector<64x24xf32>
    %cst = arith.constant 0.000000e+00 : f32
    %1 = vector.broadcast %cst : f32 to vector<64x24xf32>
    %2 = arith.maximumf %0, %1 : vector<64x24xf32>
    %3 = arith.truncf %2 : vector<64x24xf32> to vector<64x24xbf16>
    %c0_1 = arith.constant 0 : index
    %c0_2 = arith.constant 0 : index
    %4 = vector.load %arg2[%c0_1, %c0_2] : memref<24x768xbf16, #tpu.memory_space<vmem>>, vector<24x768xbf16>
    %cst_3 = arith.constant dense<0.000000e+00> : vector<64x768xf32>
    %5 = tpu.matmul %3, %4, %cst_3 {dimension_numbers = #tpu.dot_dimension_numbers<[1], [0], [0], [1], [0, 0, 1, 1], [], []>} : vector<64x24xbf16>, vector<24x768xbf16>, vector<64x768xf32> -> vector<64x768xf32>
    %c0_4 = arith.constant 0 : index
    %c0_5 = arith.constant 0 : index
    %6 = vector.load %arg3[%c0_4, %c0_5] : memref<1x768xf32, #tpu.memory_space<vmem>>, vector<1x768xf32>
    %7 = vector.broadcast %6 : vector<1x768xf32> to vector<64x768xf32>
    %8 = arith.addf %5, %7 : vector<64x768xf32>
    %c0_6 = arith.constant 0 : index
    %c0_7 = arith.constant 0 : index
    %9 = vector.load %arg4[%c0_6, %c0_7] : memref<64x768xf32, #tpu.memory_space<vmem>>, vector<64x768xf32>
    tpu.vector_store %arg4[%c0_6, %c0_7], %8 {strides = array<i32>} : memref<64x768xf32, #tpu.memory_space<vmem>>, vector<64x768xf32>,
    return
  }
  func.func @transform_0(%arg0: i32) -> (i32, i32) {
    %c0_i32 = arith.constant 0 : i32
    %c0_i32_0 = arith.constant 0 : i32
    return %arg0, %c0_i32 : i32, i32
  }
  func.func @transform_1(%arg0: i32) -> (i32, i32) {
    %c0_i32 = arith.constant 0 : i32
    %c0_i32_0 = arith.constant 0 : i32
    %c0_i32_1 = arith.constant 0 : i32
    return %c0_i32, %c0_i32_0 : i32, i32
  }
  func.func @transform_2(%arg0: i32) -> (i32, i32) {
    %c0_i32 = arith.constant 0 : i32
    %c0_i32_0 = arith.constant 0 : i32
    %c0_i32_1 = arith.constant 0 : i32
    return %c0_i32, %c0_i32_0 : i32, i32
  }
  func.func @transform_3(%arg0: i32) -> (i32, i32) {
    %c0_i32 = arith.constant 0 : i32
    %c0_i32_0 = arith.constant 0 : i32
    return %arg0, %c0_i32 : i32, i32
  }
}

module attributes {stable_mosaic.version = 11 : i64} {
  func.func @_linear_kernel(%arg0: i32, %arg1: memref<64x256xf32, #tpu.memory_space<vmem>>, %arg2: memref<256x768xbf16, #tpu.memory_space<vmem>>, %arg3: memref<1x768xf32, #tpu.memory_space<vmem>>, %arg4: memref<64x768xf32, #tpu.memory_space<vmem>>) attributes {dimension_semantics = [#tpu.dimension_semantics<parallel>], iteration_bounds = array<i64: 1>, scalar_prefetch = 0 : i64, scratch_operands = 0 : i64, tpu.core_type = #tpu.core_type<tc>, window_params = [{transform_indices = @transform_0, window_bounds = array<i64: 64, 256>}, {pipeline_mode = #tpu.pipeline_mode<synchronous>, transform_indices = @transform_1, window_bounds = array<i64: 256, 768>}, {pipeline_mode = #tpu.pipeline_mode<synchronous>, transform_indices = @transform_2, window_bounds = array<i64: 1, 768>}, {transform_indices = @transform_3, window_bounds = array<i64: 64, 768>}]} {
    %c0 = arith.constant 0 : index
    %c0_0 = arith.constant 0 : index
    %0 = vector.load %arg1[%c0, %c0_0] : memref<64x256xf32, #tpu.memory_space<vmem>>, vector<64x256xf32>
    %1 = arith.truncf %0 : vector<64x256xf32> to vector<64x256xbf16>
    %c0_1 = arith.constant 0 : index
    %c0_2 = arith.constant 0 : index
    %2 = vector.load %arg2[%c0_1, %c0_2] : memref<256x768xbf16, #tpu.memory_space<vmem>>, vector<256x768xbf16>
    %cst = arith.constant dense<0.000000e+00> : vector<64x768xf32>
    %3 = tpu.matmul %1, %2, %cst {dimension_numbers = #tpu.dot_dimension_numbers<[1], [0], [0], [1], [0, 0, 1, 1], [], []>} : vector<64x256xbf16>, vector<256x768xbf16>, vector<64x768xf32> -> vector<64x768xf32>
    %c0_3 = arith.constant 0 : index
    %c0_4 = arith.constant 0 : index
    %4 = vector.load %arg3[%c0_3, %c0_4] : memref<1x768xf32, #tpu.memory_space<vmem>>, vector<1x768xf32>
    %5 = vector.broadcast %4 : vector<1x768xf32> to vector<64x768xf32>
    %6 = arith.addf %3, %5 : vector<64x768xf32>
    %c0_5 = arith.constant 0 : index
    %c0_6 = arith.constant 0 : index
    %7 = vector.load %arg4[%c0_5, %c0_6] : memref<64x768xf32, #tpu.memory_space<vmem>>, vector<64x768xf32>
    tpu.vector_store %arg4[%c0_5, %c0_6], %6 {strides = array<i32>} : memref<64x768xf32, #tpu.memory_space<vmem>>, vector<64x768xf32>,
    return
  }
  func.func @transform_0(%arg0: i32) -> (i32, i32) {
    %c0_i32 = arith.constant 0 : i32
    %c0_i32_0 = arith.constant 0 : i32
    return %arg0, %c0_i32 : i32, i32
  }
  func.func @transform_1(%arg0: i32) -> (i32, i32) {
    %c0_i32 = arith.constant 0 : i32
    %c0_i32_0 = arith.constant 0 : i32
    %c0_i32_1 = arith.constant 0 : i32
    return %c0_i32, %c0_i32_0 : i32, i32
  }
  func.func @transform_2(%arg0: i32) -> (i32, i32) {
    %c0_i32 = arith.constant 0 : i32
    %c0_i32_0 = arith.constant 0 : i32
    %c0_i32_1 = arith.constant 0 : i32
    return %c0_i32, %c0_i32_0 : i32, i32
  }
  func.func @transform_3(%arg0: i32) -> (i32, i32) {
    %c0_i32 = arith.constant 0 : i32
    %c0_i32_0 = arith.constant 0 : i32
    return %arg0, %c0_i32 : i32, i32
  }
}

module attributes {stable_mosaic.version = 11 : i64} {
  func.func @_gru_recurrence_kernel(%arg0: memref<8x8x768xf32, #tpu.memory_space<vmem>>, %arg1: memref<2x8x128xf32, #tpu.memory_space<vmem>>, %arg2: memref<2x128x384xbf16, #tpu.memory_space<vmem>>, %arg3: memref<2x1x128xf32, #tpu.memory_space<vmem>>, %arg4: memref<8x8x256xf32, #tpu.memory_space<vmem>>, %arg5: memref<2x8x128xf32, #tpu.memory_space<vmem>>) attributes {dimension_semantics = [], scalar_prefetch = 0 : i64, scratch_operands = 0 : i64, tpu.core_type = #tpu.core_type<tc>} {
    %c0 = arith.constant 0 : index
    %c0_0 = arith.constant 0 : index
    %c0_1 = arith.constant 0 : index
    %0 = vector.load %arg3[%c0, %c0_0, %c0_1] : memref<2x1x128xf32, #tpu.memory_space<vmem>>, vector<1x1x128xf32>
    %1 = vector.shape_cast %0 : vector<1x1x128xf32> to vector<1x128xf32>
    %c1 = arith.constant 1 : index
    %c0_2 = arith.constant 0 : index
    %c0_3 = arith.constant 0 : index
    %2 = vector.load %arg3[%c1, %c0_2, %c0_3] : memref<2x1x128xf32, #tpu.memory_space<vmem>>, vector<1x1x128xf32>
    %3 = vector.shape_cast %2 : vector<1x1x128xf32> to vector<1x128xf32>
    %c0_4 = arith.constant 0 : index
    %c0_5 = arith.constant 0 : index
    %c0_6 = arith.constant 0 : index
    %4 = vector.load %arg2[%c0_4, %c0_5, %c0_6] : memref<2x128x384xbf16, #tpu.memory_space<vmem>>, vector<1x128x384xbf16>
    %5 = vector.shape_cast %4 : vector<1x128x384xbf16> to vector<128x384xbf16>
    %c1_7 = arith.constant 1 : index
    %c0_8 = arith.constant 0 : index
    %c0_9 = arith.constant 0 : index
    %6 = vector.load %arg2[%c1_7, %c0_8, %c0_9] : memref<2x128x384xbf16, #tpu.memory_space<vmem>>, vector<1x128x384xbf16>
    %7 = vector.shape_cast %6 : vector<1x128x384xbf16> to vector<128x384xbf16>
    %c0_10 = arith.constant 0 : index
    %c0_11 = arith.constant 0 : index
    %c0_12 = arith.constant 0 : index
    %8 = vector.load %arg1[%c0_10, %c0_11, %c0_12] : memref<2x8x128xf32, #tpu.memory_space<vmem>>, vector<1x8x128xf32>
    %9 = vector.shape_cast %8 : vector<1x8x128xf32> to vector<8x128xf32>
    %c1_13 = arith.constant 1 : index
    %c0_14 = arith.constant 0 : index
    %c0_15 = arith.constant 0 : index
    %10 = vector.load %arg1[%c1_13, %c0_14, %c0_15] : memref<2x8x128xf32, #tpu.memory_space<vmem>>, vector<1x8x128xf32>
    %11 = vector.shape_cast %10 : vector<1x8x128xf32> to vector<8x128xf32>
    %c0_i32 = arith.constant 0 : i32
    %12 = arith.index_cast %c0_i32 : i32 to index
    %c0_16 = arith.constant 0 : index
    %c0_17 = arith.constant 0 : index
    %13 = vector.load %arg0[%12, %c0_16, %c0_17] : memref<8x8x768xf32, #tpu.memory_space<vmem>>, vector<1x8x384xf32>
    %14 = vector.shape_cast %13 : vector<1x8x384xf32> to vector<8x384xf32>
    %15 = arith.truncf %9 : vector<8x128xf32> to vector<8x128xbf16>
    %cst = arith.constant dense<0.000000e+00> : vector<8x384xf32>
    %16 = tpu.matmul %15, %5, %cst {dimension_numbers = #tpu.dot_dimension_numbers<[1], [0], [0], [1], [0, 0, 1, 1], [], []>} : vector<8x128xbf16>, vector<128x384xbf16>, vector<8x384xf32> -> vector<8x384xf32>
    %17 = vector.extract_strided_slice %14 {offsets = [0, 0], sizes = [8, 128], strides = [1, 1]} : vector<8x384xf32> to vector<8x128xf32>
    %18 = vector.extract_strided_slice %16 {offsets = [0, 0], sizes = [8, 128], strides = [1, 1]} : vector<8x384xf32> to vector<8x128xf32>
    %19 = arith.addf %17, %18 : vector<8x128xf32>
    %20 = arith.negf %19 : vector<8x128xf32>
    %21 = math.exp %20 : vector<8x128xf32>
    %cst_18 = arith.constant 1.000000e+00 : f32
    %22 = vector.broadcast %cst_18 : f32 to vector<8x128xf32>
    %23 = arith.addf %22, %21 : vector<8x128xf32>
    %24 = arith.divf %22, %23 : vector<8x128xf32>
    %25 = vector.extract_strided_slice %14 {offsets = [0, 128], sizes = [8, 128], strides = [1, 1]} : vector<8x384xf32> to vector<8x128xf32>
    %26 = vector.extract_strided_slice %16 {offsets = [0, 128], sizes = [8, 128], strides = [1, 1]} : vector<8x384xf32> to vector<8x128xf32>
    %27 = arith.addf %25, %26 : vector<8x128xf32>
    %28 = arith.negf %27 : vector<8x128xf32>
    %29 = math.exp %28 : vector<8x128xf32>
    %cst_19 = arith.constant 1.000000e+00 : f32
    %30 = vector.broadcast %cst_19 : f32 to vector<8x128xf32>
    %31 = arith.addf %30, %29 : vector<8x128xf32>
    %32 = arith.divf %30, %31 : vector<8x128xf32>
    %33 = vector.extract_strided_slice %14 {offsets = [0, 256], sizes = [8, 128], strides = [1, 1]} : vector<8x384xf32> to vector<8x128xf32>
    %34 = vector.extract_strided_slice %16 {offsets = [0, 256], sizes = [8, 128], strides = [1, 1]} : vector<8x384xf32> to vector<8x128xf32>
    %35 = vector.broadcast %1 : vector<1x128xf32> to vector<8x128xf32>
    %36 = arith.addf %34, %35 : vector<8x128xf32>
    %37 = arith.mulf %24, %36 : vector<8x128xf32>
    %38 = arith.addf %33, %37 : vector<8x128xf32>
    %39 = math.tanh %38 : vector<8x128xf32>
    %cst_20 = arith.constant 1.000000e+00 : f32
    %40 = vector.broadcast %cst_20 : f32 to vector<8x128xf32>
    %41 = arith.subf %40, %32 : vector<8x128xf32>
    %42 = arith.mulf %41, %39 : vector<8x128xf32>
    %43 = arith.mulf %32, %9 : vector<8x128xf32>
    %44 = arith.addf %42, %43 : vector<8x128xf32>
    %45 = arith.index_cast %c0_i32 : i32 to index
    %c0_21 = arith.constant 0 : index
    %c0_22 = arith.constant 0 : index
    %46 = vector.load %arg4[%45, %c0_21, %c0_22] : memref<8x8x256xf32, #tpu.memory_space<vmem>>, vector<1x8x128xf32>
    %47 = vector.shape_cast %46 : vector<1x8x128xf32> to vector<8x128xf32>
    %48 = vector.shape_cast %44 : vector<8x128xf32> to vector<1x8x128xf32>
    tpu.vector_store %arg4[%45, %c0_21, %c0_22], %48 {strides = array<i32>} : memref<8x8x256xf32, #tpu.memory_space<vmem>>, vector<1x8x128xf32>,
    %c7_i32 = arith.constant 7 : i32
    %49 = arith.subi %c7_i32, %c0_i32 : i32
    %50 = arith.index_cast %49 : i32 to index
    %c0_23 = arith.constant 0 : index
    %c384 = arith.constant 384 : index
    %51 = vector.load %arg0[%50, %c0_23, %c384] : memref<8x8x768xf32, #tpu.memory_space<vmem>>, vector<1x8x384xf32>
    %52 = vector.shape_cast %51 : vector<1x8x384xf32> to vector<8x384xf32>
    %53 = arith.truncf %11 : vector<8x128xf32> to vector<8x128xbf16>
    %cst_24 = arith.constant dense<0.000000e+00> : vector<8x384xf32>
    %54 = tpu.matmul %53, %7, %cst_24 {dimension_numbers = #tpu.dot_dimension_numbers<[1], [0], [0], [1], [0, 0, 1, 1], [], []>} : vector<8x128xbf16>, vector<128x384xbf16>, vector<8x384xf32> -> vector<8x384xf32>
    %55 = vector.extract_strided_slice %52 {offsets = [0, 0], sizes = [8, 128], strides = [1, 1]} : vector<8x384xf32> to vector<8x128xf32>
    %56 = vector.extract_strided_slice %54 {offsets = [0, 0], sizes = [8, 128], strides = [1, 1]} : vector<8x384xf32> to vector<8x128xf32>
    %57 = arith.addf %55, %56 : vector<8x128xf32>
    %58 = arith.negf %57 : vector<8x128xf32>
    %59 = math.exp %58 : vector<8x128xf32>
    %cst_25 = arith.constant 1.000000e+00 : f32
    %60 = vector.broadcast %cst_25 : f32 to vector<8x128xf32>
    %61 = arith.addf %60, %59 : vector<8x128xf32>
    %62 = arith.divf %60, %61 : vector<8x128xf32>
    %63 = vector.extract_strided_slice %52 {offsets = [0, 128], sizes = [8, 128], strides = [1, 1]} : vector<8x384xf32> to vector<8x128xf32>
    %64 = vector.extract_strided_slice %54 {offsets = [0, 128], sizes = [8, 128], strides = [1, 1]} : vector<8x384xf32> to vector<8x128xf32>
    %65 = arith.addf %63, %64 : vector<8x128xf32>
    %66 = arith.negf %65 : vector<8x128xf32>
    %67 = math.exp %66 : vector<8x128xf32>
    %cst_26 = arith.constant 1.000000e+00 : f32
    %68 = vector.broadcast %cst_26 : f32 to vector<8x128xf32>
    %69 = arith.addf %68, %67 : vector<8x128xf32>
    %70 = arith.divf %68, %69 : vector<8x128xf32>
    %71 = vector.extract_strided_slice %52 {offsets = [0, 256], sizes = [8, 128], strides = [1, 1]} : vector<8x384xf32> to vector<8x128xf32>
    %72 = vector.extract_strided_slice %54 {offsets = [0, 256], sizes = [8, 128], strides = [1, 1]} : vector<8x384xf32> to vector<8x128xf32>
    %73 = vector.broadcast %3 : vector<1x128xf32> to vector<8x128xf32>
    %74 = arith.addf %72, %73 : vector<8x128xf32>
    %75 = arith.mulf %62, %74 : vector<8x128xf32>
    %76 = arith.addf %71, %75 : vector<8x128xf32>
    %77 = math.tanh %76 : vector<8x128xf32>
    %cst_27 = arith.constant 1.000000e+00 : f32
    %78 = vector.broadcast %cst_27 : f32 to vector<8x128xf32>
    %79 = arith.subf %78, %70 : vector<8x128xf32>
    %80 = arith.mulf %79, %77 : vector<8x128xf32>
    %81 = arith.mulf %70, %11 : vector<8x128xf32>
    %82 = arith.addf %80, %81 : vector<8x128xf32>
    %83 = arith.index_cast %49 : i32 to index
    %c0_28 = arith.constant 0 : index
    %c128 = arith.constant 128 : index
    %84 = vector.load %arg4[%83, %c0_28, %c128] : memref<8x8x256xf32, #tpu.memory_space<vmem>>, vector<1x8x128xf32>
    %85 = vector.shape_cast %84 : vector<1x8x128xf32> to vector<8x128xf32>
    %86 = vector.shape_cast %82 : vector<8x128xf32> to vector<1x8x128xf32>
    tpu.vector_store %arg4[%83, %c0_28, %c128], %86 {strides = array<i32>} : memref<8x8x256xf32, #tpu.memory_space<vmem>>, vector<1x8x128xf32>,
    %c1_i32 = arith.constant 1 : i32
    %87 = arith.index_cast %c1_i32 : i32 to index
    %c0_29 = arith.constant 0 : index
    %c0_30 = arith.constant 0 : index
    %88 = vector.load %arg0[%87, %c0_29, %c0_30] : memref<8x8x768xf32, #tpu.memory_space<vmem>>, vector<1x8x384xf32>
    %89 = vector.shape_cast %88 : vector<1x8x384xf32> to vector<8x384xf32>
    %90 = arith.truncf %44 : vector<8x128xf32> to vector<8x128xbf16>
    %cst_31 = arith.constant dense<0.000000e+00> : vector<8x384xf32>
    %91 = tpu.matmul %90, %5, %cst_31 {dimension_numbers = #tpu.dot_dimension_numbers<[1], [0], [0], [1], [0, 0, 1, 1], [], []>} : vector<8x128xbf16>, vector<128x384xbf16>, vector<8x384xf32> -> vector<8x384xf32>
    %92 = vector.extract_strided_slice %89 {offsets = [0, 0], sizes = [8, 128], strides = [1, 1]} : vector<8x384xf32> to vector<8x128xf32>
    %93 = vector.extract_strided_slice %91 {offsets = [0, 0], sizes = [8, 128], strides = [1, 1]} : vector<8x384xf32> to vector<8x128xf32>
    %94 = arith.addf %92, %93 : vector<8x128xf32>
    %95 = arith.negf %94 : vector<8x128xf32>
    %96 = math.exp %95 : vector<8x128xf32>
    %cst_32 = arith.constant 1.000000e+00 : f32
    %97 = vector.broadcast %cst_32 : f32 to vector<8x128xf32>
    %98 = arith.addf %97, %96 : vector<8x128xf32>
    %99 = arith.divf %97, %98 : vector<8x128xf32>
    %100 = vector.extract_strided_slice %89 {offsets = [0, 128], sizes = [8, 128], strides = [1, 1]} : vector<8x384xf32> to vector<8x128xf32>
    %101 = vector.extract_strided_slice %91 {offsets = [0, 128], sizes = [8, 128], strides = [1, 1]} : vector<8x384xf32> to vector<8x128xf32>
    %102 = arith.addf %100, %101 : vector<8x128xf32>
    %103 = arith.negf %102 : vector<8x128xf32>
    %104 = math.exp %103 : vector<8x128xf32>
    %cst_33 = arith.constant 1.000000e+00 : f32
    %105 = vector.broadcast %cst_33 : f32 to vector<8x128xf32>
    %106 = arith.addf %105, %104 : vector<8x128xf32>
    %107 = arith.divf %105, %106 : vector<8x128xf32>
    %108 = vector.extract_strided_slice %89 {offsets = [0, 256], sizes = [8, 128], strides = [1, 1]} : vector<8x384xf32> to vector<8x128xf32>
    %109 = vector.extract_strided_slice %91 {offsets = [0, 256], sizes = [8, 128], strides = [1, 1]} : vector<8x384xf32> to vector<8x128xf32>
    %110 = vector.broadcast %1 : vector<1x128xf32> to vector<8x128xf32>
    %111 = arith.addf %109, %110 : vector<8x128xf32>
    %112 = arith.mulf %99, %111 : vector<8x128xf32>
    %113 = arith.addf %108, %112 : vector<8x128xf32>
    %114 = math.tanh %113 : vector<8x128xf32>
    %cst_34 = arith.constant 1.000000e+00 : f32
    %115 = vector.broadcast %cst_34 : f32 to vector<8x128xf32>
    %116 = arith.subf %115, %107 : vector<8x128xf32>
    %117 = arith.mulf %116, %114 : vector<8x128xf32>
    %118 = arith.mulf %107, %44 : vector<8x128xf32>
    %119 = arith.addf %117, %118 : vector<8x128xf32>
    %120 = arith.index_cast %c1_i32 : i32 to index
    %c0_35 = arith.constant 0 : index
    %c0_36 = arith.constant 0 : index
    %121 = vector.load %arg4[%120, %c0_35, %c0_36] : memref<8x8x256xf32, #tpu.memory_space<vmem>>, vector<1x8x128xf32>
    %122 = vector.shape_cast %121 : vector<1x8x128xf32> to vector<8x128xf32>
    %123 = vector.shape_cast %119 : vector<8x128xf32> to vector<1x8x128xf32>
    tpu.vector_store %arg4[%120, %c0_35, %c0_36], %123 {strides = array<i32>} : memref<8x8x256xf32, #tpu.memory_space<vmem>>, vector<1x8x128xf32>,
    %c7_i32_37 = arith.constant 7 : i32
    %124 = arith.subi %c7_i32_37, %c1_i32 : i32
    %125 = arith.index_cast %124 : i32 to index
    %c0_38 = arith.constant 0 : index
    %c384_39 = arith.constant 384 : index
    %126 = vector.load %arg0[%125, %c0_38, %c384_39] : memref<8x8x768xf32, #tpu.memory_space<vmem>>, vector<1x8x384xf32>
    %127 = vector.shape_cast %126 : vector<1x8x384xf32> to vector<8x384xf32>
    %128 = arith.truncf %82 : vector<8x128xf32> to vector<8x128xbf16>
    %cst_40 = arith.constant dense<0.000000e+00> : vector<8x384xf32>
    %129 = tpu.matmul %128, %7, %cst_40 {dimension_numbers = #tpu.dot_dimension_numbers<[1], [0], [0], [1], [0, 0, 1, 1], [], []>} : vector<8x128xbf16>, vector<128x384xbf16>, vector<8x384xf32> -> vector<8x384xf32>
    %130 = vector.extract_strided_slice %127 {offsets = [0, 0], sizes = [8, 128], strides = [1, 1]} : vector<8x384xf32> to vector<8x128xf32>
    %131 = vector.extract_strided_slice %129 {offsets = [0, 0], sizes = [8, 128], strides = [1, 1]} : vector<8x384xf32> to vector<8x128xf32>
    %132 = arith.addf %130, %131 : vector<8x128xf32>
    %133 = arith.negf %132 : vector<8x128xf32>
    %134 = math.exp %133 : vector<8x128xf32>
    %cst_41 = arith.constant 1.000000e+00 : f32
    %135 = vector.broadcast %cst_41 : f32 to vector<8x128xf32>
    %136 = arith.addf %135, %134 : vector<8x128xf32>
    %137 = arith.divf %135, %136 : vector<8x128xf32>
    %138 = vector.extract_strided_slice %127 {offsets = [0, 128], sizes = [8, 128], strides = [1, 1]} : vector<8x384xf32> to vector<8x128xf32>
    %139 = vector.extract_strided_slice %129 {offsets = [0, 128], sizes = [8, 128], strides = [1, 1]} : vector<8x384xf32> to vector<8x128xf32>
    %140 = arith.addf %138, %139 : vector<8x128xf32>
    %141 = arith.negf %140 : vector<8x128xf32>
    %142 = math.exp %141 : vector<8x128xf32>
    %cst_42 = arith.constant 1.000000e+00 : f32
    %143 = vector.broadcast %cst_42 : f32 to vector<8x128xf32>
    %144 = arith.addf %143, %142 : vector<8x128xf32>
    %145 = arith.divf %143, %144 : vector<8x128xf32>
    %146 = vector.extract_strided_slice %127 {offsets = [0, 256], sizes = [8, 128], strides = [1, 1]} : vector<8x384xf32> to vector<8x128xf32>
    %147 = vector.extract_strided_slice %129 {offsets = [0, 256], sizes = [8, 128], strides = [1, 1]} : vector<8x384xf32> to vector<8x128xf32>
    %148 = vector.broadcast %3 : vector<1x128xf32> to vector<8x128xf32>
    %149 = arith.addf %147, %148 : vector<8x128xf32>
    %150 = arith.mulf %137, %149 : vector<8x128xf32>
    %151 = arith.addf %146, %150 : vector<8x128xf32>
    %152 = math.tanh %151 : vector<8x128xf32>
    %cst_43 = arith.constant 1.000000e+00 : f32
    %153 = vector.broadcast %cst_43 : f32 to vector<8x128xf32>
    %154 = arith.subf %153, %145 : vector<8x128xf32>
    %155 = arith.mulf %154, %152 : vector<8x128xf32>
    %156 = arith.mulf %145, %82 : vector<8x128xf32>
    %157 = arith.addf %155, %156 : vector<8x128xf32>
    %158 = arith.index_cast %124 : i32 to index
    %c0_44 = arith.constant 0 : index
    %c128_45 = arith.constant 128 : index
    %159 = vector.load %arg4[%158, %c0_44, %c128_45] : memref<8x8x256xf32, #tpu.memory_space<vmem>>, vector<1x8x128xf32>
    %160 = vector.shape_cast %159 : vector<1x8x128xf32> to vector<8x128xf32>
    %161 = vector.shape_cast %157 : vector<8x128xf32> to vector<1x8x128xf32>
    tpu.vector_store %arg4[%158, %c0_44, %c128_45], %161 {strides = array<i32>} : memref<8x8x256xf32, #tpu.memory_space<vmem>>, vector<1x8x128xf32>,
    %c2_i32 = arith.constant 2 : i32
    %162 = arith.index_cast %c2_i32 : i32 to index
    %c0_46 = arith.constant 0 : index
    %c0_47 = arith.constant 0 : index
    %163 = vector.load %arg0[%162, %c0_46, %c0_47] : memref<8x8x768xf32, #tpu.memory_space<vmem>>, vector<1x8x384xf32>
    %164 = vector.shape_cast %163 : vector<1x8x384xf32> to vector<8x384xf32>
    %165 = arith.truncf %119 : vector<8x128xf32> to vector<8x128xbf16>
    %cst_48 = arith.constant dense<0.000000e+00> : vector<8x384xf32>
    %166 = tpu.matmul %165, %5, %cst_48 {dimension_numbers = #tpu.dot_dimension_numbers<[1], [0], [0], [1], [0, 0, 1, 1], [], []>} : vector<8x128xbf16>, vector<128x384xbf16>, vector<8x384xf32> -> vector<8x384xf32>
    %167 = vector.extract_strided_slice %164 {offsets = [0, 0], sizes = [8, 128], strides = [1, 1]} : vector<8x384xf32> to vector<8x128xf32>
    %168 = vector.extract_strided_slice %166 {offsets = [0, 0], sizes = [8, 128], strides = [1, 1]} : vector<8x384xf32> to vector<8x128xf32>
    %169 = arith.addf %167, %168 : vector<8x128xf32>
    %170 = arith.negf %169 : vector<8x128xf32>
    %171 = math.exp %170 : vector<8x128xf32>
    %cst_49 = arith.constant 1.000000e+00 : f32
    %172 = vector.broadcast %cst_49 : f32 to vector<8x128xf32>
    %173 = arith.addf %172, %171 : vector<8x128xf32>
    %174 = arith.divf %172, %173 : vector<8x128xf32>
    %175 = vector.extract_strided_slice %164 {offsets = [0, 128], sizes = [8, 128], strides = [1, 1]} : vector<8x384xf32> to vector<8x128xf32>
    %176 = vector.extract_strided_slice %166 {offsets = [0, 128], sizes = [8, 128], strides = [1, 1]} : vector<8x384xf32> to vector<8x128xf32>
    %177 = arith.addf %175, %176 : vector<8x128xf32>
    %178 = arith.negf %177 : vector<8x128xf32>
    %179 = math.exp %178 : vector<8x128xf32>
    %cst_50 = arith.constant 1.000000e+00 : f32
    %180 = vector.broadcast %cst_50 : f32 to vector<8x128xf32>
    %181 = arith.addf %180, %179 : vector<8x128xf32>
    %182 = arith.divf %180, %181 : vector<8x128xf32>
    %183 = vector.extract_strided_slice %164 {offsets = [0, 256], sizes = [8, 128], strides = [1, 1]} : vector<8x384xf32> to vector<8x128xf32>
    %184 = vector.extract_strided_slice %166 {offsets = [0, 256], sizes = [8, 128], strides = [1, 1]} : vector<8x384xf32> to vector<8x128xf32>
    %185 = vector.broadcast %1 : vector<1x128xf32> to vector<8x128xf32>
    %186 = arith.addf %184, %185 : vector<8x128xf32>
    %187 = arith.mulf %174, %186 : vector<8x128xf32>
    %188 = arith.addf %183, %187 : vector<8x128xf32>
    %189 = math.tanh %188 : vector<8x128xf32>
    %cst_51 = arith.constant 1.000000e+00 : f32
    %190 = vector.broadcast %cst_51 : f32 to vector<8x128xf32>
    %191 = arith.subf %190, %182 : vector<8x128xf32>
    %192 = arith.mulf %191, %189 : vector<8x128xf32>
    %193 = arith.mulf %182, %119 : vector<8x128xf32>
    %194 = arith.addf %192, %193 : vector<8x128xf32>
    %195 = arith.index_cast %c2_i32 : i32 to index
    %c0_52 = arith.constant 0 : index
    %c0_53 = arith.constant 0 : index
    %196 = vector.load %arg4[%195, %c0_52, %c0_53] : memref<8x8x256xf32, #tpu.memory_space<vmem>>, vector<1x8x128xf32>
    %197 = vector.shape_cast %196 : vector<1x8x128xf32> to vector<8x128xf32>
    %198 = vector.shape_cast %194 : vector<8x128xf32> to vector<1x8x128xf32>
    tpu.vector_store %arg4[%195, %c0_52, %c0_53], %198 {strides = array<i32>} : memref<8x8x256xf32, #tpu.memory_space<vmem>>, vector<1x8x128xf32>,
    %c7_i32_54 = arith.constant 7 : i32
    %199 = arith.subi %c7_i32_54, %c2_i32 : i32
    %200 = arith.index_cast %199 : i32 to index
    %c0_55 = arith.constant 0 : index
    %c384_56 = arith.constant 384 : index
    %201 = vector.load %arg0[%200, %c0_55, %c384_56] : memref<8x8x768xf32, #tpu.memory_space<vmem>>, vector<1x8x384xf32>
    %202 = vector.shape_cast %201 : vector<1x8x384xf32> to vector<8x384xf32>
    %203 = arith.truncf %157 : vector<8x128xf32> to vector<8x128xbf16>
    %cst_57 = arith.constant dense<0.000000e+00> : vector<8x384xf32>
    %204 = tpu.matmul %203, %7, %cst_57 {dimension_numbers = #tpu.dot_dimension_numbers<[1], [0], [0], [1], [0, 0, 1, 1], [], []>} : vector<8x128xbf16>, vector<128x384xbf16>, vector<8x384xf32> -> vector<8x384xf32>
    %205 = vector.extract_strided_slice %202 {offsets = [0, 0], sizes = [8, 128], strides = [1, 1]} : vector<8x384xf32> to vector<8x128xf32>
    %206 = vector.extract_strided_slice %204 {offsets = [0, 0], sizes = [8, 128], strides = [1, 1]} : vector<8x384xf32> to vector<8x128xf32>
    %207 = arith.addf %205, %206 : vector<8x128xf32>
    %208 = arith.negf %207 : vector<8x128xf32>
    %209 = math.exp %208 : vector<8x128xf32>
    %cst_58 = arith.constant 1.000000e+00 : f32
    %210 = vector.broadcast %cst_58 : f32 to vector<8x128xf32>
    %211 = arith.addf %210, %209 : vector<8x128xf32>
    %212 = arith.divf %210, %211 : vector<8x128xf32>
    %213 = vector.extract_strided_slice %202 {offsets = [0, 128], sizes = [8, 128], strides = [1, 1]} : vector<8x384xf32> to vector<8x128xf32>
    %214 = vector.extract_strided_slice %204 {offsets = [0, 128], sizes = [8, 128], strides = [1, 1]} : vector<8x384xf32> to vector<8x128xf32>
    %215 = arith.addf %213, %214 : vector<8x128xf32>
    %216 = arith.negf %215 : vector<8x128xf32>
    %217 = math.exp %216 : vector<8x128xf32>
    %cst_59 = arith.constant 1.000000e+00 : f32
    %218 = vector.broadcast %cst_59 : f32 to vector<8x128xf32>
    %219 = arith.addf %218, %217 : vector<8x128xf32>
    %220 = arith.divf %218, %219 : vector<8x128xf32>
    %221 = vector.extract_strided_slice %202 {offsets = [0, 256], sizes = [8, 128], strides = [1, 1]} : vector<8x384xf32> to vector<8x128xf32>
    %222 = vector.extract_strided_slice %204 {offsets = [0, 256], sizes = [8, 128], strides = [1, 1]} : vector<8x384xf32> to vector<8x128xf32>
    %223 = vector.broadcast %3 : vector<1x128xf32> to vector<8x128xf32>
    %224 = arith.addf %222, %223 : vector<8x128xf32>
    %225 = arith.mulf %212, %224 : vector<8x128xf32>
    %226 = arith.addf %221, %225 : vector<8x128xf32>
    %227 = math.tanh %226 : vector<8x128xf32>
    %cst_60 = arith.constant 1.000000e+00 : f32
    %228 = vector.broadcast %cst_60 : f32 to vector<8x128xf32>
    %229 = arith.subf %228, %220 : vector<8x128xf32>
    %230 = arith.mulf %229, %227 : vector<8x128xf32>
    %231 = arith.mulf %220, %157 : vector<8x128xf32>
    %232 = arith.addf %230, %231 : vector<8x128xf32>
    %233 = arith.index_cast %199 : i32 to index
    %c0_61 = arith.constant 0 : index
    %c128_62 = arith.constant 128 : index
    %234 = vector.load %arg4[%233, %c0_61, %c128_62] : memref<8x8x256xf32, #tpu.memory_space<vmem>>, vector<1x8x128xf32>
    %235 = vector.shape_cast %234 : vector<1x8x128xf32> to vector<8x128xf32>
    %236 = vector.shape_cast %232 : vector<8x128xf32> to vector<1x8x128xf32>
    tpu.vector_store %arg4[%233, %c0_61, %c128_62], %236 {strides = array<i32>} : memref<8x8x256xf32, #tpu.memory_space<vmem>>, vector<1x8x128xf32>,
    %c3_i32 = arith.constant 3 : i32
    %237 = arith.index_cast %c3_i32 : i32 to index
    %c0_63 = arith.constant 0 : index
    %c0_64 = arith.constant 0 : index
    %238 = vector.load %arg0[%237, %c0_63, %c0_64] : memref<8x8x768xf32, #tpu.memory_space<vmem>>, vector<1x8x384xf32>
    %239 = vector.shape_cast %238 : vector<1x8x384xf32> to vector<8x384xf32>
    %240 = arith.truncf %194 : vector<8x128xf32> to vector<8x128xbf16>
    %cst_65 = arith.constant dense<0.000000e+00> : vector<8x384xf32>
    %241 = tpu.matmul %240, %5, %cst_65 {dimension_numbers = #tpu.dot_dimension_numbers<[1], [0], [0], [1], [0, 0, 1, 1], [], []>} : vector<8x128xbf16>, vector<128x384xbf16>, vector<8x384xf32> -> vector<8x384xf32>
    %242 = vector.extract_strided_slice %239 {offsets = [0, 0], sizes = [8, 128], strides = [1, 1]} : vector<8x384xf32> to vector<8x128xf32>
    %243 = vector.extract_strided_slice %241 {offsets = [0, 0], sizes = [8, 128], strides = [1, 1]} : vector<8x384xf32> to vector<8x128xf32>
    %244 = arith.addf %242, %243 : vector<8x128xf32>
    %245 = arith.negf %244 : vector<8x128xf32>
    %246 = math.exp %245 : vector<8x128xf32>
    %cst_66 = arith.constant 1.000000e+00 : f32
    %247 = vector.broadcast %cst_66 : f32 to vector<8x128xf32>
    %248 = arith.addf %247, %246 : vector<8x128xf32>
    %249 = arith.divf %247, %248 : vector<8x128xf32>
    %250 = vector.extract_strided_slice %239 {offsets = [0, 128], sizes = [8, 128], strides = [1, 1]} : vector<8x384xf32> to vector<8x128xf32>
    %251 = vector.extract_strided_slice %241 {offsets = [0, 128], sizes = [8, 128], strides = [1, 1]} : vector<8x384xf32> to vector<8x128xf32>
    %252 = arith.addf %250, %251 : vector<8x128xf32>
    %253 = arith.negf %252 : vector<8x128xf32>
    %254 = math.exp %253 : vector<8x128xf32>
    %cst_67 = arith.constant 1.000000e+00 : f32
    %255 = vector.broadcast %cst_67 : f32 to vector<8x128xf32>
    %256 = arith.addf %255, %254 : vector<8x128xf32>
    %257 = arith.divf %255, %256 : vector<8x128xf32>
    %258 = vector.extract_strided_slice %239 {offsets = [0, 256], sizes = [8, 128], strides = [1, 1]} : vector<8x384xf32> to vector<8x128xf32>
    %259 = vector.extract_strided_slice %241 {offsets = [0, 256], sizes = [8, 128], strides = [1, 1]} : vector<8x384xf32> to vector<8x128xf32>
    %260 = vector.broadcast %1 : vector<1x128xf32> to vector<8x128xf32>
    %261 = arith.addf %259, %260 : vector<8x128xf32>
    %262 = arith.mulf %249, %261 : vector<8x128xf32>
    %263 = arith.addf %258, %262 : vector<8x128xf32>
    %264 = math.tanh %263 : vector<8x128xf32>
    %cst_68 = arith.constant 1.000000e+00 : f32
    %265 = vector.broadcast %cst_68 : f32 to vector<8x128xf32>
    %266 = arith.subf %265, %257 : vector<8x128xf32>
    %267 = arith.mulf %266, %264 : vector<8x128xf32>
    %268 = arith.mulf %257, %194 : vector<8x128xf32>
    %269 = arith.addf %267, %268 : vector<8x128xf32>
    %270 = arith.index_cast %c3_i32 : i32 to index
    %c0_69 = arith.constant 0 : index
    %c0_70 = arith.constant 0 : index
    %271 = vector.load %arg4[%270, %c0_69, %c0_70] : memref<8x8x256xf32, #tpu.memory_space<vmem>>, vector<1x8x128xf32>
    %272 = vector.shape_cast %271 : vector<1x8x128xf32> to vector<8x128xf32>
    %273 = vector.shape_cast %269 : vector<8x128xf32> to vector<1x8x128xf32>
    tpu.vector_store %arg4[%270, %c0_69, %c0_70], %273 {strides = array<i32>} : memref<8x8x256xf32, #tpu.memory_space<vmem>>, vector<1x8x128xf32>,
    %c7_i32_71 = arith.constant 7 : i32
    %274 = arith.subi %c7_i32_71, %c3_i32 : i32
    %275 = arith.index_cast %274 : i32 to index
    %c0_72 = arith.constant 0 : index
    %c384_73 = arith.constant 384 : index
    %276 = vector.load %arg0[%275, %c0_72, %c384_73] : memref<8x8x768xf32, #tpu.memory_space<vmem>>, vector<1x8x384xf32>
    %277 = vector.shape_cast %276 : vector<1x8x384xf32> to vector<8x384xf32>
    %278 = arith.truncf %232 : vector<8x128xf32> to vector<8x128xbf16>
    %cst_74 = arith.constant dense<0.000000e+00> : vector<8x384xf32>
    %279 = tpu.matmul %278, %7, %cst_74 {dimension_numbers = #tpu.dot_dimension_numbers<[1], [0], [0], [1], [0, 0, 1, 1], [], []>} : vector<8x128xbf16>, vector<128x384xbf16>, vector<8x384xf32> -> vector<8x384xf32>
    %280 = vector.extract_strided_slice %277 {offsets = [0, 0], sizes = [8, 128], strides = [1, 1]} : vector<8x384xf32> to vector<8x128xf32>
    %281 = vector.extract_strided_slice %279 {offsets = [0, 0], sizes = [8, 128], strides = [1, 1]} : vector<8x384xf32> to vector<8x128xf32>
    %282 = arith.addf %280, %281 : vector<8x128xf32>
    %283 = arith.negf %282 : vector<8x128xf32>
    %284 = math.exp %283 : vector<8x128xf32>
    %cst_75 = arith.constant 1.000000e+00 : f32
    %285 = vector.broadcast %cst_75 : f32 to vector<8x128xf32>
    %286 = arith.addf %285, %284 : vector<8x128xf32>
    %287 = arith.divf %285, %286 : vector<8x128xf32>
    %288 = vector.extract_strided_slice %277 {offsets = [0, 128], sizes = [8, 128], strides = [1, 1]} : vector<8x384xf32> to vector<8x128xf32>
    %289 = vector.extract_strided_slice %279 {offsets = [0, 128], sizes = [8, 128], strides = [1, 1]} : vector<8x384xf32> to vector<8x128xf32>
    %290 = arith.addf %288, %289 : vector<8x128xf32>
    %291 = arith.negf %290 : vector<8x128xf32>
    %292 = math.exp %291 : vector<8x128xf32>
    %cst_76 = arith.constant 1.000000e+00 : f32
    %293 = vector.broadcast %cst_76 : f32 to vector<8x128xf32>
    %294 = arith.addf %293, %292 : vector<8x128xf32>
    %295 = arith.divf %293, %294 : vector<8x128xf32>
    %296 = vector.extract_strided_slice %277 {offsets = [0, 256], sizes = [8, 128], strides = [1, 1]} : vector<8x384xf32> to vector<8x128xf32>
    %297 = vector.extract_strided_slice %279 {offsets = [0, 256], sizes = [8, 128], strides = [1, 1]} : vector<8x384xf32> to vector<8x128xf32>
    %298 = vector.broadcast %3 : vector<1x128xf32> to vector<8x128xf32>
    %299 = arith.addf %297, %298 : vector<8x128xf32>
    %300 = arith.mulf %287, %299 : vector<8x128xf32>
    %301 = arith.addf %296, %300 : vector<8x128xf32>
    %302 = math.tanh %301 : vector<8x128xf32>
    %cst_77 = arith.constant 1.000000e+00 : f32
    %303 = vector.broadcast %cst_77 : f32 to vector<8x128xf32>
    %304 = arith.subf %303, %295 : vector<8x128xf32>
    %305 = arith.mulf %304, %302 : vector<8x128xf32>
    %306 = arith.mulf %295, %232 : vector<8x128xf32>
    %307 = arith.addf %305, %306 : vector<8x128xf32>
    %308 = arith.index_cast %274 : i32 to index
    %c0_78 = arith.constant 0 : index
    %c128_79 = arith.constant 128 : index
    %309 = vector.load %arg4[%308, %c0_78, %c128_79] : memref<8x8x256xf32, #tpu.memory_space<vmem>>, vector<1x8x128xf32>
    %310 = vector.shape_cast %309 : vector<1x8x128xf32> to vector<8x128xf32>
    %311 = vector.shape_cast %307 : vector<8x128xf32> to vector<1x8x128xf32>
    tpu.vector_store %arg4[%308, %c0_78, %c128_79], %311 {strides = array<i32>} : memref<8x8x256xf32, #tpu.memory_space<vmem>>, vector<1x8x128xf32>,
    %c4_i32 = arith.constant 4 : i32
    %312 = arith.index_cast %c4_i32 : i32 to index
    %c0_80 = arith.constant 0 : index
    %c0_81 = arith.constant 0 : index
    %313 = vector.load %arg0[%312, %c0_80, %c0_81] : memref<8x8x768xf32, #tpu.memory_space<vmem>>, vector<1x8x384xf32>
    %314 = vector.shape_cast %313 : vector<1x8x384xf32> to vector<8x384xf32>
    %315 = arith.truncf %269 : vector<8x128xf32> to vector<8x128xbf16>
    %cst_82 = arith.constant dense<0.000000e+00> : vector<8x384xf32>
    %316 = tpu.matmul %315, %5, %cst_82 {dimension_numbers = #tpu.dot_dimension_numbers<[1], [0], [0], [1], [0, 0, 1, 1], [], []>} : vector<8x128xbf16>, vector<128x384xbf16>, vector<8x384xf32> -> vector<8x384xf32>
    %317 = vector.extract_strided_slice %314 {offsets = [0, 0], sizes = [8, 128], strides = [1, 1]} : vector<8x384xf32> to vector<8x128xf32>
    %318 = vector.extract_strided_slice %316 {offsets = [0, 0], sizes = [8, 128], strides = [1, 1]} : vector<8x384xf32> to vector<8x128xf32>
    %319 = arith.addf %317, %318 : vector<8x128xf32>
    %320 = arith.negf %319 : vector<8x128xf32>
    %321 = math.exp %320 : vector<8x128xf32>
    %cst_83 = arith.constant 1.000000e+00 : f32
    %322 = vector.broadcast %cst_83 : f32 to vector<8x128xf32>
    %323 = arith.addf %322, %321 : vector<8x128xf32>
    %324 = arith.divf %322, %323 : vector<8x128xf32>
    %325 = vector.extract_strided_slice %314 {offsets = [0, 128], sizes = [8, 128], strides = [1, 1]} : vector<8x384xf32> to vector<8x128xf32>
    %326 = vector.extract_strided_slice %316 {offsets = [0, 128], sizes = [8, 128], strides = [1, 1]} : vector<8x384xf32> to vector<8x128xf32>
    %327 = arith.addf %325, %326 : vector<8x128xf32>
    %328 = arith.negf %327 : vector<8x128xf32>
    %329 = math.exp %328 : vector<8x128xf32>
    %cst_84 = arith.constant 1.000000e+00 : f32
    %330 = vector.broadcast %cst_84 : f32 to vector<8x128xf32>
    %331 = arith.addf %330, %329 : vector<8x128xf32>
    %332 = arith.divf %330, %331 : vector<8x128xf32>
    %333 = vector.extract_strided_slice %314 {offsets = [0, 256], sizes = [8, 128], strides = [1, 1]} : vector<8x384xf32> to vector<8x128xf32>
    %334 = vector.extract_strided_slice %316 {offsets = [0, 256], sizes = [8, 128], strides = [1, 1]} : vector<8x384xf32> to vector<8x128xf32>
    %335 = vector.broadcast %1 : vector<1x128xf32> to vector<8x128xf32>
    %336 = arith.addf %334, %335 : vector<8x128xf32>
    %337 = arith.mulf %324, %336 : vector<8x128xf32>
    %338 = arith.addf %333, %337 : vector<8x128xf32>
    %339 = math.tanh %338 : vector<8x128xf32>
    %cst_85 = arith.constant 1.000000e+00 : f32
    %340 = vector.broadcast %cst_85 : f32 to vector<8x128xf32>
    %341 = arith.subf %340, %332 : vector<8x128xf32>
    %342 = arith.mulf %341, %339 : vector<8x128xf32>
    %343 = arith.mulf %332, %269 : vector<8x128xf32>
    %344 = arith.addf %342, %343 : vector<8x128xf32>
    %345 = arith.index_cast %c4_i32 : i32 to index
    %c0_86 = arith.constant 0 : index
    %c0_87 = arith.constant 0 : index
    %346 = vector.load %arg4[%345, %c0_86, %c0_87] : memref<8x8x256xf32, #tpu.memory_space<vmem>>, vector<1x8x128xf32>
    %347 = vector.shape_cast %346 : vector<1x8x128xf32> to vector<8x128xf32>
    %348 = vector.shape_cast %344 : vector<8x128xf32> to vector<1x8x128xf32>
    tpu.vector_store %arg4[%345, %c0_86, %c0_87], %348 {strides = array<i32>} : memref<8x8x256xf32, #tpu.memory_space<vmem>>, vector<1x8x128xf32>,
    %c7_i32_88 = arith.constant 7 : i32
    %349 = arith.subi %c7_i32_88, %c4_i32 : i32
    %350 = arith.index_cast %349 : i32 to index
    %c0_89 = arith.constant 0 : index
    %c384_90 = arith.constant 384 : index
    %351 = vector.load %arg0[%350, %c0_89, %c384_90] : memref<8x8x768xf32, #tpu.memory_space<vmem>>, vector<1x8x384xf32>
    %352 = vector.shape_cast %351 : vector<1x8x384xf32> to vector<8x384xf32>
    %353 = arith.truncf %307 : vector<8x128xf32> to vector<8x128xbf16>
    %cst_91 = arith.constant dense<0.000000e+00> : vector<8x384xf32>
    %354 = tpu.matmul %353, %7, %cst_91 {dimension_numbers = #tpu.dot_dimension_numbers<[1], [0], [0], [1], [0, 0, 1, 1], [], []>} : vector<8x128xbf16>, vector<128x384xbf16>, vector<8x384xf32> -> vector<8x384xf32>
    %355 = vector.extract_strided_slice %352 {offsets = [0, 0], sizes = [8, 128], strides = [1, 1]} : vector<8x384xf32> to vector<8x128xf32>
    %356 = vector.extract_strided_slice %354 {offsets = [0, 0], sizes = [8, 128], strides = [1, 1]} : vector<8x384xf32> to vector<8x128xf32>
    %357 = arith.addf %355, %356 : vector<8x128xf32>
    %358 = arith.negf %357 : vector<8x128xf32>
    %359 = math.exp %358 : vector<8x128xf32>
    %cst_92 = arith.constant 1.000000e+00 : f32
    %360 = vector.broadcast %cst_92 : f32 to vector<8x128xf32>
    %361 = arith.addf %360, %359 : vector<8x128xf32>
    %362 = arith.divf %360, %361 : vector<8x128xf32>
    %363 = vector.extract_strided_slice %352 {offsets = [0, 128], sizes = [8, 128], strides = [1, 1]} : vector<8x384xf32> to vector<8x128xf32>
    %364 = vector.extract_strided_slice %354 {offsets = [0, 128], sizes = [8, 128], strides = [1, 1]} : vector<8x384xf32> to vector<8x128xf32>
    %365 = arith.addf %363, %364 : vector<8x128xf32>
    %366 = arith.negf %365 : vector<8x128xf32>
    %367 = math.exp %366 : vector<8x128xf32>
    %cst_93 = arith.constant 1.000000e+00 : f32
    %368 = vector.broadcast %cst_93 : f32 to vector<8x128xf32>
    %369 = arith.addf %368, %367 : vector<8x128xf32>
    %370 = arith.divf %368, %369 : vector<8x128xf32>
    %371 = vector.extract_strided_slice %352 {offsets = [0, 256], sizes = [8, 128], strides = [1, 1]} : vector<8x384xf32> to vector<8x128xf32>
    %372 = vector.extract_strided_slice %354 {offsets = [0, 256], sizes = [8, 128], strides = [1, 1]} : vector<8x384xf32> to vector<8x128xf32>
    %373 = vector.broadcast %3 : vector<1x128xf32> to vector<8x128xf32>
    %374 = arith.addf %372, %373 : vector<8x128xf32>
    %375 = arith.mulf %362, %374 : vector<8x128xf32>
    %376 = arith.addf %371, %375 : vector<8x128xf32>
    %377 = math.tanh %376 : vector<8x128xf32>
    %cst_94 = arith.constant 1.000000e+00 : f32
    %378 = vector.broadcast %cst_94 : f32 to vector<8x128xf32>
    %379 = arith.subf %378, %370 : vector<8x128xf32>
    %380 = arith.mulf %379, %377 : vector<8x128xf32>
    %381 = arith.mulf %370, %307 : vector<8x128xf32>
    %382 = arith.addf %380, %381 : vector<8x128xf32>
    %383 = arith.index_cast %349 : i32 to index
    %c0_95 = arith.constant 0 : index
    %c128_96 = arith.constant 128 : index
    %384 = vector.load %arg4[%383, %c0_95, %c128_96] : memref<8x8x256xf32, #tpu.memory_space<vmem>>, vector<1x8x128xf32>
    %385 = vector.shape_cast %384 : vector<1x8x128xf32> to vector<8x128xf32>
    %386 = vector.shape_cast %382 : vector<8x128xf32> to vector<1x8x128xf32>
    tpu.vector_store %arg4[%383, %c0_95, %c128_96], %386 {strides = array<i32>} : memref<8x8x256xf32, #tpu.memory_space<vmem>>, vector<1x8x128xf32>,
    %c5_i32 = arith.constant 5 : i32
    %387 = arith.index_cast %c5_i32 : i32 to index
    %c0_97 = arith.constant 0 : index
    %c0_98 = arith.constant 0 : index
    %388 = vector.load %arg0[%387, %c0_97, %c0_98] : memref<8x8x768xf32, #tpu.memory_space<vmem>>, vector<1x8x384xf32>
    %389 = vector.shape_cast %388 : vector<1x8x384xf32> to vector<8x384xf32>
    %390 = arith.truncf %344 : vector<8x128xf32> to vector<8x128xbf16>
    %cst_99 = arith.constant dense<0.000000e+00> : vector<8x384xf32>
    %391 = tpu.matmul %390, %5, %cst_99 {dimension_numbers = #tpu.dot_dimension_numbers<[1], [0], [0], [1], [0, 0, 1, 1], [], []>} : vector<8x128xbf16>, vector<128x384xbf16>, vector<8x384xf32> -> vector<8x384xf32>
    %392 = vector.extract_strided_slice %389 {offsets = [0, 0], sizes = [8, 128], strides = [1, 1]} : vector<8x384xf32> to vector<8x128xf32>
    %393 = vector.extract_strided_slice %391 {offsets = [0, 0], sizes = [8, 128], strides = [1, 1]} : vector<8x384xf32> to vector<8x128xf32>
    %394 = arith.addf %392, %393 : vector<8x128xf32>
    %395 = arith.negf %394 : vector<8x128xf32>
    %396 = math.exp %395 : vector<8x128xf32>
    %cst_100 = arith.constant 1.000000e+00 : f32
    %397 = vector.broadcast %cst_100 : f32 to vector<8x128xf32>
    %398 = arith.addf %397, %396 : vector<8x128xf32>
    %399 = arith.divf %397, %398 : vector<8x128xf32>
    %400 = vector.extract_strided_slice %389 {offsets = [0, 128], sizes = [8, 128], strides = [1, 1]} : vector<8x384xf32> to vector<8x128xf32>
    %401 = vector.extract_strided_slice %391 {offsets = [0, 128], sizes = [8, 128], strides = [1, 1]} : vector<8x384xf32> to vector<8x128xf32>
    %402 = arith.addf %400, %401 : vector<8x128xf32>
    %403 = arith.negf %402 : vector<8x128xf32>
    %404 = math.exp %403 : vector<8x128xf32>
    %cst_101 = arith.constant 1.000000e+00 : f32
    %405 = vector.broadcast %cst_101 : f32 to vector<8x128xf32>
    %406 = arith.addf %405, %404 : vector<8x128xf32>
    %407 = arith.divf %405, %406 : vector<8x128xf32>
    %408 = vector.extract_strided_slice %389 {offsets = [0, 256], sizes = [8, 128], strides = [1, 1]} : vector<8x384xf32> to vector<8x128xf32>
    %409 = vector.extract_strided_slice %391 {offsets = [0, 256], sizes = [8, 128], strides = [1, 1]} : vector<8x384xf32> to vector<8x128xf32>
    %410 = vector.broadcast %1 : vector<1x128xf32> to vector<8x128xf32>
    %411 = arith.addf %409, %410 : vector<8x128xf32>
    %412 = arith.mulf %399, %411 : vector<8x128xf32>
    %413 = arith.addf %408, %412 : vector<8x128xf32>
    %414 = math.tanh %413 : vector<8x128xf32>
    %cst_102 = arith.constant 1.000000e+00 : f32
    %415 = vector.broadcast %cst_102 : f32 to vector<8x128xf32>
    %416 = arith.subf %415, %407 : vector<8x128xf32>
    %417 = arith.mulf %416, %414 : vector<8x128xf32>
    %418 = arith.mulf %407, %344 : vector<8x128xf32>
    %419 = arith.addf %417, %418 : vector<8x128xf32>
    %420 = arith.index_cast %c5_i32 : i32 to index
    %c0_103 = arith.constant 0 : index
    %c0_104 = arith.constant 0 : index
    %421 = vector.load %arg4[%420, %c0_103, %c0_104] : memref<8x8x256xf32, #tpu.memory_space<vmem>>, vector<1x8x128xf32>
    %422 = vector.shape_cast %421 : vector<1x8x128xf32> to vector<8x128xf32>
    %423 = vector.shape_cast %419 : vector<8x128xf32> to vector<1x8x128xf32>
    tpu.vector_store %arg4[%420, %c0_103, %c0_104], %423 {strides = array<i32>} : memref<8x8x256xf32, #tpu.memory_space<vmem>>, vector<1x8x128xf32>,
    %c7_i32_105 = arith.constant 7 : i32
    %424 = arith.subi %c7_i32_105, %c5_i32 : i32
    %425 = arith.index_cast %424 : i32 to index
    %c0_106 = arith.constant 0 : index
    %c384_107 = arith.constant 384 : index
    %426 = vector.load %arg0[%425, %c0_106, %c384_107] : memref<8x8x768xf32, #tpu.memory_space<vmem>>, vector<1x8x384xf32>
    %427 = vector.shape_cast %426 : vector<1x8x384xf32> to vector<8x384xf32>
    %428 = arith.truncf %382 : vector<8x128xf32> to vector<8x128xbf16>
    %cst_108 = arith.constant dense<0.000000e+00> : vector<8x384xf32>
    %429 = tpu.matmul %428, %7, %cst_108 {dimension_numbers = #tpu.dot_dimension_numbers<[1], [0], [0], [1], [0, 0, 1, 1], [], []>} : vector<8x128xbf16>, vector<128x384xbf16>, vector<8x384xf32> -> vector<8x384xf32>
    %430 = vector.extract_strided_slice %427 {offsets = [0, 0], sizes = [8, 128], strides = [1, 1]} : vector<8x384xf32> to vector<8x128xf32>
    %431 = vector.extract_strided_slice %429 {offsets = [0, 0], sizes = [8, 128], strides = [1, 1]} : vector<8x384xf32> to vector<8x128xf32>
    %432 = arith.addf %430, %431 : vector<8x128xf32>
    %433 = arith.negf %432 : vector<8x128xf32>
    %434 = math.exp %433 : vector<8x128xf32>
    %cst_109 = arith.constant 1.000000e+00 : f32
    %435 = vector.broadcast %cst_109 : f32 to vector<8x128xf32>
    %436 = arith.addf %435, %434 : vector<8x128xf32>
    %437 = arith.divf %435, %436 : vector<8x128xf32>
    %438 = vector.extract_strided_slice %427 {offsets = [0, 128], sizes = [8, 128], strides = [1, 1]} : vector<8x384xf32> to vector<8x128xf32>
    %439 = vector.extract_strided_slice %429 {offsets = [0, 128], sizes = [8, 128], strides = [1, 1]} : vector<8x384xf32> to vector<8x128xf32>
    %440 = arith.addf %438, %439 : vector<8x128xf32>
    %441 = arith.negf %440 : vector<8x128xf32>
    %442 = math.exp %441 : vector<8x128xf32>
    %cst_110 = arith.constant 1.000000e+00 : f32
    %443 = vector.broadcast %cst_110 : f32 to vector<8x128xf32>
    %444 = arith.addf %443, %442 : vector<8x128xf32>
    %445 = arith.divf %443, %444 : vector<8x128xf32>
    %446 = vector.extract_strided_slice %427 {offsets = [0, 256], sizes = [8, 128], strides = [1, 1]} : vector<8x384xf32> to vector<8x128xf32>
    %447 = vector.extract_strided_slice %429 {offsets = [0, 256], sizes = [8, 128], strides = [1, 1]} : vector<8x384xf32> to vector<8x128xf32>
    %448 = vector.broadcast %3 : vector<1x128xf32> to vector<8x128xf32>
    %449 = arith.addf %447, %448 : vector<8x128xf32>
    %450 = arith.mulf %437, %449 : vector<8x128xf32>
    %451 = arith.addf %446, %450 : vector<8x128xf32>
    %452 = math.tanh %451 : vector<8x128xf32>
    %cst_111 = arith.constant 1.000000e+00 : f32
    %453 = vector.broadcast %cst_111 : f32 to vector<8x128xf32>
    %454 = arith.subf %453, %445 : vector<8x128xf32>
    %455 = arith.mulf %454, %452 : vector<8x128xf32>
    %456 = arith.mulf %445, %382 : vector<8x128xf32>
    %457 = arith.addf %455, %456 : vector<8x128xf32>
    %458 = arith.index_cast %424 : i32 to index
    %c0_112 = arith.constant 0 : index
    %c128_113 = arith.constant 128 : index
    %459 = vector.load %arg4[%458, %c0_112, %c128_113] : memref<8x8x256xf32, #tpu.memory_space<vmem>>, vector<1x8x128xf32>
    %460 = vector.shape_cast %459 : vector<1x8x128xf32> to vector<8x128xf32>
    %461 = vector.shape_cast %457 : vector<8x128xf32> to vector<1x8x128xf32>
    tpu.vector_store %arg4[%458, %c0_112, %c128_113], %461 {strides = array<i32>} : memref<8x8x256xf32, #tpu.memory_space<vmem>>, vector<1x8x128xf32>,
    %c6_i32 = arith.constant 6 : i32
    %462 = arith.index_cast %c6_i32 : i32 to index
    %c0_114 = arith.constant 0 : index
    %c0_115 = arith.constant 0 : index
    %463 = vector.load %arg0[%462, %c0_114, %c0_115] : memref<8x8x768xf32, #tpu.memory_space<vmem>>, vector<1x8x384xf32>
    %464 = vector.shape_cast %463 : vector<1x8x384xf32> to vector<8x384xf32>
    %465 = arith.truncf %419 : vector<8x128xf32> to vector<8x128xbf16>
    %cst_116 = arith.constant dense<0.000000e+00> : vector<8x384xf32>
    %466 = tpu.matmul %465, %5, %cst_116 {dimension_numbers = #tpu.dot_dimension_numbers<[1], [0], [0], [1], [0, 0, 1, 1], [], []>} : vector<8x128xbf16>, vector<128x384xbf16>, vector<8x384xf32> -> vector<8x384xf32>
    %467 = vector.extract_strided_slice %464 {offsets = [0, 0], sizes = [8, 128], strides = [1, 1]} : vector<8x384xf32> to vector<8x128xf32>
    %468 = vector.extract_strided_slice %466 {offsets = [0, 0], sizes = [8, 128], strides = [1, 1]} : vector<8x384xf32> to vector<8x128xf32>
    %469 = arith.addf %467, %468 : vector<8x128xf32>
    %470 = arith.negf %469 : vector<8x128xf32>
    %471 = math.exp %470 : vector<8x128xf32>
    %cst_117 = arith.constant 1.000000e+00 : f32
    %472 = vector.broadcast %cst_117 : f32 to vector<8x128xf32>
    %473 = arith.addf %472, %471 : vector<8x128xf32>
    %474 = arith.divf %472, %473 : vector<8x128xf32>
    %475 = vector.extract_strided_slice %464 {offsets = [0, 128], sizes = [8, 128], strides = [1, 1]} : vector<8x384xf32> to vector<8x128xf32>
    %476 = vector.extract_strided_slice %466 {offsets = [0, 128], sizes = [8, 128], strides = [1, 1]} : vector<8x384xf32> to vector<8x128xf32>
    %477 = arith.addf %475, %476 : vector<8x128xf32>
    %478 = arith.negf %477 : vector<8x128xf32>
    %479 = math.exp %478 : vector<8x128xf32>
    %cst_118 = arith.constant 1.000000e+00 : f32
    %480 = vector.broadcast %cst_118 : f32 to vector<8x128xf32>
    %481 = arith.addf %480, %479 : vector<8x128xf32>
    %482 = arith.divf %480, %481 : vector<8x128xf32>
    %483 = vector.extract_strided_slice %464 {offsets = [0, 256], sizes = [8, 128], strides = [1, 1]} : vector<8x384xf32> to vector<8x128xf32>
    %484 = vector.extract_strided_slice %466 {offsets = [0, 256], sizes = [8, 128], strides = [1, 1]} : vector<8x384xf32> to vector<8x128xf32>
    %485 = vector.broadcast %1 : vector<1x128xf32> to vector<8x128xf32>
    %486 = arith.addf %484, %485 : vector<8x128xf32>
    %487 = arith.mulf %474, %486 : vector<8x128xf32>
    %488 = arith.addf %483, %487 : vector<8x128xf32>
    %489 = math.tanh %488 : vector<8x128xf32>
    %cst_119 = arith.constant 1.000000e+00 : f32
    %490 = vector.broadcast %cst_119 : f32 to vector<8x128xf32>
    %491 = arith.subf %490, %482 : vector<8x128xf32>
    %492 = arith.mulf %491, %489 : vector<8x128xf32>
    %493 = arith.mulf %482, %419 : vector<8x128xf32>
    %494 = arith.addf %492, %493 : vector<8x128xf32>
    %495 = arith.index_cast %c6_i32 : i32 to index
    %c0_120 = arith.constant 0 : index
    %c0_121 = arith.constant 0 : index
    %496 = vector.load %arg4[%495, %c0_120, %c0_121] : memref<8x8x256xf32, #tpu.memory_space<vmem>>, vector<1x8x128xf32>
    %497 = vector.shape_cast %496 : vector<1x8x128xf32> to vector<8x128xf32>
    %498 = vector.shape_cast %494 : vector<8x128xf32> to vector<1x8x128xf32>
    tpu.vector_store %arg4[%495, %c0_120, %c0_121], %498 {strides = array<i32>} : memref<8x8x256xf32, #tpu.memory_space<vmem>>, vector<1x8x128xf32>,
    %c7_i32_122 = arith.constant 7 : i32
    %499 = arith.subi %c7_i32_122, %c6_i32 : i32
    %500 = arith.index_cast %499 : i32 to index
    %c0_123 = arith.constant 0 : index
    %c384_124 = arith.constant 384 : index
    %501 = vector.load %arg0[%500, %c0_123, %c384_124] : memref<8x8x768xf32, #tpu.memory_space<vmem>>, vector<1x8x384xf32>
    %502 = vector.shape_cast %501 : vector<1x8x384xf32> to vector<8x384xf32>
    %503 = arith.truncf %457 : vector<8x128xf32> to vector<8x128xbf16>
    %cst_125 = arith.constant dense<0.000000e+00> : vector<8x384xf32>
    %504 = tpu.matmul %503, %7, %cst_125 {dimension_numbers = #tpu.dot_dimension_numbers<[1], [0], [0], [1], [0, 0, 1, 1], [], []>} : vector<8x128xbf16>, vector<128x384xbf16>, vector<8x384xf32> -> vector<8x384xf32>
    %505 = vector.extract_strided_slice %502 {offsets = [0, 0], sizes = [8, 128], strides = [1, 1]} : vector<8x384xf32> to vector<8x128xf32>
    %506 = vector.extract_strided_slice %504 {offsets = [0, 0], sizes = [8, 128], strides = [1, 1]} : vector<8x384xf32> to vector<8x128xf32>
    %507 = arith.addf %505, %506 : vector<8x128xf32>
    %508 = arith.negf %507 : vector<8x128xf32>
    %509 = math.exp %508 : vector<8x128xf32>
    %cst_126 = arith.constant 1.000000e+00 : f32
    %510 = vector.broadcast %cst_126 : f32 to vector<8x128xf32>
    %511 = arith.addf %510, %509 : vector<8x128xf32>
    %512 = arith.divf %510, %511 : vector<8x128xf32>
    %513 = vector.extract_strided_slice %502 {offsets = [0, 128], sizes = [8, 128], strides = [1, 1]} : vector<8x384xf32> to vector<8x128xf32>
    %514 = vector.extract_strided_slice %504 {offsets = [0, 128], sizes = [8, 128], strides = [1, 1]} : vector<8x384xf32> to vector<8x128xf32>
    %515 = arith.addf %513, %514 : vector<8x128xf32>
    %516 = arith.negf %515 : vector<8x128xf32>
    %517 = math.exp %516 : vector<8x128xf32>
    %cst_127 = arith.constant 1.000000e+00 : f32
    %518 = vector.broadcast %cst_127 : f32 to vector<8x128xf32>
    %519 = arith.addf %518, %517 : vector<8x128xf32>
    %520 = arith.divf %518, %519 : vector<8x128xf32>
    %521 = vector.extract_strided_slice %502 {offsets = [0, 256], sizes = [8, 128], strides = [1, 1]} : vector<8x384xf32> to vector<8x128xf32>
    %522 = vector.extract_strided_slice %504 {offsets = [0, 256], sizes = [8, 128], strides = [1, 1]} : vector<8x384xf32> to vector<8x128xf32>
    %523 = vector.broadcast %3 : vector<1x128xf32> to vector<8x128xf32>
    %524 = arith.addf %522, %523 : vector<8x128xf32>
    %525 = arith.mulf %512, %524 : vector<8x128xf32>
    %526 = arith.addf %521, %525 : vector<8x128xf32>
    %527 = math.tanh %526 : vector<8x128xf32>
    %cst_128 = arith.constant 1.000000e+00 : f32
    %528 = vector.broadcast %cst_128 : f32 to vector<8x128xf32>
    %529 = arith.subf %528, %520 : vector<8x128xf32>
    %530 = arith.mulf %529, %527 : vector<8x128xf32>
    %531 = arith.mulf %520, %457 : vector<8x128xf32>
    %532 = arith.addf %530, %531 : vector<8x128xf32>
    %533 = arith.index_cast %499 : i32 to index
    %c0_129 = arith.constant 0 : index
    %c128_130 = arith.constant 128 : index
    %534 = vector.load %arg4[%533, %c0_129, %c128_130] : memref<8x8x256xf32, #tpu.memory_space<vmem>>, vector<1x8x128xf32>
    %535 = vector.shape_cast %534 : vector<1x8x128xf32> to vector<8x128xf32>
    %536 = vector.shape_cast %532 : vector<8x128xf32> to vector<1x8x128xf32>
    tpu.vector_store %arg4[%533, %c0_129, %c128_130], %536 {strides = array<i32>} : memref<8x8x256xf32, #tpu.memory_space<vmem>>, vector<1x8x128xf32>,
    %c7_i32_131 = arith.constant 7 : i32
    %537 = arith.index_cast %c7_i32_131 : i32 to index
    %c0_132 = arith.constant 0 : index
    %c0_133 = arith.constant 0 : index
    %538 = vector.load %arg0[%537, %c0_132, %c0_133] : memref<8x8x768xf32, #tpu.memory_space<vmem>>, vector<1x8x384xf32>
    %539 = vector.shape_cast %538 : vector<1x8x384xf32> to vector<8x384xf32>
    %540 = arith.truncf %494 : vector<8x128xf32> to vector<8x128xbf16>
    %cst_134 = arith.constant dense<0.000000e+00> : vector<8x384xf32>
    %541 = tpu.matmul %540, %5, %cst_134 {dimension_numbers = #tpu.dot_dimension_numbers<[1], [0], [0], [1], [0, 0, 1, 1], [], []>} : vector<8x128xbf16>, vector<128x384xbf16>, vector<8x384xf32> -> vector<8x384xf32>
    %542 = vector.extract_strided_slice %539 {offsets = [0, 0], sizes = [8, 128], strides = [1, 1]} : vector<8x384xf32> to vector<8x128xf32>
    %543 = vector.extract_strided_slice %541 {offsets = [0, 0], sizes = [8, 128], strides = [1, 1]} : vector<8x384xf32> to vector<8x128xf32>
    %544 = arith.addf %542, %543 : vector<8x128xf32>
    %545 = arith.negf %544 : vector<8x128xf32>
    %546 = math.exp %545 : vector<8x128xf32>
    %cst_135 = arith.constant 1.000000e+00 : f32
    %547 = vector.broadcast %cst_135 : f32 to vector<8x128xf32>
    %548 = arith.addf %547, %546 : vector<8x128xf32>
    %549 = arith.divf %547, %548 : vector<8x128xf32>
    %550 = vector.extract_strided_slice %539 {offsets = [0, 128], sizes = [8, 128], strides = [1, 1]} : vector<8x384xf32> to vector<8x128xf32>
    %551 = vector.extract_strided_slice %541 {offsets = [0, 128], sizes = [8, 128], strides = [1, 1]} : vector<8x384xf32> to vector<8x128xf32>
    %552 = arith.addf %550, %551 : vector<8x128xf32>
    %553 = arith.negf %552 : vector<8x128xf32>
    %554 = math.exp %553 : vector<8x128xf32>
    %cst_136 = arith.constant 1.000000e+00 : f32
    %555 = vector.broadcast %cst_136 : f32 to vector<8x128xf32>
    %556 = arith.addf %555, %554 : vector<8x128xf32>
    %557 = arith.divf %555, %556 : vector<8x128xf32>
    %558 = vector.extract_strided_slice %539 {offsets = [0, 256], sizes = [8, 128], strides = [1, 1]} : vector<8x384xf32> to vector<8x128xf32>
    %559 = vector.extract_strided_slice %541 {offsets = [0, 256], sizes = [8, 128], strides = [1, 1]} : vector<8x384xf32> to vector<8x128xf32>
    %560 = vector.broadcast %1 : vector<1x128xf32> to vector<8x128xf32>
    %561 = arith.addf %559, %560 : vector<8x128xf32>
    %562 = arith.mulf %549, %561 : vector<8x128xf32>
    %563 = arith.addf %558, %562 : vector<8x128xf32>
    %564 = math.tanh %563 : vector<8x128xf32>
    %cst_137 = arith.constant 1.000000e+00 : f32
    %565 = vector.broadcast %cst_137 : f32 to vector<8x128xf32>
    %566 = arith.subf %565, %557 : vector<8x128xf32>
    %567 = arith.mulf %566, %564 : vector<8x128xf32>
    %568 = arith.mulf %557, %494 : vector<8x128xf32>
    %569 = arith.addf %567, %568 : vector<8x128xf32>
    %570 = arith.index_cast %c7_i32_131 : i32 to index
    %c0_138 = arith.constant 0 : index
    %c0_139 = arith.constant 0 : index
    %571 = vector.load %arg4[%570, %c0_138, %c0_139] : memref<8x8x256xf32, #tpu.memory_space<vmem>>, vector<1x8x128xf32>
    %572 = vector.shape_cast %571 : vector<1x8x128xf32> to vector<8x128xf32>
    %573 = vector.shape_cast %569 : vector<8x128xf32> to vector<1x8x128xf32>
    tpu.vector_store %arg4[%570, %c0_138, %c0_139], %573 {strides = array<i32>} : memref<8x8x256xf32, #tpu.memory_space<vmem>>, vector<1x8x128xf32>,
    %c7_i32_140 = arith.constant 7 : i32
    %574 = arith.subi %c7_i32_140, %c7_i32_131 : i32
    %575 = arith.index_cast %574 : i32 to index
    %c0_141 = arith.constant 0 : index
    %c384_142 = arith.constant 384 : index
    %576 = vector.load %arg0[%575, %c0_141, %c384_142] : memref<8x8x768xf32, #tpu.memory_space<vmem>>, vector<1x8x384xf32>
    %577 = vector.shape_cast %576 : vector<1x8x384xf32> to vector<8x384xf32>
    %578 = arith.truncf %532 : vector<8x128xf32> to vector<8x128xbf16>
    %cst_143 = arith.constant dense<0.000000e+00> : vector<8x384xf32>
    %579 = tpu.matmul %578, %7, %cst_143 {dimension_numbers = #tpu.dot_dimension_numbers<[1], [0], [0], [1], [0, 0, 1, 1], [], []>} : vector<8x128xbf16>, vector<128x384xbf16>, vector<8x384xf32> -> vector<8x384xf32>
    %580 = vector.extract_strided_slice %577 {offsets = [0, 0], sizes = [8, 128], strides = [1, 1]} : vector<8x384xf32> to vector<8x128xf32>
    %581 = vector.extract_strided_slice %579 {offsets = [0, 0], sizes = [8, 128], strides = [1, 1]} : vector<8x384xf32> to vector<8x128xf32>
    %582 = arith.addf %580, %581 : vector<8x128xf32>
    %583 = arith.negf %582 : vector<8x128xf32>
    %584 = math.exp %583 : vector<8x128xf32>
    %cst_144 = arith.constant 1.000000e+00 : f32
    %585 = vector.broadcast %cst_144 : f32 to vector<8x128xf32>
    %586 = arith.addf %585, %584 : vector<8x128xf32>
    %587 = arith.divf %585, %586 : vector<8x128xf32>
    %588 = vector.extract_strided_slice %577 {offsets = [0, 128], sizes = [8, 128], strides = [1, 1]} : vector<8x384xf32> to vector<8x128xf32>
    %589 = vector.extract_strided_slice %579 {offsets = [0, 128], sizes = [8, 128], strides = [1, 1]} : vector<8x384xf32> to vector<8x128xf32>
    %590 = arith.addf %588, %589 : vector<8x128xf32>
    %591 = arith.negf %590 : vector<8x128xf32>
    %592 = math.exp %591 : vector<8x128xf32>
    %cst_145 = arith.constant 1.000000e+00 : f32
    %593 = vector.broadcast %cst_145 : f32 to vector<8x128xf32>
    %594 = arith.addf %593, %592 : vector<8x128xf32>
    %595 = arith.divf %593, %594 : vector<8x128xf32>
    %596 = vector.extract_strided_slice %577 {offsets = [0, 256], sizes = [8, 128], strides = [1, 1]} : vector<8x384xf32> to vector<8x128xf32>
    %597 = vector.extract_strided_slice %579 {offsets = [0, 256], sizes = [8, 128], strides = [1, 1]} : vector<8x384xf32> to vector<8x128xf32>
    %598 = vector.broadcast %3 : vector<1x128xf32> to vector<8x128xf32>
    %599 = arith.addf %597, %598 : vector<8x128xf32>
    %600 = arith.mulf %587, %599 : vector<8x128xf32>
    %601 = arith.addf %596, %600 : vector<8x128xf32>
    %602 = math.tanh %601 : vector<8x128xf32>
    %cst_146 = arith.constant 1.000000e+00 : f32
    %603 = vector.broadcast %cst_146 : f32 to vector<8x128xf32>
    %604 = arith.subf %603, %595 : vector<8x128xf32>
    %605 = arith.mulf %604, %602 : vector<8x128xf32>
    %606 = arith.mulf %595, %532 : vector<8x128xf32>
    %607 = arith.addf %605, %606 : vector<8x128xf32>
    %608 = arith.index_cast %574 : i32 to index
    %c0_147 = arith.constant 0 : index
    %c128_148 = arith.constant 128 : index
    %609 = vector.load %arg4[%608, %c0_147, %c128_148] : memref<8x8x256xf32, #tpu.memory_space<vmem>>, vector<1x8x128xf32>
    %610 = vector.shape_cast %609 : vector<1x8x128xf32> to vector<8x128xf32>
    %611 = vector.shape_cast %607 : vector<8x128xf32> to vector<1x8x128xf32>
    tpu.vector_store %arg4[%608, %c0_147, %c128_148], %611 {strides = array<i32>} : memref<8x8x256xf32, #tpu.memory_space<vmem>>, vector<1x8x128xf32>,
    %c8_i32 = arith.constant 8 : i32
    %c0_149 = arith.constant 0 : index
    %c0_150 = arith.constant 0 : index
    %c0_151 = arith.constant 0 : index
    %612 = vector.load %arg5[%c0_149, %c0_150, %c0_151] : memref<2x8x128xf32, #tpu.memory_space<vmem>>, vector<1x8x128xf32>
    %613 = vector.shape_cast %612 : vector<1x8x128xf32> to vector<8x128xf32>
    %614 = vector.shape_cast %569 : vector<8x128xf32> to vector<1x8x128xf32>
    tpu.vector_store %arg5[%c0_149, %c0_150, %c0_151], %614 {strides = array<i32>} : memref<2x8x128xf32, #tpu.memory_space<vmem>>, vector<1x8x128xf32>,
    %c1_152 = arith.constant 1 : index
    %c0_153 = arith.constant 0 : index
    %c0_154 = arith.constant 0 : index
    %615 = vector.load %arg5[%c1_152, %c0_153, %c0_154] : memref<2x8x128xf32, #tpu.memory_space<vmem>>, vector<1x8x128xf32>
    %616 = vector.shape_cast %615 : vector<1x8x128xf32> to vector<8x128xf32>
    %617 = vector.shape_cast %607 : vector<8x128xf32> to vector<1x8x128xf32>
    tpu.vector_store %arg5[%c1_152, %c0_153, %c0_154], %617 {strides = array<i32>} : memref<2x8x128xf32, #tpu.memory_space<vmem>>, vector<1x8x128xf32>,
    return
  }
}

module attributes {stable_mosaic.version = 11 : i64} {
  func.func @_gru_recurrence_kernel(%arg0: memref<8x8x768xf32, #tpu.memory_space<vmem>>, %arg1: memref<2x8x128xf32, #tpu.memory_space<vmem>>, %arg2: memref<2x128x384xbf16, #tpu.memory_space<vmem>>, %arg3: memref<2x1x128xf32, #tpu.memory_space<vmem>>, %arg4: memref<8x8x256xf32, #tpu.memory_space<vmem>>, %arg5: memref<2x8x128xf32, #tpu.memory_space<vmem>>) attributes {dimension_semantics = [], scalar_prefetch = 0 : i64, scratch_operands = 0 : i64, tpu.core_type = #tpu.core_type<tc>} {
    %c0 = arith.constant 0 : index
    %c0_0 = arith.constant 0 : index
    %c0_1 = arith.constant 0 : index
    %0 = vector.load %arg3[%c0, %c0_0, %c0_1] : memref<2x1x128xf32, #tpu.memory_space<vmem>>, vector<1x1x128xf32>
    %1 = vector.shape_cast %0 : vector<1x1x128xf32> to vector<1x128xf32>
    %c1 = arith.constant 1 : index
    %c0_2 = arith.constant 0 : index
    %c0_3 = arith.constant 0 : index
    %2 = vector.load %arg3[%c1, %c0_2, %c0_3] : memref<2x1x128xf32, #tpu.memory_space<vmem>>, vector<1x1x128xf32>
    %3 = vector.shape_cast %2 : vector<1x1x128xf32> to vector<1x128xf32>
    %c0_4 = arith.constant 0 : index
    %c0_5 = arith.constant 0 : index
    %c0_6 = arith.constant 0 : index
    %4 = vector.load %arg2[%c0_4, %c0_5, %c0_6] : memref<2x128x384xbf16, #tpu.memory_space<vmem>>, vector<1x128x384xbf16>
    %5 = vector.shape_cast %4 : vector<1x128x384xbf16> to vector<128x384xbf16>
    %c1_7 = arith.constant 1 : index
    %c0_8 = arith.constant 0 : index
    %c0_9 = arith.constant 0 : index
    %6 = vector.load %arg2[%c1_7, %c0_8, %c0_9] : memref<2x128x384xbf16, #tpu.memory_space<vmem>>, vector<1x128x384xbf16>
    %7 = vector.shape_cast %6 : vector<1x128x384xbf16> to vector<128x384xbf16>
    %c0_10 = arith.constant 0 : index
    %c0_11 = arith.constant 0 : index
    %c0_12 = arith.constant 0 : index
    %8 = vector.load %arg1[%c0_10, %c0_11, %c0_12] : memref<2x8x128xf32, #tpu.memory_space<vmem>>, vector<1x8x128xf32>
    %9 = vector.shape_cast %8 : vector<1x8x128xf32> to vector<8x128xf32>
    %c1_13 = arith.constant 1 : index
    %c0_14 = arith.constant 0 : index
    %c0_15 = arith.constant 0 : index
    %10 = vector.load %arg1[%c1_13, %c0_14, %c0_15] : memref<2x8x128xf32, #tpu.memory_space<vmem>>, vector<1x8x128xf32>
    %11 = vector.shape_cast %10 : vector<1x8x128xf32> to vector<8x128xf32>
    %c0_i32 = arith.constant 0 : i32
    %12 = arith.index_cast %c0_i32 : i32 to index
    %c0_16 = arith.constant 0 : index
    %c0_17 = arith.constant 0 : index
    %13 = vector.load %arg0[%12, %c0_16, %c0_17] : memref<8x8x768xf32, #tpu.memory_space<vmem>>, vector<1x8x384xf32>
    %14 = vector.shape_cast %13 : vector<1x8x384xf32> to vector<8x384xf32>
    %15 = arith.truncf %9 : vector<8x128xf32> to vector<8x128xbf16>
    %cst = arith.constant dense<0.000000e+00> : vector<8x384xf32>
    %16 = tpu.matmul %15, %5, %cst {dimension_numbers = #tpu.dot_dimension_numbers<[1], [0], [0], [1], [0, 0, 1, 1], [], []>} : vector<8x128xbf16>, vector<128x384xbf16>, vector<8x384xf32> -> vector<8x384xf32>
    %17 = vector.extract_strided_slice %14 {offsets = [0, 0], sizes = [8, 128], strides = [1, 1]} : vector<8x384xf32> to vector<8x128xf32>
    %18 = vector.extract_strided_slice %16 {offsets = [0, 0], sizes = [8, 128], strides = [1, 1]} : vector<8x384xf32> to vector<8x128xf32>
    %19 = arith.addf %17, %18 : vector<8x128xf32>
    %20 = arith.negf %19 : vector<8x128xf32>
    %21 = math.exp %20 : vector<8x128xf32>
    %cst_18 = arith.constant 1.000000e+00 : f32
    %22 = vector.broadcast %cst_18 : f32 to vector<8x128xf32>
    %23 = arith.addf %22, %21 : vector<8x128xf32>
    %24 = arith.divf %22, %23 : vector<8x128xf32>
    %25 = vector.extract_strided_slice %14 {offsets = [0, 128], sizes = [8, 128], strides = [1, 1]} : vector<8x384xf32> to vector<8x128xf32>
    %26 = vector.extract_strided_slice %16 {offsets = [0, 128], sizes = [8, 128], strides = [1, 1]} : vector<8x384xf32> to vector<8x128xf32>
    %27 = arith.addf %25, %26 : vector<8x128xf32>
    %28 = arith.negf %27 : vector<8x128xf32>
    %29 = math.exp %28 : vector<8x128xf32>
    %cst_19 = arith.constant 1.000000e+00 : f32
    %30 = vector.broadcast %cst_19 : f32 to vector<8x128xf32>
    %31 = arith.addf %30, %29 : vector<8x128xf32>
    %32 = arith.divf %30, %31 : vector<8x128xf32>
    %33 = vector.extract_strided_slice %14 {offsets = [0, 256], sizes = [8, 128], strides = [1, 1]} : vector<8x384xf32> to vector<8x128xf32>
    %34 = vector.extract_strided_slice %16 {offsets = [0, 256], sizes = [8, 128], strides = [1, 1]} : vector<8x384xf32> to vector<8x128xf32>
    %35 = vector.broadcast %1 : vector<1x128xf32> to vector<8x128xf32>
    %36 = arith.addf %34, %35 : vector<8x128xf32>
    %37 = arith.mulf %24, %36 : vector<8x128xf32>
    %38 = arith.addf %33, %37 : vector<8x128xf32>
    %39 = math.tanh %38 : vector<8x128xf32>
    %cst_20 = arith.constant 1.000000e+00 : f32
    %40 = vector.broadcast %cst_20 : f32 to vector<8x128xf32>
    %41 = arith.subf %40, %32 : vector<8x128xf32>
    %42 = arith.mulf %41, %39 : vector<8x128xf32>
    %43 = arith.mulf %32, %9 : vector<8x128xf32>
    %44 = arith.addf %42, %43 : vector<8x128xf32>
    %45 = arith.index_cast %c0_i32 : i32 to index
    %c0_21 = arith.constant 0 : index
    %c0_22 = arith.constant 0 : index
    %46 = vector.load %arg4[%45, %c0_21, %c0_22] : memref<8x8x256xf32, #tpu.memory_space<vmem>>, vector<1x8x128xf32>
    %47 = vector.shape_cast %46 : vector<1x8x128xf32> to vector<8x128xf32>
    %48 = vector.shape_cast %44 : vector<8x128xf32> to vector<1x8x128xf32>
    tpu.vector_store %arg4[%45, %c0_21, %c0_22], %48 {strides = array<i32>} : memref<8x8x256xf32, #tpu.memory_space<vmem>>, vector<1x8x128xf32>,
    %c7_i32 = arith.constant 7 : i32
    %49 = arith.subi %c7_i32, %c0_i32 : i32
    %50 = arith.index_cast %49 : i32 to index
    %c0_23 = arith.constant 0 : index
    %c384 = arith.constant 384 : index
    %51 = vector.load %arg0[%50, %c0_23, %c384] : memref<8x8x768xf32, #tpu.memory_space<vmem>>, vector<1x8x384xf32>
    %52 = vector.shape_cast %51 : vector<1x8x384xf32> to vector<8x384xf32>
    %53 = arith.truncf %11 : vector<8x128xf32> to vector<8x128xbf16>
    %cst_24 = arith.constant dense<0.000000e+00> : vector<8x384xf32>
    %54 = tpu.matmul %53, %7, %cst_24 {dimension_numbers = #tpu.dot_dimension_numbers<[1], [0], [0], [1], [0, 0, 1, 1], [], []>} : vector<8x128xbf16>, vector<128x384xbf16>, vector<8x384xf32> -> vector<8x384xf32>
    %55 = vector.extract_strided_slice %52 {offsets = [0, 0], sizes = [8, 128], strides = [1, 1]} : vector<8x384xf32> to vector<8x128xf32>
    %56 = vector.extract_strided_slice %54 {offsets = [0, 0], sizes = [8, 128], strides = [1, 1]} : vector<8x384xf32> to vector<8x128xf32>
    %57 = arith.addf %55, %56 : vector<8x128xf32>
    %58 = arith.negf %57 : vector<8x128xf32>
    %59 = math.exp %58 : vector<8x128xf32>
    %cst_25 = arith.constant 1.000000e+00 : f32
    %60 = vector.broadcast %cst_25 : f32 to vector<8x128xf32>
    %61 = arith.addf %60, %59 : vector<8x128xf32>
    %62 = arith.divf %60, %61 : vector<8x128xf32>
    %63 = vector.extract_strided_slice %52 {offsets = [0, 128], sizes = [8, 128], strides = [1, 1]} : vector<8x384xf32> to vector<8x128xf32>
    %64 = vector.extract_strided_slice %54 {offsets = [0, 128], sizes = [8, 128], strides = [1, 1]} : vector<8x384xf32> to vector<8x128xf32>
    %65 = arith.addf %63, %64 : vector<8x128xf32>
    %66 = arith.negf %65 : vector<8x128xf32>
    %67 = math.exp %66 : vector<8x128xf32>
    %cst_26 = arith.constant 1.000000e+00 : f32
    %68 = vector.broadcast %cst_26 : f32 to vector<8x128xf32>
    %69 = arith.addf %68, %67 : vector<8x128xf32>
    %70 = arith.divf %68, %69 : vector<8x128xf32>
    %71 = vector.extract_strided_slice %52 {offsets = [0, 256], sizes = [8, 128], strides = [1, 1]} : vector<8x384xf32> to vector<8x128xf32>
    %72 = vector.extract_strided_slice %54 {offsets = [0, 256], sizes = [8, 128], strides = [1, 1]} : vector<8x384xf32> to vector<8x128xf32>
    %73 = vector.broadcast %3 : vector<1x128xf32> to vector<8x128xf32>
    %74 = arith.addf %72, %73 : vector<8x128xf32>
    %75 = arith.mulf %62, %74 : vector<8x128xf32>
    %76 = arith.addf %71, %75 : vector<8x128xf32>
    %77 = math.tanh %76 : vector<8x128xf32>
    %cst_27 = arith.constant 1.000000e+00 : f32
    %78 = vector.broadcast %cst_27 : f32 to vector<8x128xf32>
    %79 = arith.subf %78, %70 : vector<8x128xf32>
    %80 = arith.mulf %79, %77 : vector<8x128xf32>
    %81 = arith.mulf %70, %11 : vector<8x128xf32>
    %82 = arith.addf %80, %81 : vector<8x128xf32>
    %83 = arith.index_cast %49 : i32 to index
    %c0_28 = arith.constant 0 : index
    %c128 = arith.constant 128 : index
    %84 = vector.load %arg4[%83, %c0_28, %c128] : memref<8x8x256xf32, #tpu.memory_space<vmem>>, vector<1x8x128xf32>
    %85 = vector.shape_cast %84 : vector<1x8x128xf32> to vector<8x128xf32>
    %86 = vector.shape_cast %82 : vector<8x128xf32> to vector<1x8x128xf32>
    tpu.vector_store %arg4[%83, %c0_28, %c128], %86 {strides = array<i32>} : memref<8x8x256xf32, #tpu.memory_space<vmem>>, vector<1x8x128xf32>,
    %c1_i32 = arith.constant 1 : i32
    %87 = arith.index_cast %c1_i32 : i32 to index
    %c0_29 = arith.constant 0 : index
    %c0_30 = arith.constant 0 : index
    %88 = vector.load %arg0[%87, %c0_29, %c0_30] : memref<8x8x768xf32, #tpu.memory_space<vmem>>, vector<1x8x384xf32>
    %89 = vector.shape_cast %88 : vector<1x8x384xf32> to vector<8x384xf32>
    %90 = arith.truncf %44 : vector<8x128xf32> to vector<8x128xbf16>
    %cst_31 = arith.constant dense<0.000000e+00> : vector<8x384xf32>
    %91 = tpu.matmul %90, %5, %cst_31 {dimension_numbers = #tpu.dot_dimension_numbers<[1], [0], [0], [1], [0, 0, 1, 1], [], []>} : vector<8x128xbf16>, vector<128x384xbf16>, vector<8x384xf32> -> vector<8x384xf32>
    %92 = vector.extract_strided_slice %89 {offsets = [0, 0], sizes = [8, 128], strides = [1, 1]} : vector<8x384xf32> to vector<8x128xf32>
    %93 = vector.extract_strided_slice %91 {offsets = [0, 0], sizes = [8, 128], strides = [1, 1]} : vector<8x384xf32> to vector<8x128xf32>
    %94 = arith.addf %92, %93 : vector<8x128xf32>
    %95 = arith.negf %94 : vector<8x128xf32>
    %96 = math.exp %95 : vector<8x128xf32>
    %cst_32 = arith.constant 1.000000e+00 : f32
    %97 = vector.broadcast %cst_32 : f32 to vector<8x128xf32>
    %98 = arith.addf %97, %96 : vector<8x128xf32>
    %99 = arith.divf %97, %98 : vector<8x128xf32>
    %100 = vector.extract_strided_slice %89 {offsets = [0, 128], sizes = [8, 128], strides = [1, 1]} : vector<8x384xf32> to vector<8x128xf32>
    %101 = vector.extract_strided_slice %91 {offsets = [0, 128], sizes = [8, 128], strides = [1, 1]} : vector<8x384xf32> to vector<8x128xf32>
    %102 = arith.addf %100, %101 : vector<8x128xf32>
    %103 = arith.negf %102 : vector<8x128xf32>
    %104 = math.exp %103 : vector<8x128xf32>
    %cst_33 = arith.constant 1.000000e+00 : f32
    %105 = vector.broadcast %cst_33 : f32 to vector<8x128xf32>
    %106 = arith.addf %105, %104 : vector<8x128xf32>
    %107 = arith.divf %105, %106 : vector<8x128xf32>
    %108 = vector.extract_strided_slice %89 {offsets = [0, 256], sizes = [8, 128], strides = [1, 1]} : vector<8x384xf32> to vector<8x128xf32>
    %109 = vector.extract_strided_slice %91 {offsets = [0, 256], sizes = [8, 128], strides = [1, 1]} : vector<8x384xf32> to vector<8x128xf32>
    %110 = vector.broadcast %1 : vector<1x128xf32> to vector<8x128xf32>
    %111 = arith.addf %109, %110 : vector<8x128xf32>
    %112 = arith.mulf %99, %111 : vector<8x128xf32>
    %113 = arith.addf %108, %112 : vector<8x128xf32>
    %114 = math.tanh %113 : vector<8x128xf32>
    %cst_34 = arith.constant 1.000000e+00 : f32
    %115 = vector.broadcast %cst_34 : f32 to vector<8x128xf32>
    %116 = arith.subf %115, %107 : vector<8x128xf32>
    %117 = arith.mulf %116, %114 : vector<8x128xf32>
    %118 = arith.mulf %107, %44 : vector<8x128xf32>
    %119 = arith.addf %117, %118 : vector<8x128xf32>
    %120 = arith.index_cast %c1_i32 : i32 to index
    %c0_35 = arith.constant 0 : index
    %c0_36 = arith.constant 0 : index
    %121 = vector.load %arg4[%120, %c0_35, %c0_36] : memref<8x8x256xf32, #tpu.memory_space<vmem>>, vector<1x8x128xf32>
    %122 = vector.shape_cast %121 : vector<1x8x128xf32> to vector<8x128xf32>
    %123 = vector.shape_cast %119 : vector<8x128xf32> to vector<1x8x128xf32>
    tpu.vector_store %arg4[%120, %c0_35, %c0_36], %123 {strides = array<i32>} : memref<8x8x256xf32, #tpu.memory_space<vmem>>, vector<1x8x128xf32>,
    %c7_i32_37 = arith.constant 7 : i32
    %124 = arith.subi %c7_i32_37, %c1_i32 : i32
    %125 = arith.index_cast %124 : i32 to index
    %c0_38 = arith.constant 0 : index
    %c384_39 = arith.constant 384 : index
    %126 = vector.load %arg0[%125, %c0_38, %c384_39] : memref<8x8x768xf32, #tpu.memory_space<vmem>>, vector<1x8x384xf32>
    %127 = vector.shape_cast %126 : vector<1x8x384xf32> to vector<8x384xf32>
    %128 = arith.truncf %82 : vector<8x128xf32> to vector<8x128xbf16>
    %cst_40 = arith.constant dense<0.000000e+00> : vector<8x384xf32>
    %129 = tpu.matmul %128, %7, %cst_40 {dimension_numbers = #tpu.dot_dimension_numbers<[1], [0], [0], [1], [0, 0, 1, 1], [], []>} : vector<8x128xbf16>, vector<128x384xbf16>, vector<8x384xf32> -> vector<8x384xf32>
    %130 = vector.extract_strided_slice %127 {offsets = [0, 0], sizes = [8, 128], strides = [1, 1]} : vector<8x384xf32> to vector<8x128xf32>
    %131 = vector.extract_strided_slice %129 {offsets = [0, 0], sizes = [8, 128], strides = [1, 1]} : vector<8x384xf32> to vector<8x128xf32>
    %132 = arith.addf %130, %131 : vector<8x128xf32>
    %133 = arith.negf %132 : vector<8x128xf32>
    %134 = math.exp %133 : vector<8x128xf32>
    %cst_41 = arith.constant 1.000000e+00 : f32
    %135 = vector.broadcast %cst_41 : f32 to vector<8x128xf32>
    %136 = arith.addf %135, %134 : vector<8x128xf32>
    %137 = arith.divf %135, %136 : vector<8x128xf32>
    %138 = vector.extract_strided_slice %127 {offsets = [0, 128], sizes = [8, 128], strides = [1, 1]} : vector<8x384xf32> to vector<8x128xf32>
    %139 = vector.extract_strided_slice %129 {offsets = [0, 128], sizes = [8, 128], strides = [1, 1]} : vector<8x384xf32> to vector<8x128xf32>
    %140 = arith.addf %138, %139 : vector<8x128xf32>
    %141 = arith.negf %140 : vector<8x128xf32>
    %142 = math.exp %141 : vector<8x128xf32>
    %cst_42 = arith.constant 1.000000e+00 : f32
    %143 = vector.broadcast %cst_42 : f32 to vector<8x128xf32>
    %144 = arith.addf %143, %142 : vector<8x128xf32>
    %145 = arith.divf %143, %144 : vector<8x128xf32>
    %146 = vector.extract_strided_slice %127 {offsets = [0, 256], sizes = [8, 128], strides = [1, 1]} : vector<8x384xf32> to vector<8x128xf32>
    %147 = vector.extract_strided_slice %129 {offsets = [0, 256], sizes = [8, 128], strides = [1, 1]} : vector<8x384xf32> to vector<8x128xf32>
    %148 = vector.broadcast %3 : vector<1x128xf32> to vector<8x128xf32>
    %149 = arith.addf %147, %148 : vector<8x128xf32>
    %150 = arith.mulf %137, %149 : vector<8x128xf32>
    %151 = arith.addf %146, %150 : vector<8x128xf32>
    %152 = math.tanh %151 : vector<8x128xf32>
    %cst_43 = arith.constant 1.000000e+00 : f32
    %153 = vector.broadcast %cst_43 : f32 to vector<8x128xf32>
    %154 = arith.subf %153, %145 : vector<8x128xf32>
    %155 = arith.mulf %154, %152 : vector<8x128xf32>
    %156 = arith.mulf %145, %82 : vector<8x128xf32>
    %157 = arith.addf %155, %156 : vector<8x128xf32>
    %158 = arith.index_cast %124 : i32 to index
    %c0_44 = arith.constant 0 : index
    %c128_45 = arith.constant 128 : index
    %159 = vector.load %arg4[%158, %c0_44, %c128_45] : memref<8x8x256xf32, #tpu.memory_space<vmem>>, vector<1x8x128xf32>
    %160 = vector.shape_cast %159 : vector<1x8x128xf32> to vector<8x128xf32>
    %161 = vector.shape_cast %157 : vector<8x128xf32> to vector<1x8x128xf32>
    tpu.vector_store %arg4[%158, %c0_44, %c128_45], %161 {strides = array<i32>} : memref<8x8x256xf32, #tpu.memory_space<vmem>>, vector<1x8x128xf32>,
    %c2_i32 = arith.constant 2 : i32
    %162 = arith.index_cast %c2_i32 : i32 to index
    %c0_46 = arith.constant 0 : index
    %c0_47 = arith.constant 0 : index
    %163 = vector.load %arg0[%162, %c0_46, %c0_47] : memref<8x8x768xf32, #tpu.memory_space<vmem>>, vector<1x8x384xf32>
    %164 = vector.shape_cast %163 : vector<1x8x384xf32> to vector<8x384xf32>
    %165 = arith.truncf %119 : vector<8x128xf32> to vector<8x128xbf16>
    %cst_48 = arith.constant dense<0.000000e+00> : vector<8x384xf32>
    %166 = tpu.matmul %165, %5, %cst_48 {dimension_numbers = #tpu.dot_dimension_numbers<[1], [0], [0], [1], [0, 0, 1, 1], [], []>} : vector<8x128xbf16>, vector<128x384xbf16>, vector<8x384xf32> -> vector<8x384xf32>
    %167 = vector.extract_strided_slice %164 {offsets = [0, 0], sizes = [8, 128], strides = [1, 1]} : vector<8x384xf32> to vector<8x128xf32>
    %168 = vector.extract_strided_slice %166 {offsets = [0, 0], sizes = [8, 128], strides = [1, 1]} : vector<8x384xf32> to vector<8x128xf32>
    %169 = arith.addf %167, %168 : vector<8x128xf32>
    %170 = arith.negf %169 : vector<8x128xf32>
    %171 = math.exp %170 : vector<8x128xf32>
    %cst_49 = arith.constant 1.000000e+00 : f32
    %172 = vector.broadcast %cst_49 : f32 to vector<8x128xf32>
    %173 = arith.addf %172, %171 : vector<8x128xf32>
    %174 = arith.divf %172, %173 : vector<8x128xf32>
    %175 = vector.extract_strided_slice %164 {offsets = [0, 128], sizes = [8, 128], strides = [1, 1]} : vector<8x384xf32> to vector<8x128xf32>
    %176 = vector.extract_strided_slice %166 {offsets = [0, 128], sizes = [8, 128], strides = [1, 1]} : vector<8x384xf32> to vector<8x128xf32>
    %177 = arith.addf %175, %176 : vector<8x128xf32>
    %178 = arith.negf %177 : vector<8x128xf32>
    %179 = math.exp %178 : vector<8x128xf32>
    %cst_50 = arith.constant 1.000000e+00 : f32
    %180 = vector.broadcast %cst_50 : f32 to vector<8x128xf32>
    %181 = arith.addf %180, %179 : vector<8x128xf32>
    %182 = arith.divf %180, %181 : vector<8x128xf32>
    %183 = vector.extract_strided_slice %164 {offsets = [0, 256], sizes = [8, 128], strides = [1, 1]} : vector<8x384xf32> to vector<8x128xf32>
    %184 = vector.extract_strided_slice %166 {offsets = [0, 256], sizes = [8, 128], strides = [1, 1]} : vector<8x384xf32> to vector<8x128xf32>
    %185 = vector.broadcast %1 : vector<1x128xf32> to vector<8x128xf32>
    %186 = arith.addf %184, %185 : vector<8x128xf32>
    %187 = arith.mulf %174, %186 : vector<8x128xf32>
    %188 = arith.addf %183, %187 : vector<8x128xf32>
    %189 = math.tanh %188 : vector<8x128xf32>
    %cst_51 = arith.constant 1.000000e+00 : f32
    %190 = vector.broadcast %cst_51 : f32 to vector<8x128xf32>
    %191 = arith.subf %190, %182 : vector<8x128xf32>
    %192 = arith.mulf %191, %189 : vector<8x128xf32>
    %193 = arith.mulf %182, %119 : vector<8x128xf32>
    %194 = arith.addf %192, %193 : vector<8x128xf32>
    %195 = arith.index_cast %c2_i32 : i32 to index
    %c0_52 = arith.constant 0 : index
    %c0_53 = arith.constant 0 : index
    %196 = vector.load %arg4[%195, %c0_52, %c0_53] : memref<8x8x256xf32, #tpu.memory_space<vmem>>, vector<1x8x128xf32>
    %197 = vector.shape_cast %196 : vector<1x8x128xf32> to vector<8x128xf32>
    %198 = vector.shape_cast %194 : vector<8x128xf32> to vector<1x8x128xf32>
    tpu.vector_store %arg4[%195, %c0_52, %c0_53], %198 {strides = array<i32>} : memref<8x8x256xf32, #tpu.memory_space<vmem>>, vector<1x8x128xf32>,
    %c7_i32_54 = arith.constant 7 : i32
    %199 = arith.subi %c7_i32_54, %c2_i32 : i32
    %200 = arith.index_cast %199 : i32 to index
    %c0_55 = arith.constant 0 : index
    %c384_56 = arith.constant 384 : index
    %201 = vector.load %arg0[%200, %c0_55, %c384_56] : memref<8x8x768xf32, #tpu.memory_space<vmem>>, vector<1x8x384xf32>
    %202 = vector.shape_cast %201 : vector<1x8x384xf32> to vector<8x384xf32>
    %203 = arith.truncf %157 : vector<8x128xf32> to vector<8x128xbf16>
    %cst_57 = arith.constant dense<0.000000e+00> : vector<8x384xf32>
    %204 = tpu.matmul %203, %7, %cst_57 {dimension_numbers = #tpu.dot_dimension_numbers<[1], [0], [0], [1], [0, 0, 1, 1], [], []>} : vector<8x128xbf16>, vector<128x384xbf16>, vector<8x384xf32> -> vector<8x384xf32>
    %205 = vector.extract_strided_slice %202 {offsets = [0, 0], sizes = [8, 128], strides = [1, 1]} : vector<8x384xf32> to vector<8x128xf32>
    %206 = vector.extract_strided_slice %204 {offsets = [0, 0], sizes = [8, 128], strides = [1, 1]} : vector<8x384xf32> to vector<8x128xf32>
    %207 = arith.addf %205, %206 : vector<8x128xf32>
    %208 = arith.negf %207 : vector<8x128xf32>
    %209 = math.exp %208 : vector<8x128xf32>
    %cst_58 = arith.constant 1.000000e+00 : f32
    %210 = vector.broadcast %cst_58 : f32 to vector<8x128xf32>
    %211 = arith.addf %210, %209 : vector<8x128xf32>
    %212 = arith.divf %210, %211 : vector<8x128xf32>
    %213 = vector.extract_strided_slice %202 {offsets = [0, 128], sizes = [8, 128], strides = [1, 1]} : vector<8x384xf32> to vector<8x128xf32>
    %214 = vector.extract_strided_slice %204 {offsets = [0, 128], sizes = [8, 128], strides = [1, 1]} : vector<8x384xf32> to vector<8x128xf32>
    %215 = arith.addf %213, %214 : vector<8x128xf32>
    %216 = arith.negf %215 : vector<8x128xf32>
    %217 = math.exp %216 : vector<8x128xf32>
    %cst_59 = arith.constant 1.000000e+00 : f32
    %218 = vector.broadcast %cst_59 : f32 to vector<8x128xf32>
    %219 = arith.addf %218, %217 : vector<8x128xf32>
    %220 = arith.divf %218, %219 : vector<8x128xf32>
    %221 = vector.extract_strided_slice %202 {offsets = [0, 256], sizes = [8, 128], strides = [1, 1]} : vector<8x384xf32> to vector<8x128xf32>
    %222 = vector.extract_strided_slice %204 {offsets = [0, 256], sizes = [8, 128], strides = [1, 1]} : vector<8x384xf32> to vector<8x128xf32>
    %223 = vector.broadcast %3 : vector<1x128xf32> to vector<8x128xf32>
    %224 = arith.addf %222, %223 : vector<8x128xf32>
    %225 = arith.mulf %212, %224 : vector<8x128xf32>
    %226 = arith.addf %221, %225 : vector<8x128xf32>
    %227 = math.tanh %226 : vector<8x128xf32>
    %cst_60 = arith.constant 1.000000e+00 : f32
    %228 = vector.broadcast %cst_60 : f32 to vector<8x128xf32>
    %229 = arith.subf %228, %220 : vector<8x128xf32>
    %230 = arith.mulf %229, %227 : vector<8x128xf32>
    %231 = arith.mulf %220, %157 : vector<8x128xf32>
    %232 = arith.addf %230, %231 : vector<8x128xf32>
    %233 = arith.index_cast %199 : i32 to index
    %c0_61 = arith.constant 0 : index
    %c128_62 = arith.constant 128 : index
    %234 = vector.load %arg4[%233, %c0_61, %c128_62] : memref<8x8x256xf32, #tpu.memory_space<vmem>>, vector<1x8x128xf32>
    %235 = vector.shape_cast %234 : vector<1x8x128xf32> to vector<8x128xf32>
    %236 = vector.shape_cast %232 : vector<8x128xf32> to vector<1x8x128xf32>
    tpu.vector_store %arg4[%233, %c0_61, %c128_62], %236 {strides = array<i32>} : memref<8x8x256xf32, #tpu.memory_space<vmem>>, vector<1x8x128xf32>,
    %c3_i32 = arith.constant 3 : i32
    %237 = arith.index_cast %c3_i32 : i32 to index
    %c0_63 = arith.constant 0 : index
    %c0_64 = arith.constant 0 : index
    %238 = vector.load %arg0[%237, %c0_63, %c0_64] : memref<8x8x768xf32, #tpu.memory_space<vmem>>, vector<1x8x384xf32>
    %239 = vector.shape_cast %238 : vector<1x8x384xf32> to vector<8x384xf32>
    %240 = arith.truncf %194 : vector<8x128xf32> to vector<8x128xbf16>
    %cst_65 = arith.constant dense<0.000000e+00> : vector<8x384xf32>
    %241 = tpu.matmul %240, %5, %cst_65 {dimension_numbers = #tpu.dot_dimension_numbers<[1], [0], [0], [1], [0, 0, 1, 1], [], []>} : vector<8x128xbf16>, vector<128x384xbf16>, vector<8x384xf32> -> vector<8x384xf32>
    %242 = vector.extract_strided_slice %239 {offsets = [0, 0], sizes = [8, 128], strides = [1, 1]} : vector<8x384xf32> to vector<8x128xf32>
    %243 = vector.extract_strided_slice %241 {offsets = [0, 0], sizes = [8, 128], strides = [1, 1]} : vector<8x384xf32> to vector<8x128xf32>
    %244 = arith.addf %242, %243 : vector<8x128xf32>
    %245 = arith.negf %244 : vector<8x128xf32>
    %246 = math.exp %245 : vector<8x128xf32>
    %cst_66 = arith.constant 1.000000e+00 : f32
    %247 = vector.broadcast %cst_66 : f32 to vector<8x128xf32>
    %248 = arith.addf %247, %246 : vector<8x128xf32>
    %249 = arith.divf %247, %248 : vector<8x128xf32>
    %250 = vector.extract_strided_slice %239 {offsets = [0, 128], sizes = [8, 128], strides = [1, 1]} : vector<8x384xf32> to vector<8x128xf32>
    %251 = vector.extract_strided_slice %241 {offsets = [0, 128], sizes = [8, 128], strides = [1, 1]} : vector<8x384xf32> to vector<8x128xf32>
    %252 = arith.addf %250, %251 : vector<8x128xf32>
    %253 = arith.negf %252 : vector<8x128xf32>
    %254 = math.exp %253 : vector<8x128xf32>
    %cst_67 = arith.constant 1.000000e+00 : f32
    %255 = vector.broadcast %cst_67 : f32 to vector<8x128xf32>
    %256 = arith.addf %255, %254 : vector<8x128xf32>
    %257 = arith.divf %255, %256 : vector<8x128xf32>
    %258 = vector.extract_strided_slice %239 {offsets = [0, 256], sizes = [8, 128], strides = [1, 1]} : vector<8x384xf32> to vector<8x128xf32>
    %259 = vector.extract_strided_slice %241 {offsets = [0, 256], sizes = [8, 128], strides = [1, 1]} : vector<8x384xf32> to vector<8x128xf32>
    %260 = vector.broadcast %1 : vector<1x128xf32> to vector<8x128xf32>
    %261 = arith.addf %259, %260 : vector<8x128xf32>
    %262 = arith.mulf %249, %261 : vector<8x128xf32>
    %263 = arith.addf %258, %262 : vector<8x128xf32>
    %264 = math.tanh %263 : vector<8x128xf32>
    %cst_68 = arith.constant 1.000000e+00 : f32
    %265 = vector.broadcast %cst_68 : f32 to vector<8x128xf32>
    %266 = arith.subf %265, %257 : vector<8x128xf32>
    %267 = arith.mulf %266, %264 : vector<8x128xf32>
    %268 = arith.mulf %257, %194 : vector<8x128xf32>
    %269 = arith.addf %267, %268 : vector<8x128xf32>
    %270 = arith.index_cast %c3_i32 : i32 to index
    %c0_69 = arith.constant 0 : index
    %c0_70 = arith.constant 0 : index
    %271 = vector.load %arg4[%270, %c0_69, %c0_70] : memref<8x8x256xf32, #tpu.memory_space<vmem>>, vector<1x8x128xf32>
    %272 = vector.shape_cast %271 : vector<1x8x128xf32> to vector<8x128xf32>
    %273 = vector.shape_cast %269 : vector<8x128xf32> to vector<1x8x128xf32>
    tpu.vector_store %arg4[%270, %c0_69, %c0_70], %273 {strides = array<i32>} : memref<8x8x256xf32, #tpu.memory_space<vmem>>, vector<1x8x128xf32>,
    %c7_i32_71 = arith.constant 7 : i32
    %274 = arith.subi %c7_i32_71, %c3_i32 : i32
    %275 = arith.index_cast %274 : i32 to index
    %c0_72 = arith.constant 0 : index
    %c384_73 = arith.constant 384 : index
    %276 = vector.load %arg0[%275, %c0_72, %c384_73] : memref<8x8x768xf32, #tpu.memory_space<vmem>>, vector<1x8x384xf32>
    %277 = vector.shape_cast %276 : vector<1x8x384xf32> to vector<8x384xf32>
    %278 = arith.truncf %232 : vector<8x128xf32> to vector<8x128xbf16>
    %cst_74 = arith.constant dense<0.000000e+00> : vector<8x384xf32>
    %279 = tpu.matmul %278, %7, %cst_74 {dimension_numbers = #tpu.dot_dimension_numbers<[1], [0], [0], [1], [0, 0, 1, 1], [], []>} : vector<8x128xbf16>, vector<128x384xbf16>, vector<8x384xf32> -> vector<8x384xf32>
    %280 = vector.extract_strided_slice %277 {offsets = [0, 0], sizes = [8, 128], strides = [1, 1]} : vector<8x384xf32> to vector<8x128xf32>
    %281 = vector.extract_strided_slice %279 {offsets = [0, 0], sizes = [8, 128], strides = [1, 1]} : vector<8x384xf32> to vector<8x128xf32>
    %282 = arith.addf %280, %281 : vector<8x128xf32>
    %283 = arith.negf %282 : vector<8x128xf32>
    %284 = math.exp %283 : vector<8x128xf32>
    %cst_75 = arith.constant 1.000000e+00 : f32
    %285 = vector.broadcast %cst_75 : f32 to vector<8x128xf32>
    %286 = arith.addf %285, %284 : vector<8x128xf32>
    %287 = arith.divf %285, %286 : vector<8x128xf32>
    %288 = vector.extract_strided_slice %277 {offsets = [0, 128], sizes = [8, 128], strides = [1, 1]} : vector<8x384xf32> to vector<8x128xf32>
    %289 = vector.extract_strided_slice %279 {offsets = [0, 128], sizes = [8, 128], strides = [1, 1]} : vector<8x384xf32> to vector<8x128xf32>
    %290 = arith.addf %288, %289 : vector<8x128xf32>
    %291 = arith.negf %290 : vector<8x128xf32>
    %292 = math.exp %291 : vector<8x128xf32>
    %cst_76 = arith.constant 1.000000e+00 : f32
    %293 = vector.broadcast %cst_76 : f32 to vector<8x128xf32>
    %294 = arith.addf %293, %292 : vector<8x128xf32>
    %295 = arith.divf %293, %294 : vector<8x128xf32>
    %296 = vector.extract_strided_slice %277 {offsets = [0, 256], sizes = [8, 128], strides = [1, 1]} : vector<8x384xf32> to vector<8x128xf32>
    %297 = vector.extract_strided_slice %279 {offsets = [0, 256], sizes = [8, 128], strides = [1, 1]} : vector<8x384xf32> to vector<8x128xf32>
    %298 = vector.broadcast %3 : vector<1x128xf32> to vector<8x128xf32>
    %299 = arith.addf %297, %298 : vector<8x128xf32>
    %300 = arith.mulf %287, %299 : vector<8x128xf32>
    %301 = arith.addf %296, %300 : vector<8x128xf32>
    %302 = math.tanh %301 : vector<8x128xf32>
    %cst_77 = arith.constant 1.000000e+00 : f32
    %303 = vector.broadcast %cst_77 : f32 to vector<8x128xf32>
    %304 = arith.subf %303, %295 : vector<8x128xf32>
    %305 = arith.mulf %304, %302 : vector<8x128xf32>
    %306 = arith.mulf %295, %232 : vector<8x128xf32>
    %307 = arith.addf %305, %306 : vector<8x128xf32>
    %308 = arith.index_cast %274 : i32 to index
    %c0_78 = arith.constant 0 : index
    %c128_79 = arith.constant 128 : index
    %309 = vector.load %arg4[%308, %c0_78, %c128_79] : memref<8x8x256xf32, #tpu.memory_space<vmem>>, vector<1x8x128xf32>
    %310 = vector.shape_cast %309 : vector<1x8x128xf32> to vector<8x128xf32>
    %311 = vector.shape_cast %307 : vector<8x128xf32> to vector<1x8x128xf32>
    tpu.vector_store %arg4[%308, %c0_78, %c128_79], %311 {strides = array<i32>} : memref<8x8x256xf32, #tpu.memory_space<vmem>>, vector<1x8x128xf32>,
    %c4_i32 = arith.constant 4 : i32
    %312 = arith.index_cast %c4_i32 : i32 to index
    %c0_80 = arith.constant 0 : index
    %c0_81 = arith.constant 0 : index
    %313 = vector.load %arg0[%312, %c0_80, %c0_81] : memref<8x8x768xf32, #tpu.memory_space<vmem>>, vector<1x8x384xf32>
    %314 = vector.shape_cast %313 : vector<1x8x384xf32> to vector<8x384xf32>
    %315 = arith.truncf %269 : vector<8x128xf32> to vector<8x128xbf16>
    %cst_82 = arith.constant dense<0.000000e+00> : vector<8x384xf32>
    %316 = tpu.matmul %315, %5, %cst_82 {dimension_numbers = #tpu.dot_dimension_numbers<[1], [0], [0], [1], [0, 0, 1, 1], [], []>} : vector<8x128xbf16>, vector<128x384xbf16>, vector<8x384xf32> -> vector<8x384xf32>
    %317 = vector.extract_strided_slice %314 {offsets = [0, 0], sizes = [8, 128], strides = [1, 1]} : vector<8x384xf32> to vector<8x128xf32>
    %318 = vector.extract_strided_slice %316 {offsets = [0, 0], sizes = [8, 128], strides = [1, 1]} : vector<8x384xf32> to vector<8x128xf32>
    %319 = arith.addf %317, %318 : vector<8x128xf32>
    %320 = arith.negf %319 : vector<8x128xf32>
    %321 = math.exp %320 : vector<8x128xf32>
    %cst_83 = arith.constant 1.000000e+00 : f32
    %322 = vector.broadcast %cst_83 : f32 to vector<8x128xf32>
    %323 = arith.addf %322, %321 : vector<8x128xf32>
    %324 = arith.divf %322, %323 : vector<8x128xf32>
    %325 = vector.extract_strided_slice %314 {offsets = [0, 128], sizes = [8, 128], strides = [1, 1]} : vector<8x384xf32> to vector<8x128xf32>
    %326 = vector.extract_strided_slice %316 {offsets = [0, 128], sizes = [8, 128], strides = [1, 1]} : vector<8x384xf32> to vector<8x128xf32>
    %327 = arith.addf %325, %326 : vector<8x128xf32>
    %328 = arith.negf %327 : vector<8x128xf32>
    %329 = math.exp %328 : vector<8x128xf32>
    %cst_84 = arith.constant 1.000000e+00 : f32
    %330 = vector.broadcast %cst_84 : f32 to vector<8x128xf32>
    %331 = arith.addf %330, %329 : vector<8x128xf32>
    %332 = arith.divf %330, %331 : vector<8x128xf32>
    %333 = vector.extract_strided_slice %314 {offsets = [0, 256], sizes = [8, 128], strides = [1, 1]} : vector<8x384xf32> to vector<8x128xf32>
    %334 = vector.extract_strided_slice %316 {offsets = [0, 256], sizes = [8, 128], strides = [1, 1]} : vector<8x384xf32> to vector<8x128xf32>
    %335 = vector.broadcast %1 : vector<1x128xf32> to vector<8x128xf32>
    %336 = arith.addf %334, %335 : vector<8x128xf32>
    %337 = arith.mulf %324, %336 : vector<8x128xf32>
    %338 = arith.addf %333, %337 : vector<8x128xf32>
    %339 = math.tanh %338 : vector<8x128xf32>
    %cst_85 = arith.constant 1.000000e+00 : f32
    %340 = vector.broadcast %cst_85 : f32 to vector<8x128xf32>
    %341 = arith.subf %340, %332 : vector<8x128xf32>
    %342 = arith.mulf %341, %339 : vector<8x128xf32>
    %343 = arith.mulf %332, %269 : vector<8x128xf32>
    %344 = arith.addf %342, %343 : vector<8x128xf32>
    %345 = arith.index_cast %c4_i32 : i32 to index
    %c0_86 = arith.constant 0 : index
    %c0_87 = arith.constant 0 : index
    %346 = vector.load %arg4[%345, %c0_86, %c0_87] : memref<8x8x256xf32, #tpu.memory_space<vmem>>, vector<1x8x128xf32>
    %347 = vector.shape_cast %346 : vector<1x8x128xf32> to vector<8x128xf32>
    %348 = vector.shape_cast %344 : vector<8x128xf32> to vector<1x8x128xf32>
    tpu.vector_store %arg4[%345, %c0_86, %c0_87], %348 {strides = array<i32>} : memref<8x8x256xf32, #tpu.memory_space<vmem>>, vector<1x8x128xf32>,
    %c7_i32_88 = arith.constant 7 : i32
    %349 = arith.subi %c7_i32_88, %c4_i32 : i32
    %350 = arith.index_cast %349 : i32 to index
    %c0_89 = arith.constant 0 : index
    %c384_90 = arith.constant 384 : index
    %351 = vector.load %arg0[%350, %c0_89, %c384_90] : memref<8x8x768xf32, #tpu.memory_space<vmem>>, vector<1x8x384xf32>
    %352 = vector.shape_cast %351 : vector<1x8x384xf32> to vector<8x384xf32>
    %353 = arith.truncf %307 : vector<8x128xf32> to vector<8x128xbf16>
    %cst_91 = arith.constant dense<0.000000e+00> : vector<8x384xf32>
    %354 = tpu.matmul %353, %7, %cst_91 {dimension_numbers = #tpu.dot_dimension_numbers<[1], [0], [0], [1], [0, 0, 1, 1], [], []>} : vector<8x128xbf16>, vector<128x384xbf16>, vector<8x384xf32> -> vector<8x384xf32>
    %355 = vector.extract_strided_slice %352 {offsets = [0, 0], sizes = [8, 128], strides = [1, 1]} : vector<8x384xf32> to vector<8x128xf32>
    %356 = vector.extract_strided_slice %354 {offsets = [0, 0], sizes = [8, 128], strides = [1, 1]} : vector<8x384xf32> to vector<8x128xf32>
    %357 = arith.addf %355, %356 : vector<8x128xf32>
    %358 = arith.negf %357 : vector<8x128xf32>
    %359 = math.exp %358 : vector<8x128xf32>
    %cst_92 = arith.constant 1.000000e+00 : f32
    %360 = vector.broadcast %cst_92 : f32 to vector<8x128xf32>
    %361 = arith.addf %360, %359 : vector<8x128xf32>
    %362 = arith.divf %360, %361 : vector<8x128xf32>
    %363 = vector.extract_strided_slice %352 {offsets = [0, 128], sizes = [8, 128], strides = [1, 1]} : vector<8x384xf32> to vector<8x128xf32>
    %364 = vector.extract_strided_slice %354 {offsets = [0, 128], sizes = [8, 128], strides = [1, 1]} : vector<8x384xf32> to vector<8x128xf32>
    %365 = arith.addf %363, %364 : vector<8x128xf32>
    %366 = arith.negf %365 : vector<8x128xf32>
    %367 = math.exp %366 : vector<8x128xf32>
    %cst_93 = arith.constant 1.000000e+00 : f32
    %368 = vector.broadcast %cst_93 : f32 to vector<8x128xf32>
    %369 = arith.addf %368, %367 : vector<8x128xf32>
    %370 = arith.divf %368, %369 : vector<8x128xf32>
    %371 = vector.extract_strided_slice %352 {offsets = [0, 256], sizes = [8, 128], strides = [1, 1]} : vector<8x384xf32> to vector<8x128xf32>
    %372 = vector.extract_strided_slice %354 {offsets = [0, 256], sizes = [8, 128], strides = [1, 1]} : vector<8x384xf32> to vector<8x128xf32>
    %373 = vector.broadcast %3 : vector<1x128xf32> to vector<8x128xf32>
    %374 = arith.addf %372, %373 : vector<8x128xf32>
    %375 = arith.mulf %362, %374 : vector<8x128xf32>
    %376 = arith.addf %371, %375 : vector<8x128xf32>
    %377 = math.tanh %376 : vector<8x128xf32>
    %cst_94 = arith.constant 1.000000e+00 : f32
    %378 = vector.broadcast %cst_94 : f32 to vector<8x128xf32>
    %379 = arith.subf %378, %370 : vector<8x128xf32>
    %380 = arith.mulf %379, %377 : vector<8x128xf32>
    %381 = arith.mulf %370, %307 : vector<8x128xf32>
    %382 = arith.addf %380, %381 : vector<8x128xf32>
    %383 = arith.index_cast %349 : i32 to index
    %c0_95 = arith.constant 0 : index
    %c128_96 = arith.constant 128 : index
    %384 = vector.load %arg4[%383, %c0_95, %c128_96] : memref<8x8x256xf32, #tpu.memory_space<vmem>>, vector<1x8x128xf32>
    %385 = vector.shape_cast %384 : vector<1x8x128xf32> to vector<8x128xf32>
    %386 = vector.shape_cast %382 : vector<8x128xf32> to vector<1x8x128xf32>
    tpu.vector_store %arg4[%383, %c0_95, %c128_96], %386 {strides = array<i32>} : memref<8x8x256xf32, #tpu.memory_space<vmem>>, vector<1x8x128xf32>,
    %c5_i32 = arith.constant 5 : i32
    %387 = arith.index_cast %c5_i32 : i32 to index
    %c0_97 = arith.constant 0 : index
    %c0_98 = arith.constant 0 : index
    %388 = vector.load %arg0[%387, %c0_97, %c0_98] : memref<8x8x768xf32, #tpu.memory_space<vmem>>, vector<1x8x384xf32>
    %389 = vector.shape_cast %388 : vector<1x8x384xf32> to vector<8x384xf32>
    %390 = arith.truncf %344 : vector<8x128xf32> to vector<8x128xbf16>
    %cst_99 = arith.constant dense<0.000000e+00> : vector<8x384xf32>
    %391 = tpu.matmul %390, %5, %cst_99 {dimension_numbers = #tpu.dot_dimension_numbers<[1], [0], [0], [1], [0, 0, 1, 1], [], []>} : vector<8x128xbf16>, vector<128x384xbf16>, vector<8x384xf32> -> vector<8x384xf32>
    %392 = vector.extract_strided_slice %389 {offsets = [0, 0], sizes = [8, 128], strides = [1, 1]} : vector<8x384xf32> to vector<8x128xf32>
    %393 = vector.extract_strided_slice %391 {offsets = [0, 0], sizes = [8, 128], strides = [1, 1]} : vector<8x384xf32> to vector<8x128xf32>
    %394 = arith.addf %392, %393 : vector<8x128xf32>
    %395 = arith.negf %394 : vector<8x128xf32>
    %396 = math.exp %395 : vector<8x128xf32>
    %cst_100 = arith.constant 1.000000e+00 : f32
    %397 = vector.broadcast %cst_100 : f32 to vector<8x128xf32>
    %398 = arith.addf %397, %396 : vector<8x128xf32>
    %399 = arith.divf %397, %398 : vector<8x128xf32>
    %400 = vector.extract_strided_slice %389 {offsets = [0, 128], sizes = [8, 128], strides = [1, 1]} : vector<8x384xf32> to vector<8x128xf32>
    %401 = vector.extract_strided_slice %391 {offsets = [0, 128], sizes = [8, 128], strides = [1, 1]} : vector<8x384xf32> to vector<8x128xf32>
    %402 = arith.addf %400, %401 : vector<8x128xf32>
    %403 = arith.negf %402 : vector<8x128xf32>
    %404 = math.exp %403 : vector<8x128xf32>
    %cst_101 = arith.constant 1.000000e+00 : f32
    %405 = vector.broadcast %cst_101 : f32 to vector<8x128xf32>
    %406 = arith.addf %405, %404 : vector<8x128xf32>
    %407 = arith.divf %405, %406 : vector<8x128xf32>
    %408 = vector.extract_strided_slice %389 {offsets = [0, 256], sizes = [8, 128], strides = [1, 1]} : vector<8x384xf32> to vector<8x128xf32>
    %409 = vector.extract_strided_slice %391 {offsets = [0, 256], sizes = [8, 128], strides = [1, 1]} : vector<8x384xf32> to vector<8x128xf32>
    %410 = vector.broadcast %1 : vector<1x128xf32> to vector<8x128xf32>
    %411 = arith.addf %409, %410 : vector<8x128xf32>
    %412 = arith.mulf %399, %411 : vector<8x128xf32>
    %413 = arith.addf %408, %412 : vector<8x128xf32>
    %414 = math.tanh %413 : vector<8x128xf32>
    %cst_102 = arith.constant 1.000000e+00 : f32
    %415 = vector.broadcast %cst_102 : f32 to vector<8x128xf32>
    %416 = arith.subf %415, %407 : vector<8x128xf32>
    %417 = arith.mulf %416, %414 : vector<8x128xf32>
    %418 = arith.mulf %407, %344 : vector<8x128xf32>
    %419 = arith.addf %417, %418 : vector<8x128xf32>
    %420 = arith.index_cast %c5_i32 : i32 to index
    %c0_103 = arith.constant 0 : index
    %c0_104 = arith.constant 0 : index
    %421 = vector.load %arg4[%420, %c0_103, %c0_104] : memref<8x8x256xf32, #tpu.memory_space<vmem>>, vector<1x8x128xf32>
    %422 = vector.shape_cast %421 : vector<1x8x128xf32> to vector<8x128xf32>
    %423 = vector.shape_cast %419 : vector<8x128xf32> to vector<1x8x128xf32>
    tpu.vector_store %arg4[%420, %c0_103, %c0_104], %423 {strides = array<i32>} : memref<8x8x256xf32, #tpu.memory_space<vmem>>, vector<1x8x128xf32>,
    %c7_i32_105 = arith.constant 7 : i32
    %424 = arith.subi %c7_i32_105, %c5_i32 : i32
    %425 = arith.index_cast %424 : i32 to index
    %c0_106 = arith.constant 0 : index
    %c384_107 = arith.constant 384 : index
    %426 = vector.load %arg0[%425, %c0_106, %c384_107] : memref<8x8x768xf32, #tpu.memory_space<vmem>>, vector<1x8x384xf32>
    %427 = vector.shape_cast %426 : vector<1x8x384xf32> to vector<8x384xf32>
    %428 = arith.truncf %382 : vector<8x128xf32> to vector<8x128xbf16>
    %cst_108 = arith.constant dense<0.000000e+00> : vector<8x384xf32>
    %429 = tpu.matmul %428, %7, %cst_108 {dimension_numbers = #tpu.dot_dimension_numbers<[1], [0], [0], [1], [0, 0, 1, 1], [], []>} : vector<8x128xbf16>, vector<128x384xbf16>, vector<8x384xf32> -> vector<8x384xf32>
    %430 = vector.extract_strided_slice %427 {offsets = [0, 0], sizes = [8, 128], strides = [1, 1]} : vector<8x384xf32> to vector<8x128xf32>
    %431 = vector.extract_strided_slice %429 {offsets = [0, 0], sizes = [8, 128], strides = [1, 1]} : vector<8x384xf32> to vector<8x128xf32>
    %432 = arith.addf %430, %431 : vector<8x128xf32>
    %433 = arith.negf %432 : vector<8x128xf32>
    %434 = math.exp %433 : vector<8x128xf32>
    %cst_109 = arith.constant 1.000000e+00 : f32
    %435 = vector.broadcast %cst_109 : f32 to vector<8x128xf32>
    %436 = arith.addf %435, %434 : vector<8x128xf32>
    %437 = arith.divf %435, %436 : vector<8x128xf32>
    %438 = vector.extract_strided_slice %427 {offsets = [0, 128], sizes = [8, 128], strides = [1, 1]} : vector<8x384xf32> to vector<8x128xf32>
    %439 = vector.extract_strided_slice %429 {offsets = [0, 128], sizes = [8, 128], strides = [1, 1]} : vector<8x384xf32> to vector<8x128xf32>
    %440 = arith.addf %438, %439 : vector<8x128xf32>
    %441 = arith.negf %440 : vector<8x128xf32>
    %442 = math.exp %441 : vector<8x128xf32>
    %cst_110 = arith.constant 1.000000e+00 : f32
    %443 = vector.broadcast %cst_110 : f32 to vector<8x128xf32>
    %444 = arith.addf %443, %442 : vector<8x128xf32>
    %445 = arith.divf %443, %444 : vector<8x128xf32>
    %446 = vector.extract_strided_slice %427 {offsets = [0, 256], sizes = [8, 128], strides = [1, 1]} : vector<8x384xf32> to vector<8x128xf32>
    %447 = vector.extract_strided_slice %429 {offsets = [0, 256], sizes = [8, 128], strides = [1, 1]} : vector<8x384xf32> to vector<8x128xf32>
    %448 = vector.broadcast %3 : vector<1x128xf32> to vector<8x128xf32>
    %449 = arith.addf %447, %448 : vector<8x128xf32>
    %450 = arith.mulf %437, %449 : vector<8x128xf32>
    %451 = arith.addf %446, %450 : vector<8x128xf32>
    %452 = math.tanh %451 : vector<8x128xf32>
    %cst_111 = arith.constant 1.000000e+00 : f32
    %453 = vector.broadcast %cst_111 : f32 to vector<8x128xf32>
    %454 = arith.subf %453, %445 : vector<8x128xf32>
    %455 = arith.mulf %454, %452 : vector<8x128xf32>
    %456 = arith.mulf %445, %382 : vector<8x128xf32>
    %457 = arith.addf %455, %456 : vector<8x128xf32>
    %458 = arith.index_cast %424 : i32 to index
    %c0_112 = arith.constant 0 : index
    %c128_113 = arith.constant 128 : index
    %459 = vector.load %arg4[%458, %c0_112, %c128_113] : memref<8x8x256xf32, #tpu.memory_space<vmem>>, vector<1x8x128xf32>
    %460 = vector.shape_cast %459 : vector<1x8x128xf32> to vector<8x128xf32>
    %461 = vector.shape_cast %457 : vector<8x128xf32> to vector<1x8x128xf32>
    tpu.vector_store %arg4[%458, %c0_112, %c128_113], %461 {strides = array<i32>} : memref<8x8x256xf32, #tpu.memory_space<vmem>>, vector<1x8x128xf32>,
    %c6_i32 = arith.constant 6 : i32
    %462 = arith.index_cast %c6_i32 : i32 to index
    %c0_114 = arith.constant 0 : index
    %c0_115 = arith.constant 0 : index
    %463 = vector.load %arg0[%462, %c0_114, %c0_115] : memref<8x8x768xf32, #tpu.memory_space<vmem>>, vector<1x8x384xf32>
    %464 = vector.shape_cast %463 : vector<1x8x384xf32> to vector<8x384xf32>
    %465 = arith.truncf %419 : vector<8x128xf32> to vector<8x128xbf16>
    %cst_116 = arith.constant dense<0.000000e+00> : vector<8x384xf32>
    %466 = tpu.matmul %465, %5, %cst_116 {dimension_numbers = #tpu.dot_dimension_numbers<[1], [0], [0], [1], [0, 0, 1, 1], [], []>} : vector<8x128xbf16>, vector<128x384xbf16>, vector<8x384xf32> -> vector<8x384xf32>
    %467 = vector.extract_strided_slice %464 {offsets = [0, 0], sizes = [8, 128], strides = [1, 1]} : vector<8x384xf32> to vector<8x128xf32>
    %468 = vector.extract_strided_slice %466 {offsets = [0, 0], sizes = [8, 128], strides = [1, 1]} : vector<8x384xf32> to vector<8x128xf32>
    %469 = arith.addf %467, %468 : vector<8x128xf32>
    %470 = arith.negf %469 : vector<8x128xf32>
    %471 = math.exp %470 : vector<8x128xf32>
    %cst_117 = arith.constant 1.000000e+00 : f32
    %472 = vector.broadcast %cst_117 : f32 to vector<8x128xf32>
    %473 = arith.addf %472, %471 : vector<8x128xf32>
    %474 = arith.divf %472, %473 : vector<8x128xf32>
    %475 = vector.extract_strided_slice %464 {offsets = [0, 128], sizes = [8, 128], strides = [1, 1]} : vector<8x384xf32> to vector<8x128xf32>
    %476 = vector.extract_strided_slice %466 {offsets = [0, 128], sizes = [8, 128], strides = [1, 1]} : vector<8x384xf32> to vector<8x128xf32>
    %477 = arith.addf %475, %476 : vector<8x128xf32>
    %478 = arith.negf %477 : vector<8x128xf32>
    %479 = math.exp %478 : vector<8x128xf32>
    %cst_118 = arith.constant 1.000000e+00 : f32
    %480 = vector.broadcast %cst_118 : f32 to vector<8x128xf32>
    %481 = arith.addf %480, %479 : vector<8x128xf32>
    %482 = arith.divf %480, %481 : vector<8x128xf32>
    %483 = vector.extract_strided_slice %464 {offsets = [0, 256], sizes = [8, 128], strides = [1, 1]} : vector<8x384xf32> to vector<8x128xf32>
    %484 = vector.extract_strided_slice %466 {offsets = [0, 256], sizes = [8, 128], strides = [1, 1]} : vector<8x384xf32> to vector<8x128xf32>
    %485 = vector.broadcast %1 : vector<1x128xf32> to vector<8x128xf32>
    %486 = arith.addf %484, %485 : vector<8x128xf32>
    %487 = arith.mulf %474, %486 : vector<8x128xf32>
    %488 = arith.addf %483, %487 : vector<8x128xf32>
    %489 = math.tanh %488 : vector<8x128xf32>
    %cst_119 = arith.constant 1.000000e+00 : f32
    %490 = vector.broadcast %cst_119 : f32 to vector<8x128xf32>
    %491 = arith.subf %490, %482 : vector<8x128xf32>
    %492 = arith.mulf %491, %489 : vector<8x128xf32>
    %493 = arith.mulf %482, %419 : vector<8x128xf32>
    %494 = arith.addf %492, %493 : vector<8x128xf32>
    %495 = arith.index_cast %c6_i32 : i32 to index
    %c0_120 = arith.constant 0 : index
    %c0_121 = arith.constant 0 : index
    %496 = vector.load %arg4[%495, %c0_120, %c0_121] : memref<8x8x256xf32, #tpu.memory_space<vmem>>, vector<1x8x128xf32>
    %497 = vector.shape_cast %496 : vector<1x8x128xf32> to vector<8x128xf32>
    %498 = vector.shape_cast %494 : vector<8x128xf32> to vector<1x8x128xf32>
    tpu.vector_store %arg4[%495, %c0_120, %c0_121], %498 {strides = array<i32>} : memref<8x8x256xf32, #tpu.memory_space<vmem>>, vector<1x8x128xf32>,
    %c7_i32_122 = arith.constant 7 : i32
    %499 = arith.subi %c7_i32_122, %c6_i32 : i32
    %500 = arith.index_cast %499 : i32 to index
    %c0_123 = arith.constant 0 : index
    %c384_124 = arith.constant 384 : index
    %501 = vector.load %arg0[%500, %c0_123, %c384_124] : memref<8x8x768xf32, #tpu.memory_space<vmem>>, vector<1x8x384xf32>
    %502 = vector.shape_cast %501 : vector<1x8x384xf32> to vector<8x384xf32>
    %503 = arith.truncf %457 : vector<8x128xf32> to vector<8x128xbf16>
    %cst_125 = arith.constant dense<0.000000e+00> : vector<8x384xf32>
    %504 = tpu.matmul %503, %7, %cst_125 {dimension_numbers = #tpu.dot_dimension_numbers<[1], [0], [0], [1], [0, 0, 1, 1], [], []>} : vector<8x128xbf16>, vector<128x384xbf16>, vector<8x384xf32> -> vector<8x384xf32>
    %505 = vector.extract_strided_slice %502 {offsets = [0, 0], sizes = [8, 128], strides = [1, 1]} : vector<8x384xf32> to vector<8x128xf32>
    %506 = vector.extract_strided_slice %504 {offsets = [0, 0], sizes = [8, 128], strides = [1, 1]} : vector<8x384xf32> to vector<8x128xf32>
    %507 = arith.addf %505, %506 : vector<8x128xf32>
    %508 = arith.negf %507 : vector<8x128xf32>
    %509 = math.exp %508 : vector<8x128xf32>
    %cst_126 = arith.constant 1.000000e+00 : f32
    %510 = vector.broadcast %cst_126 : f32 to vector<8x128xf32>
    %511 = arith.addf %510, %509 : vector<8x128xf32>
    %512 = arith.divf %510, %511 : vector<8x128xf32>
    %513 = vector.extract_strided_slice %502 {offsets = [0, 128], sizes = [8, 128], strides = [1, 1]} : vector<8x384xf32> to vector<8x128xf32>
    %514 = vector.extract_strided_slice %504 {offsets = [0, 128], sizes = [8, 128], strides = [1, 1]} : vector<8x384xf32> to vector<8x128xf32>
    %515 = arith.addf %513, %514 : vector<8x128xf32>
    %516 = arith.negf %515 : vector<8x128xf32>
    %517 = math.exp %516 : vector<8x128xf32>
    %cst_127 = arith.constant 1.000000e+00 : f32
    %518 = vector.broadcast %cst_127 : f32 to vector<8x128xf32>
    %519 = arith.addf %518, %517 : vector<8x128xf32>
    %520 = arith.divf %518, %519 : vector<8x128xf32>
    %521 = vector.extract_strided_slice %502 {offsets = [0, 256], sizes = [8, 128], strides = [1, 1]} : vector<8x384xf32> to vector<8x128xf32>
    %522 = vector.extract_strided_slice %504 {offsets = [0, 256], sizes = [8, 128], strides = [1, 1]} : vector<8x384xf32> to vector<8x128xf32>
    %523 = vector.broadcast %3 : vector<1x128xf32> to vector<8x128xf32>
    %524 = arith.addf %522, %523 : vector<8x128xf32>
    %525 = arith.mulf %512, %524 : vector<8x128xf32>
    %526 = arith.addf %521, %525 : vector<8x128xf32>
    %527 = math.tanh %526 : vector<8x128xf32>
    %cst_128 = arith.constant 1.000000e+00 : f32
    %528 = vector.broadcast %cst_128 : f32 to vector<8x128xf32>
    %529 = arith.subf %528, %520 : vector<8x128xf32>
    %530 = arith.mulf %529, %527 : vector<8x128xf32>
    %531 = arith.mulf %520, %457 : vector<8x128xf32>
    %532 = arith.addf %530, %531 : vector<8x128xf32>
    %533 = arith.index_cast %499 : i32 to index
    %c0_129 = arith.constant 0 : index
    %c128_130 = arith.constant 128 : index
    %534 = vector.load %arg4[%533, %c0_129, %c128_130] : memref<8x8x256xf32, #tpu.memory_space<vmem>>, vector<1x8x128xf32>
    %535 = vector.shape_cast %534 : vector<1x8x128xf32> to vector<8x128xf32>
    %536 = vector.shape_cast %532 : vector<8x128xf32> to vector<1x8x128xf32>
    tpu.vector_store %arg4[%533, %c0_129, %c128_130], %536 {strides = array<i32>} : memref<8x8x256xf32, #tpu.memory_space<vmem>>, vector<1x8x128xf32>,
    %c7_i32_131 = arith.constant 7 : i32
    %537 = arith.index_cast %c7_i32_131 : i32 to index
    %c0_132 = arith.constant 0 : index
    %c0_133 = arith.constant 0 : index
    %538 = vector.load %arg0[%537, %c0_132, %c0_133] : memref<8x8x768xf32, #tpu.memory_space<vmem>>, vector<1x8x384xf32>
    %539 = vector.shape_cast %538 : vector<1x8x384xf32> to vector<8x384xf32>
    %540 = arith.truncf %494 : vector<8x128xf32> to vector<8x128xbf16>
    %cst_134 = arith.constant dense<0.000000e+00> : vector<8x384xf32>
    %541 = tpu.matmul %540, %5, %cst_134 {dimension_numbers = #tpu.dot_dimension_numbers<[1], [0], [0], [1], [0, 0, 1, 1], [], []>} : vector<8x128xbf16>, vector<128x384xbf16>, vector<8x384xf32> -> vector<8x384xf32>
    %542 = vector.extract_strided_slice %539 {offsets = [0, 0], sizes = [8, 128], strides = [1, 1]} : vector<8x384xf32> to vector<8x128xf32>
    %543 = vector.extract_strided_slice %541 {offsets = [0, 0], sizes = [8, 128], strides = [1, 1]} : vector<8x384xf32> to vector<8x128xf32>
    %544 = arith.addf %542, %543 : vector<8x128xf32>
    %545 = arith.negf %544 : vector<8x128xf32>
    %546 = math.exp %545 : vector<8x128xf32>
    %cst_135 = arith.constant 1.000000e+00 : f32
    %547 = vector.broadcast %cst_135 : f32 to vector<8x128xf32>
    %548 = arith.addf %547, %546 : vector<8x128xf32>
    %549 = arith.divf %547, %548 : vector<8x128xf32>
    %550 = vector.extract_strided_slice %539 {offsets = [0, 128], sizes = [8, 128], strides = [1, 1]} : vector<8x384xf32> to vector<8x128xf32>
    %551 = vector.extract_strided_slice %541 {offsets = [0, 128], sizes = [8, 128], strides = [1, 1]} : vector<8x384xf32> to vector<8x128xf32>
    %552 = arith.addf %550, %551 : vector<8x128xf32>
    %553 = arith.negf %552 : vector<8x128xf32>
    %554 = math.exp %553 : vector<8x128xf32>
    %cst_136 = arith.constant 1.000000e+00 : f32
    %555 = vector.broadcast %cst_136 : f32 to vector<8x128xf32>
    %556 = arith.addf %555, %554 : vector<8x128xf32>
    %557 = arith.divf %555, %556 : vector<8x128xf32>
    %558 = vector.extract_strided_slice %539 {offsets = [0, 256], sizes = [8, 128], strides = [1, 1]} : vector<8x384xf32> to vector<8x128xf32>
    %559 = vector.extract_strided_slice %541 {offsets = [0, 256], sizes = [8, 128], strides = [1, 1]} : vector<8x384xf32> to vector<8x128xf32>
    %560 = vector.broadcast %1 : vector<1x128xf32> to vector<8x128xf32>
    %561 = arith.addf %559, %560 : vector<8x128xf32>
    %562 = arith.mulf %549, %561 : vector<8x128xf32>
    %563 = arith.addf %558, %562 : vector<8x128xf32>
    %564 = math.tanh %563 : vector<8x128xf32>
    %cst_137 = arith.constant 1.000000e+00 : f32
    %565 = vector.broadcast %cst_137 : f32 to vector<8x128xf32>
    %566 = arith.subf %565, %557 : vector<8x128xf32>
    %567 = arith.mulf %566, %564 : vector<8x128xf32>
    %568 = arith.mulf %557, %494 : vector<8x128xf32>
    %569 = arith.addf %567, %568 : vector<8x128xf32>
    %570 = arith.index_cast %c7_i32_131 : i32 to index
    %c0_138 = arith.constant 0 : index
    %c0_139 = arith.constant 0 : index
    %571 = vector.load %arg4[%570, %c0_138, %c0_139] : memref<8x8x256xf32, #tpu.memory_space<vmem>>, vector<1x8x128xf32>
    %572 = vector.shape_cast %571 : vector<1x8x128xf32> to vector<8x128xf32>
    %573 = vector.shape_cast %569 : vector<8x128xf32> to vector<1x8x128xf32>
    tpu.vector_store %arg4[%570, %c0_138, %c0_139], %573 {strides = array<i32>} : memref<8x8x256xf32, #tpu.memory_space<vmem>>, vector<1x8x128xf32>,
    %c7_i32_140 = arith.constant 7 : i32
    %574 = arith.subi %c7_i32_140, %c7_i32_131 : i32
    %575 = arith.index_cast %574 : i32 to index
    %c0_141 = arith.constant 0 : index
    %c384_142 = arith.constant 384 : index
    %576 = vector.load %arg0[%575, %c0_141, %c384_142] : memref<8x8x768xf32, #tpu.memory_space<vmem>>, vector<1x8x384xf32>
    %577 = vector.shape_cast %576 : vector<1x8x384xf32> to vector<8x384xf32>
    %578 = arith.truncf %532 : vector<8x128xf32> to vector<8x128xbf16>
    %cst_143 = arith.constant dense<0.000000e+00> : vector<8x384xf32>
    %579 = tpu.matmul %578, %7, %cst_143 {dimension_numbers = #tpu.dot_dimension_numbers<[1], [0], [0], [1], [0, 0, 1, 1], [], []>} : vector<8x128xbf16>, vector<128x384xbf16>, vector<8x384xf32> -> vector<8x384xf32>
    %580 = vector.extract_strided_slice %577 {offsets = [0, 0], sizes = [8, 128], strides = [1, 1]} : vector<8x384xf32> to vector<8x128xf32>
    %581 = vector.extract_strided_slice %579 {offsets = [0, 0], sizes = [8, 128], strides = [1, 1]} : vector<8x384xf32> to vector<8x128xf32>
    %582 = arith.addf %580, %581 : vector<8x128xf32>
    %583 = arith.negf %582 : vector<8x128xf32>
    %584 = math.exp %583 : vector<8x128xf32>
    %cst_144 = arith.constant 1.000000e+00 : f32
    %585 = vector.broadcast %cst_144 : f32 to vector<8x128xf32>
    %586 = arith.addf %585, %584 : vector<8x128xf32>
    %587 = arith.divf %585, %586 : vector<8x128xf32>
    %588 = vector.extract_strided_slice %577 {offsets = [0, 128], sizes = [8, 128], strides = [1, 1]} : vector<8x384xf32> to vector<8x128xf32>
    %589 = vector.extract_strided_slice %579 {offsets = [0, 128], sizes = [8, 128], strides = [1, 1]} : vector<8x384xf32> to vector<8x128xf32>
    %590 = arith.addf %588, %589 : vector<8x128xf32>
    %591 = arith.negf %590 : vector<8x128xf32>
    %592 = math.exp %591 : vector<8x128xf32>
    %cst_145 = arith.constant 1.000000e+00 : f32
    %593 = vector.broadcast %cst_145 : f32 to vector<8x128xf32>
    %594 = arith.addf %593, %592 : vector<8x128xf32>
    %595 = arith.divf %593, %594 : vector<8x128xf32>
    %596 = vector.extract_strided_slice %577 {offsets = [0, 256], sizes = [8, 128], strides = [1, 1]} : vector<8x384xf32> to vector<8x128xf32>
    %597 = vector.extract_strided_slice %579 {offsets = [0, 256], sizes = [8, 128], strides = [1, 1]} : vector<8x384xf32> to vector<8x128xf32>
    %598 = vector.broadcast %3 : vector<1x128xf32> to vector<8x128xf32>
    %599 = arith.addf %597, %598 : vector<8x128xf32>
    %600 = arith.mulf %587, %599 : vector<8x128xf32>
    %601 = arith.addf %596, %600 : vector<8x128xf32>
    %602 = math.tanh %601 : vector<8x128xf32>
    %cst_146 = arith.constant 1.000000e+00 : f32
    %603 = vector.broadcast %cst_146 : f32 to vector<8x128xf32>
    %604 = arith.subf %603, %595 : vector<8x128xf32>
    %605 = arith.mulf %604, %602 : vector<8x128xf32>
    %606 = arith.mulf %595, %532 : vector<8x128xf32>
    %607 = arith.addf %605, %606 : vector<8x128xf32>
    %608 = arith.index_cast %574 : i32 to index
    %c0_147 = arith.constant 0 : index
    %c128_148 = arith.constant 128 : index
    %609 = vector.load %arg4[%608, %c0_147, %c128_148] : memref<8x8x256xf32, #tpu.memory_space<vmem>>, vector<1x8x128xf32>
    %610 = vector.shape_cast %609 : vector<1x8x128xf32> to vector<8x128xf32>
    %611 = vector.shape_cast %607 : vector<8x128xf32> to vector<1x8x128xf32>
    tpu.vector_store %arg4[%608, %c0_147, %c128_148], %611 {strides = array<i32>} : memref<8x8x256xf32, #tpu.memory_space<vmem>>, vector<1x8x128xf32>,
    %c8_i32 = arith.constant 8 : i32
    %c0_149 = arith.constant 0 : index
    %c0_150 = arith.constant 0 : index
    %c0_151 = arith.constant 0 : index
    %612 = vector.load %arg5[%c0_149, %c0_150, %c0_151] : memref<2x8x128xf32, #tpu.memory_space<vmem>>, vector<1x8x128xf32>
    %613 = vector.shape_cast %612 : vector<1x8x128xf32> to vector<8x128xf32>
    %614 = vector.shape_cast %569 : vector<8x128xf32> to vector<1x8x128xf32>
    tpu.vector_store %arg5[%c0_149, %c0_150, %c0_151], %614 {strides = array<i32>} : memref<2x8x128xf32, #tpu.memory_space<vmem>>, vector<1x8x128xf32>,
    %c1_152 = arith.constant 1 : index
    %c0_153 = arith.constant 0 : index
    %c0_154 = arith.constant 0 : index
    %615 = vector.load %arg5[%c1_152, %c0_153, %c0_154] : memref<2x8x128xf32, #tpu.memory_space<vmem>>, vector<1x8x128xf32>
    %616 = vector.shape_cast %615 : vector<1x8x128xf32> to vector<8x128xf32>
    %617 = vector.shape_cast %607 : vector<8x128xf32> to vector<1x8x128xf32>
    tpu.vector_store %arg5[%c1_152, %c0_153, %c0_154], %617 {strides = array<i32>} : memref<2x8x128xf32, #tpu.memory_space<vmem>>, vector<1x8x128xf32>,
    return
  }
}

module attributes {stable_mosaic.version = 11 : i64} {
  func.func @_linear_kernel(%arg0: i32, %arg1: memref<64x256xf32, #tpu.memory_space<vmem>>, %arg2: memref<256x128xbf16, #tpu.memory_space<vmem>>, %arg3: memref<1x128xf32, #tpu.memory_space<vmem>>, %arg4: memref<64x128xf32, #tpu.memory_space<vmem>>) attributes {dimension_semantics = [#tpu.dimension_semantics<parallel>], iteration_bounds = array<i64: 1>, scalar_prefetch = 0 : i64, scratch_operands = 0 : i64, tpu.core_type = #tpu.core_type<tc>, window_params = [{transform_indices = @transform_0, window_bounds = array<i64: 64, 256>}, {pipeline_mode = #tpu.pipeline_mode<synchronous>, transform_indices = @transform_1, window_bounds = array<i64: 256, 128>}, {pipeline_mode = #tpu.pipeline_mode<synchronous>, transform_indices = @transform_2, window_bounds = array<i64: 1, 128>}, {transform_indices = @transform_3, window_bounds = array<i64: 64, 128>}]} {
    %c0 = arith.constant 0 : index
    %c0_0 = arith.constant 0 : index
    %0 = vector.load %arg1[%c0, %c0_0] : memref<64x256xf32, #tpu.memory_space<vmem>>, vector<64x256xf32>
    %1 = arith.truncf %0 : vector<64x256xf32> to vector<64x256xbf16>
    %c0_1 = arith.constant 0 : index
    %c0_2 = arith.constant 0 : index
    %2 = vector.load %arg2[%c0_1, %c0_2] : memref<256x128xbf16, #tpu.memory_space<vmem>>, vector<256x128xbf16>
    %cst = arith.constant dense<0.000000e+00> : vector<64x128xf32>
    %3 = tpu.matmul %1, %2, %cst {dimension_numbers = #tpu.dot_dimension_numbers<[1], [0], [0], [1], [0, 0, 1, 1], [], []>} : vector<64x256xbf16>, vector<256x128xbf16>, vector<64x128xf32> -> vector<64x128xf32>
    %c0_3 = arith.constant 0 : index
    %c0_4 = arith.constant 0 : index
    %4 = vector.load %arg3[%c0_3, %c0_4] : memref<1x128xf32, #tpu.memory_space<vmem>>, vector<1x128xf32>
    %5 = vector.broadcast %4 : vector<1x128xf32> to vector<64x128xf32>
    %6 = arith.addf %3, %5 : vector<64x128xf32>
    %c0_5 = arith.constant 0 : index
    %c0_6 = arith.constant 0 : index
    %7 = vector.load %arg4[%c0_5, %c0_6] : memref<64x128xf32, #tpu.memory_space<vmem>>, vector<64x128xf32>
    tpu.vector_store %arg4[%c0_5, %c0_6], %6 {strides = array<i32>} : memref<64x128xf32, #tpu.memory_space<vmem>>, vector<64x128xf32>,
    return
  }
  func.func @transform_0(%arg0: i32) -> (i32, i32) {
    %c0_i32 = arith.constant 0 : i32
    %c0_i32_0 = arith.constant 0 : i32
    return %arg0, %c0_i32 : i32, i32
  }
  func.func @transform_1(%arg0: i32) -> (i32, i32) {
    %c0_i32 = arith.constant 0 : i32
    %c0_i32_0 = arith.constant 0 : i32
    %c0_i32_1 = arith.constant 0 : i32
    return %c0_i32, %c0_i32_0 : i32, i32
  }
  func.func @transform_2(%arg0: i32) -> (i32, i32) {
    %c0_i32 = arith.constant 0 : i32
    %c0_i32_0 = arith.constant 0 : i32
    %c0_i32_1 = arith.constant 0 : i32
    return %c0_i32, %c0_i32_0 : i32, i32
  }
  func.func @transform_3(%arg0: i32) -> (i32, i32) {
    %c0_i32 = arith.constant 0 : i32
    %c0_i32_0 = arith.constant 0 : i32
    return %arg0, %c0_i32 : i32, i32
  }
}

</mosaic_0001>

<bundles_post_ra>
// kernel: graph_decoder_rnn_forward.5
= control target key start
LH: loop header
LB: loop body
LE: loop exit
PB: predicated region body
PF: predicated region fallthrough
CT: control target
= control target key end

     0   :  { %8 = vsyncpa [#allocation3], 0  ;;  %s465_s15 = smov [#allocation2]   ;;  %s466_s17 = smov 384   ;;  %s732_s0 = inlined_call_operand.vmem [shape: f32[64,24], index: 0, kind: input, shape index: {}]   ;;  %s733_s1 = inlined_call_operand.hbm [shape: bf16[24,768], index: 1, kind: input, shape index: {}]   ;;  %s734_s2 = inlined_call_operand.vmem [shape: f32[1,768], index: 2, kind: input, shape index: {}]   ;;  %s735_s3 = inlined_call_operand.vmem [shape: f32[64,768], index: 3, kind: output, shape index: {}]  }
   0x1   :  { %s15_s14 = sshll.u32 %s733_s1, 4  ;;  %s17_s16 = sshll.u32 %s465_s15, 4  ;;  %s16_s14 = int_to_ptr.hbm [resolvable:$true] %s15_s14  ;;  %s18_s16 = int_to_ptr.vmem [resolvable:$true] %s17_s16 }
   0x2   :  { %s467_s18 = smov 24  }
   0x3   :  { %23 = dma.hbm_to_vmem [thread:$0]  %s16_s14, 1152, %s18_s16, [#allocation3], %s466_s17, %s466_s17, %s467_s18  }
   0x4   :  { %463 = dma.done.wait [#allocation3], 1152  }
   0x5   :  { %464 = vsyncadd [#allocation3], 4294966144  ;;  %v57_v0 = vld [vmem:[#allocation2 + $0x30] sm:$0xff]  ;;  %v380_v3 = vld [vmem:[#allocation2] sm:$0xf]  ;;  %vm132_vm0 = vcmask 1043456  }
   0x6   :  { %v95_v1 = vunpack.c.l.b16 %v57_v0  ;;  %v96_v2 = vunpack.c.h.b16 %v57_v0  ;;  %v31_v4 = vld [vmem:[%s732_s0] sm:$0xff]  ;;  %v32_v5 = vld [vmem:[%s732_s0 + $0x8] sm:$0xff]  ;;  %v429_v10 = vld [vmem:[#allocation2 + $0x14] sm:$0xf0]  ;;  %vm119_vm1 = vcmask 195584  }
   0x7   :  { %v35_v6 = vld [vmem:[%s732_s0 + $0x20] sm:$0xff]  ;;  %v36_v7 = vld [vmem:[%s732_s0 + $0x28] sm:$0xff]  ;;  %v39_v11 = vmax.f32 %v31_v4, 0.0  ;;  %v40_v12 = vmax.f32 %v32_v5, 0.0  ;;  %v58_v13 = vld [vmem:[#allocation2 + $0x38] sm:$0xff]  ;;  %v381_v25 = vor.u32 %v429_v10, %v380_v3 }
   0x8   :  { %v107_v8 = vpack.c.b16 %v95_v1, %v95_v1  ;;  %v108_v9 = vpack.c.b16 %v96_v2, %v96_v2  ;;  %v59_v14 = vld [vmem:[#allocation2 + $0x40] sm:$0xff]  ;;  %v382_v16 = vld [vmem:[#allocation2 + $0x18] sm:$0xf0]  ;;  %v43_v17 = vmax.f32 %v35_v6, 0.0  ;;  %v97_v18 = vunpack.c.l.b16 %v58_v13  ;;  %v388_v31 = vld [vmem:[#allocation2 + $0x8] sm:$0xf] }
   0x9   :  { %v426_v15 = vld [vmem:[#allocation2 + $0x4] sm:$0xf]  ;;  %v98_v19 = vunpack.c.h.b16 %v58_v13  ;;  %v99_v20 = vunpack.c.l.b16 %v59_v14  ;;  %v44_v23 = vmax.f32 %v36_v7, 0.0  ;;  %v100_v24 = vunpack.c.h.b16 %v59_v14  ;;  %v430_v32 = vld [vmem:[#allocation2 + $0x1c] sm:$0xf0]  ;;  %v33_v49 = vld [vmem:[%s732_s0 + $0x10] sm:$0xff] }
   0xa   :  { %v134_v21 = vsel %vm132_vm0, %v107_v8, 0  ;;  %v137_v22 = vsel %vm132_vm0, %v108_v9, 0  ;;  %v109_v26 = vpack.c.b16 %v97_v18, %v97_v18  ;;  %v385_v28 = vor.u32 %v426_v15, %v382_v16  ;;  %v427_v37 = vld [vmem:[#allocation2 + $0xc] sm:$0xf]  ;;  %v390_v38 = vld [vmem:[#allocation2 + $0x20] sm:$0xf0] }
   0xb   :  { %157 = vmatpush.bf16.msra.mxu0 %v134_v21  ;;  %432 = vmatpush.bf16.msra.mxu2 %v134_v21  ;;  %v110_v27 = vpack.c.b16 %v98_v19, %v98_v19  ;;  %v111_v29 = vpack.c.b16 %v99_v20, %v99_v20  ;;  %v112_v30 = vpack.c.b16 %v100_v24, %v100_v24  ;;  %v396_v39 = vld [vmem:[#allocation2 + $0x10] sm:$0xf]  ;;  %v431_v40 = vld [vmem:[#allocation2 + $0x24] sm:$0xf0]  ;;  %v428_v45 = vld [vmem:[#allocation2 + $0x14] sm:$0xf] }
   0xc   :  { %186 = vmatpush.bf16.msra.mxu1 %v137_v22  ;;  %434 = vmatpush.bf16.msra.mxu3 %v137_v22  ;;  %v47_v33 = vpack.c.bf16 %v40_v12, %v39_v11  ;;  %v49_v34 = vpack.c.bf16 %v44_v23, %v43_v17  ;;  %v140_v35 = vsel %vm132_vm0, %v109_v26, 0  ;;  %v389_v43 = vor.u32 %v430_v32, %v388_v31  ;;  %v398_v46 = vld [vmem:[#allocation2 + $0x28] sm:$0xf0]  ;;  %v34_v50 = vld [vmem:[%s732_s0 + $0x18] sm:$0xff]  ;;  %v37_v51 = vld [vmem:[%s732_s0 + $0x30] sm:$0xff] }
   0xd   :  { %v143_v36 = vsel %vm132_vm0, %v110_v27, 0  ;;  %v146_v41 = vsel %vm132_vm0, %v111_v29, 0  ;;  %v149_v42 = vsel %vm132_vm0, %v112_v30, 0  ;;  %v393_v44 = vor.u32 %v427_v37, %v390_v38  ;;  %v38_v52 = vld [vmem:[%s732_s0 + $0x38] sm:$0xff]  ;;  %v60_v59 = vld [vmem:[%s734_s2] sm:$0x3f] }
   0xe   :  { %v397_v47 = vor.u32 %v431_v40, %v396_v39  ;;  %v401_v48 = vor.u32 %v428_v45, %v398_v46  ;;  %v41_v53 = vmax.f32 %v33_v49, 0.0  ;;  %v42_v54 = vmax.f32 %v34_v50, 0.0 }
   0xf   :  { %158 = vmatpush.bf16.msra.mxu0 %v381_v25  ;;  %433 = vmatpush.bf16.msra.mxu2 %v381_v25  ;;  %v45_v55 = vmax.f32 %v37_v51, 0.0  ;;  %v46_v56 = vmax.f32 %v38_v52, 0.0  ;;  %v62_v60 = vperm.slane %v60_v59, 0  ;;  %v63_v61 = vperm.slane %v60_v59, 1 }
  0x10   :  { %187 = vmatpush.bf16.msra.mxu1 %v385_v28  ;;  %435 = vmatpush.bf16.msra.mxu3 %v385_v28  ;;  %v48_v57 = vpack.c.bf16 %v42_v54, %v41_v53  ;;  %v590_v26 = vperm.slane %v60_v59, 4  ;;  %v592_v28 = vperm.slane %v60_v59, 5  ;;  %v610_v37 = vperm.slane %v60_v59, 3 }
  0x11   :  { %v50_v58 = vpack.c.bf16 %v46_v56, %v45_v55 }
  0x12   :  { %402 = vmatmul.msk.bf16.vlgmr.msra.gmra.mxu0 %vm119_vm1, %v47_v33  ;;  %404 = vmatmul.msk.bf16.vlgmr.msra.gmra.mxu2 %vm119_vm1, %v49_v34 }
  0x13   :  { %215 = vmatpush.bf16.msrb.mxu2 %v140_v35  ;;  %406 = vmatmul.msk.bf16.vlgmr.msra.gmra.mxu1 %vm119_vm1, %v47_v33 }
  0x14   :  { %244 = vmatpush.bf16.msrb.mxu3 %v143_v36  ;;  %273 = vmatpush.bf16.msrb.mxu0 %v146_v41  ;;  %v605_v36 = vperm.slane %v60_v59, 2 }
  0x15   :  { %408 = vmatmul.msk.bf16.vlgmr.msra.gmra.mxu3 %vm119_vm1, %v49_v34  ;;  %302 = vmatpush.bf16.msrb.mxu1 %v149_v42 }
  0x17   :  { %216 = vmatpush.bf16.msrb.mxu2 %v389_v43 }
  0x18   :  { %245 = vmatpush.bf16.msrb.mxu3 %v393_v44  ;;  %274 = vmatpush.bf16.msrb.mxu0 %v397_v47 }
  0x19   :  { %303 = vmatpush.bf16.msrb.mxu1 %v401_v48 }
  0x22   :  { %403 = vmatmul.msk.bf16.gmra.mxu0 %vm119_vm1, %v48_v57  ;;  %405 = vmatmul.msk.bf16.gmra.mxu2 %vm119_vm1, %v50_v58 }
  0x23   :  { %407 = vmatmul.msk.bf16.gmra.mxu1 %vm119_vm1, %v48_v57 }
  0x25   :  { %409 = vmatmul.msk.bf16.gmra.mxu3 %vm119_vm1, %v50_v58 }
  0x32   :  { %410 = vmatmul.msk.bf16.vlgmr.msrb.gmra.mxu2 %vm119_vm1, %v47_v33  ;;  %418 = vmatmul.msk.bf16.vlgmr.msrb.gmra.mxu0 %vm119_vm1, %v47_v33 }
  0x33   :  { %422 = vmatmul.msk.bf16.vlgmr.msrb.gmra.mxu1 %vm119_vm1, %v47_v33 }
  0x35   :  { %414 = vmatmul.msk.bf16.vlgmr.msrb.gmra.mxu3 %vm119_vm1, %v47_v33 }
  0x42   :  { %411 = vmatmul.msk.bf16.gmra.mxu2 %vm119_vm1, %v48_v57  ;;  %419 = vmatmul.msk.bf16.gmra.mxu0 %vm119_vm1, %v48_v57 }
  0x43   :  { %423 = vmatmul.msk.bf16.gmra.mxu1 %vm119_vm1, %v48_v57 }
  0x45   :  { %415 = vmatmul.msk.bf16.gmra.mxu3 %vm119_vm1, %v48_v57 }
  0x52   :  { %412 = vmatmul.msk.bf16.gmra.mxu2 %vm119_vm1, %v49_v34  ;;  %420 = vmatmul.msk.bf16.gmra.mxu0 %vm119_vm1, %v49_v34 }
  0x53   :  { %424 = vmatmul.msk.bf16.gmra.mxu1 %vm119_vm1, %v49_v34 }
  0x55   :  { %416 = vmatmul.msk.bf16.gmra.mxu3 %vm119_vm1, %v49_v34 }
  0x62   :  { %413 = vmatmul.msk.bf16.gmra.mxu2 %vm119_vm1, %v50_v58  ;;  %421 = vmatmul.msk.bf16.gmra.mxu0 %vm119_vm1, %v50_v58 }
  0x63   :  { %425 = vmatmul.msk.bf16.gmra.mxu1 %vm119_vm1, %v50_v58 }
  0x65   :  { %417 = vmatmul.msk.bf16.gmra.mxu3 %vm119_vm1, %v50_v58 }
  0x8f   :  { %v160_v62 = vpop.f32.mrf.mxu0 }
  0x90   :  { %v161_v63 = vadd.f32 %v160_v62, %v62_v60  ;;  %v189_v0 = vpop.f32.mrf.mxu1 }
  0x91   :  { %v190_v1 = vadd.f32 %v189_v0, %v63_v61 }
  0x92   :  { %325 = vst [vmem:[%s735_s3] sm:$0xff] %v161_v63 }
  0x93   :  { %326 = vst [vmem:[%s735_s3 + $0x8] sm:$0xff] %v190_v1 }
  0x95   :  { %v170_v2 = vpop.f32.mrf.mxu2 }
  0x96   :  { %v171_v3 = vadd.f32 %v170_v2, %v62_v60 }
  0x97   :  { %v162_v6 = vpop.f32.mrf.mxu0 }
  0x98   :  { %v199_v4 = vpop.f32.mrf.mxu3  ;;  %349 = vst [vmem:[%s735_s3 + $0xc0] sm:$0xff] %v171_v3  ;;  %v163_v7 = vadd.f32 %v162_v6, %v62_v60  ;;  %v191_v8 = vpop.f32.mrf.mxu1 }
  0x99   :  { %v200_v5 = vadd.f32 %v199_v4, %v63_v61  ;;  %v192_v9 = vadd.f32 %v191_v8, %v63_v61 }
  0x9a   :  { %331 = vst [vmem:[%s735_s3 + $0x30] sm:$0xff] %v163_v7 }
  0x9b   :  { %350 = vst [vmem:[%s735_s3 + $0xc8] sm:$0xff] %v200_v5 }
  0x9c   :  { %332 = vst [vmem:[%s735_s3 + $0x38] sm:$0xff] %v192_v9 }
  0x9d   :  { %v172_v10 = vpop.f32.mrf.mxu2 }
  0x9e   :  { %v173_v11 = vadd.f32 %v172_v10, %v62_v60 }
  0x9f   :  { %v165_v14 = vpop.f32.mrf.mxu0 }
  0xa0   :  { %v201_v12 = vpop.f32.mrf.mxu3  ;;  %355 = vst [vmem:[%s735_s3 + $0xf0] sm:$0xff] %v173_v11  ;;  %v166_v15 = vadd.f32 %v165_v14, %v62_v60  ;;  %v194_v16 = vpop.f32.mrf.mxu1 }
  0xa1   :  { %v202_v13 = vadd.f32 %v201_v12, %v63_v61  ;;  %v195_v17 = vadd.f32 %v194_v16, %v63_v61 }
  0xa2   :  { %337 = vst [vmem:[%s735_s3 + $0x60] sm:$0xff] %v166_v15 }
  0xa3   :  { %356 = vst [vmem:[%s735_s3 + $0xf8] sm:$0xff] %v202_v13 }
  0xa4   :  { %338 = vst [vmem:[%s735_s3 + $0x68] sm:$0xff] %v195_v17 }
  0xa5   :  { %v175_v18 = vpop.f32.mrf.mxu2 }
  0xa6   :  { %v176_v19 = vadd.f32 %v175_v18, %v62_v60 }
  0xa7   :  { %v167_v22 = vpop.f32.mrf.mxu0 }
  0xa8   :  { %v204_v20 = vpop.f32.mrf.mxu3  ;;  %361 = vst [vmem:[%s735_s3 + $0x120] sm:$0xff] %v176_v19  ;;  %v168_v23 = vadd.f32 %v167_v22, %v62_v60  ;;  %v196_v24 = vpop.f32.mrf.mxu1 }
  0xa9   :  { %v205_v21 = vadd.f32 %v204_v20, %v63_v61  ;;  %v197_v25 = vadd.f32 %v196_v24, %v63_v61 }
  0xaa   :  { %343 = vst [vmem:[%s735_s3 + $0x90] sm:$0xff] %v168_v23 }
  0xab   :  { %362 = vst [vmem:[%s735_s3 + $0x128] sm:$0xff] %v205_v21 }
  0xac   :  { %344 = vst [vmem:[%s735_s3 + $0x98] sm:$0xff] %v197_v25 }
  0xad   :  { %v177_v27 = vpop.f32.mrf.mxu2 }
  0xae   :  { %v178_v29 = vadd.f32 %v177_v27, %v62_v60 }
  0xaf   :  { %v276_v32 = vpop.f32.mrf.mxu0 }
  0xb0   :  { %v206_v30 = vpop.f32.mrf.mxu3  ;;  %367 = vst [vmem:[%s735_s3 + $0x150] sm:$0xff] %v178_v29  ;;  %v277_v33 = vadd.f32 %v276_v32, %v590_v26  ;;  %v305_v34 = vpop.f32.mrf.mxu1 }
  0xb1   :  { %v207_v31 = vadd.f32 %v206_v30, %v63_v61  ;;  %v306_v35 = vadd.f32 %v305_v34, %v592_v28 }
  0xb2   :  { %329 = vst [vmem:[%s735_s3 + $0x20] sm:$0xff] %v277_v33 }
  0xb3   :  { %368 = vst [vmem:[%s735_s3 + $0x158] sm:$0xff] %v207_v31 }
  0xb4   :  { %330 = vst [vmem:[%s735_s3 + $0x28] sm:$0xff] %v306_v35 }
  0xb5   :  { %v218_v38 = vpop.f32.mrf.mxu2 }
  0xb6   :  { %v219_v39 = vadd.f32 %v218_v38, %v605_v36 }
  0xb7   :  { %v278_v42 = vpop.f32.mrf.mxu0 }
  0xb8   :  { %v247_v40 = vpop.f32.mrf.mxu3  ;;  %327 = vst [vmem:[%s735_s3 + $0x10] sm:$0xff] %v219_v39  ;;  %v279_v43 = vadd.f32 %v278_v42, %v590_v26  ;;  %v307_v44 = vpop.f32.mrf.mxu1 }
  0xb9   :  { %v248_v41 = vadd.f32 %v247_v40, %v610_v37  ;;  %v308_v45 = vadd.f32 %v307_v44, %v592_v28 }
  0xba   :  { %335 = vst [vmem:[%s735_s3 + $0x50] sm:$0xff] %v279_v43 }
  0xbb   :  { %328 = vst [vmem:[%s735_s3 + $0x18] sm:$0xff] %v248_v41 }
  0xbc   :  { %336 = vst [vmem:[%s735_s3 + $0x58] sm:$0xff] %v308_v45 }
  0xbd   :  { %v220_v46 = vpop.f32.mrf.mxu2 }
  0xbe   :  { %v221_v47 = vadd.f32 %v220_v46, %v605_v36 }
  0xbf   :  { %v281_v50 = vpop.f32.mrf.mxu0 }
  0xc0   :  { %v249_v48 = vpop.f32.mrf.mxu3  ;;  %333 = vst [vmem:[%s735_s3 + $0x40] sm:$0xff] %v221_v47  ;;  %v282_v51 = vadd.f32 %v281_v50, %v590_v26  ;;  %v310_v52 = vpop.f32.mrf.mxu1 }
  0xc1   :  { %v250_v49 = vadd.f32 %v249_v48, %v610_v37  ;;  %v311_v53 = vadd.f32 %v310_v52, %v592_v28 }
  0xc2   :  { %341 = vst [vmem:[%s735_s3 + $0x80] sm:$0xff] %v282_v51 }
  0xc3   :  { %334 = vst [vmem:[%s735_s3 + $0x48] sm:$0xff] %v250_v49 }
  0xc4   :  { %342 = vst [vmem:[%s735_s3 + $0x88] sm:$0xff] %v311_v53 }
  0xc5   :  { %v223_v54 = vpop.f32.mrf.mxu2 }
  0xc6   :  { %v224_v55 = vadd.f32 %v223_v54, %v605_v36 }
  0xc7   :  { %v283_v58 = vpop.f32.mrf.mxu0 }
  0xc8   :  { %v252_v56 = vpop.f32.mrf.mxu3  ;;  %339 = vst [vmem:[%s735_s3 + $0x70] sm:$0xff] %v224_v55  ;;  %v284_v59 = vadd.f32 %v283_v58, %v590_v26  ;;  %v312_v60 = vpop.f32.mrf.mxu1 }
  0xc9   :  { %v253_v57 = vadd.f32 %v252_v56, %v610_v37  ;;  %v313_v61 = vadd.f32 %v312_v60, %v592_v28 }
  0xca   :  { %347 = vst [vmem:[%s735_s3 + $0xb0] sm:$0xff] %v284_v59 }
  0xcb   :  { %340 = vst [vmem:[%s735_s3 + $0x78] sm:$0xff] %v253_v57 }
  0xcc   :  { %348 = vst [vmem:[%s735_s3 + $0xb8] sm:$0xff] %v313_v61 }
  0xcd   :  { %v225_v62 = vpop.f32.mrf.mxu2 }
  0xce   :  { %v226_v63 = vadd.f32 %v225_v62, %v605_v36 }
  0xcf   :  { %v286_v2 = vpop.f32.mrf.mxu0 }
  0xd0   :  { %v254_v0 = vpop.f32.mrf.mxu3  ;;  %345 = vst [vmem:[%s735_s3 + $0xa0] sm:$0xff] %v226_v63  ;;  %v287_v3 = vadd.f32 %v286_v2, %v590_v26  ;;  %v315_v4 = vpop.f32.mrf.mxu1 }
  0xd1   :  { %v255_v1 = vadd.f32 %v254_v0, %v610_v37  ;;  %v316_v5 = vadd.f32 %v315_v4, %v592_v28 }
  0xd2   :  { %353 = vst [vmem:[%s735_s3 + $0xe0] sm:$0xff] %v287_v3 }
  0xd3   :  { %346 = vst [vmem:[%s735_s3 + $0xa8] sm:$0xff] %v255_v1 }
  0xd4   :  { %354 = vst [vmem:[%s735_s3 + $0xe8] sm:$0xff] %v316_v5 }
  0xd5   :  { %v228_v6 = vpop.f32.mrf.mxu2 }
  0xd6   :  { %v229_v7 = vadd.f32 %v228_v6, %v605_v36 }
  0xd7   :  { %v288_v10 = vpop.f32.mrf.mxu0 }
  0xd8   :  { %v257_v8 = vpop.f32.mrf.mxu3  ;;  %351 = vst [vmem:[%s735_s3 + $0xd0] sm:$0xff] %v229_v7  ;;  %v289_v11 = vadd.f32 %v288_v10, %v590_v26  ;;  %v317_v12 = vpop.f32.mrf.mxu1 }
  0xd9   :  { %v258_v9 = vadd.f32 %v257_v8, %v610_v37  ;;  %v318_v13 = vadd.f32 %v317_v12, %v592_v28 }
  0xda   :  { %359 = vst [vmem:[%s735_s3 + $0x110] sm:$0xff] %v289_v11 }
  0xdb   :  { %352 = vst [vmem:[%s735_s3 + $0xd8] sm:$0xff] %v258_v9 }
  0xdc   :  { %360 = vst [vmem:[%s735_s3 + $0x118] sm:$0xff] %v318_v13 }
  0xdd   :  { %v230_v14 = vpop.f32.mrf.mxu2 }
  0xde   :  { %v231_v15 = vadd.f32 %v230_v14, %v605_v36 }
  0xdf   :  { %v291_v18 = vpop.f32.mrf.mxu0 }
  0xe0   :  { %v259_v16 = vpop.f32.mrf.mxu3  ;;  %357 = vst [vmem:[%s735_s3 + $0x100] sm:$0xff] %v231_v15  ;;  %v292_v19 = vadd.f32 %v291_v18, %v590_v26  ;;  %v320_v20 = vpop.f32.mrf.mxu1 }
  0xe1   :  { %v260_v17 = vadd.f32 %v259_v16, %v610_v37  ;;  %v321_v21 = vadd.f32 %v320_v20, %v592_v28 }
  0xe2   :  { %365 = vst [vmem:[%s735_s3 + $0x140] sm:$0xff] %v292_v19 }
  0xe3   :  { %358 = vst [vmem:[%s735_s3 + $0x108] sm:$0xff] %v260_v17 }
  0xe4   :  { %366 = vst [vmem:[%s735_s3 + $0x148] sm:$0xff] %v321_v21 }
  0xe5   :  { %v233_v22 = vpop.f32.mrf.mxu2 }
  0xe6   :  { %v234_v23 = vadd.f32 %v233_v22, %v605_v36 }
  0xe7   :  { %v293_v27 = vpop.f32.mrf.mxu0 }
  0xe8   :  { %v262_v24 = vpop.f32.mrf.mxu3  ;;  %363 = vst [vmem:[%s735_s3 + $0x130] sm:$0xff] %v234_v23  ;;  %v294_v29 = vadd.f32 %v293_v27, %v590_v26  ;;  %v322_v30 = vpop.f32.mrf.mxu1 }
  0xe9   :  { %v263_v25 = vadd.f32 %v262_v24, %v610_v37  ;;  %v323_v31 = vadd.f32 %v322_v30, %v592_v28 }
  0xea   :  { %371 = vst [vmem:[%s735_s3 + $0x170] sm:$0xff] %v294_v29 }
  0xeb   :  { %364 = vst [vmem:[%s735_s3 + $0x138] sm:$0xff] %v263_v25 }
  0xec   :  { %372 = vst [vmem:[%s735_s3 + $0x178] sm:$0xff] %v323_v31 }
  0xed   :  { %v235_v32 = vpop.f32.mrf.mxu2 }
  0xee   :  { %v236_v33 = vadd.f32 %v235_v32, %v605_v36 }
  0xf0   :  { %v264_v34 = vpop.f32.mrf.mxu3  ;;  %369 = vst [vmem:[%s735_s3 + $0x160] sm:$0xff] %v236_v33 }
  0xf1   :  { %v265_v26 = vadd.f32 %v264_v34, %v610_v37 }
  0xf3   :  { %370 = vst [vmem:[%s735_s3 + $0x168] sm:$0xff] %v265_v26 }
  0xf4   :  { %377 = vsyncpa [#allocation3], 1 }

// kernel: graph_decoder_rnn_forward.7
= control target key start
LH: loop header
LB: loop body
LE: loop exit
PB: predicated region body
PF: predicated region fallthrough
CT: control target
= control target key end

     0   :  { %s2431_s1 = inlined_call_operand.vmem [shape: bf16[256,768], index: 1, kind: input, shape index: {}]   ;;  %s2432_s0 = inlined_call_operand.vmem [shape: f32[64,256], index: 0, kind: input, shape index: {}]   ;;  %s2433_s2 = inlined_call_operand.vmem [shape: f32[1,768], index: 2, kind: input, shape index: {}]   ;;  %s2434_s3 = inlined_call_operand.vmem [shape: f32[64,768], index: 3, kind: output, shape index: {}]  }
   0x1   :  { %v1198_v0 = vld [vmem:[%s2431_s1 + $0x150] sm:$0xf]  ;;  %v1457_v1 = vld [vmem:[%s2431_s1 + $0x164] sm:$0xf0]  ;;  %v1454_v5 = vld [vmem:[%s2431_s1 + $0x154] sm:$0xf] }
   0x2   :  { %v1390_v2 = vld [vmem:[%s2431_s1 + $0x2d0] sm:$0xf]  ;;  %v1199_v3 = vor.u32 %v1457_v1, %v1198_v0  ;;  %v1505_v4 = vld [vmem:[%s2431_s1 + $0x2e4] sm:$0xf0]  ;;  %v1200_v6 = vld [vmem:[%s2431_s1 + $0x168] sm:$0xf0] }
   0x3   :  { %v1391_v7 = vor.u32 %v1505_v4, %v1390_v2  ;;  %v1203_v8 = vor.u32 %v1454_v5, %v1200_v6  ;;  %v1502_v9 = vld [vmem:[%s2431_s1 + $0x2d4] sm:$0xf]  ;;  %v1392_v10 = vld [vmem:[%s2431_s1 + $0x2e8] sm:$0xf0]  ;;  %v1174_v11 = vld [vmem:[%s2431_s1 + $0x120] sm:$0xf] }
   0x4   :  { %628 = vmatpush.bf16.msra.mxu0 %v1199_v3  ;;  %v1395_v12 = vor.u32 %v1502_v9, %v1392_v10  ;;  %v1451_v13 = vld [vmem:[%s2431_s1 + $0x134] sm:$0xf0]  ;;  %v1366_v14 = vld [vmem:[%s2431_s1 + $0x2a0] sm:$0xf]  ;;  %v1448_v18 = vld [vmem:[%s2431_s1 + $0x124] sm:$0xf] }
   0x5   :  { %v1499_v15 = vld [vmem:[%s2431_s1 + $0x2b4] sm:$0xf0]  ;;  %657 = vmatpush.bf16.msra.mxu1 %v1391_v7  ;;  %686 = vmatpush.bf16.msra.mxu2 %v1203_v8  ;;  %v1175_v16 = vor.u32 %v1451_v13, %v1174_v11  ;;  %v1176_v19 = vld [vmem:[%s2431_s1 + $0x138] sm:$0xf0]  ;;  %v1496_v20 = vld [vmem:[%s2431_s1 + $0x2a4] sm:$0xf] }
   0x6   :  { %v1367_v17 = vor.u32 %v1499_v15, %v1366_v14  ;;  %715 = vmatpush.bf16.msra.mxu3 %v1395_v12  ;;  %v1179_v21 = vor.u32 %v1448_v18, %v1176_v19  ;;  %v1368_v22 = vld [vmem:[%s2431_s1 + $0x2b8] sm:$0xf0]  ;;  %v1150_v23 = vld [vmem:[%s2431_s1 + $0xf0] sm:$0xf]  ;;  %v1445_v24 = vld [vmem:[%s2431_s1 + $0x104] sm:$0xf0] }
   0x7   :  { %v1371_v25 = vor.u32 %v1496_v20, %v1368_v22  ;;  %v1342_v26 = vld [vmem:[%s2431_s1 + $0x270] sm:$0xf]  ;;  %v1493_v27 = vld [vmem:[%s2431_s1 + $0x284] sm:$0xf0]  ;;  %v1442_v28 = vld [vmem:[%s2431_s1 + $0xf4] sm:$0xf]  ;;  %v1151_v29 = vor.u32 %v1445_v24, %v1150_v23 }
   0x8   :  { %629 = vmatpush.bf16.msra.mxu0 %v1175_v16  ;;  %v1152_v30 = vld [vmem:[%s2431_s1 + $0x108] sm:$0xf0]  ;;  %v1490_v31 = vld [vmem:[%s2431_s1 + $0x274] sm:$0xf]  ;;  %v1343_v33 = vor.u32 %v1493_v27, %v1342_v26  ;;  %v1126_v35 = vld [vmem:[%s2431_s1 + $0xc0] sm:$0xf] }
   0x9   :  { %v1344_v32 = vld [vmem:[%s2431_s1 + $0x288] sm:$0xf0]  ;;  %658 = vmatpush.bf16.msra.mxu1 %v1367_v17  ;;  %687 = vmatpush.bf16.msra.mxu2 %v1179_v21  ;;  %v1155_v34 = vor.u32 %v1442_v28, %v1152_v30  ;;  %v1439_v36 = vld [vmem:[%s2431_s1 + $0xd4] sm:$0xf0]  ;;  %v1318_v37 = vld [vmem:[%s2431_s1 + $0x240] sm:$0xf] }
   0xa   :  { %716 = vmatpush.bf16.msra.mxu3 %v1371_v25  ;;  %v1347_v38 = vor.u32 %v1490_v31, %v1344_v32  ;;  %v1487_v39 = vld [vmem:[%s2431_s1 + $0x254] sm:$0xf0]  ;;  %v1436_v40 = vld [vmem:[%s2431_s1 + $0xc4] sm:$0xf]  ;;  %v1128_v41 = vld [vmem:[%s2431_s1 + $0xd8] sm:$0xf0]  ;;  %v1127_v44 = vor.u32 %v1439_v36, %v1126_v35 }
   0xb   :  { %v1484_v42 = vld [vmem:[%s2431_s1 + $0x244] sm:$0xf]  ;;  %v1320_v43 = vld [vmem:[%s2431_s1 + $0x258] sm:$0xf0]  ;;  %v1319_v45 = vor.u32 %v1487_v39, %v1318_v37  ;;  %v1131_v46 = vor.u32 %v1436_v40, %v1128_v41  ;;  %v1102_v47 = vld [vmem:[%s2431_s1 + $0x90] sm:$0xf] }
   0xc   :  { %630 = vmatpush.bf16.msra.mxu0 %v1151_v29  ;;  %v1433_v48 = vld [vmem:[%s2431_s1 + $0xa4] sm:$0xf0]  ;;  %v1294_v49 = vld [vmem:[%s2431_s1 + $0x210] sm:$0xf]  ;;  %v1323_v50 = vor.u32 %v1484_v42, %v1320_v43  ;;  %v1430_v52 = vld [vmem:[%s2431_s1 + $0x94] sm:$0xf] }
   0xd   :  { %659 = vmatpush.bf16.msra.mxu1 %v1343_v33  ;;  %688 = vmatpush.bf16.msra.mxu2 %v1155_v34  ;;  %v1481_v51 = vld [vmem:[%s2431_s1 + $0x224] sm:$0xf0]  ;;  %v1104_v53 = vld [vmem:[%s2431_s1 + $0xa8] sm:$0xf0]  ;;  %v1478_v54 = vld [vmem:[%s2431_s1 + $0x214] sm:$0xf]  ;;  %v1103_v56 = vor.u32 %v1433_v48, %v1102_v47 }
   0xe   :  { %717 = vmatpush.bf16.msra.mxu3 %v1347_v38  ;;  %v1296_v55 = vld [vmem:[%s2431_s1 + $0x228] sm:$0xf0]  ;;  %v1295_v57 = vor.u32 %v1481_v51, %v1294_v49  ;;  %v1107_v58 = vor.u32 %v1430_v52, %v1104_v53  ;;  %v1078_v59 = vld [vmem:[%s2431_s1 + $0x60] sm:$0xf]  ;;  %v1427_v60 = vld [vmem:[%s2431_s1 + $0x74] sm:$0xf0] }
   0xf   :  { %v1270_v61 = vld [vmem:[%s2431_s1 + $0x1e0] sm:$0xf]  ;;  %v1299_v62 = vor.u32 %v1478_v54, %v1296_v55  ;;  %v1475_v63 = vld [vmem:[%s2431_s1 + $0x1f4] sm:$0xf0]  ;;  %v1424_v0 = vld [vmem:[%s2431_s1 + $0x64] sm:$0xf]  ;;  %v1079_v4 = vor.u32 %v1427_v60, %v1078_v59 }
  0x10   :  { %631 = vmatpush.bf16.msra.mxu0 %v1127_v44  ;;  %v1080_v1 = vld [vmem:[%s2431_s1 + $0x78] sm:$0xf0]  ;;  %v1472_v2 = vld [vmem:[%s2431_s1 + $0x1e4] sm:$0xf]  ;;  %v1271_v5 = vor.u32 %v1475_v63, %v1270_v61  ;;  %v1054_v7 = vld [vmem:[%s2431_s1 + $0x30] sm:$0xf] }
  0x11   :  { %660 = vmatpush.bf16.msra.mxu1 %v1319_v45  ;;  %689 = vmatpush.bf16.msra.mxu2 %v1131_v46  ;;  %v1272_v3 = vld [vmem:[%s2431_s1 + $0x1f8] sm:$0xf0]  ;;  %v1083_v6 = vor.u32 %v1424_v0, %v1080_v1  ;;  %v1421_v8 = vld [vmem:[%s2431_s1 + $0x44] sm:$0xf0]  ;;  %v1246_v9 = vld [vmem:[%s2431_s1 + $0x1b0] sm:$0xf] }
  0x12   :  { %718 = vmatpush.bf16.msra.mxu3 %v1323_v50  ;;  %v1275_v10 = vor.u32 %v1472_v2, %v1272_v3  ;;  %v1469_v11 = vld [vmem:[%s2431_s1 + $0x1c4] sm:$0xf0]  ;;  %v1418_v12 = vld [vmem:[%s2431_s1 + $0x34] sm:$0xf]  ;;  %v1056_v13 = vld [vmem:[%s2431_s1 + $0x48] sm:$0xf0]  ;;  %v1055_v16 = vor.u32 %v1421_v8, %v1054_v7 }
  0x13   :  { %v1466_v14 = vld [vmem:[%s2431_s1 + $0x1b4] sm:$0xf]  ;;  %v1248_v15 = vld [vmem:[%s2431_s1 + $0x1c8] sm:$0xf0]  ;;  %v1030_v17 = vld [vmem:[%s2431_s1] sm:$0xf]  ;;  %v1247_v19 = vor.u32 %v1469_v11, %v1246_v9  ;;  %v1059_v20 = vor.u32 %v1418_v12, %v1056_v13 }
  0x14   :  { %632 = vmatpush.bf16.msra.mxu0 %v1103_v56  ;;  %v1415_v18 = vld [vmem:[%s2431_s1 + $0x14] sm:$0xf0]  ;;  %v1222_v21 = vld [vmem:[%s2431_s1 + $0x180] sm:$0xf]  ;;  %v1412_v23 = vld [vmem:[%s2431_s1 + $0x4] sm:$0xf]  ;;  %v1251_v24 = vor.u32 %v1466_v14, %v1248_v15 }
  0x15   :  { %661 = vmatpush.bf16.msra.mxu1 %v1295_v57  ;;  %690 = vmatpush.bf16.msra.mxu2 %v1107_v58  ;;  %v1463_v22 = vld [vmem:[%s2431_s1 + $0x194] sm:$0xf0]  ;;  %v1032_v25 = vld [vmem:[%s2431_s1 + $0x18] sm:$0xf0]  ;;  %v1460_v26 = vld [vmem:[%s2431_s1 + $0x184] sm:$0xf]  ;;  %v1031_v31 = vor.u32 %v1415_v18, %v1030_v17 }
  0x16   :  { %719 = vmatpush.bf16.msra.mxu3 %v1299_v62  ;;  %v1224_v27 = vld [vmem:[%s2431_s1 + $0x198] sm:$0xf0]  ;;  %v14_v28 = vld [vmem:[%s2432_s0] sm:$0xff]  ;;  %v1208_v30 = vld [vmem:[%s2431_s1 + $0x170] sm:$0xf0]  ;;  %v1223_v35 = vor.u32 %v1463_v22, %v1222_v21  ;;  %v1035_v36 = vor.u32 %v1412_v23, %v1032_v25 }
  0x17   :  { %v1455_v29 = vld [vmem:[%s2431_s1 + $0x15c] sm:$0xf]  ;;  %v16_v32 = vld [vmem:[%s2432_s0 + $0x10] sm:$0xff]  ;;  %v15_v37 = vld [vmem:[%s2432_s0 + $0x8] sm:$0xff]  ;;  %v1227_v39 = vor.u32 %v1460_v26, %v1224_v27 }
  0x18   :  { %633 = vmatpush.bf16.msra.mxu0 %v1079_v4  ;;  %v1503_v33 = vld [vmem:[%s2431_s1 + $0x2dc] sm:$0xf]  ;;  %v1400_v34 = vld [vmem:[%s2431_s1 + $0x2f0] sm:$0xf0]  ;;  %v1211_v40 = vor.u32 %v1455_v29, %v1208_v30  ;;  %v1206_v41 = vld [vmem:[%s2431_s1 + $0x158] sm:$0xf]  ;;  %v1753_v44 = vpack.c.bf16 %v16_v32, %v14_v28 }
  0x19   :  { %662 = vmatpush.bf16.msra.mxu1 %v1271_v5  ;;  %691 = vmatpush.bf16.msra.mxu2 %v1083_v6  ;;  %v17_v38 = vld [vmem:[%s2432_s0 + $0x18] sm:$0xff]  ;;  %v1458_v42 = vld [vmem:[%s2431_s1 + $0x16c] sm:$0xf0]  ;;  %v1403_v45 = vor.u32 %v1503_v33, %v1400_v34  ;;  %v1449_v47 = vld [vmem:[%s2431_s1 + $0x12c] sm:$0xf] }
  0x1a   :  { %720 = vmatpush.bf16.msra.mxu3 %v1275_v10  ;;  %v1398_v43 = vld [vmem:[%s2431_s1 + $0x2d8] sm:$0xf]  ;;  %v1506_v46 = vld [vmem:[%s2431_s1 + $0x2ec] sm:$0xf0]  ;;  %v1184_v48 = vld [vmem:[%s2431_s1 + $0x140] sm:$0xf0]  ;;  %v1764_v49 = vpack.c.bf16 %v17_v38, %v15_v37  ;;  %v1207_v52 = vor.u32 %v1458_v42, %v1206_v41 }
  0x1b   :  { %v1497_v50 = vld [vmem:[%s2431_s1 + $0x2ac] sm:$0xf]  ;;  %v1376_v51 = vld [vmem:[%s2431_s1 + $0x2c0] sm:$0xf0]  ;;  %v1399_v53 = vor.u32 %v1506_v46, %v1398_v43  ;;  %v1187_v54 = vor.u32 %v1449_v47, %v1184_v48  ;;  %v1182_v55 = vld [vmem:[%s2431_s1 + $0x128] sm:$0xf] }
  0x1c   :  { %634 = vmatpush.bf16.msra.mxu0 %v1055_v16  ;;  %v1452_v56 = vld [vmem:[%s2431_s1 + $0x13c] sm:$0xf0]  ;;  %v1374_v57 = vld [vmem:[%s2431_s1 + $0x2a8] sm:$0xf]  ;;  %v1379_v58 = vor.u32 %v1497_v50, %v1376_v51  ;;  %v1443_v60 = vld [vmem:[%s2431_s1 + $0xfc] sm:$0xf] }
  0x1d   :  { %663 = vmatpush.bf16.msra.mxu1 %v1247_v19  ;;  %692 = vmatpush.bf16.msra.mxu2 %v1059_v20  ;;  %v1500_v59 = vld [vmem:[%s2431_s1 + $0x2bc] sm:$0xf0]  ;;  %v1160_v61 = vld [vmem:[%s2431_s1 + $0x110] sm:$0xf0]  ;;  %v1491_v62 = vld [vmem:[%s2431_s1 + $0x27c] sm:$0xf]  ;;  %v1183_v0 = vor.u32 %v1452_v56, %v1182_v55 }
  0x1e   :  { %721 = vmatpush.bf16.msra.mxu3 %v1251_v24  ;;  %v1352_v63 = vld [vmem:[%s2431_s1 + $0x290] sm:$0xf0]  ;;  %v1375_v1 = vor.u32 %v1500_v59, %v1374_v57  ;;  %v1163_v2 = vor.u32 %v1443_v60, %v1160_v61  ;;  %v1158_v3 = vld [vmem:[%s2431_s1 + $0xf8] sm:$0xf]  ;;  %v1446_v4 = vld [vmem:[%s2431_s1 + $0x10c] sm:$0xf0] }
  0x1f   :  { %v1350_v5 = vld [vmem:[%s2431_s1 + $0x278] sm:$0xf]  ;;  %v1355_v6 = vor.u32 %v1491_v62, %v1352_v63  ;;  %v1494_v7 = vld [vmem:[%s2431_s1 + $0x28c] sm:$0xf0]  ;;  %v1437_v8 = vld [vmem:[%s2431_s1 + $0xcc] sm:$0xf]  ;;  %v1159_v12 = vor.u32 %v1446_v4, %v1158_v3 }
  0x20   :  { %635 = vmatpush.bf16.msra.mxu0 %v1031_v31  ;;  %v1136_v9 = vld [vmem:[%s2431_s1 + $0xe0] sm:$0xf0]  ;;  %v1485_v10 = vld [vmem:[%s2431_s1 + $0x24c] sm:$0xf]  ;;  %v1351_v14 = vor.u32 %v1494_v7, %v1350_v5  ;;  %v1134_v16 = vld [vmem:[%s2431_s1 + $0xc8] sm:$0xf] }
  0x21   :  { %664 = vmatpush.bf16.msra.mxu1 %v1223_v35  ;;  %693 = vmatpush.bf16.msra.mxu2 %v1035_v36  ;;  %v1328_v11 = vld [vmem:[%s2431_s1 + $0x260] sm:$0xf0]  ;;  %v1139_v15 = vor.u32 %v1437_v8, %v1136_v9  ;;  %v1440_v17 = vld [vmem:[%s2431_s1 + $0xdc] sm:$0xf0]  ;;  %v1326_v18 = vld [vmem:[%s2431_s1 + $0x248] sm:$0xf] }
  0x22   :  { %722 = vmatpush.bf16.msra.mxu3 %v1227_v39  ;;  %v18_v13 = vld [vmem:[%s2432_s0 + $0x20] sm:$0xff]  ;;  %v1331_v19 = vor.u32 %v1485_v10, %v1328_v11  ;;  %v1431_v21 = vld [vmem:[%s2431_s1 + $0x9c] sm:$0xf]  ;;  %v1112_v22 = vld [vmem:[%s2431_s1 + $0xb0] sm:$0xf0]  ;;  %v1135_v28 = vor.u32 %v1440_v17, %v1134_v16 }
  0x23   :  { %636 = vmatmul.bf16.vlgmr.msra.gmra.mxu0 %v1753_v44  ;;  %v1488_v20 = vld [vmem:[%s2431_s1 + $0x25c] sm:$0xf0]  ;;  %v20_v23 = vld [vmem:[%s2432_s0 + $0x30] sm:$0xff]  ;;  %v1479_v24 = vld [vmem:[%s2431_s1 + $0x21c] sm:$0xf]  ;;  %v1115_v30 = vor.u32 %v1431_v21, %v1112_v22 }
  0x24   :  { %665 = vmatmul.bf16.vlgmr.msra.gmra.mxu1 %v1764_v49  ;;  %694 = vmatmul.bf16.vlgmr.msra.gmra.mxu2 %v1753_v44  ;;  %v1304_v25 = vld [vmem:[%s2431_s1 + $0x230] sm:$0xf0]  ;;  %v19_v26 = vld [vmem:[%s2432_s0 + $0x28] sm:$0xff]  ;;  %v21_v27 = vld [vmem:[%s2432_s0 + $0x38] sm:$0xff]  ;;  %v1327_v29 = vor.u32 %v1488_v20, %v1326_v18  ;;  %v1869_v34 = vpack.c.bf16 %v20_v23, %v18_v13 }
  0x25   :  { %802 = vmatpush.bf16.msrb.mxu2 %v1211_v40  ;;  %723 = vmatmul.bf16.vlgmr.msra.gmra.mxu3 %v1764_v49  ;;  %v1110_v31 = vld [vmem:[%s2431_s1 + $0x98] sm:$0xf]  ;;  %v1434_v32 = vld [vmem:[%s2431_s1 + $0xac] sm:$0xf0]  ;;  %v1307_v35 = vor.u32 %v1479_v24, %v1304_v25  ;;  %v1425_v37 = vld [vmem:[%s2431_s1 + $0x6c] sm:$0xf]  ;;  %v1880_v39 = vpack.c.bf16 %v21_v27, %v19_v26 }
  0x26   :  { %831 = vmatpush.bf16.msrb.mxu3 %v1403_v45  ;;  %744 = vmatpush.bf16.msrb.mxu0 %v1207_v52  ;;  %v1302_v33 = vld [vmem:[%s2431_s1 + $0x218] sm:$0xf]  ;;  %v1482_v36 = vld [vmem:[%s2431_s1 + $0x22c] sm:$0xf0]  ;;  %v1088_v38 = vld [vmem:[%s2431_s1 + $0x80] sm:$0xf0]  ;;  %v1111_v42 = vor.u32 %v1434_v32, %v1110_v31 }
  0x27   :  { %773 = vmatpush.bf16.msrb.mxu1 %v1399_v53  ;;  %v1473_v40 = vld [vmem:[%s2431_s1 + $0x1ec] sm:$0xf]  ;;  %v1280_v41 = vld [vmem:[%s2431_s1 + $0x200] sm:$0xf0]  ;;  %v1303_v43 = vor.u32 %v1482_v36, %v1302_v33  ;;  %v1091_v45 = vor.u32 %v1425_v37, %v1088_v38  ;;  %v1086_v46 = vld [vmem:[%s2431_s1 + $0x68] sm:$0xf] }
  0x28   :  { %v1428_v47 = vld [vmem:[%s2431_s1 + $0x7c] sm:$0xf0]  ;;  %v1283_v48 = vor.u32 %v1473_v40, %v1280_v41  ;;  %v1278_v51 = vld [vmem:[%s2431_s1 + $0x1e8] sm:$0xf]  ;;  %v1419_v53 = vld [vmem:[%s2431_s1 + $0x3c] sm:$0xf] }
  0x29   :  { %803 = vmatpush.bf16.msrb.mxu2 %v1187_v54  ;;  %v1087_v50 = vor.u32 %v1428_v47, %v1086_v46  ;;  %v1476_v52 = vld [vmem:[%s2431_s1 + $0x1fc] sm:$0xf0]  ;;  %v1064_v55 = vld [vmem:[%s2431_s1 + $0x50] sm:$0xf0]  ;;  %v1467_v56 = vld [vmem:[%s2431_s1 + $0x1bc] sm:$0xf] }
  0x2a   :  { %832 = vmatpush.bf16.msrb.mxu3 %v1379_v58  ;;  %745 = vmatpush.bf16.msrb.mxu0 %v1183_v0  ;;  %v1279_v54 = vor.u32 %v1476_v52, %v1278_v51  ;;  %v1256_v57 = vld [vmem:[%s2431_s1 + $0x1d0] sm:$0xf0]  ;;  %v1067_v58 = vor.u32 %v1419_v53, %v1064_v55  ;;  %v1062_v60 = vld [vmem:[%s2431_s1 + $0x38] sm:$0xf]  ;;  %v1422_v61 = vld [vmem:[%s2431_s1 + $0x4c] sm:$0xf0] }
  0x2b   :  { %774 = vmatpush.bf16.msrb.mxu1 %v1375_v1  ;;  %v1259_v59 = vor.u32 %v1467_v56, %v1256_v57  ;;  %v1254_v62 = vld [vmem:[%s2431_s1 + $0x1b8] sm:$0xf]  ;;  %v1470_v63 = vld [vmem:[%s2431_s1 + $0x1cc] sm:$0xf0]  ;;  %v1413_v0 = vld [vmem:[%s2431_s1 + $0xc] sm:$0xf] }
  0x2c   :  { %v1040_v1 = vld [vmem:[%s2431_s1 + $0x20] sm:$0xf0]  ;;  %v1461_v3 = vld [vmem:[%s2431_s1 + $0x18c] sm:$0xf]  ;;  %v1255_v5 = vor.u32 %v1470_v63, %v1254_v62  ;;  %v1038_v7 = vld [vmem:[%s2431_s1 + $0x8] sm:$0xf] }
  0x2d   :  { %804 = vmatpush.bf16.msrb.mxu2 %v1163_v2  ;;  %v1063_v2 = vor.u32 %v1422_v61, %v1062_v60  ;;  %v1232_v4 = vld [vmem:[%s2431_s1 + $0x1a0] sm:$0xf0]  ;;  %v1416_v8 = vld [vmem:[%s2431_s1 + $0x1c] sm:$0xf0]  ;;  %v1230_v10 = vld [vmem:[%s2431_s1 + $0x188] sm:$0xf] }
  0x2e   :  { %833 = vmatpush.bf16.msrb.mxu3 %v1355_v6  ;;  %746 = vmatpush.bf16.msrb.mxu0 %v1159_v12  ;;  %v1043_v6 = vor.u32 %v1413_v0, %v1040_v1  ;;  %v1235_v9 = vor.u32 %v1461_v3, %v1232_v4  ;;  %v1464_v11 = vld [vmem:[%s2431_s1 + $0x19c] sm:$0xf0]  ;;  %v24_v13 = vld [vmem:[%s2432_s0 + $0x50] sm:$0xff]  ;;  %v1039_v16 = vor.u32 %v1416_v8, %v1038_v7  ;;  %v1456_v20 = vld [vmem:[%s2431_s1 + $0x164] sm:$0xf] }
  0x2f   :  { %775 = vmatpush.bf16.msrb.mxu1 %v1351_v14  ;;  %v22_v12 = vld [vmem:[%s2432_s0 + $0x40] sm:$0xff]  ;;  %v23_v14 = vld [vmem:[%s2432_s0 + $0x48] sm:$0xff]  ;;  %v1231_v17 = vor.u32 %v1464_v11, %v1230_v10  ;;  %v1216_v21 = vld [vmem:[%s2431_s1 + $0x178] sm:$0xf0] }
  0x30   :  { %v1964_v18 = vpack.c.bf16 %v24_v13, %v22_v12  ;;  %v1504_v22 = vld [vmem:[%s2431_s1 + $0x2e4] sm:$0xf]  ;;  %v1219_v23 = vor.u32 %v1456_v20, %v1216_v21  ;;  %v1408_v24 = vld [vmem:[%s2431_s1 + $0x2f8] sm:$0xf0]  ;;  %v1214_v25 = vld [vmem:[%s2431_s1 + $0x160] sm:$0xf] }
  0x31   :  { %805 = vmatpush.bf16.msrb.mxu2 %v1139_v15  ;;  %v25_v15 = vld [vmem:[%s2432_s0 + $0x58] sm:$0xff]  ;;  %v1411_v27 = vor.u32 %v1504_v22, %v1408_v24  ;;  %v1450_v31 = vld [vmem:[%s2431_s1 + $0x134] sm:$0xf]  ;;  %v1192_v33 = vld [vmem:[%s2431_s1 + $0x148] sm:$0xf0] }
  0x32   :  { %834 = vmatpush.bf16.msrb.mxu3 %v1331_v19  ;;  %747 = vmatpush.bf16.msrb.mxu0 %v1135_v28  ;;  %v1966_v19 = vpack.c.bf16 %v25_v15, %v23_v14  ;;  %v1459_v26 = vld [vmem:[%s2431_s1 + $0x174] sm:$0xf0]  ;;  %v1384_v36 = vld [vmem:[%s2431_s1 + $0x2c8] sm:$0xf0]  ;;  %v1195_v37 = vor.u32 %v1450_v31, %v1192_v33  ;;  %v1190_v40 = vld [vmem:[%s2431_s1 + $0x130] sm:$0xf] }
  0x33   :  { %776 = vmatpush.bf16.msrb.mxu1 %v1327_v29  ;;  %641 = vmatmul.bf16.gmra.mxu0 %v1869_v34  ;;  %v1215_v28 = vor.u32 %v1459_v26, %v1214_v25  ;;  %v1406_v29 = vld [vmem:[%s2431_s1 + $0x2e0] sm:$0xf]  ;;  %v1453_v41 = vld [vmem:[%s2431_s1 + $0x144] sm:$0xf0]  ;;  %v29_v47 = vld [vmem:[%s2432_s0 + $0x78] sm:$0xff] }
  0x34   :  { %670 = vmatmul.bf16.gmra.mxu1 %v1880_v39  ;;  %699 = vmatmul.bf16.gmra.mxu2 %v1869_v34  ;;  %v27_v46 = vld [vmem:[%s2432_s0 + $0x68] sm:$0xff]  ;;  %v1382_v51 = vld [vmem:[%s2431_s1 + $0x2b0] sm:$0xf]  ;;  %v1444_v53 = vld [vmem:[%s2431_s1 + $0x104] sm:$0xf] }
  0x35   :  { %806 = vmatpush.bf16.msrb.mxu2 %v1115_v30  ;;  %728 = vmatmul.bf16.gmra.mxu3 %v1880_v39  ;;  %v1507_v30 = vld [vmem:[%s2431_s1 + $0x2f4] sm:$0xf0]  ;;  %v1501_v52 = vld [vmem:[%s2431_s1 + $0x2c4] sm:$0xf0]  ;;  %v1168_v55 = vld [vmem:[%s2431_s1 + $0x118] sm:$0xf0] }
  0x36   :  { %835 = vmatpush.bf16.msrb.mxu3 %v1307_v35  ;;  %748 = vmatpush.bf16.msrb.mxu0 %v1111_v42  ;;  %v1407_v32 = vor.u32 %v1507_v30, %v1406_v29  ;;  %v1498_v35 = vld [vmem:[%s2431_s1 + $0x2b4] sm:$0xf]  ;;  %v1191_v42 = vor.u32 %v1453_v41, %v1190_v40  ;;  %v1492_v56 = vld [vmem:[%s2431_s1 + $0x284] sm:$0xf]  ;;  %v1360_v57 = vld [vmem:[%s2431_s1 + $0x298] sm:$0xf0] }
  0x37   :  { %777 = vmatpush.bf16.msrb.mxu1 %v1303_v43  ;;  %v1387_v38 = vor.u32 %v1498_v35, %v1384_v36  ;;  %v26_v43 = vld [vmem:[%s2432_s0 + $0x60] sm:$0xff]  ;;  %v1447_v61 = vld [vmem:[%s2431_s1 + $0x114] sm:$0xf0]  ;;  %v1438_v1 = vld [vmem:[%s2431_s1 + $0xd4] sm:$0xf] }
  0x38   :  { %v1166_v60 = vld [vmem:[%s2431_s1 + $0x100] sm:$0xf]  ;;  %v1495_v0 = vld [vmem:[%s2431_s1 + $0x294] sm:$0xf0]  ;;  %v1142_v7 = vld [vmem:[%s2431_s1 + $0xd0] sm:$0xf] }
  0x39   :  { %807 = vmatpush.bf16.msrb.mxu2 %v1091_v45  ;;  %v28_v45 = vld [vmem:[%s2432_s0 + $0x70] sm:$0xff]  ;;  %v1358_v62 = vld [vmem:[%s2431_s1 + $0x280] sm:$0xf]  ;;  %v1167_v63 = vor.u32 %v1447_v61, %v1166_v60  ;;  %v1489_v12 = vld [vmem:[%s2431_s1 + $0x264] sm:$0xf0] }
  0x3a   :  { %836 = vmatpush.bf16.msrb.mxu3 %v1283_v48  ;;  %749 = vmatpush.bf16.msrb.mxu0 %v1087_v50  ;;  %v2026_v48 = vpack.c.bf16 %v28_v45, %v26_v43  ;;  %v2028_v50 = vpack.c.bf16 %v29_v47, %v27_v46  ;;  %v1359_v3 = vor.u32 %v1495_v0, %v1358_v62  ;;  %v1334_v11 = vld [vmem:[%s2431_s1 + $0x250] sm:$0xf]  ;;  %v1432_v13 = vld [vmem:[%s2431_s1 + $0xa4] sm:$0xf]  ;;  %v1120_v15 = vld [vmem:[%s2431_s1 + $0xb8] sm:$0xf0] }
  0x3b   :  { %778 = vmatpush.bf16.msrb.mxu1 %v1279_v54  ;;  %v1383_v54 = vor.u32 %v1501_v52, %v1382_v51  ;;  %v1335_v14 = vor.u32 %v1489_v12, %v1334_v11  ;;  %v1123_v20 = vor.u32 %v1432_v13, %v1120_v15  ;;  %v1118_v22 = vld [vmem:[%s2431_s1 + $0xa0] sm:$0xf]  ;;  %v1483_v26 = vld [vmem:[%s2431_s1 + $0x234] sm:$0xf0]  ;;  %v1474_v31 = vld [vmem:[%s2431_s1 + $0x1f4] sm:$0xf] }
  0x3c   :  { %v1310_v24 = vld [vmem:[%s2431_s1 + $0x220] sm:$0xf]  ;;  %v1094_v33 = vld [vmem:[%s2431_s1 + $0x70] sm:$0xf]  ;;  %v1429_v36 = vld [vmem:[%s2431_s1 + $0x84] sm:$0xf0] }
  0x3d   :  { %808 = vmatpush.bf16.msrb.mxu2 %v1067_v58  ;;  %v1171_v58 = vor.u32 %v1444_v53, %v1168_v55  ;;  %v1311_v29 = vor.u32 %v1483_v26, %v1310_v24  ;;  %v1477_v40 = vld [vmem:[%s2431_s1 + $0x204] sm:$0xf0]  ;;  %v1420_v41 = vld [vmem:[%s2431_s1 + $0x44] sm:$0xf]  ;;  %v1072_v43 = vld [vmem:[%s2431_s1 + $0x58] sm:$0xf0] }
  0x3e   :  { %837 = vmatpush.bf16.msrb.mxu3 %v1259_v59  ;;  %750 = vmatpush.bf16.msrb.mxu0 %v1063_v2  ;;  %v1363_v59 = vor.u32 %v1492_v56, %v1360_v57  ;;  %v1144_v2 = vld [vmem:[%s2431_s1 + $0xe8] sm:$0xf0]  ;;  %v1468_v45 = vld [vmem:[%s2431_s1 + $0x1c4] sm:$0xf]  ;;  %v1264_v46 = vld [vmem:[%s2431_s1 + $0x1d8] sm:$0xf0]  ;;  %v1075_v47 = vor.u32 %v1420_v41, %v1072_v43 }
  0x3f   :  { %779 = vmatpush.bf16.msrb.mxu1 %v1255_v5  ;;  %v1147_v4 = vor.u32 %v1438_v1, %v1144_v2  ;;  %v1486_v5 = vld [vmem:[%s2431_s1 + $0x254] sm:$0xf]  ;;  %v1267_v51 = vor.u32 %v1468_v45, %v1264_v46  ;;  %v1070_v52 = vld [vmem:[%s2431_s1 + $0x40] sm:$0xf]  ;;  %v1423_v53 = vld [vmem:[%s2431_s1 + $0x54] sm:$0xf0] }
  0x40   :  { %v1071_v55 = vor.u32 %v1423_v53, %v1070_v52  ;;  %v1471_v56 = vld [vmem:[%s2431_s1 + $0x1d4] sm:$0xf0]  ;;  %v1414_v57 = vld [vmem:[%s2431_s1 + $0x14] sm:$0xf]  ;;  %v1240_v62 = vld [vmem:[%s2431_s1 + $0x1a8] sm:$0xf0] }
  0x41   :  { %809 = vmatpush.bf16.msrb.mxu2 %v1043_v6  ;;  %v1336_v6 = vld [vmem:[%s2431_s1 + $0x268] sm:$0xf0]  ;;  %v1462_v61 = vld [vmem:[%s2431_s1 + $0x194] sm:$0xf]  ;;  %v1046_v0 = vld [vmem:[%s2431_s1 + $0x10] sm:$0xf] }
  0x42   :  { %838 = vmatpush.bf16.msrb.mxu3 %v1235_v9  ;;  %751 = vmatpush.bf16.msrb.mxu0 %v1039_v16  ;;  %v1339_v8 = vor.u32 %v1486_v5, %v1336_v6  ;;  %v1441_v9 = vld [vmem:[%s2431_s1 + $0xe4] sm:$0xf0]  ;;  %v1480_v16 = vld [vmem:[%s2431_s1 + $0x224] sm:$0xf]  ;;  %v1238_v2 = vld [vmem:[%s2431_s1 + $0x190] sm:$0xf] }
  0x43   :  { %780 = vmatpush.bf16.msrb.mxu1 %v1231_v17  ;;  %646 = vmatmul.bf16.gmra.mxu0 %v1964_v18  ;;  %v1143_v10 = vor.u32 %v1441_v9, %v1142_v7  ;;  %v1312_v17 = vld [vmem:[%s2431_s1 + $0x238] sm:$0xf0]  ;;  %v1417_v1 = vld [vmem:[%s2431_s1 + $0x24] sm:$0xf0]  ;;  %v2203_v6 = vld [vmem:[%s2433_s2] sm:$0x3f] }
  0x44   :  { %675 = vmatmul.bf16.gmra.mxu1 %v1966_v19  ;;  %704 = vmatmul.bf16.gmra.mxu2 %v1964_v18  ;;  %v1315_v21 = vor.u32 %v1480_v16, %v1312_v17  ;;  %v2206_v7 = vperm.slane %v2203_v6, 0  ;;  %v2213_v12 = vperm.slane %v2203_v6, 1 }
  0x45   :  { %733 = vmatmul.bf16.gmra.mxu3 %v1966_v19  ;;  %918 = vmatpush.bf16.msra.mxu2 %v1219_v23  ;;  %v1435_v23 = vld [vmem:[%s2431_s1 + $0xb4] sm:$0xf0] }
  0x46   :  { %947 = vmatpush.bf16.msra.mxu3 %v1411_v27  ;;  %860 = vmatpush.bf16.msra.mxu0 %v1215_v28  ;;  %v1119_v25 = vor.u32 %v1435_v23, %v1118_v22  ;;  %v1426_v27 = vld [vmem:[%s2431_s1 + $0x74] sm:$0xf]  ;;  %v1096_v28 = vld [vmem:[%s2431_s1 + $0x88] sm:$0xf0] }
  0x47   :  { %889 = vmatpush.bf16.msra.mxu1 %v1407_v32  ;;  %v1099_v30 = vor.u32 %v1426_v27, %v1096_v28  ;;  %v1288_v32 = vld [vmem:[%s2431_s1 + $0x208] sm:$0xf0] }
  0x48   :  { %v1291_v35 = vor.u32 %v1474_v31, %v1288_v32 }
  0x49   :  { %919 = vmatpush.bf16.msra.mxu2 %v1195_v37  ;;  %v1095_v37 = vor.u32 %v1429_v36, %v1094_v33 }
  0x4a   :  { %948 = vmatpush.bf16.msra.mxu3 %v1387_v38  ;;  %861 = vmatpush.bf16.msra.mxu0 %v1191_v42  ;;  %v1286_v38 = vld [vmem:[%s2431_s1 + $0x1f0] sm:$0xf] }
  0x4b   :  { %890 = vmatpush.bf16.msra.mxu1 %v1383_v54  ;;  %v1287_v42 = vor.u32 %v1477_v40, %v1286_v38  ;;  %v1262_v54 = vld [vmem:[%s2431_s1 + $0x1c0] sm:$0xf] }
  0x4d   :  { %920 = vmatpush.bf16.msra.mxu2 %v1171_v58  ;;  %v1048_v58 = vld [vmem:[%s2431_s1 + $0x28] sm:$0xf0] }
  0x4e   :  { %949 = vmatpush.bf16.msra.mxu3 %v1363_v59  ;;  %862 = vmatpush.bf16.msra.mxu0 %v1167_v63  ;;  %v1263_v59 = vor.u32 %v1471_v56, %v1262_v54  ;;  %v1051_v60 = vor.u32 %v1414_v57, %v1048_v58  ;;  %v1243_v63 = vor.u32 %v1462_v61, %v1240_v62 }
  0x4f   :  { %891 = vmatpush.bf16.msra.mxu1 %v1359_v3  ;;  %v1047_v3 = vor.u32 %v1417_v1, %v1046_v0 }
  0x51   :  { %921 = vmatpush.bf16.msra.mxu2 %v1147_v4  ;;  %v1465_v4 = vld [vmem:[%s2431_s1 + $0x1a4] sm:$0xf0] }
  0x52   :  { %950 = vmatpush.bf16.msra.mxu3 %v1339_v8  ;;  %863 = vmatpush.bf16.msra.mxu0 %v1143_v10  ;;  %v1239_v5 = vor.u32 %v1465_v4, %v1238_v2 }
  0x53   :  { %651 = vmatmul.bf16.gmra.mxu0 %v2026_v48  ;;  %892 = vmatpush.bf16.msra.mxu1 %v1335_v14 }
  0x54   :  { %680 = vmatmul.bf16.gmra.mxu1 %v2028_v50  ;;  %709 = vmatmul.bf16.gmra.mxu2 %v2026_v48 }
  0x55   :  { %738 = vmatmul.bf16.gmra.mxu3 %v2028_v50  ;;  %922 = vmatpush.bf16.msra.mxu2 %v1123_v20 }
  0x56   :  { %951 = vmatpush.bf16.msra.mxu3 %v1315_v21  ;;  %864 = vmatpush.bf16.msra.mxu0 %v1119_v25 }
  0x57   :  { %893 = vmatpush.bf16.msra.mxu1 %v1311_v29 }
  0x59   :  { %923 = vmatpush.bf16.msra.mxu2 %v1099_v30 }
  0x5a   :  { %952 = vmatpush.bf16.msra.mxu3 %v1291_v35  ;;  %865 = vmatpush.bf16.msra.mxu0 %v1095_v37 }
  0x5b   :  { %894 = vmatpush.bf16.msra.mxu1 %v1287_v42 }
  0x5d   :  { %924 = vmatpush.bf16.msra.mxu2 %v1075_v47 }
  0x5e   :  { %953 = vmatpush.bf16.msra.mxu3 %v1267_v51  ;;  %866 = vmatpush.bf16.msra.mxu0 %v1071_v55 }
  0x5f   :  { %895 = vmatpush.bf16.msra.mxu1 %v1263_v59 }
  0x61   :  { %925 = vmatpush.bf16.msra.mxu2 %v1051_v60 }
  0x62   :  { %954 = vmatpush.bf16.msra.mxu3 %v1243_v63  ;;  %867 = vmatpush.bf16.msra.mxu0 %v1047_v3 }
  0x63   :  { %752 = vmatmul.bf16.vlgmr.msrb.gmra.mxu0 %v1753_v44  ;;  %896 = vmatpush.bf16.msra.mxu1 %v1239_v5 }
  0x64   :  { %781 = vmatmul.bf16.vlgmr.msrb.gmra.mxu1 %v1764_v49  ;;  %810 = vmatmul.bf16.vlgmr.msrb.gmra.mxu2 %v1753_v44 }
  0x65   :  { %839 = vmatmul.bf16.vlgmr.msrb.gmra.mxu3 %v1764_v49 }
  0x73   :  { %757 = vmatmul.bf16.gmra.mxu0 %v1869_v34 }
  0x74   :  { %786 = vmatmul.bf16.gmra.mxu1 %v1880_v39  ;;  %815 = vmatmul.bf16.gmra.mxu2 %v1869_v34 }
  0x75   :  { %844 = vmatmul.bf16.gmra.mxu3 %v1880_v39 }
  0x83   :  { %762 = vmatmul.bf16.gmra.mxu0 %v1964_v18 }
  0x84   :  { %791 = vmatmul.bf16.gmra.mxu1 %v1966_v19  ;;  %820 = vmatmul.bf16.gmra.mxu2 %v1964_v18 }
  0x85   :  { %849 = vmatmul.bf16.gmra.mxu3 %v1966_v19 }
  0x93   :  { %767 = vmatmul.bf16.gmra.mxu0 %v2026_v48 }
  0x94   :  { %796 = vmatmul.bf16.gmra.mxu1 %v2028_v50  ;;  %825 = vmatmul.bf16.gmra.mxu2 %v2026_v48 }
  0x95   :  { %854 = vmatmul.bf16.gmra.mxu3 %v2028_v50 }
  0xa0   :  { %v637_v8 = vpop.f32.mrf.mxu0 }
  0xa1   :  { %v638_v9 = vadd.f32 %v637_v8, %v2206_v7  ;;  %v666_v10 = vpop.f32.mrf.mxu1 }
  0xa3   :  { %v667_v11 = vadd.f32 %v666_v10, %v638_v9  ;;  %868 = vmatmul.bf16.vlgmr.msra.gmra.mxu0 %v1753_v44 }
  0xa4   :  { %897 = vmatmul.bf16.vlgmr.msra.gmra.mxu1 %v1764_v49  ;;  %926 = vmatmul.bf16.vlgmr.msra.gmra.mxu2 %v1753_v44 }
  0xa5   :  { %976 = vst [vmem:[%s2434_s3] sm:$0xff] %v667_v11  ;;  %955 = vmatmul.bf16.vlgmr.msra.gmra.mxu3 %v1764_v49 }
  0xa7   :  { %v695_v13 = vpop.f32.mrf.mxu2 }
  0xa8   :  { %v696_v14 = vadd.f32 %v695_v13, %v2213_v12  ;;  %v724_v15 = vpop.f32.mrf.mxu3  ;;  %v639_v16 = vpop.f32.mrf.mxu0 }
  0xa9   :  { %v640_v17 = vadd.f32 %v639_v16, %v2206_v7  ;;  %v668_v20 = vpop.f32.mrf.mxu1  ;;  %v2296_v16 = vperm.slane %v2203_v6, 3 }
  0xaa   :  { %v725_v21 = vadd.f32 %v724_v15, %v696_v14 }
  0xab   :  { %v669_v22 = vadd.f32 %v668_v20, %v640_v17 }
  0xac   :  { %977 = vst [vmem:[%s2434_s3 + $0x8] sm:$0xff] %v725_v21 }
  0xad   :  { %982 = vst [vmem:[%s2434_s3 + $0x30] sm:$0xff] %v669_v22 }
  0xaf   :  { %v697_v44 = vpop.f32.mrf.mxu2 }
  0xb0   :  { %v698_v49 = vadd.f32 %v697_v44, %v2213_v12  ;;  %v726_v23 = vpop.f32.mrf.mxu3  ;;  %v642_v24 = vpop.f32.mrf.mxu0 }
  0xb1   :  { %v643_v25 = vadd.f32 %v642_v24, %v2206_v7  ;;  %v671_v26 = vpop.f32.mrf.mxu1 }
  0xb2   :  { %v727_v27 = vadd.f32 %v726_v23, %v698_v49 }
  0xb3   :  { %v672_v28 = vadd.f32 %v671_v26, %v643_v25  ;;  %873 = vmatmul.bf16.gmra.mxu0 %v1869_v34 }
  0xb4   :  { %983 = vst [vmem:[%s2434_s3 + $0x38] sm:$0xff] %v727_v27  ;;  %902 = vmatmul.bf16.gmra.mxu1 %v1880_v39  ;;  %931 = vmatmul.bf16.gmra.mxu2 %v1869_v34 }
  0xb5   :  { %988 = vst [vmem:[%s2434_s3 + $0x60] sm:$0xff] %v672_v28  ;;  %960 = vmatmul.bf16.gmra.mxu3 %v1880_v39 }
  0xb7   :  { %v700_v29 = vpop.f32.mrf.mxu2 }
  0xb8   :  { %v701_v30 = vadd.f32 %v700_v29, %v2213_v12  ;;  %v729_v31 = vpop.f32.mrf.mxu3  ;;  %v644_v32 = vpop.f32.mrf.mxu0 }
  0xb9   :  { %v645_v33 = vadd.f32 %v644_v32, %v2206_v7  ;;  %v673_v35 = vpop.f32.mrf.mxu1 }
  0xba   :  { %v730_v36 = vadd.f32 %v729_v31, %v701_v30 }
  0xbb   :  { %v674_v37 = vadd.f32 %v673_v35, %v645_v33 }
  0xbc   :  { %989 = vst [vmem:[%s2434_s3 + $0x68] sm:$0xff] %v730_v36 }
  0xbd   :  { %994 = vst [vmem:[%s2434_s3 + $0x90] sm:$0xff] %v674_v37 }
  0xbf   :  { %v702_v34 = vpop.f32.mrf.mxu2 }
  0xc0   :  { %v703_v39 = vadd.f32 %v702_v34, %v2213_v12  ;;  %v731_v38 = vpop.f32.mrf.mxu3  ;;  %v647_v40 = vpop.f32.mrf.mxu0 }
  0xc1   :  { %v648_v41 = vadd.f32 %v647_v40, %v2206_v7  ;;  %v676_v42 = vpop.f32.mrf.mxu1 }
  0xc2   :  { %v732_v43 = vadd.f32 %v731_v38, %v703_v39 }
  0xc3   :  { %v677_v45 = vadd.f32 %v676_v42, %v648_v41  ;;  %878 = vmatmul.bf16.gmra.mxu0 %v1964_v18 }
  0xc4   :  { %995 = vst [vmem:[%s2434_s3 + $0x98] sm:$0xff] %v732_v43  ;;  %907 = vmatmul.bf16.gmra.mxu1 %v1966_v19  ;;  %936 = vmatmul.bf16.gmra.mxu2 %v1964_v18 }
  0xc5   :  { %1000 = vst [vmem:[%s2434_s3 + $0xc0] sm:$0xff] %v677_v45  ;;  %965 = vmatmul.bf16.gmra.mxu3 %v1966_v19 }
  0xc7   :  { %v705_v46 = vpop.f32.mrf.mxu2 }
  0xc8   :  { %v706_v47 = vadd.f32 %v705_v46, %v2213_v12  ;;  %v734_v51 = vpop.f32.mrf.mxu3  ;;  %v649_v52 = vpop.f32.mrf.mxu0 }
  0xc9   :  { %v650_v53 = vadd.f32 %v649_v52, %v2206_v7  ;;  %v678_v54 = vpop.f32.mrf.mxu1 }
  0xca   :  { %v735_v55 = vadd.f32 %v734_v51, %v706_v47 }
  0xcb   :  { %v679_v56 = vadd.f32 %v678_v54, %v650_v53 }
  0xcc   :  { %1001 = vst [vmem:[%s2434_s3 + $0xc8] sm:$0xff] %v735_v55 }
  0xcd   :  { %1006 = vst [vmem:[%s2434_s3 + $0xf0] sm:$0xff] %v679_v56 }
  0xcf   :  { %v707_v18 = vpop.f32.mrf.mxu2 }
  0xd0   :  { %v708_v19 = vadd.f32 %v707_v18, %v2213_v12  ;;  %v736_v57 = vpop.f32.mrf.mxu3  ;;  %v652_v58 = vpop.f32.mrf.mxu0 }
  0xd1   :  { %v653_v59 = vadd.f32 %v652_v58, %v2206_v7  ;;  %v681_v60 = vpop.f32.mrf.mxu1 }
  0xd2   :  { %v737_v61 = vadd.f32 %v736_v57, %v708_v19 }
  0xd3   :  { %v682_v62 = vadd.f32 %v681_v60, %v653_v59  ;;  %883 = vmatmul.bf16.gmra.mxu0 %v2026_v48 }
  0xd4   :  { %1007 = vst [vmem:[%s2434_s3 + $0xf8] sm:$0xff] %v737_v61  ;;  %912 = vmatmul.bf16.gmra.mxu1 %v2028_v50  ;;  %941 = vmatmul.bf16.gmra.mxu2 %v2026_v48  ;;  %v2288_v48 = vperm.slane %v2203_v6, 2 }
  0xd5   :  { %1012 = vst [vmem:[%s2434_s3 + $0x120] sm:$0xff] %v682_v62  ;;  %970 = vmatmul.bf16.gmra.mxu3 %v2028_v50 }
  0xd7   :  { %v710_v63 = vpop.f32.mrf.mxu2 }
  0xd8   :  { %v711_v0 = vadd.f32 %v710_v63, %v2213_v12  ;;  %v739_v1 = vpop.f32.mrf.mxu3  ;;  %v654_v2 = vpop.f32.mrf.mxu0 }
  0xd9   :  { %v655_v3 = vadd.f32 %v654_v2, %v2206_v7  ;;  %v683_v4 = vpop.f32.mrf.mxu1 }
  0xda   :  { %v740_v5 = vadd.f32 %v739_v1, %v711_v0 }
  0xdb   :  { %v684_v8 = vadd.f32 %v683_v4, %v655_v3 }
  0xdc   :  { %1013 = vst [vmem:[%s2434_s3 + $0x128] sm:$0xff] %v740_v5 }
  0xdd   :  { %1018 = vst [vmem:[%s2434_s3 + $0x150] sm:$0xff] %v684_v8 }
  0xdf   :  { %v712_v50 = vpop.f32.mrf.mxu2 }
  0xe0   :  { %v713_v9 = vadd.f32 %v712_v50, %v2213_v12  ;;  %v741_v10 = vpop.f32.mrf.mxu3  ;;  %v753_v11 = vpop.f32.mrf.mxu0 }
  0xe1   :  { %v754_v7 = vadd.f32 %v753_v11, %v2288_v48  ;;  %v782_v13 = vpop.f32.mrf.mxu1  ;;  %v2358_v11 = vperm.slane %v2203_v6, 4 }
  0xe2   :  { %v742_v14 = vadd.f32 %v741_v10, %v713_v9 }
  0xe3   :  { %v783_v15 = vadd.f32 %v782_v13, %v754_v7 }
  0xe4   :  { %1019 = vst [vmem:[%s2434_s3 + $0x158] sm:$0xff] %v742_v14 }
  0xe5   :  { %978 = vst [vmem:[%s2434_s3 + $0x10] sm:$0xff] %v783_v15 }
  0xe7   :  { %v811_v17 = vpop.f32.mrf.mxu2 }
  0xe8   :  { %v812_v12 = vadd.f32 %v811_v17, %v2296_v16  ;;  %v840_v20 = vpop.f32.mrf.mxu3  ;;  %v755_v21 = vpop.f32.mrf.mxu0 }
  0xe9   :  { %v756_v22 = vadd.f32 %v755_v21, %v2288_v48  ;;  %v784_v44 = vpop.f32.mrf.mxu1  ;;  %v2366_v21 = vperm.slane %v2203_v6, 5 }
  0xea   :  { %v841_v49 = vadd.f32 %v840_v20, %v812_v12 }
  0xeb   :  { %v785_v23 = vadd.f32 %v784_v44, %v756_v22 }
  0xec   :  { %979 = vst [vmem:[%s2434_s3 + $0x18] sm:$0xff] %v841_v49 }
  0xed   :  { %984 = vst [vmem:[%s2434_s3 + $0x40] sm:$0xff] %v785_v23 }
  0xef   :  { %v813_v24 = vpop.f32.mrf.mxu2 }
  0xf0   :  { %v814_v25 = vadd.f32 %v813_v24, %v2296_v16  ;;  %v842_v26 = vpop.f32.mrf.mxu3  ;;  %v758_v27 = vpop.f32.mrf.mxu0 }
  0xf1   :  { %v759_v28 = vadd.f32 %v758_v27, %v2288_v48  ;;  %v787_v29 = vpop.f32.mrf.mxu1 }
  0xf2   :  { %v843_v30 = vadd.f32 %v842_v26, %v814_v25 }
  0xf3   :  { %v788_v31 = vadd.f32 %v787_v29, %v759_v28 }
  0xf4   :  { %985 = vst [vmem:[%s2434_s3 + $0x48] sm:$0xff] %v843_v30 }
  0xf5   :  { %990 = vst [vmem:[%s2434_s3 + $0x70] sm:$0xff] %v788_v31 }
  0xf7   :  { %v816_v32 = vpop.f32.mrf.mxu2 }
  0xf8   :  { %v817_v33 = vadd.f32 %v816_v32, %v2296_v16  ;;  %v845_v35 = vpop.f32.mrf.mxu3  ;;  %v760_v36 = vpop.f32.mrf.mxu0 }
  0xf9   :  { %v761_v37 = vadd.f32 %v760_v36, %v2288_v48  ;;  %v789_v34 = vpop.f32.mrf.mxu1 }
  0xfa   :  { %v846_v39 = vadd.f32 %v845_v35, %v817_v33 }
  0xfb   :  { %v790_v38 = vadd.f32 %v789_v34, %v761_v37 }
  0xfc   :  { %991 = vst [vmem:[%s2434_s3 + $0x78] sm:$0xff] %v846_v39 }
  0xfd   :  { %996 = vst [vmem:[%s2434_s3 + $0xa0] sm:$0xff] %v790_v38 }
  0xff   :  { %v818_v40 = vpop.f32.mrf.mxu2 }
 0x100   :  { %v819_v41 = vadd.f32 %v818_v40, %v2296_v16  ;;  %v847_v42 = vpop.f32.mrf.mxu3  ;;  %v763_v43 = vpop.f32.mrf.mxu0 }
 0x101   :  { %v764_v45 = vadd.f32 %v763_v43, %v2288_v48  ;;  %v792_v46 = vpop.f32.mrf.mxu1 }
 0x102   :  { %v848_v47 = vadd.f32 %v847_v42, %v819_v41 }
 0x103   :  { %v793_v51 = vadd.f32 %v792_v46, %v764_v45 }
 0x104   :  { %997 = vst [vmem:[%s2434_s3 + $0xa8] sm:$0xff] %v848_v47 }
 0x105   :  { %1002 = vst [vmem:[%s2434_s3 + $0xd0] sm:$0xff] %v793_v51 }
 0x107   :  { %v821_v52 = vpop.f32.mrf.mxu2 }
 0x108   :  { %v822_v53 = vadd.f32 %v821_v52, %v2296_v16  ;;  %v850_v54 = vpop.f32.mrf.mxu3  ;;  %v765_v55 = vpop.f32.mrf.mxu0 }
 0x109   :  { %v766_v56 = vadd.f32 %v765_v55, %v2288_v48  ;;  %v794_v18 = vpop.f32.mrf.mxu1 }
 0x10a   :  { %v851_v19 = vadd.f32 %v850_v54, %v822_v53 }
 0x10b   :  { %v795_v57 = vadd.f32 %v794_v18, %v766_v56 }
 0x10c   :  { %1003 = vst [vmem:[%s2434_s3 + $0xd8] sm:$0xff] %v851_v19 }
 0x10d   :  { %1008 = vst [vmem:[%s2434_s3 + $0x100] sm:$0xff] %v795_v57 }
 0x10f   :  { %v823_v58 = vpop.f32.mrf.mxu2 }
 0x110   :  { %v824_v59 = vadd.f32 %v823_v58, %v2296_v16  ;;  %v852_v60 = vpop.f32.mrf.mxu3  ;;  %v768_v61 = vpop.f32.mrf.mxu0 }
 0x111   :  { %v769_v62 = vadd.f32 %v768_v61, %v2288_v48  ;;  %v797_v63 = vpop.f32.mrf.mxu1 }
 0x112   :  { %v853_v0 = vadd.f32 %v852_v60, %v824_v59 }
 0x113   :  { %v798_v1 = vadd.f32 %v797_v63, %v769_v62 }
 0x114   :  { %1009 = vst [vmem:[%s2434_s3 + $0x108] sm:$0xff] %v853_v0 }
 0x115   :  { %1014 = vst [vmem:[%s2434_s3 + $0x130] sm:$0xff] %v798_v1 }
 0x117   :  { %v826_v2 = vpop.f32.mrf.mxu2 }
 0x118   :  { %v827_v3 = vadd.f32 %v826_v2, %v2296_v16  ;;  %v855_v4 = vpop.f32.mrf.mxu3  ;;  %v770_v5 = vpop.f32.mrf.mxu0 }
 0x119   :  { %v771_v8 = vadd.f32 %v770_v5, %v2288_v48  ;;  %v799_v50 = vpop.f32.mrf.mxu1 }
 0x11a   :  { %v856_v9 = vadd.f32 %v855_v4, %v827_v3 }
 0x11b   :  { %v800_v10 = vadd.f32 %v799_v50, %v771_v8 }
 0x11c   :  { %1015 = vst [vmem:[%s2434_s3 + $0x138] sm:$0xff] %v856_v9 }
 0x11d   :  { %1020 = vst [vmem:[%s2434_s3 + $0x160] sm:$0xff] %v800_v10 }
 0x11f   :  { %v828_v7 = vpop.f32.mrf.mxu2 }
 0x120   :  { %v829_v13 = vadd.f32 %v828_v7, %v2296_v16  ;;  %v857_v14 = vpop.f32.mrf.mxu3  ;;  %v869_v15 = vpop.f32.mrf.mxu0 }
 0x121   :  { %v870_v48 = vadd.f32 %v869_v15, %v2358_v11  ;;  %v898_v17 = vpop.f32.mrf.mxu1 }
 0x122   :  { %v858_v12 = vadd.f32 %v857_v14, %v829_v13 }
 0x123   :  { %v899_v20 = vadd.f32 %v898_v17, %v870_v48 }
 0x124   :  { %1021 = vst [vmem:[%s2434_s3 + $0x168] sm:$0xff] %v858_v12 }
 0x125   :  { %980 = vst [vmem:[%s2434_s3 + $0x20] sm:$0xff] %v899_v20 }
 0x127   :  { %v927_v22 = vpop.f32.mrf.mxu2 }
 0x128   :  { %v928_v16 = vadd.f32 %v927_v22, %v2366_v21  ;;  %v956_v44 = vpop.f32.mrf.mxu3  ;;  %v871_v49 = vpop.f32.mrf.mxu0 }
 0x129   :  { %v872_v23 = vadd.f32 %v871_v49, %v2358_v11  ;;  %v900_v24 = vpop.f32.mrf.mxu1 }
 0x12a   :  { %v957_v25 = vadd.f32 %v956_v44, %v928_v16 }
 0x12b   :  { %v901_v26 = vadd.f32 %v900_v24, %v872_v23 }
 0x12c   :  { %981 = vst [vmem:[%s2434_s3 + $0x28] sm:$0xff] %v957_v25 }
 0x12d   :  { %986 = vst [vmem:[%s2434_s3 + $0x50] sm:$0xff] %v901_v26 }
 0x12f   :  { %v929_v6 = vpop.f32.mrf.mxu2 }
 0x130   :  { %v930_v27 = vadd.f32 %v929_v6, %v2366_v21  ;;  %v958_v28 = vpop.f32.mrf.mxu3  ;;  %v874_v29 = vpop.f32.mrf.mxu0 }
 0x131   :  { %v875_v30 = vadd.f32 %v874_v29, %v2358_v11  ;;  %v903_v31 = vpop.f32.mrf.mxu1 }
 0x132   :  { %v959_v32 = vadd.f32 %v958_v28, %v930_v27 }
 0x133   :  { %v904_v33 = vadd.f32 %v903_v31, %v875_v30 }
 0x134   :  { %987 = vst [vmem:[%s2434_s3 + $0x58] sm:$0xff] %v959_v32 }
 0x135   :  { %992 = vst [vmem:[%s2434_s3 + $0x80] sm:$0xff] %v904_v33 }
 0x137   :  { %v932_v35 = vpop.f32.mrf.mxu2 }
 0x138   :  { %v933_v36 = vadd.f32 %v932_v35, %v2366_v21  ;;  %v961_v37 = vpop.f32.mrf.mxu3  ;;  %v876_v34 = vpop.f32.mrf.mxu0 }
 0x139   :  { %v877_v39 = vadd.f32 %v876_v34, %v2358_v11  ;;  %v905_v38 = vpop.f32.mrf.mxu1 }
 0x13a   :  { %v962_v40 = vadd.f32 %v961_v37, %v933_v36 }
 0x13b   :  { %v906_v41 = vadd.f32 %v905_v38, %v877_v39 }
 0x13c   :  { %993 = vst [vmem:[%s2434_s3 + $0x88] sm:$0xff] %v962_v40 }
 0x13d   :  { %998 = vst [vmem:[%s2434_s3 + $0xb0] sm:$0xff] %v906_v41 }
 0x13f   :  { %v934_v42 = vpop.f32.mrf.mxu2 }
 0x140   :  { %v935_v43 = vadd.f32 %v934_v42, %v2366_v21  ;;  %v963_v45 = vpop.f32.mrf.mxu3  ;;  %v879_v46 = vpop.f32.mrf.mxu0 }
 0x141   :  { %v880_v47 = vadd.f32 %v879_v46, %v2358_v11  ;;  %v908_v51 = vpop.f32.mrf.mxu1 }
 0x142   :  { %v964_v52 = vadd.f32 %v963_v45, %v935_v43 }
 0x143   :  { %v909_v53 = vadd.f32 %v908_v51, %v880_v47 }
 0x144   :  { %999 = vst [vmem:[%s2434_s3 + $0xb8] sm:$0xff] %v964_v52 }
 0x145   :  { %1004 = vst [vmem:[%s2434_s3 + $0xe0] sm:$0xff] %v909_v53 }
 0x147   :  { %v937_v54 = vpop.f32.mrf.mxu2 }
 0x148   :  { %v938_v55 = vadd.f32 %v937_v54, %v2366_v21  ;;  %v966_v56 = vpop.f32.mrf.mxu3  ;;  %v881_v18 = vpop.f32.mrf.mxu0 }
 0x149   :  { %v882_v19 = vadd.f32 %v881_v18, %v2358_v11  ;;  %v910_v57 = vpop.f32.mrf.mxu1 }
 0x14a   :  { %v967_v58 = vadd.f32 %v966_v56, %v938_v55 }
 0x14b   :  { %v911_v59 = vadd.f32 %v910_v57, %v882_v19 }
 0x14c   :  { %1005 = vst [vmem:[%s2434_s3 + $0xe8] sm:$0xff] %v967_v58 }
 0x14d   :  { %1010 = vst [vmem:[%s2434_s3 + $0x110] sm:$0xff] %v911_v59 }
 0x14f   :  { %v939_v60 = vpop.f32.mrf.mxu2 }
 0x150   :  { %v940_v61 = vadd.f32 %v939_v60, %v2366_v21  ;;  %v968_v62 = vpop.f32.mrf.mxu3  ;;  %v884_v63 = vpop.f32.mrf.mxu0 }
 0x151   :  { %v885_v0 = vadd.f32 %v884_v63, %v2358_v11  ;;  %v913_v1 = vpop.f32.mrf.mxu1 }
 0x152   :  { %v969_v2 = vadd.f32 %v968_v62, %v940_v61 }
 0x153   :  { %v914_v3 = vadd.f32 %v913_v1, %v885_v0 }
 0x154   :  { %1011 = vst [vmem:[%s2434_s3 + $0x118] sm:$0xff] %v969_v2 }
 0x155   :  { %1016 = vst [vmem:[%s2434_s3 + $0x140] sm:$0xff] %v914_v3 }
 0x157   :  { %v942_v4 = vpop.f32.mrf.mxu2 }
 0x158   :  { %v943_v5 = vadd.f32 %v942_v4, %v2366_v21  ;;  %v971_v8 = vpop.f32.mrf.mxu3  ;;  %v886_v50 = vpop.f32.mrf.mxu0 }
 0x159   :  { %v887_v9 = vadd.f32 %v886_v50, %v2358_v11  ;;  %v915_v7 = vpop.f32.mrf.mxu1 }
 0x15a   :  { %v972_v10 = vadd.f32 %v971_v8, %v943_v5 }
 0x15b   :  { %v916_v13 = vadd.f32 %v915_v7, %v887_v9 }
 0x15c   :  { %1017 = vst [vmem:[%s2434_s3 + $0x148] sm:$0xff] %v972_v10 }
 0x15d   :  { %1022 = vst [vmem:[%s2434_s3 + $0x170] sm:$0xff] %v916_v13 }
 0x15f   :  { %v944_v14 = vpop.f32.mrf.mxu2 }
 0x160   :  { %v945_v15 = vadd.f32 %v944_v14, %v2366_v21  ;;  %v973_v48 = vpop.f32.mrf.mxu3 }
 0x162   :  { %v974_v17 = vadd.f32 %v973_v48, %v945_v15 }
 0x164   :  { %1023 = vst [vmem:[%s2434_s3 + $0x178] sm:$0xff] %v974_v17 }

// kernel: graph_decoder_rnn_forward.6
= control target key start
LH: loop header
LB: loop body
LE: loop exit
PB: predicated region body
PF: predicated region fallthrough
CT: control target
= control target key end

     0   :  { %11 = vsyncpa [#allocation3], 0  ;;  %s2392_s21 = smov [#allocation2]   ;;  %s2393_s23 = smov 192   ;;  %s3301_s0 = inlined_call_operand.vmem [shape: f32[8,8,768], index: 0, kind: input, shape index: {}]   ;;  %s3302_s1 = inlined_call_operand.vmem [shape: f32[2,8,128], index: 1, kind: input, shape index: {}]   ;;  %s3303_s2 = inlined_call_operand.hbm [shape: bf16[2,128,384], index: 2, kind: input, shape index: {}]   ;;  %s3304_s3 = inlined_call_operand.vmem [shape: f32[2,1,128], index: 3, kind: input, shape index: {}]   ;;  %s3305_s4 = inlined_call_operand.vmem [shape: f32[8,8,256], index: 4, kind: output, shape index: {0}]   ;;  %s3306_s5 = inlined_call_operand.vmem [shape: f32[2,8,128], index: 5, kind: output, shape index: {1}]  }
   0x1   :  { %s20_s20 = sshll.u32 %s3303_s2, 4  ;;  %s22_s22 = sshll.u32 %s2392_s21, 4  ;;  %s21_s20 = int_to_ptr.hbm [resolvable:$true] %s20_s20  ;;  %s23_s22 = int_to_ptr.vmem [resolvable:$true] %s22_s22 }
   0x2   :  { %s2394_s24 = smov 12  }
   0x3   :  { %28 = dma.hbm_to_vmem [thread:$0]  %s21_s20, 6144, %s23_s22, [#allocation3], %s2393_s23, %s2393_s23, %s2394_s24  }
   0x4   :  { %2390 = dma.done.wait [#allocation3], 6144  }
   0x5   :  { %2391 = vsyncadd [#allocation3], 4294961152  ;;  %v1954_v0 = vld [vmem:[#allocation2 + $0xa8] sm:$0xf]  ;;  %v2171_v1 = vld [vmem:[#allocation2 + $0xb0] sm:$0xf0] }
   0x6   :  { %v2055_v2 = vld [vmem:[#allocation2 + $0x168] sm:$0xf]  ;;  %v2428_v3 = vor.u32 %v2171_v1, %v1954_v0  ;;  %v2195_v4 = vld [vmem:[#allocation2 + $0x170] sm:$0xf0]  ;;  %v2170_v5 = vld [vmem:[#allocation2 + $0xac] sm:$0xf] }
   0x7   :  { %v1956_v6 = vld [vmem:[#allocation2 + $0xb4] sm:$0xf0]  ;;  %v2430_v7 = vor.u32 %v2195_v4, %v2055_v2  ;;  %v1942_v9 = vld [vmem:[#allocation2 + $0x90] sm:$0xf]  ;;  %v2168_v10 = vld [vmem:[#allocation2 + $0x98] sm:$0xf0] }
   0x8   :  { %v2432_v8 = vor.u32 %v2170_v5, %v1956_v6  ;;  %v2043_v11 = vld [vmem:[#allocation2 + $0x150] sm:$0xf]  ;;  %238 = vmatpush.bf16.msra.mxu0 %v2428_v3  ;;  %v2435_v12 = vor.u32 %v2168_v10, %v1942_v9  ;;  %v2192_v13 = vld [vmem:[#allocation2 + $0x158] sm:$0xf0]  ;;  %v2167_v14 = vld [vmem:[#allocation2 + $0x94] sm:$0xf] }
   0x9   :  { %v1944_v15 = vld [vmem:[#allocation2 + $0x9c] sm:$0xf0]  ;;  %462 = vmatpush.bf16.msra.mxu3 %v2430_v7  ;;  %v2439_v16 = vor.u32 %v2192_v13, %v2043_v11  ;;  %v1930_v18 = vld [vmem:[#allocation2 + $0x78] sm:$0xf]  ;;  %v2165_v19 = vld [vmem:[#allocation2 + $0x80] sm:$0xf0] }
   0xa   :  { %251 = vmatpush.bf16.msra.mxu1 %v2432_v8  ;;  %v2441_v17 = vor.u32 %v2167_v14, %v1944_v15  ;;  %v2031_v20 = vld [vmem:[#allocation2 + $0x138] sm:$0xf]  ;;  %v2189_v21 = vld [vmem:[#allocation2 + $0x140] sm:$0xf0]  ;;  %v2164_v22 = vld [vmem:[#allocation2 + $0x7c] sm:$0xf]  ;;  %v2444_v24 = vor.u32 %v2165_v19, %v1930_v18 }
   0xb   :  { %v1932_v23 = vld [vmem:[#allocation2 + $0x84] sm:$0xf0]  ;;  %v2448_v25 = vor.u32 %v2189_v21, %v2031_v20  ;;  %v1918_v27 = vld [vmem:[#allocation2 + $0x60] sm:$0xf]  ;;  %v2162_v28 = vld [vmem:[#allocation2 + $0x68] sm:$0xf0] }
   0xc   :  { %239 = vmatpush.bf16.msra.mxu0 %v2435_v12  ;;  %v2450_v26 = vor.u32 %v2164_v22, %v1932_v23  ;;  %v2019_v29 = vld [vmem:[#allocation2 + $0x120] sm:$0xf]  ;;  %v2186_v30 = vld [vmem:[#allocation2 + $0x128] sm:$0xf0]  ;;  %v2161_v31 = vld [vmem:[#allocation2 + $0x64] sm:$0xf]  ;;  %v2453_v34 = vor.u32 %v2162_v28, %v1918_v27 }
   0xd   :  { %463 = vmatpush.bf16.msra.mxu3 %v2439_v16  ;;  %v1920_v32 = vld [vmem:[#allocation2 + $0x6c] sm:$0xf0]  ;;  %v1906_v35 = vld [vmem:[#allocation2 + $0x48] sm:$0xf]  ;;  %v2159_v36 = vld [vmem:[#allocation2 + $0x50] sm:$0xf0]  ;;  %v2457_v38 = vor.u32 %v2186_v30, %v2019_v29 }
   0xe   :  { %252 = vmatpush.bf16.msra.mxu1 %v2441_v17  ;;  %v1962_v33 = vld [vmem:[#allocation2 + $0xb0] sm:$0xf]  ;;  %3339 = vst [vmem:[#allocation5_spill] sm:$0xff] %v2453_v34  ;;  %v2172_v37 = vld [vmem:[#allocation2 + $0xb8] sm:$0xf0]  ;;  %v2459_v39 = vor.u32 %v2161_v31, %v1920_v32  ;;  %v2467_v48 = vor.u32 %v2159_v36, %v1906_v35  ;;  %v2508_v32 = vld [vmem:[%s3302_s1] sm:$0xff] }
   0xf   :  { %v2007_v40 = vld [vmem:[#allocation2 + $0x108] sm:$0xf]  ;;  %v2183_v41 = vld [vmem:[#allocation2 + $0x110] sm:$0xf0]  ;;  %v2158_v42 = vld [vmem:[#allocation2 + $0x4c] sm:$0xf]  ;;  %v2461_v43 = vor.u32 %v2172_v37, %v1962_v33 }
  0x10   :  { %240 = vmatpush.bf16.msra.mxu0 %v2444_v24  ;;  %3340 = vst [vmem:[#allocation6_spill] sm:$0xff] %v2459_v39  ;;  %v1908_v44 = vld [vmem:[#allocation2 + $0x54] sm:$0xf0]  ;;  %v2169_v46 = vld [vmem:[#allocation2 + $0xa0] sm:$0xf0]  ;;  %v2471_v51 = vor.u32 %v2183_v41, %v2007_v40  ;;  %v2519_v40 = vld [vmem:[%s3302_s1 + $0x8] sm:$0xff] }
  0x11   :  { %464 = vmatpush.bf16.msra.mxu3 %v2448_v25  ;;  %v1950_v45 = vld [vmem:[#allocation2 + $0x98] sm:$0xf]  ;;  %264 = vmatpush.bf16.msra.mxu2 %v2461_v43  ;;  %3341 = vst [vmem:[#allocation7_spill] sm:$0xff] %v2467_v48  ;;  %v1894_v49 = vld [vmem:[#allocation2 + $0x30] sm:$0xf]  ;;  %v2473_v52 = vor.u32 %v2158_v42, %v1908_v44 }
  0x12   :  { %253 = vmatpush.bf16.msra.mxu1 %v2450_v26  ;;  %v2464_v47 = vor.u32 %v2169_v46, %v1950_v45  ;;  %v2156_v50 = vld [vmem:[#allocation2 + $0x38] sm:$0xf0]  ;;  %v1995_v53 = vld [vmem:[#allocation2 + $0xf0] sm:$0xf]  ;;  %v1938_v54 = vld [vmem:[#allocation2 + $0x80] sm:$0xf] }
  0x13   :  { %3342 = vst [vmem:[#allocation8_spill] sm:$0xff] %v2473_v52  ;;  %v2166_v55 = vld [vmem:[#allocation2 + $0x88] sm:$0xf0]  ;;  %v2180_v56 = vld [vmem:[#allocation2 + $0xf8] sm:$0xf0]  ;;  %v2479_v60 = vor.u32 %v2156_v50, %v1894_v49  ;;  %v109_v49 = vpack.c.bf16 %v2508_v32, %v2508_v32 }
  0x14   :  { %241 = vmatpush.bf16.msra.mxu0 %v2453_v34  ;;  %v2155_v57 = vld [vmem:[#allocation2 + $0x34] sm:$0xf]  ;;  %v1896_v58 = vld [vmem:[#allocation2 + $0x3c] sm:$0xf0]  ;;  %v2476_v59 = vor.u32 %v2166_v55, %v1938_v54  ;;  %v1926_v61 = vld [vmem:[#allocation2 + $0x68] sm:$0xf]  ;;  %v2483_v63 = vor.u32 %v2180_v56, %v1995_v53  ;;  %v2531_v53 = vpack.c.bf16 %v2519_v40, %v2519_v40 }
  0x15   :  { %465 = vmatpush.bf16.msra.mxu3 %v2457_v38  ;;  %265 = vmatpush.bf16.msra.mxu2 %v2464_v47  ;;  %3343 = vst [vmem:[#allocation9_spill] sm:$0xff] %v2479_v60  ;;  %v2163_v62 = vld [vmem:[#allocation2 + $0x70] sm:$0xf0]  ;;  %v2485_v0 = vor.u32 %v2155_v57, %v1896_v58  ;;  %v1882_v1 = vld [vmem:[#allocation2 + $0x18] sm:$0xf] }
  0x16   :  { %254 = vmatpush.bf16.msra.mxu1 %v2459_v39  ;;  %v2153_v2 = vld [vmem:[#allocation2 + $0x20] sm:$0xf0]  ;;  %v1983_v4 = vld [vmem:[#allocation2 + $0xd8] sm:$0xf]  ;;  %v2152_v6 = vld [vmem:[#allocation2 + $0x1c] sm:$0xf]  ;;  %v2488_v10 = vor.u32 %v2163_v62, %v1926_v61 }
  0x17   :  { %3344 = vst [vmem:[#allocation10_spill] sm:$0xff] %v2485_v0  ;;  %v2177_v5 = vld [vmem:[#allocation2 + $0xe0] sm:$0xf0]  ;;  %v1884_v9 = vld [vmem:[#allocation2 + $0x24] sm:$0xf0]  ;;  %v2491_v11 = vor.u32 %v2153_v2, %v1882_v1 }
  0x18   :  { %242 = vmatpush.bf16.msra.mxu0 %v2467_v48  ;;  %v1914_v13 = vld [vmem:[#allocation2 + $0x50] sm:$0xf]  ;;  %v2160_v14 = vld [vmem:[#allocation2 + $0x58] sm:$0xf0]  ;;  %v2495_v15 = vor.u32 %v2177_v5, %v1983_v4  ;;  %v2497_v18 = vor.u32 %v2152_v6, %v1884_v9  ;;  %v1870_v19 = vld [vmem:[#allocation2] sm:$0xf] }
  0x19   :  { %466 = vmatpush.bf16.msra.mxu3 %v2471_v51  ;;  %266 = vmatpush.bf16.msra.mxu2 %v2476_v59  ;;  %3345 = vst [vmem:[#allocation11_spill] sm:$0xff] %v2491_v11  ;;  %v2150_v20 = vld [vmem:[#allocation2 + $0x8] sm:$0xf0]  ;;  %v1971_v21 = vld [vmem:[#allocation2 + $0xc0] sm:$0xf]  ;;  %v2500_v30 = vor.u32 %v2160_v14, %v1914_v13 }
  0x1a   :  { %255 = vmatpush.bf16.msra.mxu1 %v2473_v52  ;;  %3346 = vst [vmem:[#allocation12_spill] sm:$0xff] %v2497_v18  ;;  %v2174_v22 = vld [vmem:[#allocation2 + $0xc8] sm:$0xf0]  ;;  %v2057_v27 = vld [vmem:[#allocation2 + $0x174] sm:$0xf0]  ;;  %v2503_v31 = vor.u32 %v2150_v20, %v1870_v19 }
  0x1b   :  { %v2194_v23 = vld [vmem:[#allocation2 + $0x16c] sm:$0xf]  ;;  %v2149_v28 = vld [vmem:[#allocation2 + $0x4] sm:$0xf]  ;;  %v1872_v29 = vld [vmem:[#allocation2 + $0xc] sm:$0xf0]  ;;  %v2512_v36 = vor.u32 %v2174_v22, %v1971_v21 }
  0x1c   :  { %243 = vmatpush.bf16.msra.mxu0 %v2479_v60  ;;  %3347 = vst [vmem:[#allocation13_spill] sm:$0xff] %v2503_v31  ;;  %v2063_v33 = vld [vmem:[#allocation2 + $0x170] sm:$0xf]  ;;  %v2196_v35 = vld [vmem:[#allocation2 + $0x178] sm:$0xf0]  ;;  %v2514_v37 = vor.u32 %v2194_v23, %v2057_v27  ;;  %v2521_v44 = vor.u32 %v2149_v28, %v1872_v29 }
  0x1d   :  { %467 = vmatpush.bf16.msra.mxu3 %v2483_v63  ;;  %267 = vmatpush.bf16.msra.mxu2 %v2488_v10  ;;  %v1902_v41 = vld [vmem:[#allocation2 + $0x38] sm:$0xf]  ;;  %v2157_v42 = vld [vmem:[#allocation2 + $0x40] sm:$0xf0]  ;;  %v2191_v45 = vld [vmem:[#allocation2 + $0x154] sm:$0xf]  ;;  %v2525_v50 = vor.u32 %v2196_v35, %v2063_v33 }
  0x1e   :  { %256 = vmatpush.bf16.msra.mxu1 %v2485_v0  ;;  %3348 = vst [vmem:[#allocation14_spill] sm:$0xff] %v2521_v44  ;;  %v2045_v46 = vld [vmem:[#allocation2 + $0x15c] sm:$0xf0]  ;;  %v2051_v54 = vld [vmem:[#allocation2 + $0x158] sm:$0xf]  ;;  %v2533_v56 = vor.u32 %v2157_v42, %v1902_v41 }
  0x1f   :  { %v2193_v55 = vld [vmem:[#allocation2 + $0x160] sm:$0xf0]  ;;  %v2537_v57 = vor.u32 %v2191_v45, %v2045_v46  ;;  %v1890_v58 = vld [vmem:[#allocation2 + $0x20] sm:$0xf]  ;;  %v2154_v61 = vld [vmem:[#allocation2 + $0x28] sm:$0xf0] }
  0x20   :  { %244 = vmatpush.bf16.msra.mxu0 %v2491_v11  ;;  %v2188_v62 = vld [vmem:[#allocation2 + $0x13c] sm:$0xf]  ;;  %v2033_v1 = vld [vmem:[#allocation2 + $0x144] sm:$0xf0]  ;;  %v2542_v2 = vor.u32 %v2193_v55, %v2051_v54  ;;  %v2039_v4 = vld [vmem:[#allocation2 + $0x140] sm:$0xf]  ;;  %v2546_v6 = vor.u32 %v2154_v61, %v1890_v58 }
  0x21   :  { %468 = vmatpush.bf16.msra.mxu3 %v2495_v15  ;;  %268 = vmatpush.bf16.msra.mxu2 %v2500_v30  ;;  %v2190_v5 = vld [vmem:[#allocation2 + $0x148] sm:$0xf0]  ;;  %v2549_v9 = vor.u32 %v2188_v62, %v2033_v1  ;;  %v1878_v13 = vld [vmem:[#allocation2 + $0x8] sm:$0xf]  ;;  %v2151_v14 = vld [vmem:[#allocation2 + $0x10] sm:$0xf0] }
  0x22   :  { %257 = vmatpush.bf16.msra.mxu1 %v2497_v18  ;;  %v2185_v19 = vld [vmem:[#allocation2 + $0x124] sm:$0xf]  ;;  %v2021_v20 = vld [vmem:[#allocation2 + $0x12c] sm:$0xf0]  ;;  %v2553_v21 = vor.u32 %v2190_v5, %v2039_v4  ;;  %v2027_v22 = vld [vmem:[#allocation2 + $0x128] sm:$0xf]  ;;  %v2556_v27 = vor.u32 %v2151_v14, %v1878_v13 }
  0x23   :  { %v2187_v23 = vld [vmem:[#allocation2 + $0x130] sm:$0xf0]  ;;  %v2559_v28 = vor.u32 %v2185_v19, %v2021_v20  ;;  %v2182_v29 = vld [vmem:[#allocation2 + $0x10c] sm:$0xf]  ;;  %v2009_v33 = vld [vmem:[#allocation2 + $0x114] sm:$0xf0] }
  0x24   :  { %245 = vmatpush.bf16.msra.mxu0 %v2503_v31  ;;  %v2563_v35 = vor.u32 %v2187_v23, %v2027_v22  ;;  %v2015_v41 = vld [vmem:[#allocation2 + $0x110] sm:$0xf]  ;;  %v2184_v42 = vld [vmem:[#allocation2 + $0x118] sm:$0xf0]  ;;  %v2567_v45 = vor.u32 %v2182_v29, %v2009_v33  ;;  %v2179_v46 = vld [vmem:[#allocation2 + $0xf4] sm:$0xf] }
  0x25   :  { %469 = vmatpush.bf16.msra.mxu3 %v2512_v36  ;;  %269 = vmatpush.bf16.msra.mxu2 %v2533_v56  ;;  %v1997_v54 = vld [vmem:[#allocation2 + $0xfc] sm:$0xf0]  ;;  %v2572_v55 = vor.u32 %v2184_v42, %v2015_v41  ;;  %v2003_v58 = vld [vmem:[#allocation2 + $0xf8] sm:$0xf]  ;;  %v2181_v61 = vld [vmem:[#allocation2 + $0x100] sm:$0xf0] }
  0x26   :  { %258 = vmatpush.bf16.msra.mxu1 %v2521_v44  ;;  %v2575_v62 = vor.u32 %v2179_v46, %v1997_v54  ;;  %v2176_v1 = vld [vmem:[#allocation2 + $0xdc] sm:$0xf]  ;;  %v1985_v4 = vld [vmem:[#allocation2 + $0xe4] sm:$0xf0]  ;;  %v2580_v5 = vor.u32 %v2181_v61, %v2003_v58  ;;  %v1991_v13 = vld [vmem:[#allocation2 + $0xe0] sm:$0xf] }
  0x27   :  { %246 = vmatmul.bf16.vlgmr.msra.gmra.mxu0 %v109_v49  ;;  %v2178_v14 = vld [vmem:[#allocation2 + $0xe8] sm:$0xf0]  ;;  %v2173_v19 = vld [vmem:[#allocation2 + $0xc4] sm:$0xf]  ;;  %v1973_v20 = vld [vmem:[#allocation2 + $0xcc] sm:$0xf0] }
  0x28   :  { %475 = vmatpush.bf16.msrb.mxu0 %v2514_v37  ;;  %470 = vmatmul.bf16.vlgmr.msra.gmra.mxu3 %v2531_v53  ;;  %3349 = vst [vmem:[#allocation15_spill] sm:$0xff] %v2580_v5  ;;  %v2588_v22 = vor.u32 %v2178_v14, %v1991_v13  ;;  %v1979_v23 = vld [vmem:[#allocation2 + $0xc8] sm:$0xf]  ;;  %v2175_v29 = vld [vmem:[#allocation2 + $0xd0] sm:$0xf0]  ;;  %v2591_v33 = vor.u32 %v2173_v19, %v1973_v20 }
  0x29   :  { %572 = vmatpush.bf16.msrb.mxu3 %v2432_v8  ;;  %259 = vmatmul.bf16.vlgmr.msra.gmra.mxu1 %v109_v49  ;;  %v2596_v41 = vor.u32 %v2175_v29, %v1979_v23  ;;  %v107_v46 = vld [vmem:[%s3301_s0 + $0x8] sm:$0xff] }
  0x2a   :  { %488 = vmatpush.bf16.msrb.mxu1 %v2525_v50  ;;  %270 = vmatpush.bf16.msra.mxu2 %v2546_v6  ;;  %3350 = vst [vmem:[#allocation16_spill] sm:$0xff] %v2588_v22  ;;  %v1966_v13 = vld [vmem:[%s3301_s0 + $0x168] sm:$0xff] }
  0x2b   :  { %3351 = vst [vmem:[#allocation17_spill] sm:$0xff] %v2596_v41 }
  0x2c   :  { %476 = vmatpush.bf16.msrb.mxu0 %v2537_v57 }
  0x2d   :  { %573 = vmatpush.bf16.msrb.mxu3 %v2441_v17 }
  0x2e   :  { %489 = vmatpush.bf16.msrb.mxu1 %v2542_v2  ;;  %271 = vmatpush.bf16.msra.mxu2 %v2556_v27 }
  0x30   :  { %477 = vmatpush.bf16.msrb.mxu0 %v2549_v9 }
  0x31   :  { %574 = vmatpush.bf16.msrb.mxu3 %v2450_v26  ;;  %272 = vmatmul.bf16.vlgmr.msra.gmra.mxu2 %v109_v49  ;;  %v2583_v49 = vor.u32 %v2176_v1, %v1985_v4 }
  0x32   :  { %490 = vmatpush.bf16.msrb.mxu1 %v2553_v21  ;;  %559 = vmatpush.bf16.msrb.mxu2 %v2428_v3 }
  0x34   :  { %478 = vmatpush.bf16.msrb.mxu0 %v2559_v28 }
  0x35   :  { %575 = vmatpush.bf16.msrb.mxu3 %v2459_v39 }
  0x36   :  { %491 = vmatpush.bf16.msrb.mxu1 %v2563_v35  ;;  %560 = vmatpush.bf16.msrb.mxu2 %v2435_v12 }
  0x38   :  { %479 = vmatpush.bf16.msrb.mxu0 %v2567_v45 }
  0x39   :  { %576 = vmatpush.bf16.msrb.mxu3 %v2473_v52 }
  0x3a   :  { %492 = vmatpush.bf16.msrb.mxu1 %v2572_v55  ;;  %561 = vmatpush.bf16.msrb.mxu2 %v2444_v24 }
  0x3c   :  { %480 = vmatpush.bf16.msrb.mxu0 %v2575_v62 }
  0x3d   :  { %577 = vmatpush.bf16.msrb.mxu3 %v2485_v0 }
  0x3e   :  { %493 = vmatpush.bf16.msrb.mxu1 %v2580_v5  ;;  %562 = vmatpush.bf16.msrb.mxu2 %v2453_v34 }
  0x40   :  { %481 = vmatpush.bf16.msrb.mxu0 %v2583_v49 }
  0x41   :  { %578 = vmatpush.bf16.msrb.mxu3 %v2497_v18 }
  0x42   :  { %494 = vmatpush.bf16.msrb.mxu1 %v2588_v22  ;;  %563 = vmatpush.bf16.msrb.mxu2 %v2467_v48 }
  0x44   :  { %482 = vmatpush.bf16.msrb.mxu0 %v2591_v33 }
  0x45   :  { %579 = vmatpush.bf16.msrb.mxu3 %v2521_v44 }
  0x46   :  { %495 = vmatpush.bf16.msrb.mxu1 %v2596_v41  ;;  %564 = vmatpush.bf16.msrb.mxu2 %v2479_v60 }
  0x47   :  { %483 = vmatmul.bf16.vlgmr.msrb.gmra.mxu0 %v2531_v53 }
  0x48   :  { %585 = vmatpush.bf16.msra.mxu0 %v2461_v43 }
  0x49   :  { %679 = vmatpush.bf16.msra.mxu3 %v2525_v50  ;;  %496 = vmatmul.bf16.vlgmr.msrb.gmra.mxu1 %v2531_v53  ;;  %v106_v53 = vld [vmem:[%s3301_s0] sm:$0xff] }
  0x4a   :  { %653 = vmatpush.bf16.msra.mxu1 %v2430_v7  ;;  %565 = vmatpush.bf16.msrb.mxu2 %v2491_v11 }
  0x4c   :  { %586 = vmatpush.bf16.msra.mxu0 %v2464_v47 }
  0x4d   :  { %680 = vmatpush.bf16.msra.mxu3 %v2542_v2 }
  0x4e   :  { %654 = vmatpush.bf16.msra.mxu1 %v2439_v16  ;;  %566 = vmatpush.bf16.msrb.mxu2 %v2503_v31 }
  0x50   :  { %587 = vmatpush.bf16.msra.mxu0 %v2476_v59 }
  0x51   :  { %681 = vmatpush.bf16.msra.mxu3 %v2553_v21 }
  0x52   :  { %655 = vmatpush.bf16.msra.mxu1 %v2448_v25  ;;  %666 = vmatpush.bf16.msra.mxu2 %v2514_v37 }
  0x54   :  { %588 = vmatpush.bf16.msra.mxu0 %v2488_v10 }
  0x55   :  { %682 = vmatpush.bf16.msra.mxu3 %v2563_v35 }
  0x56   :  { %656 = vmatpush.bf16.msra.mxu1 %v2457_v38  ;;  %667 = vmatpush.bf16.msra.mxu2 %v2537_v57 }
  0x58   :  { %589 = vmatpush.bf16.msra.mxu0 %v2500_v30 }
  0x59   :  { %683 = vmatpush.bf16.msra.mxu3 %v2572_v55 }
  0x5a   :  { %657 = vmatpush.bf16.msra.mxu1 %v2471_v51  ;;  %668 = vmatpush.bf16.msra.mxu2 %v2549_v9 }
  0x5c   :  { %590 = vmatpush.bf16.msra.mxu0 %v2533_v56 }
  0x5d   :  { %684 = vmatpush.bf16.msra.mxu3 %v2580_v5 }
  0x5e   :  { %658 = vmatpush.bf16.msra.mxu1 %v2483_v63  ;;  %669 = vmatpush.bf16.msra.mxu2 %v2559_v28 }
  0x60   :  { %591 = vmatpush.bf16.msra.mxu0 %v2546_v6 }
  0x61   :  { %685 = vmatpush.bf16.msra.mxu3 %v2588_v22 }
  0x62   :  { %659 = vmatpush.bf16.msra.mxu1 %v2495_v15  ;;  %670 = vmatpush.bf16.msra.mxu2 %v2567_v45 }
  0x64   :  { %592 = vmatpush.bf16.msra.mxu0 %v2556_v27 }
  0x65   :  { %686 = vmatpush.bf16.msra.mxu3 %v2596_v41 }
  0x66   :  { %660 = vmatpush.bf16.msra.mxu1 %v2512_v36  ;;  %671 = vmatpush.bf16.msra.mxu2 %v2575_v62 }
  0x68   :  { %747 = vmatpush.bf16.msrb.mxu0 %v2428_v3 }
  0x6a   :  { %760 = vmatpush.bf16.msrb.mxu1 %v2432_v8  ;;  %672 = vmatpush.bf16.msra.mxu2 %v2583_v49 }
  0x6c   :  { %748 = vmatpush.bf16.msrb.mxu0 %v2435_v12 }
  0x6e   :  { %761 = vmatpush.bf16.msrb.mxu1 %v2441_v17  ;;  %673 = vmatpush.bf16.msra.mxu2 %v2591_v33 }
  0x70   :  { %749 = vmatpush.bf16.msrb.mxu0 %v2444_v24 }
  0x72   :  { %762 = vmatpush.bf16.msrb.mxu1 %v2450_v26 }
  0x74   :  { %750 = vmatpush.bf16.msrb.mxu0 %v2453_v34 }
  0x76   :  { %763 = vmatpush.bf16.msrb.mxu1 %v2459_v39 }
  0x78   :  { %751 = vmatpush.bf16.msrb.mxu0 %v2467_v48 }
  0x7a   :  { %764 = vmatpush.bf16.msrb.mxu1 %v2473_v52 }
  0x7c   :  { %752 = vmatpush.bf16.msrb.mxu0 %v2479_v60 }
  0x7e   :  { %765 = vmatpush.bf16.msrb.mxu1 %v2485_v0 }
  0x80   :  { %753 = vmatpush.bf16.msrb.mxu0 %v2491_v11 }
  0x82   :  { %766 = vmatpush.bf16.msrb.mxu1 %v2497_v18 }
  0x84   :  { %754 = vmatpush.bf16.msrb.mxu0 %v2503_v31 }
  0x86   :  { %767 = vmatpush.bf16.msrb.mxu1 %v2521_v44 }
  0xa4   :  { %v247_v42 = vpop.f32.mrf.mxu0 }
  0xa5   :  { %v277_v54 = vadd.f32 %v247_v42, %v106_v53 }
  0xa6   :  { %v260_v58 = vpop.f32.mrf.mxu1 }
  0xa7   :  { %v1964_v61 = vmul.f32 -1.442695, %v277_v54  ;;  %v297_v1 = vadd.f32 %v260_v58, %v107_v46 }
  0xa9   :  { %2202 = vpow2.f32 %v1964_v61  ;;  %v1965_v4 = vmul.f32 -1.442695, %v297_v1 }
  0xab   :  { %2204 = vpow2.f32 %v1965_v4  ;;  %v471_v14 = vpop.f32.mrf.mxu3 }
  0xac   :  { %v501_v19 = vadd.f32 %v1966_v13, %v471_v14  ;;  %v249_v20 = vpop.f32.mrf.mxu0 }
  0xae   :  { %v2065_v23 = vmul.f32 -1.442695, %v501_v19  ;;  %v262_v29 = vpop.f32.mrf.mxu1 }
  0xaf   :  { %v2203_v44 = vpop.eup %2202 }
  0xb0   :  { %v281_v31 = vadd.f32 1.0, %v2203_v44  ;;  %2206 = vpow2.f32 %v2065_v23  ;;  %v2670_v44 = vld [vmem:[%s3304_s3] ss:$0 sm:$0xff] }
  0xb1   :  { %v2205_v18 = vpop.eup %2204  ;;  %3352 = vst [vmem:[#allocation18_spill] sm:$0xff] %v2670_v44 }
  0xb2   :  { %2208 = vrcp.f32 %v281_v31  ;;  %v301_v53 = vadd.f32 1.0, %v2205_v18  ;;  %vm287_vm0 = vweird.f32 %v281_v31  ;;  %v293_v18 = vand.u32 2147483648, %v281_v31 }
  0xb3   :  { %v473_v42 = vpop.f32.mrf.mxu3  ;;  %v291_v23 = vand.u32 2147483647, %v281_v31 }
  0xb4   :  { %2210 = vrcp.f32 %v301_v53  ;;  %v273_v54 = vpop.f32.mrf.mxu2  ;;  %vm307_vm2 = vweird.f32 %v301_v53  ;;  %v294_v60 = vor.u32 1.1754944e-38, %v293_v18 }
  0xb5   :  { %v320_v0 = vadd.f32 %v2670_v44, %v273_v54  ;;  %vm292_vm5 = vcmp.eq.f32.partialorder %v291_v23, 8.507059e+37 }
  0xb6   :  { %v2207_v46 = vpop.eup %2206 }
  0xb7   :  { %v2664_v58 = vadd.f32 1.0, %v2207_v46 }
  0xb8   :  { %v2209_v61 = vpop.eup %2208 }
  0xb9   :  { %2212 = vrcp.f32 %v2664_v58  ;;  %v283_v1 = vmul.f32 %v2209_v61, %v281_v31  ;;  %vm288_vm1 = vweird.f32 %v2209_v61  ;;  %vm511_vm8 = vweird.f32 %v2664_v58 }
  0xba   :  { %v2211_v4 = vpop.eup %2210  ;;  %vm289_vm3 = vmor %vm287_vm0, %vm288_vm1 }
  0xbb   :  { %v303_v13 = vmul.f32 %v2211_v4, %v301_v53  ;;  %v284_v14 = vsub.f32 1.0, %v283_v1  ;;  %v1967_v1 = vld [vmem:[%s3301_s0 + $0x170] sm:$0xff]  ;;  %vm308_vm4 = vweird.f32 %v2211_v4 }
  0xbc   :  { %v275_v29 = vpop.f32.mrf.mxu2  ;;  %vm2681_vm6 = vmor %vm307_vm2, %vm308_vm4 }
  0xbd   :  { %v304_v19 = vsub.f32 1.0, %v303_v13  ;;  %v285_v20 = vmul.f32 %v2209_v61, %v284_v14  ;;  %v313_v13 = vand.u32 2147483648, %v301_v53  ;;  %v311_v29 = vand.u32 2147483647, %v301_v53 }
  0xbf   :  { %v2213_v42 = vpop.eup %2212  ;;  %v305_v46 = vmul.f32 %v2211_v4, %v304_v19  ;;  %v286_v11 = vadd.f32 %v2209_v61, %v285_v20  ;;  %v108_v19 = vld [vmem:[%s3301_s0 + $0x10] sm:$0xff]  ;;  %v314_v23 = vor.u32 1.1754944e-38, %v313_v13  ;;  %vm312_vm7 = vcmp.eq.f32.partialorder %v311_v29, 8.507059e+37 }
  0xc0   :  { %v507_v41 = vmul.f32 %v2213_v42, %v2664_v58  ;;  %vm512_vm9 = vweird.f32 %v2213_v42 }
  0xc1   :  { %v290_v14 = vsel %vm289_vm3, %v2209_v61, %v286_v11  ;;  %v306_v52 = vadd.f32 %v2211_v4, %v305_v46  ;;  %vm513_vm10 = vmor %vm511_vm8, %vm512_vm9 }
  0xc2   :  { %v295_v54 = vsel %vm292_vm5, %v294_v60, %v290_v14  ;;  %v508_v44 = vsub.f32 1.0, %v507_v41  ;;  %v517_v60 = vand.u32 2147483648, %v2664_v58  ;;  %v515_v41 = vand.u32 2147483647, %v2664_v58 }
  0xc3   :  { %v321_v48 = vmul.f32 %v320_v0, %v295_v54  ;;  %v310_v34 = vsel %vm2681_vm6, %v2211_v4, %v306_v52 }
  0xc4   :  { %v484_v31 = vpop.f32.mrf.mxu0  ;;  %v509_v61 = vmul.f32 %v2213_v42, %v508_v44  ;;  %v315_v46 = vsel %vm312_vm7, %v314_v23, %v310_v34  ;;  %v518_v4 = vor.u32 1.1754944e-38, %v517_v60  ;;  %vm516_vm11 = vcmp.eq.f32.partialorder %v515_v41, 8.507059e+37 }
  0xc5   :  { %v521_v20 = vadd.f32 %v1967_v1, %v484_v31  ;;  %v322_v11 = vadd.f32 %v321_v48, %v108_v19  ;;  %v324_v44 = vsub.f32 1.0, %v315_v46  ;;  %v326_v29 = vmul.f32 %v315_v46, %v2508_v32 }
  0xc6   :  { %v497_v22 = vpop.f32.mrf.mxu1  ;;  %v510_v0 = vadd.f32 %v2213_v42, %v509_v61 }
  0xc7   :  { %v2066_v39 = vmul.f32 -1.442695, %v521_v20 }
  0xc8   :  { %v514_v14 = vsel %vm513_vm10, %v2213_v42, %v510_v0  ;;  %v1968_v42 = vld [vmem:[%s3301_s0 + $0x178] sm:$0xff] }
  0xc9   :  { %2214 = vpow2.f32 %v2066_v39  ;;  %v2693_v39 = vld [vmem:[%s3304_s3 + $0x1] ss:$0 sm:$0xff]  ;;  %v519_v58 = vsel %vm516_vm11, %v518_v4, %v514_v14  ;;  %v3356_v14 = vld [vmem:[#allocation6_spill] sm:$0xff] }
  0xca   :  { %2216 = vtanh.f32 %v322_v11  ;;  %v544_v34 = vadd.f32 %v2693_v39, %v497_v22 }
  0xcc   :  { %v486_v53 = vpop.f32.mrf.mxu0  ;;  %v545_v20 = vmul.f32 %v544_v34, %v519_v58  ;;  %v3359_v34 = vld [vmem:[#allocation8_spill] sm:$0xff]  ;;  %v3360_v58 = vld [vmem:[#allocation17_spill] sm:$0xff] }
  0xce   :  { %v499_v48 = vpop.f32.mrf.mxu1  ;;  %v546_v18 = vadd.f32 %v1968_v42, %v545_v20  ;;  %v3362_v20 = vld [vmem:[#allocation10_spill] sm:$0xff]  ;;  %v3363_v42 = vld [vmem:[#allocation11_spill] sm:$0xff] }
  0xcf   :  { %v2215_v52 = vpop.eup %2214 }
  0xd0   :  { %v2217_v1 = vpop.eup %2216  ;;  %v525_v13 = vadd.f32 1.0, %v2215_v52 }
  0xd1   :  { %v325_v31 = vmul.f32 %v2217_v1, %v324_v44 }
  0xd2   :  { %2218 = vrcp.f32 %v525_v13  ;;  %v537_v61 = vand.u32 2147483648, %v525_v13  ;;  %v535_v60 = vand.u32 2147483647, %v525_v13  ;;  %vm531_vm13 = vweird.f32 %v525_v13 }
  0xd3   :  { %v2697_v19 = vadd.f32 %v326_v29, %v325_v31  ;;  %2220 = vtanh.f32 %v546_v18  ;;  %v3357_v31 = vld [vmem:[#allocation16_spill] sm:$0xff]  ;;  %v3358_v29 = vld [vmem:[#allocation7_spill] sm:$0xff]  ;;  %v3366_v18 = vld [vmem:[#allocation14_spill] sm:$0xff] }
  0xd4   :  { %v538_v41 = vor.u32 1.1754944e-38, %v537_v61  ;;  %vm536_vm15 = vcmp.eq.f32.partialorder %v535_v60, 8.507059e+37  ;;  %v2068_v61 = vld [vmem:[%s3301_s0 + $0x30] sm:$0xff] }
  0xd5   :  { %328 = vst [vmem:[%s3305_s4] sm:$0xff] %v2697_v19  ;;  %v558_v54 = vpack.c.bf16 %v2697_v19, %v2697_v19 }
  0xd7   :  { %567 = vmatmul.bf16.vlgmr.msrb.gmra.mxu2 %v558_v54  ;;  %580 = vmatmul.bf16.vlgmr.msrb.gmra.mxu3 %v558_v54 }
  0xd8   :  { %v2219_v32 = vpop.eup %2218  ;;  %593 = vmatmul.bf16.vlgmr.msra.gmra.mxu0 %v558_v54  ;;  %773 = vmatpush.bf16.msrb.mxu2 %v2461_v43  ;;  %v3361_v54 = vld [vmem:[#allocation9_spill] sm:$0xff] }
  0xd9   :  { %v527_v22 = vmul.f32 %v2219_v32, %v525_v13  ;;  %841 = vmatpush.bf16.msrb.mxu3 %v2430_v7  ;;  %854 = vmatpush.bf16.msra.mxu0 %v2514_v37  ;;  %vm532_vm12 = vweird.f32 %v2219_v32  ;;  %v2221_v52 = vpop.eup %2220 }
  0xda   :  { %vm533_vm14 = vmor %vm531_vm13, %vm532_vm12 }
  0xdb   :  { %v528_v11 = vsub.f32 1.0, %v527_v22  ;;  %v3365_v22 = vld [vmem:[#allocation13_spill] sm:$0xff] }
  0xdc   :  { %774 = vmatpush.bf16.msrb.mxu2 %v2464_v47 }
  0xdd   :  { %v529_v23 = vmul.f32 %v2219_v32, %v528_v11  ;;  %842 = vmatpush.bf16.msrb.mxu3 %v2439_v16  ;;  %855 = vmatpush.bf16.msra.mxu0 %v2537_v57 }
  0xdf   :  { %v530_v0 = vadd.f32 %v2219_v32, %v529_v23  ;;  %v2069_v23 = vld [vmem:[%s3301_s0 + $0x38] sm:$0xff] }
  0xe0   :  { %775 = vmatpush.bf16.msrb.mxu2 %v2476_v59 }
  0xe1   :  { %v534_v53 = vsel %vm533_vm14, %v2219_v32, %v530_v0  ;;  %843 = vmatpush.bf16.msrb.mxu3 %v2448_v25  ;;  %856 = vmatpush.bf16.msra.mxu0 %v2549_v9  ;;  %v3364_v32 = vld [vmem:[#allocation12_spill] sm:$0xff] }
  0xe2   :  { %v539_v46 = vsel %vm536_vm15, %v538_v41, %v534_v53 }
  0xe3   :  { %v548_v48 = vsub.f32 1.0, %v539_v46  ;;  %v550_v44 = vmul.f32 %v2519_v40, %v539_v46  ;;  %v3355_v40 = vld [vmem:[#allocation5_spill] sm:$0xff] }
  0xe4   :  { %776 = vmatpush.bf16.msrb.mxu2 %v2488_v10 }
  0xe5   :  { %v549_v4 = vmul.f32 %v2221_v52, %v548_v48  ;;  %844 = vmatpush.bf16.msrb.mxu3 %v2457_v38  ;;  %857 = vmatpush.bf16.msra.mxu0 %v2559_v28 }
  0xe7   :  { %v2721_v1 = vadd.f32 %v550_v44, %v549_v4 }
  0xe8   :  { %777 = vmatpush.bf16.msrb.mxu2 %v2500_v30 }
  0xe9   :  { %2067 = vst [vmem:[%s3305_s4 + $0x78] sm:$0xff] %v2721_v1  ;;  %v652_v13 = vpack.c.bf16 %v2721_v1, %v2721_v1  ;;  %845 = vmatpush.bf16.msrb.mxu3 %v2471_v51  ;;  %858 = vmatpush.bf16.msra.mxu0 %v2567_v45 }
  0xeb   :  { %661 = vmatmul.bf16.vlgmr.msra.gmra.mxu1 %v652_v13  ;;  %674 = vmatmul.bf16.vlgmr.msra.gmra.mxu2 %v652_v13 }
  0xec   :  { %687 = vmatmul.bf16.vlgmr.msra.gmra.mxu3 %v652_v13  ;;  %867 = vmatpush.bf16.msra.mxu1 %v2525_v50 }
  0xed   :  { %778 = vmatpush.bf16.msrb.mxu2 %v2533_v56  ;;  %846 = vmatpush.bf16.msrb.mxu3 %v2483_v63 }
  0xee   :  { %859 = vmatpush.bf16.msra.mxu0 %v2575_v62 }
  0xf0   :  { %868 = vmatpush.bf16.msra.mxu1 %v2542_v2 }
  0xf1   :  { %779 = vmatpush.bf16.msrb.mxu2 %v2546_v6  ;;  %847 = vmatpush.bf16.msrb.mxu3 %v2495_v15 }
  0xf2   :  { %860 = vmatpush.bf16.msra.mxu0 %v2583_v49 }
  0xf4   :  { %869 = vmatpush.bf16.msra.mxu1 %v2553_v21 }
  0xf5   :  { %780 = vmatpush.bf16.msrb.mxu2 %v2556_v27  ;;  %848 = vmatpush.bf16.msrb.mxu3 %v2512_v36 }
  0xf6   :  { %861 = vmatpush.bf16.msra.mxu0 %v2591_v33 }
  0xf8   :  { %870 = vmatpush.bf16.msra.mxu1 %v2563_v35 }
  0xf9   :  { %935 = vmatpush.bf16.msra.mxu2 %v2428_v3  ;;  %948 = vmatpush.bf16.msra.mxu3 %v2432_v8 }
  0xfc   :  { %871 = vmatpush.bf16.msra.mxu1 %v2572_v55 }
  0xfd   :  { %936 = vmatpush.bf16.msra.mxu2 %v2435_v12  ;;  %949 = vmatpush.bf16.msra.mxu3 %v2441_v17 }
 0x100   :  { %872 = vmatpush.bf16.msra.mxu1 %v2580_v5 }
 0x101   :  { %937 = vmatpush.bf16.msra.mxu2 %v2444_v24  ;;  %950 = vmatpush.bf16.msra.mxu3 %v2450_v26 }
 0x104   :  { %873 = vmatpush.bf16.msra.mxu1 %v3357_v31 }
 0x105   :  { %938 = vmatpush.bf16.msra.mxu2 %v3355_v40  ;;  %951 = vmatpush.bf16.msra.mxu3 %v3356_v14 }
 0x108   :  { %874 = vmatpush.bf16.msra.mxu1 %v3360_v58 }
 0x109   :  { %939 = vmatpush.bf16.msra.mxu2 %v3358_v29  ;;  %952 = vmatpush.bf16.msra.mxu3 %v3359_v34 }
 0x10d   :  { %940 = vmatpush.bf16.msra.mxu2 %v3361_v54  ;;  %953 = vmatpush.bf16.msra.mxu3 %v3362_v20 }
 0x111   :  { %941 = vmatpush.bf16.msra.mxu2 %v3363_v42  ;;  %954 = vmatpush.bf16.msra.mxu3 %v3364_v32  ;;  %v2074_v42 = vld [vmem:[%s3301_s0 + $0x138] sm:$0xff] }
 0x115   :  { %942 = vmatpush.bf16.msra.mxu2 %v3365_v22  ;;  %955 = vmatpush.bf16.msra.mxu3 %v3366_v18 }
 0x155   :  { %v594_v11 = vpop.f32.mrf.mxu0 }
 0x15a   :  { %v568_v60 = vpop.f32.mrf.mxu2  ;;  %v581_v0 = vpop.f32.mrf.mxu3 }
 0x15b   :  { %v598_v41 = vadd.f32 %v2068_v61, %v568_v60  ;;  %v618_v53 = vadd.f32 %v2069_v23, %v581_v0  ;;  %v2075_v60 = vld [vmem:[%s3301_s0 + $0x140] sm:$0xff] }
 0x15d   :  { %v2071_v46 = vmul.f32 -1.442695, %v598_v41  ;;  %v2072_v48 = vmul.f32 -1.442695, %v618_v53  ;;  %v596_v52 = vpop.f32.mrf.mxu0 }
 0x15f   :  { %2222 = vpow2.f32 %v2071_v46 }
 0x160   :  { %2224 = vpow2.f32 %v2072_v48 }
 0x162   :  { %v570_v4 = vpop.f32.mrf.mxu2  ;;  %v583_v44 = vpop.f32.mrf.mxu3 }
 0x165   :  { %v2223_v13 = vpop.eup %2222 }
 0x166   :  { %v2225_v18 = vpop.eup %2224  ;;  %v602_v22 = vadd.f32 1.0, %v2223_v13 }
 0x167   :  { %v622_v32 = vadd.f32 1.0, %v2225_v18 }
 0x168   :  { %2226 = vrcp.f32 %v602_v22  ;;  %v662_v20 = vpop.f32.mrf.mxu1  ;;  %v614_v54 = vand.u32 2147483648, %v602_v22  ;;  %vm608_vm1 = vweird.f32 %v602_v22 }
 0x169   :  { %2228 = vrcp.f32 %v622_v32  ;;  %v692_v61 = vadd.f32 %v2074_v42, %v662_v20  ;;  %v612_v20 = vand.u32 2147483647, %v602_v22  ;;  %vm628_vm5 = vweird.f32 %v622_v32 }
 0x16a   :  { %v615_v14 = vor.u32 1.1754944e-38, %v614_v54 }
 0x16b   :  { %v2077_v23 = vmul.f32 -1.442695, %v692_v61  ;;  %vm613_vm3 = vcmp.eq.f32.partialorder %v612_v20, 8.507059e+37 }
 0x16d   :  { %2230 = vpow2.f32 %v2077_v23 }
 0x16e   :  { %v2227_v0 = vpop.eup %2226  ;;  %v675_v41 = vpop.f32.mrf.mxu2 }
 0x16f   :  { %v2229_v53 = vpop.eup %2228  ;;  %v604_v46 = vmul.f32 %v2227_v0, %v602_v22  ;;  %v712_v48 = vadd.f32 %v2075_v60, %v675_v41  ;;  %v688_v18 = vpop.f32.mrf.mxu3  ;;  %vm609_vm0 = vweird.f32 %v2227_v0  ;;  %v3367_v60 = vld [vmem:[#allocation18_spill] sm:$0xff]  ;;  %v634_v22 = vand.u32 2147483648, %v622_v32 }
 0x170   :  { %v624_v52 = vmul.f32 %v2229_v53, %v622_v32  ;;  %v664_v4 = vpop.f32.mrf.mxu1  ;;  %vm610_vm2 = vmor %vm608_vm1, %vm609_vm0  ;;  %v638_v41 = vadd.f32 %v3367_v60, %v594_v11  ;;  %vm629_vm4 = vweird.f32 %v2229_v53 }
 0x171   :  { %v605_v44 = vsub.f32 1.0, %v604_v46  ;;  %v2078_v13 = vmul.f32 -1.442695, %v712_v48  ;;  %v2070_v4 = vld [vmem:[%s3301_s0 + $0x40] sm:$0xff]  ;;  %vm630_vm6 = vmor %vm628_vm5, %vm629_vm4 }
 0x172   :  { %v625_v34 = vsub.f32 1.0, %v624_v52 }
 0x173   :  { %v606_v29 = vmul.f32 %v2227_v0, %v605_v44  ;;  %2232 = vpow2.f32 %v2078_v13  ;;  %v2231_v42 = vpop.eup %2230  ;;  %v632_v44 = vand.u32 2147483647, %v622_v32 }
 0x174   :  { %v626_v61 = vmul.f32 %v2229_v53, %v625_v34  ;;  %v696_v23 = vadd.f32 1.0, %v2231_v42 }
 0x175   :  { %v607_v58 = vadd.f32 %v2227_v0, %v606_v29  ;;  %vm633_vm7 = vcmp.eq.f32.partialorder %v632_v44, 8.507059e+37  ;;  %v732_v44 = vadd.f32 %v2693_v39, %v688_v18 }
 0x176   :  { %v677_v40 = vpop.f32.mrf.mxu2  ;;  %2234 = vrcp.f32 %v696_v23  ;;  %v627_v52 = vadd.f32 %v2229_v53, %v626_v61  ;;  %v708_v20 = vand.u32 2147483648, %v696_v23  ;;  %vm702_vm9 = vweird.f32 %v696_v23 }
 0x177   :  { %v611_v31 = vsel %vm610_vm2, %v2227_v0, %v607_v58  ;;  %v690_v46 = vpop.f32.mrf.mxu3  ;;  %v635_v0 = vor.u32 1.1754944e-38, %v634_v22 }
 0x178   :  { %v616_v48 = vsel %vm613_vm3, %v615_v14, %v611_v31  ;;  %v631_v58 = vsel %vm630_vm6, %v2229_v53, %v627_v52 }
 0x179   :  { %v2233_v34 = vpop.eup %2232  ;;  %v639_v29 = vmul.f32 %v638_v41, %v616_v48  ;;  %v636_v31 = vsel %vm633_vm7, %v635_v0, %v631_v58  ;;  %v706_v41 = vand.u32 2147483647, %v696_v23  ;;  %v2076_v0 = vld [vmem:[%s3301_s0 + $0x148] sm:$0xff] }
 0x17a   :  { %v716_v54 = vadd.f32 1.0, %v2233_v34  ;;  %v642_v46 = vsub.f32 1.0, %v636_v31  ;;  %v644_v53 = vmul.f32 %v636_v31, %v2697_v19 }
 0x17b   :  { %v640_v40 = vadd.f32 %v2070_v4, %v639_v29  ;;  %v709_v29 = vor.u32 1.1754944e-38, %v708_v20  ;;  %vm707_vm11 = vcmp.eq.f32.partialorder %v706_v41, 8.507059e+37 }
 0x17c   :  { %2236 = vrcp.f32 %v716_v54  ;;  %v2235_v11 = vpop.eup %2234  ;;  %vm722_vm13 = vweird.f32 %v716_v54 }
 0x17d   :  { %2238 = vtanh.f32 %v640_v40  ;;  %v698_v14 = vmul.f32 %v2235_v11, %v696_v23  ;;  %vm703_vm8 = vweird.f32 %v2235_v11  ;;  %v728_v23 = vand.u32 2147483648, %v716_v54 }
 0x17e   :  { %vm704_vm10 = vmor %vm702_vm9, %vm703_vm8 }
 0x17f   :  { %v699_v13 = vsub.f32 1.0, %v698_v14 }
 0x181   :  { %v700_v61 = vmul.f32 %v2235_v11, %v699_v13 }
 0x182   :  { %v2237_v42 = vpop.eup %2236 }
 0x183   :  { %v2239_v48 = vpop.eup %2238  ;;  %v718_v32 = vmul.f32 %v2237_v42, %v716_v54  ;;  %v701_v34 = vadd.f32 %v2235_v11, %v700_v61  ;;  %vm723_vm12 = vweird.f32 %v2237_v42  ;;  %v729_v61 = vor.u32 1.1754944e-38, %v728_v23  ;;  %v3378_v23 = vld [vmem:[#allocation13_spill] sm:$0xff] }
 0x184   :  { %v643_v4 = vmul.f32 %v2239_v48, %v642_v46  ;;  %vm724_vm14 = vmor %vm722_vm13, %vm723_vm12 }
 0x185   :  { %v719_v52 = vsub.f32 1.0, %v718_v32  ;;  %v705_v22 = vsel %vm704_vm10, %v2235_v11, %v701_v34  ;;  %v726_v11 = vand.u32 2147483647, %v716_v54 }
 0x186   :  { %v2783_v40 = vadd.f32 %v644_v53, %v643_v4  ;;  %v710_v14 = vsel %vm707_vm11, %v709_v29, %v705_v22  ;;  %v3369_v4 = vld [vmem:[#allocation5_spill] sm:$0xff]  ;;  %v3370_v53 = vld [vmem:[#allocation6_spill] sm:$0xff]  ;;  %v3372_v29 = vld [vmem:[#allocation7_spill] sm:$0xff] }
 0x187   :  { %v720_v58 = vmul.f32 %v2237_v42, %v719_v52  ;;  %v733_v13 = vmul.f32 %v732_v44, %v710_v14  ;;  %vm727_vm15 = vcmp.eq.f32.partialorder %v726_v11, 8.507059e+37  ;;  %v3371_v52 = vld [vmem:[#allocation17_spill] sm:$0xff]  ;;  %v3373_v22 = vld [vmem:[#allocation8_spill] sm:$0xff] }
 0x188   :  { %2073 = vst [vmem:[%s3305_s4 + $0x10] sm:$0xff] %v2783_v40  ;;  %v746_v19 = vpack.c.bf16 %v2783_v40, %v2783_v40  ;;  %v3374_v44 = vld [vmem:[#allocation9_spill] sm:$0xff]  ;;  %v3377_v14 = vld [vmem:[#allocation12_spill] sm:$0xff] }
 0x189   :  { %v721_v18 = vadd.f32 %v2237_v42, %v720_v58  ;;  %v734_v31 = vadd.f32 %v2076_v0, %v733_v13  ;;  %v3375_v58 = vld [vmem:[#allocation10_spill] sm:$0xff]  ;;  %v3376_v0 = vld [vmem:[#allocation11_spill] sm:$0xff] }
 0x18a   :  { %755 = vmatmul.bf16.vlgmr.msrb.gmra.mxu0 %v746_v19  ;;  %768 = vmatmul.bf16.vlgmr.msrb.gmra.mxu1 %v746_v19  ;;  %v3379_v13 = vld [vmem:[#allocation14_spill] sm:$0xff] }
 0x18b   :  { %v725_v20 = vsel %vm724_vm14, %v2237_v42, %v721_v18  ;;  %781 = vmatmul.bf16.vlgmr.msrb.gmra.mxu2 %v746_v19  ;;  %961 = vmatpush.bf16.msrb.mxu0 %v2461_v43  ;;  %2240 = vtanh.f32 %v734_v31  ;;  %v2080_v19 = vld [vmem:[%s3301_s0 + $0x60] sm:$0xff]  ;;  %v2081_v18 = vld [vmem:[%s3301_s0 + $0x68] sm:$0xff] }
 0x18c   :  { %1029 = vmatpush.bf16.msrb.mxu1 %v2430_v7  ;;  %1042 = vmatpush.bf16.msrb.mxu2 %v2514_v37  ;;  %v730_v41 = vsel %vm727_vm15, %v729_v61, %v725_v20 }
 0x18d   :  { %v736_v54 = vsub.f32 1.0, %v730_v41  ;;  %v738_v48 = vmul.f32 %v730_v41, %v2721_v1  ;;  %v3368_v1 = vld [vmem:[#allocation16_spill] sm:$0xff] }
 0x18f   :  { %962 = vmatpush.bf16.msrb.mxu0 %v2464_v47 }
 0x190   :  { %1030 = vmatpush.bf16.msrb.mxu1 %v2439_v16  ;;  %1043 = vmatpush.bf16.msrb.mxu2 %v2537_v57 }
 0x191   :  { %v2241_v46 = vpop.eup %2240 }
 0x192   :  { %v737_v42 = vmul.f32 %v2241_v46, %v736_v54 }
 0x193   :  { %963 = vmatpush.bf16.msrb.mxu0 %v2476_v59 }
 0x194   :  { %1031 = vmatpush.bf16.msrb.mxu1 %v2448_v25  ;;  %1044 = vmatpush.bf16.msrb.mxu2 %v2549_v9  ;;  %v2804_v32 = vadd.f32 %v738_v48, %v737_v42 }
 0x196   :  { %2079 = vst [vmem:[%s3305_s4 + $0x68] sm:$0xff] %v2804_v32  ;;  %v840_v34 = vpack.c.bf16 %v2804_v32, %v2804_v32 }
 0x197   :  { %964 = vmatpush.bf16.msrb.mxu0 %v2488_v10 }
 0x198   :  { %1032 = vmatpush.bf16.msrb.mxu1 %v2457_v38  ;;  %1045 = vmatpush.bf16.msrb.mxu2 %v2559_v28 }
 0x199   :  { %849 = vmatmul.bf16.vlgmr.msrb.gmra.mxu3 %v840_v34 }
 0x19a   :  { %862 = vmatmul.bf16.vlgmr.msra.gmra.mxu0 %v840_v34  ;;  %875 = vmatmul.bf16.vlgmr.msra.gmra.mxu1 %v840_v34 }
 0x19b   :  { %965 = vmatpush.bf16.msrb.mxu0 %v2500_v30  ;;  %1055 = vmatpush.bf16.msrb.mxu3 %v2525_v50 }
 0x19c   :  { %1033 = vmatpush.bf16.msrb.mxu1 %v2471_v51  ;;  %1046 = vmatpush.bf16.msrb.mxu2 %v2567_v45 }
 0x19f   :  { %966 = vmatpush.bf16.msrb.mxu0 %v2533_v56  ;;  %1056 = vmatpush.bf16.msrb.mxu3 %v2542_v2 }
 0x1a0   :  { %1034 = vmatpush.bf16.msrb.mxu1 %v2483_v63  ;;  %1047 = vmatpush.bf16.msrb.mxu2 %v2575_v62 }
 0x1a3   :  { %967 = vmatpush.bf16.msrb.mxu0 %v2546_v6  ;;  %1057 = vmatpush.bf16.msrb.mxu3 %v2553_v21 }
 0x1a4   :  { %1035 = vmatpush.bf16.msrb.mxu1 %v2495_v15  ;;  %1048 = vmatpush.bf16.msrb.mxu2 %v2583_v49 }
 0x1a7   :  { %968 = vmatpush.bf16.msrb.mxu0 %v2556_v27  ;;  %1058 = vmatpush.bf16.msrb.mxu3 %v2563_v35 }
 0x1a8   :  { %1036 = vmatpush.bf16.msrb.mxu1 %v2512_v36  ;;  %1049 = vmatpush.bf16.msrb.mxu2 %v2591_v33 }
 0x1ab   :  { %1122 = vmatpush.bf16.msra.mxu0 %v2428_v3  ;;  %1059 = vmatpush.bf16.msrb.mxu3 %v2572_v55 }
 0x1ac   :  { %1135 = vmatpush.bf16.msra.mxu1 %v2432_v8 }
 0x1af   :  { %1123 = vmatpush.bf16.msra.mxu0 %v2435_v12  ;;  %1060 = vmatpush.bf16.msrb.mxu3 %v2580_v5 }
 0x1b0   :  { %1136 = vmatpush.bf16.msra.mxu1 %v2441_v17 }
 0x1b3   :  { %1124 = vmatpush.bf16.msra.mxu0 %v2444_v24  ;;  %1061 = vmatpush.bf16.msrb.mxu3 %v3368_v1 }
 0x1b4   :  { %1137 = vmatpush.bf16.msra.mxu1 %v2450_v26 }
 0x1b7   :  { %1125 = vmatpush.bf16.msra.mxu0 %v3369_v4  ;;  %1062 = vmatpush.bf16.msrb.mxu3 %v3371_v52 }
 0x1b8   :  { %1138 = vmatpush.bf16.msra.mxu1 %v3370_v53 }
 0x1bb   :  { %1126 = vmatpush.bf16.msra.mxu0 %v3372_v29 }
 0x1bc   :  { %1139 = vmatpush.bf16.msra.mxu1 %v3373_v22 }
 0x1bf   :  { %1127 = vmatpush.bf16.msra.mxu0 %v3374_v44 }
 0x1c0   :  { %1140 = vmatpush.bf16.msra.mxu1 %v3375_v58 }
 0x1c3   :  { %1128 = vmatpush.bf16.msra.mxu0 %v3376_v0  ;;  %v2087_v0 = vld [vmem:[%s3301_s0 + $0x110] sm:$0xff] }
 0x1c4   :  { %1141 = vmatpush.bf16.msra.mxu1 %v3377_v14 }
 0x1c7   :  { %1129 = vmatpush.bf16.msra.mxu0 %v3378_v23 }
 0x1c8   :  { %1142 = vmatpush.bf16.msra.mxu1 %v3379_v13 }
 0x207   :  { %v756_v11 = vpop.f32.mrf.mxu0  ;;  %v769_v31 = vpop.f32.mrf.mxu1 }
 0x208   :  { %v786_v20 = vadd.f32 %v2080_v19, %v756_v11  ;;  %v806_v61 = vadd.f32 %v2081_v18, %v769_v31 }
 0x20a   :  { %v2083_v41 = vmul.f32 -1.442695, %v786_v20  ;;  %v2084_v54 = vmul.f32 -1.442695, %v806_v61  ;;  %v2086_v20 = vld [vmem:[%s3301_s0 + $0x108] sm:$0xff] }
 0x20c   :  { %2242 = vpow2.f32 %v2083_v41 }
 0x20d   :  { %2244 = vpow2.f32 %v2084_v54 }
 0x20e   :  { %v782_v46 = vpop.f32.mrf.mxu2 }
 0x20f   :  { %v758_v42 = vpop.f32.mrf.mxu0  ;;  %v771_v48 = vpop.f32.mrf.mxu1 }
 0x212   :  { %v2243_v34 = vpop.eup %2242 }
 0x213   :  { %v2245_v13 = vpop.eup %2244  ;;  %v790_v23 = vadd.f32 1.0, %v2243_v34 }
 0x214   :  { %v810_v14 = vadd.f32 1.0, %v2245_v13 }
 0x215   :  { %2246 = vrcp.f32 %v790_v23  ;;  %v802_v44 = vand.u32 2147483648, %v790_v23  ;;  %vm796_vm1 = vweird.f32 %v790_v23 }
 0x216   :  { %2248 = vrcp.f32 %v810_v14  ;;  %v784_v58 = vpop.f32.mrf.mxu2  ;;  %vm816_vm5 = vweird.f32 %v810_v14 }
 0x217   :  { %v863_v19 = vpop.f32.mrf.mxu0  ;;  %v2860_v18 = vpop.f32.mrf.mxu1  ;;  %v803_v5 = vor.u32 1.1754944e-38, %v802_v44  ;;  %v820_v44 = vand.u32 2147483647, %v810_v14 }
 0x218   :  { %v900_v11 = vadd.f32 %v2087_v0, %v863_v19  ;;  %v800_v0 = vand.u32 2147483647, %v790_v23 }
 0x219   :  { %vm821_vm7 = vcmp.eq.f32.partialorder %v820_v44, 8.507059e+37 }
 0x21a   :  { %v2090_v31 = vmul.f32 -1.442695, %v900_v11  ;;  %vm801_vm3 = vcmp.eq.f32.partialorder %v800_v0, 8.507059e+37 }
 0x21b   :  { %v2247_v61 = vpop.eup %2246 }
 0x21c   :  { %v2249_v41 = vpop.eup %2248  ;;  %v792_v54 = vmul.f32 %v2247_v61, %v790_v23  ;;  %2250 = vpow2.f32 %v2090_v31  ;;  %v850_v13 = vpop.f32.mrf.mxu3  ;;  %vm797_vm0 = vweird.f32 %v2247_v61 }
 0x21d   :  { %v812_v42 = vmul.f32 %v2249_v41, %v810_v14  ;;  %v880_v48 = vadd.f32 %v2086_v20, %v850_v13  ;;  %vm798_vm2 = vmor %vm796_vm1, %vm797_vm0  ;;  %v826_v20 = vadd.f32 %v3367_v60, %v782_v46  ;;  %vm817_vm4 = vweird.f32 %v2249_v41 }
 0x21e   :  { %v793_v34 = vsub.f32 1.0, %v792_v54  ;;  %vm818_vm6 = vmor %vm816_vm5, %vm817_vm4 }
 0x21f   :  { %v813_v52 = vsub.f32 1.0, %v812_v42  ;;  %v2089_v58 = vmul.f32 -1.442695, %v880_v48  ;;  %v865_v22 = vpop.f32.mrf.mxu0  ;;  %v878_v1 = vpop.f32.mrf.mxu1 }
 0x220   :  { %v794_v29 = vmul.f32 %v2247_v61, %v793_v34  ;;  %v2082_v1 = vld [vmem:[%s3301_s0 + $0x70] sm:$0xff]  ;;  %v822_v22 = vand.u32 2147483648, %v810_v14 }
 0x221   :  { %v814_v19 = vmul.f32 %v2249_v41, %v813_v52  ;;  %2252 = vpow2.f32 %v2089_v58 }
 0x222   :  { %v2251_v11 = vpop.eup %2250  ;;  %v795_v53 = vadd.f32 %v2247_v61, %v794_v29  ;;  %v823_v60 = vor.u32 1.1754944e-38, %v822_v22 }
 0x223   :  { %v2865_v31 = vadd.f32 1.0, %v2251_v11  ;;  %v815_v13 = vadd.f32 %v2249_v41, %v814_v19 }
 0x224   :  { %v799_v4 = vsel %vm798_vm2, %v2247_v61, %v795_v53  ;;  %v852_v54 = vpop.f32.mrf.mxu3 }
 0x225   :  { %v804_v52 = vsel %vm801_vm3, %v803_v5, %v799_v4  ;;  %2254 = vrcp.f32 %v2865_v31  ;;  %v819_v61 = vsel %vm818_vm6, %v2249_v41, %v815_v13  ;;  %vm910_vm13 = vweird.f32 %v2865_v31 }
 0x226   :  { %v827_v42 = vmul.f32 %v826_v20, %v804_v52  ;;  %v824_v48 = vsel %vm821_vm7, %v823_v60, %v819_v61  ;;  %v916_v60 = vand.u32 2147483648, %v2865_v31 }
 0x227   :  { %v2253_v29 = vpop.eup %2252  ;;  %v830_v34 = vsub.f32 1.0, %v824_v48  ;;  %v832_v19 = vmul.f32 %v824_v48, %v2783_v40 }
 0x228   :  { %v828_v53 = vadd.f32 %v2082_v1, %v827_v42  ;;  %v884_v23 = vadd.f32 1.0, %v2253_v29  ;;  %v920_v29 = vadd.f32 %v2693_v39, %v2860_v18 }
 0x22a   :  { %2256 = vtanh.f32 %v828_v53  ;;  %v896_v41 = vand.u32 2147483648, %v884_v23  ;;  %v894_v52 = vand.u32 2147483647, %v884_v23  ;;  %vm890_vm9 = vweird.f32 %v884_v23 }
 0x22b   :  { %2258 = vrcp.f32 %v884_v23  ;;  %v2255_v46 = vpop.eup %2254 }
 0x22c   :  { %v906_v5 = vmul.f32 %v2255_v46, %v2865_v31  ;;  %v897_v42 = vor.u32 1.1754944e-38, %v896_v41  ;;  %vm895_vm11 = vcmp.eq.f32.partialorder %v894_v52, 8.507059e+37  ;;  %vm911_vm12 = vweird.f32 %v2255_v46  ;;  %v3383_v41 = vld [vmem:[#allocation7_spill] sm:$0xff]  ;;  %v3386_v52 = vld [vmem:[#allocation9_spill] sm:$0xff] }
 0x22d   :  { %vm912_vm14 = vmor %vm910_vm13, %vm911_vm12 }
 0x22e   :  { %v907_v14 = vsub.f32 1.0, %v906_v5  ;;  %v917_v5 = vor.u32 1.1754944e-38, %v916_v60  ;;  %v2093_v60 = vld [vmem:[%s3301_s0 + $0x98] sm:$0xff] }
 0x230   :  { %v2257_v4 = vpop.eup %2256  ;;  %v908_v22 = vmul.f32 %v2255_v46, %v907_v14  ;;  %v3381_v14 = vld [vmem:[#allocation15_spill] sm:$0xff] }
 0x231   :  { %v2259_v58 = vpop.eup %2258  ;;  %v831_v0 = vmul.f32 %v2257_v4, %v830_v34  ;;  %v914_v34 = vand.u32 2147483647, %v2865_v31 }
 0x232   :  { %v886_v11 = vmul.f32 %v2259_v58, %v884_v23  ;;  %vm891_vm8 = vweird.f32 %v2259_v58  ;;  %v909_v53 = vadd.f32 %v2255_v46, %v908_v22  ;;  %v2088_v23 = vld [vmem:[%s3301_s0 + $0x118] sm:$0xff]  ;;  %v3387_v22 = vld [vmem:[#allocation17_spill] sm:$0xff] }
 0x233   :  { %v2874_v20 = vadd.f32 %v832_v19, %v831_v0  ;;  %vm892_vm10 = vmor %vm890_vm9, %vm891_vm8  ;;  %vm915_vm15 = vcmp.eq.f32.partialorder %v914_v34, 8.507059e+37 }
 0x234   :  { %v887_v54 = vsub.f32 1.0, %v886_v11  ;;  %v913_v18 = vsel %vm912_vm14, %v2255_v46, %v909_v53  ;;  %v3392_v53 = vld [vmem:[#allocation14_spill] sm:$0xff] }
 0x235   :  { %2085 = vst [vmem:[%s3305_s4 + $0x20] sm:$0xff] %v2874_v20  ;;  %v934_v13 = vpack.c.bf16 %v2874_v20, %v2874_v20  ;;  %v918_v4 = vsel %vm915_vm15, %v917_v5, %v913_v18 }
 0x236   :  { %v888_v1 = vmul.f32 %v2259_v58, %v887_v54  ;;  %v924_v31 = vsub.f32 1.0, %v918_v4  ;;  %v926_v46 = vmul.f32 %v918_v4, %v2804_v32  ;;  %v3380_v32 = vld [vmem:[#allocation5_spill] sm:$0xff]  ;;  %v3382_v54 = vld [vmem:[#allocation6_spill] sm:$0xff] }
 0x237   :  { %943 = vmatmul.bf16.vlgmr.msra.gmra.mxu2 %v934_v13  ;;  %956 = vmatmul.bf16.vlgmr.msra.gmra.mxu3 %v934_v13 }
 0x238   :  { %v889_v40 = vadd.f32 %v2259_v58, %v888_v1  ;;  %969 = vmatmul.bf16.vlgmr.msrb.gmra.mxu0 %v934_v13  ;;  %1148 = vmatpush.bf16.msra.mxu2 %v2461_v43  ;;  %v3384_v13 = vld [vmem:[#allocation16_spill] sm:$0xff] }
 0x239   :  { %1214 = vmatpush.bf16.msra.mxu3 %v2430_v7  ;;  %1227 = vmatpush.bf16.msrb.mxu0 %v2514_v37  ;;  %v3385_v1 = vld [vmem:[#allocation8_spill] sm:$0xff] }
 0x23a   :  { %v893_v44 = vsel %vm892_vm10, %v2259_v58, %v889_v40  ;;  %v3388_v40 = vld [vmem:[#allocation10_spill] sm:$0xff] }
 0x23b   :  { %v898_v61 = vsel %vm895_vm11, %v897_v42, %v893_v44  ;;  %v3389_v42 = vld [vmem:[#allocation11_spill] sm:$0xff]  ;;  %v3391_v44 = vld [vmem:[#allocation13_spill] sm:$0xff] }
 0x23c   :  { %v921_v48 = vmul.f32 %v920_v29, %v898_v61  ;;  %1149 = vmatpush.bf16.msra.mxu2 %v2464_v47  ;;  %v3390_v29 = vld [vmem:[#allocation12_spill] sm:$0xff] }
 0x23d   :  { %1215 = vmatpush.bf16.msra.mxu3 %v2439_v16  ;;  %1228 = vmatpush.bf16.msrb.mxu0 %v2537_v57 }
 0x23e   :  { %v922_v39 = vadd.f32 %v2088_v23, %v921_v48  ;;  %v2092_v23 = vld [vmem:[%s3301_s0 + $0x90] sm:$0xff] }
 0x240   :  { %2260 = vtanh.f32 %v922_v39  ;;  %1150 = vmatpush.bf16.msra.mxu2 %v2476_v59 }
 0x241   :  { %1216 = vmatpush.bf16.msra.mxu3 %v2448_v25  ;;  %1229 = vmatpush.bf16.msrb.mxu0 %v2549_v9 }
 0x244   :  { %1151 = vmatpush.bf16.msra.mxu2 %v2488_v10 }
 0x245   :  { %1217 = vmatpush.bf16.msra.mxu3 %v2457_v38  ;;  %1230 = vmatpush.bf16.msrb.mxu0 %v2559_v28 }
 0x246   :  { %v2261_v58 = vpop.eup %2260 }
 0x247   :  { %v925_v0 = vmul.f32 %v2261_v58, %v924_v31 }
 0x248   :  { %1152 = vmatpush.bf16.msra.mxu2 %v2500_v30 }
 0x249   :  { %v2904_v19 = vadd.f32 %v926_v46, %v925_v0  ;;  %1218 = vmatpush.bf16.msra.mxu3 %v2471_v51  ;;  %1231 = vmatpush.bf16.msrb.mxu0 %v2567_v45 }
 0x24b   :  { %2091 = vst [vmem:[%s3305_s4 + $0x58] sm:$0xff] %v2904_v19  ;;  %v1028_v11 = vpack.c.bf16 %v2904_v19, %v2904_v19 }
 0x24c   :  { %1153 = vmatpush.bf16.msra.mxu2 %v2533_v56 }
 0x24d   :  { %1037 = vmatmul.bf16.vlgmr.msrb.gmra.mxu1 %v1028_v11  ;;  %1050 = vmatmul.bf16.vlgmr.msrb.gmra.mxu2 %v1028_v11 }
 0x24e   :  { %1063 = vmatmul.bf16.vlgmr.msrb.gmra.mxu3 %v1028_v11  ;;  %1240 = vmatpush.bf16.msrb.mxu1 %v2525_v50 }
 0x24f   :  { %1219 = vmatpush.bf16.msra.mxu3 %v2483_v63  ;;  %1232 = vmatpush.bf16.msrb.mxu0 %v2575_v62 }
 0x250   :  { %1154 = vmatpush.bf16.msra.mxu2 %v2546_v6 }
 0x252   :  { %1241 = vmatpush.bf16.msrb.mxu1 %v2542_v2 }
 0x253   :  { %1220 = vmatpush.bf16.msra.mxu3 %v2495_v15  ;;  %1233 = vmatpush.bf16.msrb.mxu0 %v2583_v49 }
 0x254   :  { %1155 = vmatpush.bf16.msra.mxu2 %v2556_v27 }
 0x256   :  { %1242 = vmatpush.bf16.msrb.mxu1 %v2553_v21 }
 0x257   :  { %1221 = vmatpush.bf16.msra.mxu3 %v2512_v36  ;;  %1234 = vmatpush.bf16.msrb.mxu0 %v2591_v33 }
 0x258   :  { %1306 = vmatpush.bf16.msrb.mxu2 %v2428_v3 }
 0x25a   :  { %1243 = vmatpush.bf16.msrb.mxu1 %v2563_v35 }
 0x25b   :  { %1319 = vmatpush.bf16.msrb.mxu3 %v2432_v8 }
 0x25c   :  { %1307 = vmatpush.bf16.msrb.mxu2 %v2435_v12 }
 0x25e   :  { %1244 = vmatpush.bf16.msrb.mxu1 %v2572_v55 }
 0x25f   :  { %1320 = vmatpush.bf16.msrb.mxu3 %v2441_v17 }
 0x260   :  { %1308 = vmatpush.bf16.msrb.mxu2 %v2444_v24 }
 0x262   :  { %1245 = vmatpush.bf16.msrb.mxu1 %v3381_v14 }
 0x263   :  { %1321 = vmatpush.bf16.msrb.mxu3 %v2450_v26 }
 0x264   :  { %1309 = vmatpush.bf16.msrb.mxu2 %v3380_v32 }
 0x266   :  { %1246 = vmatpush.bf16.msrb.mxu1 %v3384_v13 }
 0x267   :  { %1322 = vmatpush.bf16.msrb.mxu3 %v3382_v54 }
 0x268   :  { %1310 = vmatpush.bf16.msrb.mxu2 %v3383_v41 }
 0x26a   :  { %1247 = vmatpush.bf16.msrb.mxu1 %v3387_v22 }
 0x26b   :  { %1323 = vmatpush.bf16.msrb.mxu3 %v3385_v1 }
 0x26c   :  { %1311 = vmatpush.bf16.msrb.mxu2 %v3386_v52 }
 0x26f   :  { %1324 = vmatpush.bf16.msrb.mxu3 %v3388_v40 }
 0x270   :  { %1312 = vmatpush.bf16.msrb.mxu2 %v3389_v42 }
 0x273   :  { %1325 = vmatpush.bf16.msrb.mxu3 %v3390_v29  ;;  %v2098_v29 = vld [vmem:[%s3301_s0 + $0xd8] sm:$0xff] }
 0x274   :  { %1313 = vmatpush.bf16.msrb.mxu2 %v3391_v44 }
 0x277   :  { %1326 = vmatpush.bf16.msrb.mxu3 %v3392_v53 }
 0x2b5   :  { %v970_v61 = vpop.f32.mrf.mxu0 }
 0x2ba   :  { %v944_v48 = vpop.f32.mrf.mxu2  ;;  %v957_v34 = vpop.f32.mrf.mxu3 }
 0x2bb   :  { %v974_v39 = vadd.f32 %v2092_v23, %v944_v48  ;;  %v994_v18 = vadd.f32 %v2093_v60, %v957_v34  ;;  %v2099_v34 = vld [vmem:[%s3301_s0 + $0xe0] sm:$0xff] }
 0x2bd   :  { %v2095_v5 = vmul.f32 -1.442695, %v974_v39  ;;  %v2096_v4 = vmul.f32 -1.442695, %v994_v18  ;;  %v972_v31 = vpop.f32.mrf.mxu0 }
 0x2bf   :  { %2262 = vpow2.f32 %v2095_v5 }
 0x2c0   :  { %2264 = vpow2.f32 %v2096_v4 }
 0x2c2   :  { %v946_v58 = vpop.f32.mrf.mxu2  ;;  %v959_v0 = vpop.f32.mrf.mxu3 }
 0x2c5   :  { %v2263_v46 = vpop.eup %2262 }
 0x2c6   :  { %v2265_v11 = vpop.eup %2264  ;;  %v978_v53 = vadd.f32 1.0, %v2263_v46 }
 0x2c7   :  { %v998_v44 = vadd.f32 1.0, %v2265_v11 }
 0x2c8   :  { %2266 = vrcp.f32 %v978_v53  ;;  %v990_v46 = vand.u32 2147483648, %v978_v53  ;;  %vm984_vm1 = vweird.f32 %v978_v53 }
 0x2c9   :  { %2268 = vrcp.f32 %v998_v44  ;;  %vm1004_vm5 = vweird.f32 %v998_v44 }
 0x2ca   :  { %v1038_v42 = vpop.f32.mrf.mxu1 }
 0x2cb   :  { %v1068_v23 = vadd.f32 %v2098_v29, %v1038_v42  ;;  %v988_v42 = vand.u32 2147483647, %v978_v53 }
 0x2cd   :  { %v2101_v60 = vmul.f32 -1.442695, %v1068_v23  ;;  %vm989_vm3 = vcmp.eq.f32.partialorder %v988_v42, 8.507059e+37 }
 0x2ce   :  { %v2267_v48 = vpop.eup %2266 }
 0x2cf   :  { %v2269_v39 = vpop.eup %2268  ;;  %v980_v18 = vmul.f32 %v2267_v48, %v978_v53  ;;  %2270 = vpow2.f32 %v2101_v60  ;;  %vm985_vm0 = vweird.f32 %v2267_v48  ;;  %v991_v60 = vor.u32 1.1754944e-38, %v990_v46 }
 0x2d0   :  { %v1000_v5 = vmul.f32 %v2269_v39, %v998_v44  ;;  %v1051_v4 = vpop.f32.mrf.mxu2  ;;  %vm986_vm2 = vmor %vm984_vm1, %vm985_vm0  ;;  %vm1005_vm4 = vweird.f32 %v2269_v39  ;;  %v1008_v46 = vand.u32 2147483647, %v998_v44 }
 0x2d1   :  { %v981_v31 = vsub.f32 1.0, %v980_v18  ;;  %v1088_v58 = vadd.f32 %v2099_v34, %v1051_v4  ;;  %v2959_v0 = vpop.f32.mrf.mxu3  ;;  %v2964_v34 = vld [vmem:[%s3304_s3] ss:$0 sm:$0xff]  ;;  %vm1006_vm6 = vmor %vm1004_vm5, %vm1005_vm4 }
 0x2d2   :  { %v1001_v11 = vsub.f32 1.0, %v1000_v5  ;;  %v1040_v40 = vpop.f32.mrf.mxu1  ;;  %3393 = vst [vmem:[#allocation18_spill] sm:$0xff] %v2964_v34  ;;  %v1014_v18 = vadd.f32 %v2964_v34, %v970_v61  ;;  %vm1009_vm7 = vcmp.eq.f32.partialorder %v1008_v46, 8.507059e+37 }
 0x2d3   :  { %v982_v52 = vmul.f32 %v2267_v48, %v981_v31  ;;  %v2102_v29 = vmul.f32 -1.442695, %v1088_v58 }
 0x2d4   :  { %v1002_v23 = vmul.f32 %v2269_v39, %v1001_v11 }
 0x2d5   :  { %v2271_v1 = vpop.eup %2270  ;;  %v983_v41 = vadd.f32 %v2267_v48, %v982_v52  ;;  %2272 = vpow2.f32 %v2102_v29  ;;  %v2094_v52 = vld [vmem:[%s3301_s0 + $0xa0] sm:$0xff] }
 0x2d6   :  { %v1072_v22 = vadd.f32 1.0, %v2271_v1  ;;  %v1003_v4 = vadd.f32 %v2269_v39, %v1002_v23  ;;  %v1010_v1 = vand.u32 2147483648, %v998_v44 }
 0x2d7   :  { %v987_v40 = vsel %vm986_vm2, %v2267_v48, %v983_v41 }
 0x2d8   :  { %v992_v5 = vsel %vm989_vm3, %v991_v60, %v987_v40  ;;  %2274 = vrcp.f32 %v1072_v22  ;;  %v1053_v31 = vpop.f32.mrf.mxu2  ;;  %v1007_v41 = vsel %vm1006_vm6, %v2269_v39, %v1003_v4  ;;  %v1011_v48 = vor.u32 1.1754944e-38, %v1010_v1 }
 0x2d9   :  { %v1015_v53 = vmul.f32 %v1014_v18, %v992_v5  ;;  %v1066_v58 = vpop.f32.mrf.mxu3  ;;  %v1084_v31 = vand.u32 2147483648, %v1072_v22  ;;  %vm1078_vm9 = vweird.f32 %v1072_v22 }
 0x2da   :  { %v1012_v60 = vsel %vm1009_vm7, %v1011_v48, %v1007_v41  ;;  %v1082_v58 = vand.u32 2147483647, %v1072_v22 }
 0x2db   :  { %v2273_v11 = vpop.eup %2272  ;;  %v1016_v29 = vadd.f32 %v2094_v52, %v1015_v53  ;;  %v1018_v34 = vsub.f32 1.0, %v1012_v60  ;;  %v1020_v52 = vmul.f32 %v1012_v60, %v2874_v20  ;;  %v1085_v4 = vor.u32 1.1754944e-38, %v1084_v31  ;;  %v2100_v20 = vld [vmem:[%s3301_s0 + $0xe8] sm:$0xff] }
 0x2dc   :  { %v1092_v61 = vadd.f32 1.0, %v2273_v11  ;;  %vm1083_vm11 = vcmp.eq.f32.partialorder %v1082_v58, 8.507059e+37 }
 0x2dd   :  { %2276 = vtanh.f32 %v1016_v29  ;;  %v2976_v29 = vld [vmem:[%s3304_s3 + $0x1] ss:$0 sm:$0xff] }
 0x2de   :  { %v2275_v42 = vpop.eup %2274  ;;  %2278 = vrcp.f32 %v1092_v61  ;;  %v1104_v48 = vand.u32 2147483648, %v1092_v61  ;;  %vm1098_vm13 = vweird.f32 %v1092_v61 }
 0x2df   :  { %v1074_v23 = vmul.f32 %v2275_v42, %v1072_v22  ;;  %vm1079_vm8 = vweird.f32 %v2275_v42 }
 0x2e0   :  { %vm1080_vm10 = vmor %vm1078_vm9, %vm1079_vm8 }
 0x2e1   :  { %v1075_v40 = vsub.f32 1.0, %v1074_v23  ;;  %v1102_v23 = vand.u32 2147483647, %v1092_v61 }
 0x2e3   :  { %v2277_v18 = vpop.eup %2276  ;;  %v1076_v5 = vmul.f32 %v2275_v42, %v1075_v40  ;;  %v1105_v40 = vor.u32 1.1754944e-38, %v1104_v48  ;;  %vm1103_vm15 = vcmp.eq.f32.partialorder %v1102_v23, 8.507059e+37  ;;  %v2104_v48 = vld [vmem:[%s3301_s0 + $0xc0] sm:$0xff] }
 0x2e4   :  { %v2279_v44 = vpop.eup %2278  ;;  %v1019_v54 = vmul.f32 %v2277_v18, %v1018_v34  ;;  %v1108_v34 = vadd.f32 %v2976_v29, %v2959_v0 }
 0x2e5   :  { %v1094_v53 = vmul.f32 %v2279_v44, %v1092_v61  ;;  %v1077_v39 = vadd.f32 %v2275_v42, %v1076_v5  ;;  %vm1099_vm12 = vweird.f32 %v2279_v44 }
 0x2e6   :  { %v2971_v1 = vadd.f32 %v1020_v52, %v1019_v54  ;;  %vm1100_vm14 = vmor %vm1098_vm13, %vm1099_vm12 }
 0x2e7   :  { %v1095_v46 = vsub.f32 1.0, %v1094_v53  ;;  %v1081_v11 = vsel %vm1080_vm10, %v2275_v42, %v1077_v39  ;;  %v3395_v39 = vld [vmem:[#allocation17_spill] sm:$0xff] }
 0x2e8   :  { %v1086_v22 = vsel %vm1083_vm11, %v1085_v4, %v1081_v11  ;;  %2097 = vst [vmem:[%s3305_s4 + $0x30] sm:$0xff] %v2971_v1  ;;  %v1121_v54 = vpack.c.bf16 %v2971_v1, %v2971_v1  ;;  %v3396_v4 = vld [vmem:[#allocation7_spill] sm:$0xff]  ;;  %v3398_v11 = vld [vmem:[#allocation9_spill] sm:$0xff] }
 0x2e9   :  { %v1096_v41 = vmul.f32 %v2279_v44, %v1095_v46  ;;  %v1109_v42 = vmul.f32 %v1108_v34, %v1086_v22  ;;  %v3397_v46 = vld [vmem:[#allocation8_spill] sm:$0xff]  ;;  %v3399_v34 = vld [vmem:[#allocation10_spill] sm:$0xff] }
 0x2ea   :  { %1130 = vmatmul.bf16.vlgmr.msra.gmra.mxu0 %v1121_v54  ;;  %1143 = vmatmul.bf16.vlgmr.msra.gmra.mxu1 %v1121_v54  ;;  %v3401_v22 = vld [vmem:[#allocation12_spill] sm:$0xff] }
 0x2eb   :  { %v1097_v0 = vadd.f32 %v2279_v44, %v1096_v41  ;;  %v1110_v60 = vadd.f32 %v2100_v20, %v1109_v42  ;;  %1156 = vmatmul.bf16.vlgmr.msra.gmra.mxu2 %v1121_v54  ;;  %1332 = vmatpush.bf16.msra.mxu0 %v2461_v43  ;;  %v3400_v20 = vld [vmem:[#allocation11_spill] sm:$0xff]  ;;  %v3402_v54 = vld [vmem:[#allocation13_spill] sm:$0xff]  ;;  %v3403_v41 = vld [vmem:[#allocation14_spill] sm:$0xff] }
 0x2ec   :  { %1398 = vmatpush.bf16.msra.mxu1 %v2430_v7  ;;  %1411 = vmatpush.bf16.msra.mxu2 %v2514_v37  ;;  %v2105_v42 = vld [vmem:[%s3301_s0 + $0xc8] sm:$0xff] }
 0x2ed   :  { %v1101_v31 = vsel %vm1100_vm14, %v2279_v44, %v1097_v0  ;;  %2280 = vtanh.f32 %v1110_v60 }
 0x2ee   :  { %v1106_v18 = vsel %vm1103_vm15, %v1105_v40, %v1101_v31 }
 0x2ef   :  { %1333 = vmatpush.bf16.msra.mxu0 %v2464_v47  ;;  %v1112_v61 = vsub.f32 1.0, %v1106_v18  ;;  %v1114_v52 = vmul.f32 %v1106_v18, %v2904_v19  ;;  %v3394_v19 = vld [vmem:[#allocation6_spill] sm:$0xff] }
 0x2f0   :  { %1399 = vmatpush.bf16.msra.mxu1 %v2439_v16  ;;  %1412 = vmatpush.bf16.msra.mxu2 %v2537_v57 }
 0x2f3   :  { %v2281_v5 = vpop.eup %2280  ;;  %1334 = vmatpush.bf16.msra.mxu0 %v2476_v59 }
 0x2f4   :  { %v1113_v58 = vmul.f32 %v2281_v5, %v1112_v61  ;;  %1400 = vmatpush.bf16.msra.mxu1 %v2448_v25  ;;  %1413 = vmatpush.bf16.msra.mxu2 %v2549_v9 }
 0x2f6   :  { %v2999_v44 = vadd.f32 %v1114_v52, %v1113_v58 }
 0x2f7   :  { %1335 = vmatpush.bf16.msra.mxu0 %v2488_v10 }
 0x2f8   :  { %2103 = vst [vmem:[%s3305_s4 + $0x48] sm:$0xff] %v2999_v44  ;;  %v1213_v53 = vpack.c.bf16 %v2999_v44, %v2999_v44  ;;  %1401 = vmatpush.bf16.msra.mxu1 %v2457_v38  ;;  %1414 = vmatpush.bf16.msra.mxu2 %v2559_v28 }
 0x2fa   :  { %1222 = vmatmul.bf16.vlgmr.msra.gmra.mxu3 %v1213_v53  ;;  %1235 = vmatmul.bf16.vlgmr.msrb.gmra.mxu0 %v1213_v53 }
 0x2fb   :  { %1248 = vmatmul.bf16.vlgmr.msrb.gmra.mxu1 %v1213_v53  ;;  %1336 = vmatpush.bf16.msra.mxu0 %v2500_v30 }
 0x2fc   :  { %1424 = vmatpush.bf16.msra.mxu3 %v2525_v50  ;;  %1402 = vmatpush.bf16.msra.mxu1 %v2471_v51 }
 0x2fd   :  { %1415 = vmatpush.bf16.msra.mxu2 %v2567_v45 }
 0x2ff   :  { %1337 = vmatpush.bf16.msra.mxu0 %v2533_v56 }
 0x300   :  { %1425 = vmatpush.bf16.msra.mxu3 %v2542_v2  ;;  %1403 = vmatpush.bf16.msra.mxu1 %v2483_v63 }
 0x301   :  { %1416 = vmatpush.bf16.msra.mxu2 %v2575_v62 }
 0x303   :  { %1338 = vmatpush.bf16.msra.mxu0 %v2546_v6 }
 0x304   :  { %1426 = vmatpush.bf16.msra.mxu3 %v2553_v21  ;;  %1404 = vmatpush.bf16.msra.mxu1 %v2495_v15 }
 0x305   :  { %1417 = vmatpush.bf16.msra.mxu2 %v2583_v49 }
 0x307   :  { %1339 = vmatpush.bf16.msra.mxu0 %v2556_v27 }
 0x308   :  { %1427 = vmatpush.bf16.msra.mxu3 %v2563_v35  ;;  %1405 = vmatpush.bf16.msra.mxu1 %v2512_v36 }
 0x309   :  { %1418 = vmatpush.bf16.msra.mxu2 %v2591_v33 }
 0x30b   :  { %1490 = vmatpush.bf16.msrb.mxu0 %v2428_v3 }
 0x30c   :  { %1503 = vmatpush.bf16.msrb.mxu1 %v2432_v8  ;;  %1428 = vmatpush.bf16.msra.mxu3 %v2572_v55 }
 0x30f   :  { %1491 = vmatpush.bf16.msrb.mxu0 %v2435_v12 }
 0x310   :  { %1504 = vmatpush.bf16.msrb.mxu1 %v2441_v17  ;;  %1429 = vmatpush.bf16.msra.mxu3 %v3381_v14 }
 0x313   :  { %1492 = vmatpush.bf16.msrb.mxu0 %v2444_v24 }
 0x314   :  { %1505 = vmatpush.bf16.msrb.mxu1 %v2450_v26  ;;  %1430 = vmatpush.bf16.msra.mxu3 %v3384_v13 }
 0x317   :  { %1493 = vmatpush.bf16.msrb.mxu0 %v3380_v32 }
 0x318   :  { %1506 = vmatpush.bf16.msrb.mxu1 %v3394_v19  ;;  %1431 = vmatpush.bf16.msra.mxu3 %v3395_v39 }
 0x31b   :  { %1494 = vmatpush.bf16.msrb.mxu0 %v3396_v4 }
 0x31c   :  { %1507 = vmatpush.bf16.msrb.mxu1 %v3397_v46 }
 0x31f   :  { %1495 = vmatpush.bf16.msrb.mxu0 %v3398_v11 }
 0x320   :  { %1508 = vmatpush.bf16.msrb.mxu1 %v3399_v34 }
 0x323   :  { %1496 = vmatpush.bf16.msrb.mxu0 %v3400_v20 }
 0x324   :  { %1509 = vmatpush.bf16.msrb.mxu1 %v3401_v22  ;;  %v2111_v22 = vld [vmem:[%s3301_s0 + $0xb0] sm:$0xff] }
 0x327   :  { %1497 = vmatpush.bf16.msrb.mxu0 %v3402_v54 }
 0x328   :  { %1510 = vmatpush.bf16.msrb.mxu1 %v3403_v41 }
 0x367   :  { %v1131_v23 = vpop.f32.mrf.mxu0  ;;  %v1144_v0 = vpop.f32.mrf.mxu1 }
 0x368   :  { %v1161_v60 = vadd.f32 %v2104_v48, %v1131_v23  ;;  %v1181_v40 = vadd.f32 %v2105_v42, %v1144_v0 }
 0x36a   :  { %v2107_v31 = vmul.f32 -1.442695, %v1161_v60  ;;  %v2108_v18 = vmul.f32 -1.442695, %v1181_v40  ;;  %v2110_v40 = vld [vmem:[%s3301_s0 + $0xa8] sm:$0xff] }
 0x36c   :  { %2282 = vpow2.f32 %v2107_v31 }
 0x36d   :  { %2284 = vpow2.f32 %v2108_v18 }
 0x36e   :  { %v1157_v61 = vpop.f32.mrf.mxu2 }
 0x36f   :  { %v1133_v5 = vpop.f32.mrf.mxu0  ;;  %v1146_v58 = vpop.f32.mrf.mxu1 }
 0x372   :  { %v2283_v52 = vpop.eup %2282 }
 0x373   :  { %v2285_v53 = vpop.eup %2284  ;;  %v1165_v41 = vadd.f32 1.0, %v2283_v52 }
 0x374   :  { %v1185_v54 = vadd.f32 1.0, %v2285_v53 }
 0x375   :  { %2286 = vrcp.f32 %v1165_v41  ;;  %v1177_v39 = vand.u32 2147483648, %v1165_v41  ;;  %vm1171_vm1 = vweird.f32 %v1165_v41 }
 0x376   :  { %2288 = vrcp.f32 %v1185_v54  ;;  %v1159_v20 = vpop.f32.mrf.mxu2  ;;  %vm1191_vm5 = vweird.f32 %v1185_v54 }
 0x377   :  { %v1236_v48 = vpop.f32.mrf.mxu0  ;;  %v1178_v19 = vor.u32 1.1754944e-38, %v1177_v39  ;;  %v1195_v39 = vand.u32 2147483647, %v1185_v54 }
 0x378   :  { %v1273_v42 = vadd.f32 %v2111_v22, %v1236_v48  ;;  %v3055_v23 = vpop.f32.mrf.mxu1  ;;  %v1175_v22 = vand.u32 2147483647, %v1165_v41 }
 0x379   :  { %vm1196_vm7 = vcmp.eq.f32.partialorder %v1195_v39, 8.507059e+37 }
 0x37a   :  { %v2114_v0 = vmul.f32 -1.442695, %v1273_v42  ;;  %vm1176_vm3 = vcmp.eq.f32.partialorder %v1175_v22, 8.507059e+37 }
 0x37b   :  { %v2287_v60 = vpop.eup %2286 }
 0x37c   :  { %v2289_v31 = vpop.eup %2288  ;;  %v1167_v18 = vmul.f32 %v2287_v60, %v1165_v41  ;;  %2290 = vpow2.f32 %v2114_v0  ;;  %vm1172_vm0 = vweird.f32 %v2287_v60 }
 0x37d   :  { %v1187_v5 = vmul.f32 %v2289_v31, %v1185_v54  ;;  %v1223_v58 = vpop.f32.mrf.mxu3  ;;  %vm1173_vm2 = vmor %vm1171_vm1, %vm1172_vm0  ;;  %vm1192_vm4 = vweird.f32 %v2289_v31 }
 0x37e   :  { %v1168_v52 = vsub.f32 1.0, %v1167_v18  ;;  %v1253_v53 = vadd.f32 %v2110_v40, %v1223_v58  ;;  %v3404_v40 = vld [vmem:[#allocation18_spill] sm:$0xff]  ;;  %v2106_v58 = vld [vmem:[%s3301_s0 + $0xd0] sm:$0xff]  ;;  %vm1193_vm6 = vmor %vm1191_vm5, %vm1192_vm4 }
 0x37f   :  { %v1188_v34 = vsub.f32 1.0, %v1187_v5  ;;  %v1238_v20 = vpop.f32.mrf.mxu0  ;;  %v1201_v18 = vadd.f32 %v3404_v40, %v1157_v61 }
 0x380   :  { %v1169_v11 = vmul.f32 %v2287_v60, %v1168_v52  ;;  %v2113_v48 = vmul.f32 -1.442695, %v1253_v53  ;;  %v1251_v42 = vpop.f32.mrf.mxu1  ;;  %v1197_v53 = vand.u32 2147483648, %v1185_v54 }
 0x381   :  { %v1189_v46 = vmul.f32 %v2289_v31, %v1188_v34 }
 0x382   :  { %v2291_v13 = vpop.eup %2290  ;;  %v1170_v4 = vadd.f32 %v2287_v60, %v1169_v11  ;;  %2292 = vpow2.f32 %v2113_v48  ;;  %v1198_v61 = vor.u32 1.1754944e-38, %v1197_v53 }
 0x383   :  { %v3060_v0 = vadd.f32 1.0, %v2291_v13  ;;  %v1190_v5 = vadd.f32 %v2289_v31, %v1189_v46 }
 0x384   :  { %v1174_v14 = vsel %vm1173_vm2, %v2287_v60, %v1170_v4 }
 0x385   :  { %v1179_v52 = vsel %vm1176_vm3, %v1178_v19, %v1174_v14  ;;  %v1225_v34 = vpop.f32.mrf.mxu3  ;;  %2294 = vrcp.f32 %v3060_v0  ;;  %v1194_v41 = vsel %vm1193_vm6, %v2289_v31, %v1190_v5  ;;  %vm1283_vm13 = vweird.f32 %v3060_v0 }
 0x386   :  { %v1202_v11 = vmul.f32 %v1201_v18, %v1179_v52  ;;  %v1199_v20 = vsel %vm1196_vm7, %v1198_v61, %v1194_v41 }
 0x387   :  { %v1205_v22 = vsub.f32 1.0, %v1199_v20  ;;  %v1207_v18 = vmul.f32 %v1199_v20, %v2971_v1 }
 0x388   :  { %v2293_v13 = vpop.eup %2292  ;;  %v1203_v4 = vadd.f32 %v2106_v58, %v1202_v11 }
 0x389   :  { %v1257_v60 = vadd.f32 1.0, %v2293_v13 }
 0x38a   :  { %2296 = vtanh.f32 %v1203_v4  ;;  %v1293_v4 = vadd.f32 %v2976_v29, %v3055_v23 }
 0x38b   :  { %2298 = vrcp.f32 %v1257_v60  ;;  %v2295_v46 = vpop.eup %2294  ;;  %v1269_v5 = vand.u32 2147483648, %v1257_v60  ;;  %v1267_v11 = vand.u32 2147483647, %v1257_v60  ;;  %vm1263_vm9 = vweird.f32 %v1257_v60 }
 0x38c   :  { %v1279_v14 = vmul.f32 %v2295_v46, %v3060_v0  ;;  %vm1284_vm12 = vweird.f32 %v2295_v46 }
 0x38d   :  { %v1270_v13 = vor.u32 1.1754944e-38, %v1269_v5  ;;  %vm1268_vm11 = vcmp.eq.f32.partialorder %v1267_v11, 8.507059e+37  ;;  %vm1285_vm14 = vmor %vm1283_vm13, %vm1284_vm12  ;;  %v3413_v11 = vld [vmem:[#allocation11_spill] sm:$0xff] }
 0x38e   :  { %v1280_v52 = vsub.f32 1.0, %v1279_v14 }
 0x390   :  { %v2297_v19 = vpop.eup %2296  ;;  %v1281_v39 = vmul.f32 %v2295_v46, %v1280_v52 }
 0x391   :  { %v2299_v48 = vpop.eup %2298  ;;  %v1206_v42 = vmul.f32 %v2297_v19, %v1205_v22  ;;  %v1289_v22 = vand.u32 2147483648, %v3060_v0  ;;  %v1287_v19 = vand.u32 2147483647, %v3060_v0 }
 0x392   :  { %v1259_v54 = vmul.f32 %v2299_v48, %v1257_v60  ;;  %vm1264_vm8 = vweird.f32 %v2299_v48  ;;  %v1282_v61 = vadd.f32 %v2295_v46, %v1281_v39  ;;  %v2112_v60 = vld [vmem:[%s3301_s0 + $0xb8] sm:$0xff]  ;;  %v3416_v39 = vld [vmem:[#allocation14_spill] sm:$0xff] }
 0x393   :  { %v3069_v34 = vadd.f32 %v1207_v18, %v1206_v42  ;;  %vm1265_vm10 = vmor %vm1263_vm9, %vm1264_vm8  ;;  %v1290_v42 = vor.u32 1.1754944e-38, %v1289_v22  ;;  %vm1288_vm15 = vcmp.eq.f32.partialorder %v1287_v19, 8.507059e+37 }
 0x394   :  { %v1260_v31 = vsub.f32 1.0, %v1259_v54 }
 0x395   :  { %2109 = vst [vmem:[%s3305_s4 + $0x40] sm:$0xff] %v3069_v34  ;;  %v1305_v58 = vpack.c.bf16 %v3069_v34, %v3069_v34 }
 0x396   :  { %v1261_v53 = vmul.f32 %v2299_v48, %v1260_v31 }
 0x397   :  { %1314 = vmatmul.bf16.vlgmr.msrb.gmra.mxu2 %v1305_v58  ;;  %1327 = vmatmul.bf16.vlgmr.msrb.gmra.mxu3 %v1305_v58 }
 0x398   :  { %v1262_v1 = vadd.f32 %v2299_v48, %v1261_v53  ;;  %1340 = vmatmul.bf16.vlgmr.msra.gmra.mxu0 %v1305_v58  ;;  %1516 = vmatpush.bf16.msrb.mxu2 %v2461_v43  ;;  %v3407_v58 = vld [vmem:[#allocation7_spill] sm:$0xff]  ;;  %v3410_v53 = vld [vmem:[#allocation9_spill] sm:$0xff] }
 0x399   :  { %1582 = vmatpush.bf16.msrb.mxu3 %v2430_v7  ;;  %1595 = vmatpush.bf16.msra.mxu0 %v2514_v37 }
 0x39a   :  { %v1266_v41 = vsel %vm1265_vm10, %v2299_v48, %v1262_v1  ;;  %v1286_v48 = vsel %vm1285_vm14, %v2295_v46, %v1282_v61 }
 0x39b   :  { %v1271_v20 = vsel %vm1268_vm11, %v1270_v13, %v1266_v41  ;;  %v1291_v18 = vsel %vm1288_vm15, %v1290_v42, %v1286_v48  ;;  %v2116_v13 = vld [vmem:[%s3301_s0 + $0xf0] sm:$0xff] }
 0x39c   :  { %v1294_v14 = vmul.f32 %v1293_v4, %v1271_v20  ;;  %1517 = vmatpush.bf16.msrb.mxu2 %v2464_v47  ;;  %v1297_v0 = vsub.f32 1.0, %v1291_v18  ;;  %v1299_v46 = vmul.f32 %v1291_v18, %v2999_v44  ;;  %v3406_v44 = vld [vmem:[#allocation6_spill] sm:$0xff]  ;;  %v2117_v4 = vld [vmem:[%s3301_s0 + $0xf8] sm:$0xff] }
 0x39d   :  { %1583 = vmatpush.bf16.msrb.mxu3 %v2439_v16  ;;  %1596 = vmatpush.bf16.msra.mxu0 %v2537_v57 }
 0x39e   :  { %v1295_v23 = vadd.f32 %v2112_v60, %v1294_v14 }
 0x3a0   :  { %2300 = vtanh.f32 %v1295_v23  ;;  %1518 = vmatpush.bf16.msrb.mxu2 %v2476_v59 }
 0x3a1   :  { %1584 = vmatpush.bf16.msrb.mxu3 %v2448_v25  ;;  %1597 = vmatpush.bf16.msra.mxu0 %v2549_v9 }
 0x3a4   :  { %1519 = vmatpush.bf16.msrb.mxu2 %v2488_v10 }
 0x3a5   :  { %1585 = vmatpush.bf16.msrb.mxu3 %v2457_v38  ;;  %1598 = vmatpush.bf16.msra.mxu0 %v2559_v28 }
 0x3a6   :  { %v2301_v54 = vpop.eup %2300 }
 0x3a7   :  { %v1298_v52 = vmul.f32 %v2301_v54, %v1297_v0 }
 0x3a8   :  { %1520 = vmatpush.bf16.msrb.mxu2 %v2500_v30 }
 0x3a9   :  { %v3099_v31 = vadd.f32 %v1299_v46, %v1298_v52  ;;  %1586 = vmatpush.bf16.msrb.mxu3 %v2471_v51  ;;  %1599 = vmatpush.bf16.msra.mxu0 %v2567_v45  ;;  %v2122_v52 = vld [vmem:[%s3301_s0 + $0x78] sm:$0xff] }
 0x3ab   :  { %2115 = vst [vmem:[%s3305_s4 + $0x38] sm:$0xff] %v3099_v31  ;;  %v1397_v5 = vpack.c.bf16 %v3099_v31, %v3099_v31 }
 0x3ac   :  { %1521 = vmatpush.bf16.msrb.mxu2 %v2533_v56 }
 0x3ad   :  { %1406 = vmatmul.bf16.vlgmr.msra.gmra.mxu1 %v1397_v5  ;;  %1419 = vmatmul.bf16.vlgmr.msra.gmra.mxu2 %v1397_v5 }
 0x3ae   :  { %1432 = vmatmul.bf16.vlgmr.msra.gmra.mxu3 %v1397_v5  ;;  %1608 = vmatpush.bf16.msra.mxu1 %v2525_v50 }
 0x3af   :  { %1587 = vmatpush.bf16.msrb.mxu3 %v2483_v63  ;;  %1600 = vmatpush.bf16.msra.mxu0 %v2575_v62 }
 0x3b0   :  { %1522 = vmatpush.bf16.msrb.mxu2 %v2546_v6 }
 0x3b2   :  { %1609 = vmatpush.bf16.msra.mxu1 %v2542_v2 }
 0x3b3   :  { %1588 = vmatpush.bf16.msrb.mxu3 %v2495_v15  ;;  %1601 = vmatpush.bf16.msra.mxu0 %v2583_v49 }
 0x3b4   :  { %1523 = vmatpush.bf16.msrb.mxu2 %v2556_v27 }
 0x3b6   :  { %1610 = vmatpush.bf16.msra.mxu1 %v2553_v21 }
 0x3b7   :  { %1589 = vmatpush.bf16.msrb.mxu3 %v2512_v36  ;;  %1602 = vmatpush.bf16.msra.mxu0 %v2591_v33 }
 0x3b8   :  { %1674 = vmatpush.bf16.msra.mxu2 %v2428_v3  ;;  %v3405_v3 = vld [vmem:[#allocation15_spill] sm:$0xff] }
 0x3ba   :  { %1611 = vmatpush.bf16.msra.mxu1 %v2563_v35 }
 0x3bb   :  { %1687 = vmatpush.bf16.msra.mxu3 %v2432_v8  ;;  %v3408_v8 = vld [vmem:[#allocation16_spill] sm:$0xff] }
 0x3bc   :  { %1675 = vmatpush.bf16.msra.mxu2 %v2435_v12  ;;  %v3409_v12 = vld [vmem:[#allocation8_spill] sm:$0xff] }
 0x3be   :  { %1612 = vmatpush.bf16.msra.mxu1 %v2572_v55 }
 0x3bf   :  { %1688 = vmatpush.bf16.msra.mxu3 %v2441_v17  ;;  %v3411_v17 = vld [vmem:[#allocation17_spill] sm:$0xff] }
 0x3c0   :  { %1676 = vmatpush.bf16.msra.mxu2 %v2444_v24  ;;  %v3412_v24 = vld [vmem:[#allocation10_spill] sm:$0xff] }
 0x3c2   :  { %1613 = vmatpush.bf16.msra.mxu1 %v3405_v3 }
 0x3c3   :  { %1689 = vmatpush.bf16.msra.mxu3 %v2450_v26  ;;  %v3414_v26 = vld [vmem:[#allocation12_spill] sm:$0xff] }
 0x3c4   :  { %1677 = vmatpush.bf16.msra.mxu2 %v3380_v32  ;;  %v3415_v32 = vld [vmem:[#allocation13_spill] sm:$0xff] }
 0x3c6   :  { %1614 = vmatpush.bf16.msra.mxu1 %v3408_v8 }
 0x3c7   :  { %1690 = vmatpush.bf16.msra.mxu3 %v3406_v44 }
 0x3c8   :  { %1678 = vmatpush.bf16.msra.mxu2 %v3407_v58 }
 0x3ca   :  { %1615 = vmatpush.bf16.msra.mxu1 %v3411_v17 }
 0x3cb   :  { %1691 = vmatpush.bf16.msra.mxu3 %v3409_v12  ;;  %v2123_v12 = vld [vmem:[%s3301_s0 + $0x80] sm:$0xff] }
 0x3cc   :  { %1679 = vmatpush.bf16.msra.mxu2 %v3410_v53 }
 0x3cf   :  { %1692 = vmatpush.bf16.msra.mxu3 %v3412_v24 }
 0x3d0   :  { %1680 = vmatpush.bf16.msra.mxu2 %v3413_v11 }
 0x3d3   :  { %1693 = vmatpush.bf16.msra.mxu3 %v3414_v26 }
 0x3d4   :  { %1681 = vmatpush.bf16.msra.mxu2 %v3415_v32 }
 0x3d7   :  { %1694 = vmatpush.bf16.msra.mxu3 %v3416_v39 }
 0x415   :  { %v1341_v1 = vpop.f32.mrf.mxu0 }
 0x41a   :  { %v1315_v41 = vpop.f32.mrf.mxu2  ;;  %v1328_v61 = vpop.f32.mrf.mxu3 }
 0x41b   :  { %v1345_v20 = vadd.f32 %v2116_v13, %v1315_v41  ;;  %v1365_v60 = vadd.f32 %v2117_v4, %v1328_v61 }
 0x41d   :  { %v2119_v22 = vmul.f32 -1.442695, %v1345_v20  ;;  %v2120_v14 = vmul.f32 -1.442695, %v1365_v60  ;;  %v1343_v19 = vpop.f32.mrf.mxu0 }
 0x41f   :  { %2302 = vpow2.f32 %v2119_v22 }
 0x420   :  { %2304 = vpow2.f32 %v2120_v14 }
 0x422   :  { %v1317_v23 = vpop.f32.mrf.mxu2  ;;  %v1330_v48 = vpop.f32.mrf.mxu3 }
 0x425   :  { %v2303_v42 = vpop.eup %2302 }
 0x426   :  { %v2305_v18 = vpop.eup %2304  ;;  %v1349_v0 = vadd.f32 1.0, %v2303_v42 }
 0x427   :  { %v1369_v54 = vadd.f32 1.0, %v2305_v18  ;;  %v1385_v18 = vadd.f32 %v3404_v40, %v1341_v1 }
 0x428   :  { %2306 = vrcp.f32 %v1349_v0  ;;  %v1361_v4 = vand.u32 2147483648, %v1349_v0  ;;  %v1359_v60 = vand.u32 2147483647, %v1349_v0  ;;  %vm1355_vm1 = vweird.f32 %v1349_v0 }
 0x429   :  { %2308 = vrcp.f32 %v1369_v54  ;;  %vm1375_vm5 = vweird.f32 %v1369_v54 }
 0x42a   :  { %v1407_v46 = vpop.f32.mrf.mxu1  ;;  %v1362_v48 = vor.u32 1.1754944e-38, %v1361_v4  ;;  %vm1360_vm3 = vcmp.eq.f32.partialorder %v1359_v60, 8.507059e+37 }
 0x42b   :  { %v1437_v5 = vadd.f32 %v2122_v52, %v1407_v46 }
 0x42d   :  { %v2125_v44 = vmul.f32 -1.442695, %v1437_v5 }
 0x42e   :  { %v2307_v58 = vpop.eup %2306 }
 0x42f   :  { %v2309_v53 = vpop.eup %2308  ;;  %v1351_v24 = vmul.f32 %v2307_v58, %v1349_v0  ;;  %2310 = vpow2.f32 %v2125_v44  ;;  %vm1356_vm0 = vweird.f32 %v2307_v58 }
 0x430   :  { %v1371_v11 = vmul.f32 %v2309_v53, %v1369_v54  ;;  %v1420_v26 = vpop.f32.mrf.mxu2  ;;  %vm1357_vm2 = vmor %vm1355_vm1, %vm1356_vm0  ;;  %vm1376_vm4 = vweird.f32 %v2309_v53 }
 0x431   :  { %v1352_v32 = vsub.f32 1.0, %v1351_v24  ;;  %v1457_v39 = vadd.f32 %v2123_v12, %v1420_v26  ;;  %v1433_v13 = vpop.f32.mrf.mxu3  ;;  %v2118_v12 = vld [vmem:[%s3301_s0 + $0x100] sm:$0xff]  ;;  %v1379_v26 = vand.u32 2147483647, %v1369_v54  ;;  %vm1377_vm6 = vmor %vm1375_vm5, %vm1376_vm4 }
 0x432   :  { %v1372_v41 = vsub.f32 1.0, %v1371_v11  ;;  %v1409_v61 = vpop.f32.mrf.mxu1  ;;  %v1381_v11 = vand.u32 2147483648, %v1369_v54 }
 0x433   :  { %v1353_v20 = vmul.f32 %v2307_v58, %v1352_v32  ;;  %v2126_v22 = vmul.f32 -1.442695, %v1457_v39  ;;  %vm1380_vm7 = vcmp.eq.f32.partialorder %v1379_v26, 8.507059e+37 }
 0x434   :  { %v1373_v14 = vmul.f32 %v2309_v53, %v1372_v41  ;;  %v1382_v4 = vor.u32 1.1754944e-38, %v1381_v11  ;;  %v1477_v11 = vadd.f32 %v2976_v29, %v1433_v13 }
 0x435   :  { %v2311_v19 = vpop.eup %2310  ;;  %v1354_v23 = vadd.f32 %v2307_v58, %v1353_v20  ;;  %2312 = vpow2.f32 %v2126_v22 }
 0x436   :  { %v1441_v42 = vadd.f32 1.0, %v2311_v19  ;;  %v1374_v5 = vadd.f32 %v2309_v53, %v1373_v14 }
 0x437   :  { %v1358_v52 = vsel %vm1357_vm2, %v2307_v58, %v1354_v23 }
 0x438   :  { %v1363_v46 = vsel %vm1360_vm3, %v1362_v48, %v1358_v52  ;;  %2314 = vrcp.f32 %v1441_v42  ;;  %v1422_v44 = vpop.f32.mrf.mxu2  ;;  %v1378_v58 = vsel %vm1377_vm6, %v2309_v53, %v1374_v5  ;;  %v1453_v22 = vand.u32 2147483648, %v1441_v42 }
 0x439   :  { %v1386_v24 = vmul.f32 %v1385_v18, %v1363_v46  ;;  %v1435_v0 = vpop.f32.mrf.mxu3  ;;  %v1383_v20 = vsel %vm1380_vm7, %v1382_v4, %v1378_v58  ;;  %v1451_v48 = vand.u32 2147483647, %v1441_v42  ;;  %vm1447_vm9 = vweird.f32 %v1441_v42 }
 0x43a   :  { %v1389_v14 = vsub.f32 1.0, %v1383_v20  ;;  %v1391_v52 = vmul.f32 %v1383_v20, %v3069_v34  ;;  %v1454_v5 = vor.u32 1.1754944e-38, %v1453_v22  ;;  %v2124_v0 = vld [vmem:[%s3301_s0 + $0x88] sm:$0xff] }
 0x43b   :  { %v2313_v32 = vpop.eup %2312  ;;  %v1387_v39 = vadd.f32 %v2118_v12, %v1386_v24  ;;  %vm1452_vm11 = vcmp.eq.f32.partialorder %v1451_v48, 8.507059e+37 }
 0x43c   :  { %v1461_v1 = vadd.f32 1.0, %v2313_v32 }
 0x43d   :  { %2316 = vtanh.f32 %v1387_v39 }
 0x43e   :  { %v2315_v41 = vpop.eup %2314  ;;  %2318 = vrcp.f32 %v1461_v1  ;;  %v1473_v32 = vand.u32 2147483648, %v1461_v1  ;;  %v1471_v58 = vand.u32 2147483647, %v1461_v1  ;;  %vm1467_vm13 = vweird.f32 %v1461_v1 }
 0x43f   :  { %v1443_v61 = vmul.f32 %v2315_v41, %v1441_v42  ;;  %vm1448_vm8 = vweird.f32 %v2315_v41 }
 0x440   :  { %vm1449_vm10 = vmor %vm1447_vm9, %vm1448_vm8  ;;  %vm1472_vm15 = vcmp.eq.f32.partialorder %v1471_v58, 8.507059e+37 }
 0x441   :  { %v1444_v60 = vsub.f32 1.0, %v1443_v61 }
 0x443   :  { %v2317_v19 = vpop.eup %2316  ;;  %v1445_v23 = vmul.f32 %v2315_v41, %v1444_v60 }
 0x444   :  { %v2319_v54 = vpop.eup %2318  ;;  %v1390_v18 = vmul.f32 %v2317_v19, %v1389_v14 }
 0x445   :  { %v1463_v46 = vmul.f32 %v2319_v54, %v1461_v1  ;;  %v1446_v53 = vadd.f32 %v2315_v41, %v1445_v23  ;;  %vm1468_vm12 = vweird.f32 %v2319_v54 }
 0x446   :  { %v3159_v44 = vadd.f32 %v1391_v52, %v1390_v18  ;;  %vm1469_vm14 = vmor %vm1467_vm13, %vm1468_vm12 }
 0x447   :  { %v1464_v12 = vsub.f32 1.0, %v1463_v46  ;;  %v1450_v24 = vsel %vm1449_vm10, %v2315_v41, %v1446_v53  ;;  %v1474_v41 = vor.u32 1.1754944e-38, %v1473_v32 }
 0x448   :  { %v1455_v26 = vsel %vm1452_vm11, %v1454_v5, %v1450_v24  ;;  %2121 = vst [vmem:[%s3305_s4 + $0x50] sm:$0xff] %v3159_v44  ;;  %v1489_v34 = vpack.c.bf16 %v3159_v44, %v3159_v44 }
 0x449   :  { %v1465_v42 = vmul.f32 %v2319_v54, %v1464_v12  ;;  %v1478_v39 = vmul.f32 %v1477_v11, %v1455_v26  ;;  %v2130_v26 = vld [vmem:[%s3301_s0 + $0x130] sm:$0xff] }
 0x44a   :  { %1498 = vmatmul.bf16.vlgmr.msrb.gmra.mxu0 %v1489_v34  ;;  %1511 = vmatmul.bf16.vlgmr.msrb.gmra.mxu1 %v1489_v34 }
 0x44b   :  { %v1466_v13 = vadd.f32 %v2319_v54, %v1465_v42  ;;  %v1479_v4 = vadd.f32 %v2124_v0, %v1478_v39  ;;  %1524 = vmatmul.bf16.vlgmr.msrb.gmra.mxu2 %v1489_v34  ;;  %1700 = vmatpush.bf16.msrb.mxu0 %v2461_v43 }
 0x44c   :  { %1766 = vmatpush.bf16.msrb.mxu1 %v2430_v7  ;;  %1779 = vmatpush.bf16.msrb.mxu2 %v2514_v37 }
 0x44d   :  { %v1470_v61 = vsel %vm1469_vm14, %v2319_v54, %v1466_v13  ;;  %2320 = vtanh.f32 %v1479_v4 }
 0x44e   :  { %v1475_v20 = vsel %vm1472_vm15, %v1474_v41, %v1470_v61 }
 0x44f   :  { %1701 = vmatpush.bf16.msrb.mxu0 %v2464_v47  ;;  %v1481_v1 = vsub.f32 1.0, %v1475_v20  ;;  %v1483_v7 = vmul.f32 %v1475_v20, %v3099_v31 }
 0x450   :  { %1767 = vmatpush.bf16.msrb.mxu1 %v2439_v16  ;;  %1780 = vmatpush.bf16.msrb.mxu2 %v2537_v57 }
 0x453   :  { %v2321_v60 = vpop.eup %2320  ;;  %1702 = vmatpush.bf16.msrb.mxu0 %v2476_v59 }
 0x454   :  { %v1482_v43 = vmul.f32 %v2321_v60, %v1481_v1  ;;  %1768 = vmatpush.bf16.msrb.mxu1 %v2448_v25  ;;  %1781 = vmatpush.bf16.msrb.mxu2 %v2549_v9  ;;  %v2128_v25 = vld [vmem:[%s3301_s0 + $0x120] sm:$0xff]  ;;  %v2135_v9 = vld [vmem:[%s3301_s0 + $0x50] sm:$0xff] }
 0x456   :  { %v3181_v37 = vadd.f32 %v1483_v7, %v1482_v43 }
 0x457   :  { %1703 = vmatpush.bf16.msrb.mxu0 %v2488_v10 }
 0x458   :  { %2127 = vst [vmem:[%s3305_s4 + $0x28] sm:$0xff] %v3181_v37  ;;  %v1581_v16 = vpack.c.bf16 %v3181_v37, %v3181_v37  ;;  %1769 = vmatpush.bf16.msrb.mxu1 %v2457_v38  ;;  %1782 = vmatpush.bf16.msrb.mxu2 %v2559_v28  ;;  %v2129_v38 = vld [vmem:[%s3301_s0 + $0x128] sm:$0xff] }
 0x45a   :  { %1590 = vmatmul.bf16.vlgmr.msrb.gmra.mxu3 %v1581_v16  ;;  %1603 = vmatmul.bf16.vlgmr.msra.gmra.mxu0 %v1581_v16 }
 0x45b   :  { %1616 = vmatmul.bf16.vlgmr.msra.gmra.mxu1 %v1581_v16  ;;  %1704 = vmatpush.bf16.msrb.mxu0 %v2500_v30 }
 0x45c   :  { %1792 = vmatpush.bf16.msrb.mxu3 %v2525_v50  ;;  %1770 = vmatpush.bf16.msrb.mxu1 %v2471_v51 }
 0x45d   :  { %1783 = vmatpush.bf16.msrb.mxu2 %v2567_v45 }
 0x45f   :  { %1705 = vmatpush.bf16.msrb.mxu0 %v2533_v56 }
 0x460   :  { %1793 = vmatpush.bf16.msrb.mxu3 %v2542_v2  ;;  %1771 = vmatpush.bf16.msrb.mxu1 %v2483_v63 }
 0x461   :  { %1784 = vmatpush.bf16.msrb.mxu2 %v2575_v62  ;;  %v2134_v62 = vld [vmem:[%s3301_s0 + $0x48] sm:$0xff] }
 0x463   :  { %1706 = vmatpush.bf16.msrb.mxu0 %v2546_v6 }
 0x464   :  { %1794 = vmatpush.bf16.msrb.mxu3 %v2553_v21  ;;  %1772 = vmatpush.bf16.msrb.mxu1 %v2495_v15 }
 0x465   :  { %1785 = vmatpush.bf16.msrb.mxu2 %v2583_v49 }
 0x467   :  { %1707 = vmatpush.bf16.msrb.mxu0 %v2556_v27 }
 0x468   :  { %1795 = vmatpush.bf16.msrb.mxu3 %v2563_v35  ;;  %1773 = vmatpush.bf16.msrb.mxu1 %v2512_v36 }
 0x469   :  { %1786 = vmatpush.bf16.msrb.mxu2 %v2591_v33 }
 0x46c   :  { %1796 = vmatpush.bf16.msrb.mxu3 %v2572_v55 }
 0x470   :  { %1797 = vmatpush.bf16.msrb.mxu3 %v3405_v3 }
 0x474   :  { %1798 = vmatpush.bf16.msrb.mxu3 %v3408_v8 }
 0x478   :  { %1799 = vmatpush.bf16.msrb.mxu3 %v3411_v17 }
 0x4c7   :  { %v1499_v47 = vpop.f32.mrf.mxu0  ;;  %v1512_v51 = vpop.f32.mrf.mxu1 }
 0x4c8   :  { %v1529_v59 = vadd.f32 %v2128_v25, %v1499_v47  ;;  %v1549_v63 = vadd.f32 %v2129_v38, %v1512_v51 }
 0x4ca   :  { %v2131_v10 = vmul.f32 -1.442695, %v1529_v59  ;;  %v2132_v15 = vmul.f32 -1.442695, %v1549_v63 }
 0x4cc   :  { %2322 = vpow2.f32 %v2131_v10 }
 0x4cd   :  { %2324 = vpow2.f32 %v2132_v15 }
 0x4ce   :  { %v1525_v30 = vpop.f32.mrf.mxu2 }
 0x4cf   :  { %v1501_v36 = vpop.f32.mrf.mxu0  ;;  %v1514_v50 = vpop.f32.mrf.mxu1  ;;  %v1569_v11 = vadd.f32 %v3404_v40, %v1525_v30 }
 0x4d2   :  { %v2323_v56 = vpop.eup %2322 }
 0x4d3   :  { %v2325_v57 = vpop.eup %2324  ;;  %v1533_v2 = vadd.f32 1.0, %v2323_v56 }
 0x4d4   :  { %v1553_v6 = vadd.f32 1.0, %v2325_v57 }
 0x4d5   :  { %2326 = vrcp.f32 %v1533_v2  ;;  %v1545_v14 = vand.u32 2147483648, %v1533_v2  ;;  %v1543_v48 = vand.u32 2147483647, %v1533_v2  ;;  %vm1539_vm1 = vweird.f32 %v1533_v2 }
 0x4d6   :  { %2328 = vrcp.f32 %v1553_v6  ;;  %v1527_v21 = vpop.f32.mrf.mxu2  ;;  %v1565_v32 = vand.u32 2147483648, %v1553_v6  ;;  %vm1559_vm5 = vweird.f32 %v1553_v6  ;;  %v1563_v58 = vand.u32 2147483647, %v1553_v6 }
 0x4d7   :  { %v1604_v27 = vpop.f32.mrf.mxu0  ;;  %v1546_v5 = vor.u32 1.1754944e-38, %v1545_v14  ;;  %vm1544_vm3 = vcmp.eq.f32.partialorder %v1543_v48, 8.507059e+37  ;;  %v2136_v21 = vld [vmem:[%s3301_s0 + $0x58] sm:$0xff]  ;;  %v2140_v14 = vld [vmem:[%s3301_s0 + $0x150] sm:$0xff] }
 0x4d8   :  { %v1641_v28 = vadd.f32 %v2135_v9, %v1604_v27  ;;  %v3221_v35 = vpop.f32.mrf.mxu1  ;;  %v1566_v40 = vor.u32 1.1754944e-38, %v1565_v32  ;;  %vm1564_vm7 = vcmp.eq.f32.partialorder %v1563_v58, 8.507059e+37  ;;  %v1763_v58 = vld [vmem:[%s3301_s0 + $0x20] sm:$0xff] }
 0x4d9   :  { %v1661_v57 = vadd.f32 %v2976_v29, %v3221_v35 }
 0x4da   :  { %v2138_v45 = vmul.f32 -1.442695, %v1641_v28 }
 0x4db   :  { %v2327_v55 = vpop.eup %2326 }
 0x4dc   :  { %v2329_v49 = vpop.eup %2328  ;;  %v1535_v33 = vmul.f32 %v2327_v55, %v1533_v2  ;;  %2330 = vpow2.f32 %v2138_v45  ;;  %vm1540_vm0 = vweird.f32 %v2327_v55 }
 0x4dd   :  { %v1555_v31 = vmul.f32 %v2329_v49, %v1553_v6  ;;  %v1591_v3 = vpop.f32.mrf.mxu3  ;;  %vm1541_vm2 = vmor %vm1539_vm1, %vm1540_vm0  ;;  %vm1560_vm4 = vweird.f32 %v2329_v49 }
 0x4de   :  { %v1536_v8 = vsub.f32 1.0, %v1535_v33  ;;  %v1621_v17 = vadd.f32 %v2134_v62, %v1591_v3  ;;  %vm1561_vm6 = vmor %vm1559_vm5, %vm1560_vm4 }
 0x4df   :  { %v1556_v22 = vsub.f32 1.0, %v1555_v31  ;;  %v1606_v19 = vpop.f32.mrf.mxu0 }
 0x4e0   :  { %v1537_v23 = vmul.f32 %v2327_v55, %v1536_v8  ;;  %v2137_v54 = vmul.f32 -1.442695, %v1621_v17  ;;  %v1619_v18 = vpop.f32.mrf.mxu1 }
 0x4e1   :  { %v1557_v52 = vmul.f32 %v2329_v49, %v1556_v22 }
 0x4e2   :  { %v2331_v46 = vpop.eup %2330  ;;  %v1538_v53 = vadd.f32 %v2327_v55, %v1537_v23  ;;  %2332 = vpow2.f32 %v2137_v54 }
 0x4e3   :  { %v3226_v12 = vadd.f32 1.0, %v2331_v46  ;;  %v1558_v0 = vadd.f32 %v2329_v49, %v1557_v52 }
 0x4e4   :  { %v1542_v24 = vsel %vm1541_vm2, %v2327_v55, %v1538_v53 }
 0x4e5   :  { %v1547_v34 = vsel %vm1544_vm3, %v1546_v5, %v1542_v24  ;;  %v1593_v42 = vpop.f32.mrf.mxu3  ;;  %2334 = vrcp.f32 %v3226_v12  ;;  %v1562_v41 = vsel %vm1561_vm6, %v2329_v49, %v1558_v0  ;;  %v1657_v27 = vand.u32 2147483648, %v3226_v12 }
 0x4e6   :  { %v1570_v39 = vmul.f32 %v1569_v11, %v1547_v34  ;;  %v1567_v1 = vsel %vm1564_vm7, %v1566_v40, %v1562_v41  ;;  %vm1651_vm13 = vweird.f32 %v3226_v12  ;;  %v1655_v45 = vand.u32 2147483647, %v3226_v12 }
 0x4e7   :  { %v1573_v60 = vsub.f32 1.0, %v1567_v1  ;;  %v1575_v38 = vmul.f32 %v1567_v1, %v3159_v44  ;;  %v1658_v29 = vor.u32 1.1754944e-38, %v1657_v27 }
 0x4e8   :  { %v2333_v13 = vpop.eup %2332  ;;  %v1571_v4 = vadd.f32 %v2130_v26, %v1570_v39  ;;  %vm1656_vm15 = vcmp.eq.f32.partialorder %v1655_v45, 8.507059e+37  ;;  %v1762_v26 = vld [vmem:[%s3301_s0 + $0x18] sm:$0xff] }
 0x4e9   :  { %v1625_v61 = vadd.f32 1.0, %v2333_v13 }
 0x4ea   :  { %2336 = vtanh.f32 %v1571_v4 }
 0x4eb   :  { %2338 = vrcp.f32 %v1625_v61  ;;  %v2335_v20 = vpop.eup %2334  ;;  %v1637_v10 = vand.u32 2147483648, %v1625_v61  ;;  %v1635_v36 = vand.u32 2147483647, %v1625_v61  ;;  %vm1631_vm9 = vweird.f32 %v1625_v61 }
 0x4ec   :  { %v1647_v43 = vmul.f32 %v2335_v20, %v3226_v12  ;;  %vm1652_vm12 = vweird.f32 %v2335_v20 }
 0x4ed   :  { %v1638_v56 = vor.u32 1.1754944e-38, %v1637_v10  ;;  %vm1636_vm11 = vcmp.eq.f32.partialorder %v1635_v36, 8.507059e+37  ;;  %vm1653_vm14 = vmor %vm1651_vm13, %vm1652_vm12 }
 0x4ee   :  { %v1648_v51 = vsub.f32 1.0, %v1647_v43 }
 0x4f0   :  { %v2337_v7 = vpop.eup %2336  ;;  %v1649_v50 = vmul.f32 %v2335_v20, %v1648_v51 }
 0x4f1   :  { %v2339_v16 = vpop.eup %2338  ;;  %v1574_v25 = vmul.f32 %v2337_v7, %v1573_v60 }
 0x4f2   :  { %v1627_v47 = vmul.f32 %v2339_v16, %v1625_v61  ;;  %vm1632_vm8 = vweird.f32 %v2339_v16  ;;  %v1650_v6 = vadd.f32 %v2335_v20, %v1649_v50 }
 0x4f3   :  { %v3235_v59 = vadd.f32 %v1575_v38, %v1574_v25  ;;  %vm1633_vm10 = vmor %vm1631_vm9, %vm1632_vm8 }
 0x4f4   :  { %v1628_v63 = vsub.f32 1.0, %v1627_v47  ;;  %v1654_v62 = vsel %vm1653_vm14, %v2335_v20, %v1650_v6 }
 0x4f5   :  { %2133 = vst [vmem:[%s3305_s4 + $0x60] sm:$0xff] %v3235_v59  ;;  %v1673_v15 = vpack.c.bf16 %v3235_v59, %v3235_v59  ;;  %v1659_v35 = vsel %vm1656_vm15, %v1658_v29, %v1654_v62 }
 0x4f6   :  { %v1629_v30 = vmul.f32 %v2339_v16, %v1628_v63  ;;  %v1665_v49 = vsub.f32 1.0, %v1659_v35  ;;  %v1667_v3 = vmul.f32 %v1659_v35, %v3181_v37  ;;  %v2141_v37 = vld [vmem:[%s3301_s0 + $0x158] sm:$0xff] }
 0x4f7   :  { %1682 = vmatmul.bf16.vlgmr.msra.gmra.mxu2 %v1673_v15  ;;  %1695 = vmatmul.bf16.vlgmr.msra.gmra.mxu3 %v1673_v15 }
 0x4f8   :  { %v1630_v44 = vadd.f32 %v2339_v16, %v1629_v30  ;;  %1708 = vmatmul.bf16.vlgmr.msrb.gmra.mxu0 %v1673_v15  ;;  %v2364_v30 = vld [vmem:[%s3304_s3] ss:$0 sm:$0xff] }
 0x4fa   :  { %v1634_v2 = vsel %vm1633_vm10, %v2339_v16, %v1630_v44  ;;  %v2142_v44 = vld [vmem:[%s3301_s0 + $0x160] sm:$0xff] }
 0x4fb   :  { %v1639_v9 = vsel %vm1636_vm11, %v1638_v56, %v1634_v2 }
 0x4fc   :  { %v1662_v28 = vmul.f32 %v1661_v57, %v1639_v9 }
 0x4fe   :  { %v1663_v55 = vadd.f32 %v2136_v21, %v1662_v28 }
 0x500   :  { %2340 = vtanh.f32 %v1663_v55 }
 0x506   :  { %v2341_v33 = vpop.eup %2340 }
 0x507   :  { %v1666_v31 = vmul.f32 %v2341_v33, %v1665_v49 }
 0x509   :  { %v3252_v8 = vadd.f32 %v1667_v3, %v1666_v31 }
 0x50b   :  { %2139 = vst [vmem:[%s3305_s4 + $0x18] sm:$0xff] %v3252_v8  ;;  %v1765_v17 = vpack.c.bf16 %v3252_v8, %v3252_v8 }
 0x50d   :  { %1774 = vmatmul.bf16.vlgmr.msrb.gmra.mxu1 %v1765_v17  ;;  %1787 = vmatmul.bf16.vlgmr.msrb.gmra.mxu2 %v1765_v17 }
 0x50e   :  { %1800 = vmatmul.bf16.vlgmr.msrb.gmra.mxu3 %v1765_v17 }
 0x575   :  { %v1709_v22 = vpop.f32.mrf.mxu0 }
 0x576   :  { %v1753_v36 = vadd.f32 %v2364_v30, %v1709_v22 }
 0x57a   :  { %v1683_v19 = vpop.f32.mrf.mxu2  ;;  %v1696_v23 = vpop.f32.mrf.mxu3 }
 0x57b   :  { %v1713_v48 = vadd.f32 %v2140_v14, %v1683_v19  ;;  %v1733_v54 = vadd.f32 %v2141_v37, %v1696_v23 }
 0x57d   :  { %v2143_v18 = vmul.f32 -1.442695, %v1713_v48  ;;  %v2144_v52 = vmul.f32 -1.442695, %v1733_v54  ;;  %v1711_v46 = vpop.f32.mrf.mxu0 }
 0x57f   :  { %2342 = vpow2.f32 %v2143_v18 }
 0x580   :  { %2344 = vpow2.f32 %v2144_v52 }
 0x582   :  { %v1685_v53 = vpop.f32.mrf.mxu2  ;;  %v1698_v5 = vpop.f32.mrf.mxu3 }
 0x585   :  { %v2343_v12 = vpop.eup %2342 }
 0x586   :  { %v2345_v24 = vpop.eup %2344  ;;  %v1717_v11 = vadd.f32 1.0, %v2343_v12  ;;  %v2365_v12 = vld [vmem:[%s3304_s3 + $0x1] ss:$0 sm:$0xff] }
 0x587   :  { %v1737_v0 = vadd.f32 1.0, %v2345_v24 }
 0x588   :  { %2346 = vrcp.f32 %v1717_v11  ;;  %v1729_v60 = vand.u32 2147483648, %v1717_v11  ;;  %v1727_v25 = vand.u32 2147483647, %v1717_v11  ;;  %vm1723_vm1 = vweird.f32 %v1717_v11 }
 0x589   :  { %2348 = vrcp.f32 %v1737_v0  ;;  %v1749_v9 = vand.u32 2147483648, %v1737_v0  ;;  %vm1743_vm5 = vweird.f32 %v1737_v0  ;;  %v1747_v27 = vand.u32 2147483647, %v1737_v0 }
 0x58a   :  { %v1775_v34 = vpop.f32.mrf.mxu1  ;;  %v1730_v10 = vor.u32 1.1754944e-38, %v1729_v60  ;;  %vm1728_vm3 = vcmp.eq.f32.partialorder %v1727_v25, 8.507059e+37 }
 0x58b   :  { %v1805_v42 = vadd.f32 %v1775_v34, %v1762_v26  ;;  %v1750_v29 = vor.u32 1.1754944e-38, %v1749_v9  ;;  %vm1748_vm7 = vcmp.eq.f32.partialorder %v1747_v27, 8.507059e+37 }
 0x58d   :  { %v2146_v32 = vmul.f32 -1.442695, %v1805_v42 }
 0x58e   :  { %v2347_v39 = vpop.eup %2346 }
 0x58f   :  { %v2349_v13 = vpop.eup %2348  ;;  %v1719_v4 = vmul.f32 %v2347_v39, %v1717_v11  ;;  %2350 = vpow2.f32 %v2146_v32  ;;  %vm1724_vm0 = vweird.f32 %v2347_v39 }
 0x590   :  { %v1739_v41 = vmul.f32 %v2349_v13, %v1737_v0  ;;  %v1788_v61 = vpop.f32.mrf.mxu2  ;;  %vm1725_vm2 = vmor %vm1723_vm1, %vm1724_vm0  ;;  %vm1744_vm4 = vweird.f32 %v2349_v13 }
 0x591   :  { %v1720_v40 = vsub.f32 1.0, %v1719_v4  ;;  %v1825_v20 = vadd.f32 %v1788_v61, %v1763_v58  ;;  %v3272_v1 = vpop.f32.mrf.mxu3  ;;  %vm1745_vm6 = vmor %vm1743_vm5, %vm1744_vm4 }
 0x592   :  { %v1740_v43 = vsub.f32 1.0, %v1739_v41  ;;  %v1777_v7 = vpop.f32.mrf.mxu1  ;;  %v1845_v24 = vadd.f32 %v2365_v12, %v3272_v1 }
 0x593   :  { %v1721_v16 = vmul.f32 %v2347_v39, %v1720_v40  ;;  %v2147_v38 = vmul.f32 -1.442695, %v1825_v20 }
 0x594   :  { %v1741_v47 = vmul.f32 %v2349_v13, %v1740_v43 }
 0x595   :  { %v2351_v51 = vpop.eup %2350  ;;  %v1722_v63 = vadd.f32 %v2347_v39, %v1721_v16  ;;  %2352 = vpow2.f32 %v2147_v38 }
 0x596   :  { %v1809_v15 = vadd.f32 1.0, %v2351_v51  ;;  %v1742_v57 = vadd.f32 %v2349_v13, %v1741_v47 }
 0x597   :  { %v1726_v50 = vsel %vm1725_vm2, %v2347_v39, %v1722_v63 }
 0x598   :  { %v1731_v56 = vsel %vm1728_vm3, %v1730_v10, %v1726_v50  ;;  %2354 = vrcp.f32 %v1809_v15  ;;  %v1790_v2 = vpop.f32.mrf.mxu2  ;;  %v1746_v55 = vsel %vm1745_vm6, %v2349_v13, %v1742_v57  ;;  %v1821_v17 = vand.u32 2147483648, %v1809_v15 }
 0x599   :  { %v1754_v6 = vmul.f32 %v1753_v36, %v1731_v56  ;;  %v1803_v21 = vpop.f32.mrf.mxu3  ;;  %v1751_v49 = vsel %vm1748_vm7, %v1750_v29, %v1746_v55  ;;  %v1819_v37 = vand.u32 2147483647, %v1809_v15  ;;  %vm1815_vm9 = vweird.f32 %v1809_v15 }
 0x59a   :  { %v1757_v3 = vsub.f32 1.0, %v1751_v49  ;;  %v1759_v48 = vmul.f32 %v1751_v49, %v3235_v59  ;;  %v1822_v46 = vor.u32 1.1754944e-38, %v1821_v17  ;;  %v1764_v59 = vld [vmem:[%s3301_s0 + $0x28] sm:$0xff] }
 0x59b   :  { %v2353_v28 = vpop.eup %2352  ;;  %v1755_v45 = vadd.f32 %v2142_v44, %v1754_v6  ;;  %vm1820_vm11 = vcmp.eq.f32.partialorder %v1819_v37, 8.507059e+37 }
 0x59c   :  { %v1829_v62 = vadd.f32 1.0, %v2353_v28 }
 0x59d   :  { %2356 = vtanh.f32 %v1755_v45 }
 0x59e   :  { %v2355_v35 = vpop.eup %2354  ;;  %2358 = vrcp.f32 %v1829_v62  ;;  %v1841_v26 = vand.u32 2147483648, %v1829_v62  ;;  %v1839_v42 = vand.u32 2147483647, %v1829_v62  ;;  %vm1835_vm13 = vweird.f32 %v1829_v62 }
 0x59f   :  { %v1811_v33 = vmul.f32 %v2355_v35, %v1809_v15  ;;  %vm1816_vm8 = vweird.f32 %v2355_v35 }
 0x5a0   :  { %vm1817_vm10 = vmor %vm1815_vm9, %vm1816_vm8  ;;  %v1842_v58 = vor.u32 1.1754944e-38, %v1841_v26  ;;  %vm1840_vm15 = vcmp.eq.f32.partialorder %v1839_v42, 8.507059e+37 }
 0x5a1   :  { %v1812_v31 = vsub.f32 1.0, %v1811_v33 }
 0x5a3   :  { %v2357_v22 = vpop.eup %2356  ;;  %v1813_v14 = vmul.f32 %v2355_v35, %v1812_v31 }
 0x5a4   :  { %v2359_v19 = vpop.eup %2358  ;;  %v1758_v23 = vmul.f32 %v2357_v22, %v1757_v3 }
 0x5a5   :  { %v1831_v54 = vmul.f32 %v2359_v19, %v1829_v62  ;;  %v1814_v18 = vadd.f32 %v2355_v35, %v1813_v14  ;;  %vm1836_vm12 = vweird.f32 %v2359_v19 }
 0x5a6   :  { %v1760_v52 = vadd.f32 %v1759_v48, %v1758_v23  ;;  %vm1837_vm14 = vmor %vm1835_vm13, %vm1836_vm12 }
 0x5a7   :  { %v1832_v53 = vsub.f32 1.0, %v1831_v54  ;;  %v1818_v5 = vsel %vm1817_vm10, %v2355_v35, %v1814_v18 }
 0x5a8   :  { %2145 = vst [vmem:[%s3305_s4 + $0x70] sm:$0xff] %v1760_v52  ;;  %v1823_v11 = vsel %vm1820_vm11, %v1822_v46, %v1818_v5 }
 0x5a9   :  { %1854 = vst [vmem:[%s3306_s5] sm:$0xff] %v1760_v52  ;;  %v1833_v0 = vmul.f32 %v2359_v19, %v1832_v53  ;;  %v1846_v34 = vmul.f32 %v1845_v24, %v1823_v11 }
 0x5ab   :  { %v1834_v32 = vadd.f32 %v2359_v19, %v1833_v0  ;;  %v1847_v39 = vadd.f32 %v1846_v34, %v1764_v59 }
 0x5ad   :  { %v1838_v13 = vsel %vm1837_vm14, %v2359_v19, %v1834_v32  ;;  %2360 = vtanh.f32 %v1847_v39 }
 0x5ae   :  { %v1843_v4 = vsel %vm1840_vm15, %v1842_v58, %v1838_v13 }
 0x5af   :  { %v1849_v41 = vsub.f32 1.0, %v1843_v4  ;;  %v1851_v20 = vmul.f32 %v1843_v4, %v3252_v8 }
 0x5b3   :  { %v2361_v61 = vpop.eup %2360 }
 0x5b4   :  { %v1850_v40 = vmul.f32 %v2361_v61, %v1849_v41 }
 0x5b6   :  { %v1852_v1 = vadd.f32 %v1851_v20, %v1850_v40 }
 0x5b8   :  { %1853 = vst [vmem:[%s3305_s4 + $0x8] sm:$0xff] %v1852_v1 }
 0x5b9   :  { %2148 = vst [vmem:[%s3306_s5 + $0x8] sm:$0xff] %v1852_v1 }
 0x5ba   :  { %1865 = vsyncpa [#allocation3], 1 }

// kernel: graph_decoder_rnn_forward.8
= control target key start
LH: loop header
LB: loop body
LE: loop exit
PB: predicated region body
PF: predicated region fallthrough
CT: control target
= control target key end

     0   :  { %s3575_s2 = inlined_call_operand.vmem [shape: bf16[2,128,384], index: 2, kind: input, shape index: {}]   ;;  %s3576_s1 = inlined_call_operand.vmem [shape: f32[2,8,128], index: 1, kind: input, shape index: {}]   ;;  %s3577_s3 = inlined_call_operand.vmem [shape: f32[2,1,128], index: 3, kind: input, shape index: {}]   ;;  %s3578_s0 = inlined_call_operand.vmem [shape: f32[8,8,768], index: 0, kind: input, shape index: {}]   ;;  %s3579_s4 = inlined_call_operand.vmem [shape: f32[8,8,256], index: 4, kind: output, shape index: {0}]   ;;  %s3580_s5 = inlined_call_operand.vmem [shape: f32[2,8,128], index: 5, kind: output, shape index: {1}]  }
   0x1   :  { %v1969_v0 = vld [vmem:[%s3575_s2 + $0xa8] sm:$0xf]  ;;  %v2186_v1 = vld [vmem:[%s3575_s2 + $0xb0] sm:$0xf0]  ;;  %v2185_v5 = vld [vmem:[%s3575_s2 + $0xac] sm:$0xf] }
   0x2   :  { %v2070_v2 = vld [vmem:[%s3575_s2 + $0x168] sm:$0xf]  ;;  %v2417_v3 = vor.u32 %v2186_v1, %v1969_v0  ;;  %v2210_v4 = vld [vmem:[%s3575_s2 + $0x170] sm:$0xf0]  ;;  %v1971_v6 = vld [vmem:[%s3575_s2 + $0xb4] sm:$0xf0] }
   0x3   :  { %v2428_v7 = vor.u32 %v2210_v4, %v2070_v2  ;;  %v2430_v8 = vor.u32 %v2185_v5, %v1971_v6  ;;  %v1957_v9 = vld [vmem:[%s3575_s2 + $0x90] sm:$0xf]  ;;  %v2183_v10 = vld [vmem:[%s3575_s2 + $0x98] sm:$0xf0]  ;;  %v2182_v14 = vld [vmem:[%s3575_s2 + $0x94] sm:$0xf] }
   0x4   :  { %v2058_v11 = vld [vmem:[%s3575_s2 + $0x150] sm:$0xf]  ;;  %222 = vmatpush.bf16.msra.mxu0 %v2417_v3  ;;  %v2442_v12 = vor.u32 %v2183_v10, %v1957_v9  ;;  %v2207_v13 = vld [vmem:[%s3575_s2 + $0x158] sm:$0xf0]  ;;  %v1959_v15 = vld [vmem:[%s3575_s2 + $0x9c] sm:$0xf0] }
   0x5   :  { %446 = vmatpush.bf16.msra.mxu3 %v2428_v7  ;;  %235 = vmatpush.bf16.msra.mxu1 %v2430_v8  ;;  %v2455_v16 = vor.u32 %v2207_v13, %v2058_v11  ;;  %v2457_v17 = vor.u32 %v2182_v14, %v1959_v15  ;;  %v1945_v18 = vld [vmem:[%s3575_s2 + $0x78] sm:$0xf]  ;;  %v2180_v19 = vld [vmem:[%s3575_s2 + $0x80] sm:$0xf0]  ;;  %v2179_v22 = vld [vmem:[%s3575_s2 + $0x7c] sm:$0xf] }
   0x6   :  { %v2046_v20 = vld [vmem:[%s3575_s2 + $0x138] sm:$0xf]  ;;  %v2204_v21 = vld [vmem:[%s3575_s2 + $0x140] sm:$0xf0]  ;;  %v1947_v23 = vld [vmem:[%s3575_s2 + $0x84] sm:$0xf0]  ;;  %v2478_v24 = vor.u32 %v2180_v19, %v1945_v18 }
   0x7   :  { %v2482_v25 = vor.u32 %v2204_v21, %v2046_v20  ;;  %v2484_v26 = vor.u32 %v2179_v22, %v1947_v23  ;;  %v1933_v27 = vld [vmem:[%s3575_s2 + $0x60] sm:$0xf]  ;;  %v2177_v28 = vld [vmem:[%s3575_s2 + $0x68] sm:$0xf0]  ;;  %v2176_v31 = vld [vmem:[%s3575_s2 + $0x64] sm:$0xf] }
   0x8   :  { %223 = vmatpush.bf16.msra.mxu0 %v2442_v12  ;;  %v2034_v29 = vld [vmem:[%s3575_s2 + $0x120] sm:$0xf]  ;;  %v2201_v30 = vld [vmem:[%s3575_s2 + $0x128] sm:$0xf0]  ;;  %v1935_v32 = vld [vmem:[%s3575_s2 + $0x6c] sm:$0xf0]  ;;  %v2508_v34 = vor.u32 %v2177_v28, %v1933_v27 }
   0x9   :  { %447 = vmatpush.bf16.msra.mxu3 %v2455_v16  ;;  %236 = vmatpush.bf16.msra.mxu1 %v2457_v17  ;;  %v1977_v33 = vld [vmem:[%s3575_s2 + $0xb0] sm:$0xf]  ;;  %v1921_v35 = vld [vmem:[%s3575_s2 + $0x48] sm:$0xf]  ;;  %v2174_v36 = vld [vmem:[%s3575_s2 + $0x50] sm:$0xf0]  ;;  %v2521_v38 = vor.u32 %v2201_v30, %v2034_v29  ;;  %v2523_v39 = vor.u32 %v2176_v31, %v1935_v32 }
   0xa   :  { %3613 = vst [vmem:[#allocation2_spill] sm:$0xff] %v2508_v34  ;;  %v2187_v37 = vld [vmem:[%s3575_s2 + $0xb8] sm:$0xf0]  ;;  %v2022_v40 = vld [vmem:[%s3575_s2 + $0x108] sm:$0xf]  ;;  %v2549_v48 = vor.u32 %v2174_v36, %v1921_v35  ;;  %v2668_v32 = vld [vmem:[%s3576_s1] sm:$0xff] }
   0xb   :  { %3614 = vst [vmem:[#allocation3_spill] sm:$0xff] %v2523_v39  ;;  %v2198_v41 = vld [vmem:[%s3575_s2 + $0x110] sm:$0xf0]  ;;  %v2173_v42 = vld [vmem:[%s3575_s2 + $0x4c] sm:$0xf]  ;;  %v2534_v43 = vor.u32 %v2187_v37, %v1977_v33 }
   0xc   :  { %224 = vmatpush.bf16.msra.mxu0 %v2478_v24  ;;  %v1923_v44 = vld [vmem:[%s3575_s2 + $0x54] sm:$0xf0]  ;;  %v2184_v46 = vld [vmem:[%s3575_s2 + $0xa0] sm:$0xf0]  ;;  %3615 = vst [vmem:[#allocation4_spill] sm:$0xff] %v2549_v48  ;;  %v2559_v51 = vor.u32 %v2198_v41, %v2022_v40  ;;  %v2685_v40 = vld [vmem:[%s3576_s1 + $0x8] sm:$0xff] }
   0xd   :  { %448 = vmatpush.bf16.msra.mxu3 %v2482_v25  ;;  %237 = vmatpush.bf16.msra.mxu1 %v2484_v26  ;;  %v1965_v45 = vld [vmem:[%s3575_s2 + $0x98] sm:$0xf]  ;;  %v1909_v49 = vld [vmem:[%s3575_s2 + $0x30] sm:$0xf]  ;;  %v2171_v50 = vld [vmem:[%s3575_s2 + $0x38] sm:$0xf0]  ;;  %v2561_v52 = vor.u32 %v2173_v42, %v1923_v44 }
   0xe   :  { %248 = vmatpush.bf16.msra.mxu2 %v2534_v43  ;;  %v2546_v47 = vor.u32 %v2184_v46, %v1965_v45  ;;  %v2010_v53 = vld [vmem:[%s3575_s2 + $0xf0] sm:$0xf]  ;;  %v1953_v54 = vld [vmem:[%s3575_s2 + $0x80] sm:$0xf]  ;;  %v2181_v55 = vld [vmem:[%s3575_s2 + $0x88] sm:$0xf0]  ;;  %v2585_v60 = vor.u32 %v2171_v50, %v1909_v49  ;;  %v93_v49 = vpack.c.bf16 %v2668_v32, %v2668_v32 }
   0xf   :  { %3616 = vst [vmem:[#allocation5_spill] sm:$0xff] %v2561_v52  ;;  %v2195_v56 = vld [vmem:[%s3575_s2 + $0xf8] sm:$0xf0]  ;;  %v2170_v57 = vld [vmem:[%s3575_s2 + $0x34] sm:$0xf]  ;;  %v2582_v59 = vor.u32 %v2181_v55, %v1953_v54 }
  0x10   :  { %225 = vmatpush.bf16.msra.mxu0 %v2508_v34  ;;  %v1911_v58 = vld [vmem:[%s3575_s2 + $0x3c] sm:$0xf0]  ;;  %3617 = vst [vmem:[#allocation6_spill] sm:$0xff] %v2585_v60  ;;  %v1941_v61 = vld [vmem:[%s3575_s2 + $0x68] sm:$0xf]  ;;  %v2595_v63 = vor.u32 %v2195_v56, %v2010_v53  ;;  %v2709_v53 = vpack.c.bf16 %v2685_v40, %v2685_v40 }
  0x11   :  { %449 = vmatpush.bf16.msra.mxu3 %v2521_v38  ;;  %238 = vmatpush.bf16.msra.mxu1 %v2523_v39  ;;  %v2178_v62 = vld [vmem:[%s3575_s2 + $0x70] sm:$0xf0]  ;;  %v2597_v0 = vor.u32 %v2170_v57, %v1911_v58  ;;  %v1897_v1 = vld [vmem:[%s3575_s2 + $0x18] sm:$0xf]  ;;  %v2168_v2 = vld [vmem:[%s3575_s2 + $0x20] sm:$0xf0] }
  0x12   :  { %249 = vmatpush.bf16.msra.mxu2 %v2546_v47  ;;  %v1998_v4 = vld [vmem:[%s3575_s2 + $0xd8] sm:$0xf]  ;;  %v2192_v5 = vld [vmem:[%s3575_s2 + $0xe0] sm:$0xf0]  ;;  %v2167_v6 = vld [vmem:[%s3575_s2 + $0x1c] sm:$0xf]  ;;  %v2618_v10 = vor.u32 %v2178_v62, %v1941_v61  ;;  %v2621_v11 = vor.u32 %v2168_v2, %v1897_v1 }
  0x13   :  { %3618 = vst [vmem:[#allocation7_spill] sm:$0xff] %v2597_v0  ;;  %v1899_v9 = vld [vmem:[%s3575_s2 + $0x24] sm:$0xf0]  ;;  %v1929_v13 = vld [vmem:[%s3575_s2 + $0x50] sm:$0xf]  ;;  %v2631_v15 = vor.u32 %v2192_v5, %v1998_v4 }
  0x14   :  { %226 = vmatpush.bf16.msra.mxu0 %v2549_v48  ;;  %3619 = vst [vmem:[#allocation8_spill] sm:$0xff] %v2621_v11  ;;  %v2175_v14 = vld [vmem:[%s3575_s2 + $0x58] sm:$0xf0]  ;;  %v2633_v18 = vor.u32 %v2167_v6, %v1899_v9  ;;  %v1885_v19 = vld [vmem:[%s3575_s2] sm:$0xf] }
  0x15   :  { %450 = vmatpush.bf16.msra.mxu3 %v2559_v51  ;;  %239 = vmatpush.bf16.msra.mxu1 %v2561_v52  ;;  %v2165_v20 = vld [vmem:[%s3575_s2 + $0x8] sm:$0xf0]  ;;  %v1986_v21 = vld [vmem:[%s3575_s2 + $0xc0] sm:$0xf]  ;;  %v2072_v27 = vld [vmem:[%s3575_s2 + $0x174] sm:$0xf0]  ;;  %v2660_v30 = vor.u32 %v2175_v14, %v1929_v13 }
  0x16   :  { %250 = vmatpush.bf16.msra.mxu2 %v2582_v59  ;;  %3620 = vst [vmem:[#allocation9_spill] sm:$0xff] %v2633_v18  ;;  %v2189_v22 = vld [vmem:[%s3575_s2 + $0xc8] sm:$0xf0]  ;;  %v2164_v28 = vld [vmem:[%s3575_s2 + $0x4] sm:$0xf]  ;;  %v2663_v31 = vor.u32 %v2165_v20, %v1885_v19 }
  0x17   :  { %v2209_v23 = vld [vmem:[%s3575_s2 + $0x16c] sm:$0xf]  ;;  %v1887_v29 = vld [vmem:[%s3575_s2 + $0xc] sm:$0xf0]  ;;  %v2211_v35 = vld [vmem:[%s3575_s2 + $0x178] sm:$0xf0]  ;;  %v2678_v36 = vor.u32 %v2189_v22, %v1986_v21 }
  0x18   :  { %227 = vmatpush.bf16.msra.mxu0 %v2585_v60  ;;  %3621 = vst [vmem:[#allocation10_spill] sm:$0xff] %v2663_v31  ;;  %v2078_v33 = vld [vmem:[%s3575_s2 + $0x170] sm:$0xf]  ;;  %v2680_v37 = vor.u32 %v2209_v23, %v2072_v27  ;;  %v1917_v41 = vld [vmem:[%s3575_s2 + $0x38] sm:$0xf]  ;;  %v2693_v44 = vor.u32 %v2164_v28, %v1887_v29 }
  0x19   :  { %451 = vmatpush.bf16.msra.mxu3 %v2595_v63  ;;  %240 = vmatpush.bf16.msra.mxu1 %v2597_v0  ;;  %v2172_v42 = vld [vmem:[%s3575_s2 + $0x40] sm:$0xf0]  ;;  %v2206_v45 = vld [vmem:[%s3575_s2 + $0x154] sm:$0xf]  ;;  %v2060_v46 = vld [vmem:[%s3575_s2 + $0x15c] sm:$0xf0]  ;;  %v2703_v50 = vor.u32 %v2211_v35, %v2078_v33 }
  0x1a   :  { %251 = vmatpush.bf16.msra.mxu2 %v2618_v10  ;;  %3622 = vst [vmem:[#allocation11_spill] sm:$0xff] %v2693_v44  ;;  %v2066_v54 = vld [vmem:[%s3575_s2 + $0x158] sm:$0xf]  ;;  %v2208_v55 = vld [vmem:[%s3575_s2 + $0x160] sm:$0xf0]  ;;  %v2717_v56 = vor.u32 %v2172_v42, %v1917_v41  ;;  %v2721_v57 = vor.u32 %v2206_v45, %v2060_v46 }
  0x1b   :  { %v1905_v58 = vld [vmem:[%s3575_s2 + $0x20] sm:$0xf]  ;;  %v2169_v61 = vld [vmem:[%s3575_s2 + $0x28] sm:$0xf0]  ;;  %v2203_v62 = vld [vmem:[%s3575_s2 + $0x13c] sm:$0xf]  ;;  %v2738_v2 = vor.u32 %v2208_v55, %v2066_v54 }
  0x1c   :  { %228 = vmatpush.bf16.msra.mxu0 %v2621_v11  ;;  %v2048_v1 = vld [vmem:[%s3575_s2 + $0x144] sm:$0xf0]  ;;  %v2054_v4 = vld [vmem:[%s3575_s2 + $0x140] sm:$0xf]  ;;  %v2205_v5 = vld [vmem:[%s3575_s2 + $0x148] sm:$0xf0]  ;;  %v2748_v6 = vor.u32 %v2169_v61, %v1905_v58 }
  0x1d   :  { %452 = vmatpush.bf16.msra.mxu3 %v2631_v15  ;;  %241 = vmatpush.bf16.msra.mxu1 %v2633_v18  ;;  %v2751_v9 = vor.u32 %v2203_v62, %v2048_v1  ;;  %v1893_v13 = vld [vmem:[%s3575_s2 + $0x8] sm:$0xf]  ;;  %v2166_v14 = vld [vmem:[%s3575_s2 + $0x10] sm:$0xf0]  ;;  %v2200_v19 = vld [vmem:[%s3575_s2 + $0x124] sm:$0xf]  ;;  %v2767_v21 = vor.u32 %v2205_v5, %v2054_v4 }
  0x1e   :  { %252 = vmatpush.bf16.msra.mxu2 %v2660_v30  ;;  %v2036_v20 = vld [vmem:[%s3575_s2 + $0x12c] sm:$0xf0]  ;;  %v2042_v22 = vld [vmem:[%s3575_s2 + $0x128] sm:$0xf]  ;;  %v2202_v23 = vld [vmem:[%s3575_s2 + $0x130] sm:$0xf0]  ;;  %v2776_v27 = vor.u32 %v2166_v14, %v1893_v13 }
  0x1f   :  { %v2779_v28 = vor.u32 %v2200_v19, %v2036_v20  ;;  %v2197_v29 = vld [vmem:[%s3575_s2 + $0x10c] sm:$0xf]  ;;  %v2024_v33 = vld [vmem:[%s3575_s2 + $0x114] sm:$0xf0]  ;;  %v2789_v35 = vor.u32 %v2202_v23, %v2042_v22  ;;  %v2030_v41 = vld [vmem:[%s3575_s2 + $0x110] sm:$0xf] }
  0x20   :  { %229 = vmatpush.bf16.msra.mxu0 %v2663_v31  ;;  %v2199_v42 = vld [vmem:[%s3575_s2 + $0x118] sm:$0xf0]  ;;  %v2799_v45 = vor.u32 %v2197_v29, %v2024_v33  ;;  %v2194_v46 = vld [vmem:[%s3575_s2 + $0xf4] sm:$0xf]  ;;  %v2012_v54 = vld [vmem:[%s3575_s2 + $0xfc] sm:$0xf0] }
  0x21   :  { %453 = vmatpush.bf16.msra.mxu3 %v2678_v36  ;;  %242 = vmatpush.bf16.msra.mxu1 %v2693_v44  ;;  %v2810_v55 = vor.u32 %v2199_v42, %v2030_v41  ;;  %v2018_v58 = vld [vmem:[%s3575_s2 + $0xf8] sm:$0xf]  ;;  %v2196_v61 = vld [vmem:[%s3575_s2 + $0x100] sm:$0xf0]  ;;  %v2819_v62 = vor.u32 %v2194_v46, %v2012_v54  ;;  %v2191_v1 = vld [vmem:[%s3575_s2 + $0xdc] sm:$0xf] }
  0x22   :  { %253 = vmatpush.bf16.msra.mxu2 %v2717_v56  ;;  %v2830_v4 = vor.u32 %v2196_v61, %v2018_v58  ;;  %v2006_v5 = vld [vmem:[%s3575_s2 + $0xe0] sm:$0xf]  ;;  %v2193_v13 = vld [vmem:[%s3575_s2 + $0xe8] sm:$0xf0]  ;;  %v2188_v19 = vld [vmem:[%s3575_s2 + $0xc4] sm:$0xf] }
  0x23   :  { %230 = vmatmul.bf16.vlgmr.msra.gmra.mxu0 %v93_v49  ;;  %v1988_v20 = vld [vmem:[%s3575_s2 + $0xcc] sm:$0xf0]  ;;  %v2850_v22 = vor.u32 %v2193_v13, %v2006_v5  ;;  %v1994_v23 = vld [vmem:[%s3575_s2 + $0xc8] sm:$0xf]  ;;  %v2190_v29 = vld [vmem:[%s3575_s2 + $0xd0] sm:$0xf0] }
  0x24   :  { %459 = vmatpush.bf16.msrb.mxu0 %v2680_v37  ;;  %454 = vmatmul.bf16.vlgmr.msra.gmra.mxu3 %v2709_v53  ;;  %3623 = vst [vmem:[#allocation12_spill] sm:$0xff] %v2830_v4  ;;  %v2859_v33 = vor.u32 %v2188_v19, %v1988_v20  ;;  %v2864_v41 = vor.u32 %v2190_v29, %v1994_v23  ;;  %v91_v46 = vld [vmem:[%s3578_s0 + $0x8] sm:$0xff] }
  0x25   :  { %556 = vmatpush.bf16.msrb.mxu3 %v2430_v8  ;;  %472 = vmatpush.bf16.msrb.mxu1 %v2703_v50  ;;  %3624 = vst [vmem:[#allocation13_spill] sm:$0xff] %v2850_v22  ;;  %v1981_v5 = vld [vmem:[%s3578_s0 + $0x168] sm:$0xff] }
  0x26   :  { %243 = vmatmul.bf16.vlgmr.msra.gmra.mxu1 %v93_v49  ;;  %254 = vmatpush.bf16.msra.mxu2 %v2748_v6  ;;  %3625 = vst [vmem:[#allocation14_spill] sm:$0xff] %v2864_v41 }
  0x28   :  { %460 = vmatpush.bf16.msrb.mxu0 %v2721_v57 }
  0x29   :  { %557 = vmatpush.bf16.msrb.mxu3 %v2457_v17  ;;  %473 = vmatpush.bf16.msrb.mxu1 %v2738_v2 }
  0x2a   :  { %255 = vmatpush.bf16.msra.mxu2 %v2776_v27 }
  0x2c   :  { %461 = vmatpush.bf16.msrb.mxu0 %v2751_v9 }
  0x2d   :  { %558 = vmatpush.bf16.msrb.mxu3 %v2484_v26  ;;  %474 = vmatpush.bf16.msrb.mxu1 %v2767_v21 }
  0x2e   :  { %543 = vmatpush.bf16.msrb.mxu2 %v2417_v3 }
  0x2f   :  { %256 = vmatmul.bf16.vlgmr.msra.gmra.mxu2 %v93_v49  ;;  %v2000_v49 = vld [vmem:[%s3575_s2 + $0xe4] sm:$0xf0] }
  0x30   :  { %462 = vmatpush.bf16.msrb.mxu0 %v2779_v28  ;;  %v2839_v14 = vor.u32 %v2191_v1, %v2000_v49 }
  0x31   :  { %559 = vmatpush.bf16.msrb.mxu3 %v2523_v39  ;;  %475 = vmatpush.bf16.msrb.mxu1 %v2789_v35 }
  0x32   :  { %544 = vmatpush.bf16.msrb.mxu2 %v2442_v12 }
  0x34   :  { %463 = vmatpush.bf16.msrb.mxu0 %v2799_v45 }
  0x35   :  { %560 = vmatpush.bf16.msrb.mxu3 %v2561_v52  ;;  %476 = vmatpush.bf16.msrb.mxu1 %v2810_v55 }
  0x36   :  { %545 = vmatpush.bf16.msrb.mxu2 %v2478_v24 }
  0x38   :  { %464 = vmatpush.bf16.msrb.mxu0 %v2819_v62 }
  0x39   :  { %561 = vmatpush.bf16.msrb.mxu3 %v2597_v0  ;;  %477 = vmatpush.bf16.msrb.mxu1 %v2830_v4 }
  0x3a   :  { %546 = vmatpush.bf16.msrb.mxu2 %v2508_v34 }
  0x3c   :  { %465 = vmatpush.bf16.msrb.mxu0 %v2839_v14 }
  0x3d   :  { %562 = vmatpush.bf16.msrb.mxu3 %v2633_v18  ;;  %478 = vmatpush.bf16.msrb.mxu1 %v2850_v22 }
  0x3e   :  { %547 = vmatpush.bf16.msrb.mxu2 %v2549_v48 }
  0x40   :  { %466 = vmatpush.bf16.msrb.mxu0 %v2859_v33 }
  0x41   :  { %563 = vmatpush.bf16.msrb.mxu3 %v2693_v44  ;;  %479 = vmatpush.bf16.msrb.mxu1 %v2864_v41 }
  0x42   :  { %548 = vmatpush.bf16.msrb.mxu2 %v2585_v60 }
  0x43   :  { %467 = vmatmul.bf16.vlgmr.msrb.gmra.mxu0 %v2709_v53 }
  0x44   :  { %569 = vmatpush.bf16.msra.mxu0 %v2534_v43  ;;  %480 = vmatmul.bf16.vlgmr.msrb.gmra.mxu1 %v2709_v53  ;;  %v90_v53 = vld [vmem:[%s3578_s0] sm:$0xff] }
  0x45   :  { %663 = vmatpush.bf16.msra.mxu3 %v2703_v50  ;;  %637 = vmatpush.bf16.msra.mxu1 %v2428_v7 }
  0x46   :  { %549 = vmatpush.bf16.msrb.mxu2 %v2621_v11 }
  0x48   :  { %570 = vmatpush.bf16.msra.mxu0 %v2546_v47 }
  0x49   :  { %664 = vmatpush.bf16.msra.mxu3 %v2738_v2  ;;  %638 = vmatpush.bf16.msra.mxu1 %v2455_v16 }
  0x4a   :  { %550 = vmatpush.bf16.msrb.mxu2 %v2663_v31 }
  0x4c   :  { %571 = vmatpush.bf16.msra.mxu0 %v2582_v59 }
  0x4d   :  { %665 = vmatpush.bf16.msra.mxu3 %v2767_v21  ;;  %639 = vmatpush.bf16.msra.mxu1 %v2482_v25 }
  0x4e   :  { %650 = vmatpush.bf16.msra.mxu2 %v2680_v37 }
  0x50   :  { %572 = vmatpush.bf16.msra.mxu0 %v2618_v10 }
  0x51   :  { %666 = vmatpush.bf16.msra.mxu3 %v2789_v35  ;;  %640 = vmatpush.bf16.msra.mxu1 %v2521_v38 }
  0x52   :  { %651 = vmatpush.bf16.msra.mxu2 %v2721_v57 }
  0x54   :  { %573 = vmatpush.bf16.msra.mxu0 %v2660_v30 }
  0x55   :  { %667 = vmatpush.bf16.msra.mxu3 %v2810_v55  ;;  %641 = vmatpush.bf16.msra.mxu1 %v2559_v51 }
  0x56   :  { %652 = vmatpush.bf16.msra.mxu2 %v2751_v9 }
  0x58   :  { %574 = vmatpush.bf16.msra.mxu0 %v2717_v56 }
  0x59   :  { %668 = vmatpush.bf16.msra.mxu3 %v2830_v4  ;;  %642 = vmatpush.bf16.msra.mxu1 %v2595_v63 }
  0x5a   :  { %653 = vmatpush.bf16.msra.mxu2 %v2779_v28 }
  0x5c   :  { %575 = vmatpush.bf16.msra.mxu0 %v2748_v6 }
  0x5d   :  { %669 = vmatpush.bf16.msra.mxu3 %v2850_v22  ;;  %643 = vmatpush.bf16.msra.mxu1 %v2631_v15 }
  0x5e   :  { %654 = vmatpush.bf16.msra.mxu2 %v2799_v45 }
  0x60   :  { %576 = vmatpush.bf16.msra.mxu0 %v2776_v27 }
  0x61   :  { %670 = vmatpush.bf16.msra.mxu3 %v2864_v41  ;;  %644 = vmatpush.bf16.msra.mxu1 %v2678_v36 }
  0x62   :  { %655 = vmatpush.bf16.msra.mxu2 %v2819_v62 }
  0x64   :  { %731 = vmatpush.bf16.msrb.mxu0 %v2417_v3 }
  0x65   :  { %744 = vmatpush.bf16.msrb.mxu1 %v2430_v8 }
  0x66   :  { %656 = vmatpush.bf16.msra.mxu2 %v2839_v14 }
  0x68   :  { %732 = vmatpush.bf16.msrb.mxu0 %v2442_v12 }
  0x69   :  { %745 = vmatpush.bf16.msrb.mxu1 %v2457_v17 }
  0x6a   :  { %657 = vmatpush.bf16.msra.mxu2 %v2859_v33 }
  0x6c   :  { %733 = vmatpush.bf16.msrb.mxu0 %v2478_v24 }
  0x6d   :  { %746 = vmatpush.bf16.msrb.mxu1 %v2484_v26 }
  0x70   :  { %734 = vmatpush.bf16.msrb.mxu0 %v2508_v34 }
  0x71   :  { %747 = vmatpush.bf16.msrb.mxu1 %v2523_v39 }
  0x74   :  { %735 = vmatpush.bf16.msrb.mxu0 %v2549_v48 }
  0x75   :  { %748 = vmatpush.bf16.msrb.mxu1 %v2561_v52 }
  0x78   :  { %736 = vmatpush.bf16.msrb.mxu0 %v2585_v60 }
  0x79   :  { %749 = vmatpush.bf16.msrb.mxu1 %v2597_v0 }
  0x7c   :  { %737 = vmatpush.bf16.msrb.mxu0 %v2621_v11 }
  0x7d   :  { %750 = vmatpush.bf16.msrb.mxu1 %v2633_v18 }
  0x80   :  { %738 = vmatpush.bf16.msrb.mxu0 %v2663_v31 }
  0x81   :  { %751 = vmatpush.bf16.msrb.mxu1 %v2693_v44 }
  0xa0   :  { %v231_v42 = vpop.f32.mrf.mxu0 }
  0xa1   :  { %v261_v54 = vadd.f32 %v231_v42, %v90_v53 }
  0xa3   :  { %v244_v58 = vpop.f32.mrf.mxu1  ;;  %v1979_v61 = vmul.f32 -1.442695, %v261_v54 }
  0xa4   :  { %v281_v1 = vadd.f32 %v244_v58, %v91_v46 }
  0xa5   :  { %2214 = vpow2.f32 %v1979_v61 }
  0xa6   :  { %v1980_v49 = vmul.f32 -1.442695, %v281_v1 }
  0xa7   :  { %v455_v13 = vpop.f32.mrf.mxu3 }
  0xa8   :  { %2216 = vpow2.f32 %v1980_v49  ;;  %v485_v19 = vadd.f32 %v1981_v5, %v455_v13  ;;  %v233_v20 = vpop.f32.mrf.mxu0 }
  0xaa   :  { %v2080_v23 = vmul.f32 -1.442695, %v485_v19 }
  0xab   :  { %v246_v29 = vpop.f32.mrf.mxu1  ;;  %v2215_v44 = vpop.eup %2214 }
  0xac   :  { %v265_v31 = vadd.f32 1.0, %v2215_v44  ;;  %2218 = vpow2.f32 %v2080_v23  ;;  %v2938_v44 = vld [vmem:[%s3577_s3] ss:$0 sm:$0xff] }
  0xad   :  { %3626 = vst [vmem:[#allocation15_spill] sm:$0xff] %v2938_v44 }
  0xae   :  { %v2217_v18 = vpop.eup %2216  ;;  %2220 = vrcp.f32 %v265_v31  ;;  %vm271_vm0 = vweird.f32 %v265_v31  ;;  %v275_v23 = vand.u32 2147483647, %v265_v31 }
  0xaf   :  { %v285_v53 = vadd.f32 1.0, %v2217_v18  ;;  %v457_v42 = vpop.f32.mrf.mxu3  ;;  %v277_v18 = vand.u32 2147483648, %v265_v31 }
  0xb0   :  { %vm276_vm5 = vcmp.eq.f32.partialorder %v275_v23, 8.507059e+37 }
  0xb1   :  { %2222 = vrcp.f32 %v285_v53  ;;  %vm291_vm2 = vweird.f32 %v285_v53  ;;  %v278_v60 = vor.u32 1.1754944e-38, %v277_v18 }
  0xb2   :  { %v2219_v46 = vpop.eup %2218  ;;  %v257_v54 = vpop.f32.mrf.mxu2 }
  0xb3   :  { %v2932_v58 = vadd.f32 1.0, %v2219_v46  ;;  %v304_v0 = vadd.f32 %v2938_v44, %v257_v54 }
  0xb4   :  { %v2221_v61 = vpop.eup %2220 }
  0xb5   :  { %2224 = vrcp.f32 %v2932_v58  ;;  %v267_v1 = vmul.f32 %v2221_v61, %v265_v31  ;;  %vm272_vm1 = vweird.f32 %v2221_v61  ;;  %vm495_vm8 = vweird.f32 %v2932_v58 }
  0xb6   :  { %vm273_vm3 = vmor %vm271_vm0, %vm272_vm1 }
  0xb7   :  { %v2223_v49 = vpop.eup %2222  ;;  %v268_v13 = vsub.f32 1.0, %v267_v1  ;;  %v1982_v1 = vld [vmem:[%s3578_s0 + $0x170] sm:$0xff] }
  0xb8   :  { %v287_v5 = vmul.f32 %v2223_v49, %v285_v53  ;;  %vm292_vm4 = vweird.f32 %v2223_v49 }
  0xb9   :  { %v269_v20 = vmul.f32 %v2221_v61, %v268_v13  ;;  %vm2949_vm6 = vmor %vm291_vm2, %vm292_vm4 }
  0xba   :  { %v288_v19 = vsub.f32 1.0, %v287_v5  ;;  %v259_v29 = vpop.f32.mrf.mxu2  ;;  %v297_v5 = vand.u32 2147483648, %v285_v53 }
  0xbb   :  { %v2225_v42 = vpop.eup %2224  ;;  %v270_v11 = vadd.f32 %v2221_v61, %v269_v20  ;;  %v295_v29 = vand.u32 2147483647, %v285_v53 }
  0xbc   :  { %v289_v46 = vmul.f32 %v2223_v49, %v288_v19  ;;  %v491_v41 = vmul.f32 %v2225_v42, %v2932_v58  ;;  %v92_v19 = vld [vmem:[%s3578_s0 + $0x10] sm:$0xff]  ;;  %v298_v23 = vor.u32 1.1754944e-38, %v297_v5  ;;  %vm496_vm9 = vweird.f32 %v2225_v42 }
  0xbd   :  { %v274_v13 = vsel %vm273_vm3, %v2221_v61, %v270_v11  ;;  %vm296_vm7 = vcmp.eq.f32.partialorder %v295_v29, 8.507059e+37  ;;  %vm2958_vm10 = vmor %vm495_vm8, %vm496_vm9 }
  0xbe   :  { %v279_v54 = vsel %vm276_vm5, %v278_v60, %v274_v13  ;;  %v492_v44 = vsub.f32 1.0, %v491_v41  ;;  %v290_v52 = vadd.f32 %v2223_v49, %v289_v46  ;;  %v501_v60 = vand.u32 2147483648, %v2932_v58 }
  0xbf   :  { %v305_v48 = vmul.f32 %v304_v0, %v279_v54  ;;  %v499_v41 = vand.u32 2147483647, %v2932_v58 }
  0xc0   :  { %v468_v31 = vpop.f32.mrf.mxu0  ;;  %v493_v61 = vmul.f32 %v2225_v42, %v492_v44  ;;  %v294_v34 = vsel %vm2949_vm6, %v2223_v49, %v290_v52  ;;  %v502_v44 = vor.u32 1.1754944e-38, %v501_v60 }
  0xc1   :  { %v505_v20 = vadd.f32 %v1982_v1, %v468_v31  ;;  %v481_v22 = vpop.f32.mrf.mxu1  ;;  %v306_v11 = vadd.f32 %v305_v48, %v92_v19  ;;  %v299_v46 = vsel %vm296_vm7, %v298_v23, %v294_v34  ;;  %vm500_vm11 = vcmp.eq.f32.partialorder %v499_v41, 8.507059e+37 }
  0xc2   :  { %v494_v0 = vadd.f32 %v2225_v42, %v493_v61  ;;  %v308_v1 = vsub.f32 1.0, %v299_v46  ;;  %v310_v31 = vmul.f32 %v299_v46, %v2668_v32 }
  0xc3   :  { %v2081_v39 = vmul.f32 -1.442695, %v505_v20 }
  0xc4   :  { %v498_v58 = vsel %vm2958_vm10, %v2225_v42, %v494_v0  ;;  %v1983_v42 = vld [vmem:[%s3578_s0 + $0x178] sm:$0xff] }
  0xc5   :  { %2226 = vpow2.f32 %v2081_v39  ;;  %v2965_v39 = vld [vmem:[%s3577_s3 + $0x1] ss:$0 sm:$0xff]  ;;  %v503_v19 = vsel %vm500_vm11, %v502_v44, %v498_v58  ;;  %v3632_v58 = vld [vmem:[#allocation3_spill] sm:$0xff] }
  0xc6   :  { %2228 = vtanh.f32 %v306_v11  ;;  %v528_v29 = vadd.f32 %v2965_v39, %v481_v22 }
  0xc8   :  { %v470_v53 = vpop.f32.mrf.mxu0  ;;  %v529_v18 = vmul.f32 %v528_v29, %v503_v19  ;;  %v3635_v29 = vld [vmem:[#allocation5_spill] sm:$0xff]  ;;  %v3636_v19 = vld [vmem:[#allocation14_spill] sm:$0xff] }
  0xc9   :  { %v483_v52 = vpop.f32.mrf.mxu1 }
  0xca   :  { %v530_v11 = vadd.f32 %v1983_v42, %v529_v18  ;;  %v3638_v18 = vld [vmem:[#allocation7_spill] sm:$0xff]  ;;  %v3639_v42 = vld [vmem:[#allocation8_spill] sm:$0xff] }
  0xcb   :  { %v2227_v49 = vpop.eup %2226 }
  0xcc   :  { %v2229_v5 = vpop.eup %2228  ;;  %v509_v13 = vadd.f32 1.0, %v2227_v49 }
  0xcd   :  { %v309_v34 = vmul.f32 %v2229_v5, %v308_v1 }
  0xce   :  { %2230 = vrcp.f32 %v509_v13  ;;  %v521_v23 = vand.u32 2147483648, %v509_v13  ;;  %v519_v0 = vand.u32 2147483647, %v509_v13  ;;  %vm515_vm13 = vweird.f32 %v509_v13 }
  0xcf   :  { %v2971_v54 = vadd.f32 %v310_v31, %v309_v34  ;;  %2232 = vtanh.f32 %v530_v11  ;;  %v3633_v34 = vld [vmem:[#allocation13_spill] sm:$0xff]  ;;  %v3634_v31 = vld [vmem:[#allocation4_spill] sm:$0xff]  ;;  %v3642_v11 = vld [vmem:[#allocation11_spill] sm:$0xff] }
  0xd0   :  { %v522_v53 = vor.u32 1.1754944e-38, %v521_v23  ;;  %vm520_vm15 = vcmp.eq.f32.partialorder %v519_v0, 8.507059e+37  ;;  %v2083_v23 = vld [vmem:[%s3578_s0 + $0x30] sm:$0xff] }
  0xd1   :  { %312 = vst [vmem:[%s3579_s4] sm:$0xff] %v2971_v54  ;;  %v542_v20 = vpack.c.bf16 %v2971_v54, %v2971_v54 }
  0xd3   :  { %551 = vmatmul.bf16.vlgmr.msrb.gmra.mxu2 %v542_v20  ;;  %564 = vmatmul.bf16.vlgmr.msrb.gmra.mxu3 %v542_v20 }
  0xd4   :  { %v2231_v32 = vpop.eup %2230  ;;  %577 = vmatmul.bf16.vlgmr.msra.gmra.mxu0 %v542_v20  ;;  %757 = vmatpush.bf16.msrb.mxu2 %v2534_v43  ;;  %v3637_v20 = vld [vmem:[#allocation6_spill] sm:$0xff] }
  0xd5   :  { %v511_v22 = vmul.f32 %v2231_v32, %v509_v13  ;;  %825 = vmatpush.bf16.msrb.mxu3 %v2428_v7  ;;  %838 = vmatpush.bf16.msra.mxu0 %v2680_v37  ;;  %vm516_vm12 = vweird.f32 %v2231_v32  ;;  %v2233_v49 = vpop.eup %2232 }
  0xd6   :  { %vm517_vm14 = vmor %vm515_vm13, %vm516_vm12 }
  0xd7   :  { %v512_v61 = vsub.f32 1.0, %v511_v22  ;;  %v3641_v22 = vld [vmem:[#allocation10_spill] sm:$0xff] }
  0xd8   :  { %758 = vmatpush.bf16.msrb.mxu2 %v2546_v47 }
  0xd9   :  { %v513_v60 = vmul.f32 %v2231_v32, %v512_v61  ;;  %826 = vmatpush.bf16.msrb.mxu3 %v2455_v16  ;;  %839 = vmatpush.bf16.msra.mxu0 %v2721_v57 }
  0xdb   :  { %v514_v41 = vadd.f32 %v2231_v32, %v513_v60  ;;  %v2084_v60 = vld [vmem:[%s3578_s0 + $0x38] sm:$0xff] }
  0xdc   :  { %759 = vmatpush.bf16.msrb.mxu2 %v2582_v59 }
  0xdd   :  { %v518_v46 = vsel %vm517_vm14, %v2231_v32, %v514_v41  ;;  %827 = vmatpush.bf16.msrb.mxu3 %v2482_v25  ;;  %840 = vmatpush.bf16.msra.mxu0 %v2751_v9  ;;  %v3640_v32 = vld [vmem:[#allocation9_spill] sm:$0xff] }
  0xde   :  { %v523_v48 = vsel %vm520_vm15, %v522_v53, %v518_v46 }
  0xdf   :  { %v532_v52 = vsub.f32 1.0, %v523_v48  ;;  %v534_v1 = vmul.f32 %v2685_v40, %v523_v48  ;;  %v3631_v40 = vld [vmem:[#allocation2_spill] sm:$0xff] }
  0xe0   :  { %760 = vmatpush.bf16.msrb.mxu2 %v2618_v10 }
  0xe1   :  { %v533_v44 = vmul.f32 %v2233_v49, %v532_v52  ;;  %828 = vmatpush.bf16.msrb.mxu3 %v2521_v38  ;;  %841 = vmatpush.bf16.msra.mxu0 %v2779_v28 }
  0xe3   :  { %v2995_v5 = vadd.f32 %v534_v1, %v533_v44 }
  0xe4   :  { %761 = vmatpush.bf16.msrb.mxu2 %v2660_v30 }
  0xe5   :  { %2082 = vst [vmem:[%s3579_s4 + $0x78] sm:$0xff] %v2995_v5  ;;  %v636_v13 = vpack.c.bf16 %v2995_v5, %v2995_v5  ;;  %829 = vmatpush.bf16.msrb.mxu3 %v2559_v51  ;;  %842 = vmatpush.bf16.msra.mxu0 %v2799_v45 }
  0xe7   :  { %645 = vmatmul.bf16.vlgmr.msra.gmra.mxu1 %v636_v13  ;;  %658 = vmatmul.bf16.vlgmr.msra.gmra.mxu2 %v636_v13 }
  0xe8   :  { %671 = vmatmul.bf16.vlgmr.msra.gmra.mxu3 %v636_v13  ;;  %851 = vmatpush.bf16.msra.mxu1 %v2703_v50 }
  0xe9   :  { %762 = vmatpush.bf16.msrb.mxu2 %v2717_v56  ;;  %830 = vmatpush.bf16.msrb.mxu3 %v2595_v63 }
  0xea   :  { %843 = vmatpush.bf16.msra.mxu0 %v2819_v62 }
  0xec   :  { %852 = vmatpush.bf16.msra.mxu1 %v2738_v2 }
  0xed   :  { %763 = vmatpush.bf16.msrb.mxu2 %v2748_v6  ;;  %831 = vmatpush.bf16.msrb.mxu3 %v2631_v15 }
  0xee   :  { %844 = vmatpush.bf16.msra.mxu0 %v2839_v14 }
  0xf0   :  { %853 = vmatpush.bf16.msra.mxu1 %v2767_v21 }
  0xf1   :  { %764 = vmatpush.bf16.msrb.mxu2 %v2776_v27  ;;  %832 = vmatpush.bf16.msrb.mxu3 %v2678_v36 }
  0xf2   :  { %845 = vmatpush.bf16.msra.mxu0 %v2859_v33 }
  0xf4   :  { %854 = vmatpush.bf16.msra.mxu1 %v2789_v35 }
  0xf5   :  { %919 = vmatpush.bf16.msra.mxu2 %v2417_v3  ;;  %932 = vmatpush.bf16.msra.mxu3 %v2430_v8 }
  0xf8   :  { %855 = vmatpush.bf16.msra.mxu1 %v2810_v55 }
  0xf9   :  { %920 = vmatpush.bf16.msra.mxu2 %v2442_v12  ;;  %933 = vmatpush.bf16.msra.mxu3 %v2457_v17 }
  0xfc   :  { %856 = vmatpush.bf16.msra.mxu1 %v2830_v4 }
  0xfd   :  { %921 = vmatpush.bf16.msra.mxu2 %v2478_v24  ;;  %934 = vmatpush.bf16.msra.mxu3 %v2484_v26 }
 0x100   :  { %857 = vmatpush.bf16.msra.mxu1 %v3633_v34 }
 0x101   :  { %922 = vmatpush.bf16.msra.mxu2 %v3631_v40  ;;  %935 = vmatpush.bf16.msra.mxu3 %v3632_v58 }
 0x104   :  { %858 = vmatpush.bf16.msra.mxu1 %v3636_v19 }
 0x105   :  { %923 = vmatpush.bf16.msra.mxu2 %v3634_v31  ;;  %936 = vmatpush.bf16.msra.mxu3 %v3635_v29 }
 0x109   :  { %924 = vmatpush.bf16.msra.mxu2 %v3637_v20  ;;  %937 = vmatpush.bf16.msra.mxu3 %v3638_v18 }
 0x10d   :  { %925 = vmatpush.bf16.msra.mxu2 %v3639_v42  ;;  %938 = vmatpush.bf16.msra.mxu3 %v3640_v32  ;;  %v2089_v42 = vld [vmem:[%s3578_s0 + $0x138] sm:$0xff] }
 0x111   :  { %926 = vmatpush.bf16.msra.mxu2 %v3641_v22  ;;  %939 = vmatpush.bf16.msra.mxu3 %v3642_v11 }
 0x151   :  { %v578_v61 = vpop.f32.mrf.mxu0 }
 0x156   :  { %v552_v0 = vpop.f32.mrf.mxu2  ;;  %v565_v41 = vpop.f32.mrf.mxu3 }
 0x157   :  { %v582_v53 = vadd.f32 %v2083_v23, %v552_v0  ;;  %v602_v46 = vadd.f32 %v2084_v60, %v565_v41  ;;  %v2090_v0 = vld [vmem:[%s3578_s0 + $0x140] sm:$0xff] }
 0x159   :  { %v2086_v48 = vmul.f32 -1.442695, %v582_v53  ;;  %v2087_v52 = vmul.f32 -1.442695, %v602_v46  ;;  %v580_v49 = vpop.f32.mrf.mxu0 }
 0x15b   :  { %2234 = vpow2.f32 %v2086_v48 }
 0x15c   :  { %2236 = vpow2.f32 %v2087_v52 }
 0x15e   :  { %v554_v44 = vpop.f32.mrf.mxu2  ;;  %v567_v1 = vpop.f32.mrf.mxu3 }
 0x161   :  { %v2235_v13 = vpop.eup %2234 }
 0x162   :  { %v2237_v11 = vpop.eup %2236  ;;  %v586_v22 = vadd.f32 1.0, %v2235_v13 }
 0x163   :  { %v606_v32 = vadd.f32 1.0, %v2237_v11 }
 0x164   :  { %2238 = vrcp.f32 %v586_v22  ;;  %v646_v18 = vpop.f32.mrf.mxu1  ;;  %v598_v20 = vand.u32 2147483648, %v586_v22  ;;  %vm592_vm1 = vweird.f32 %v586_v22 }
 0x165   :  { %2240 = vrcp.f32 %v606_v32  ;;  %v676_v23 = vadd.f32 %v2089_v42, %v646_v18  ;;  %v596_v18 = vand.u32 2147483647, %v586_v22  ;;  %vm612_vm5 = vweird.f32 %v606_v32 }
 0x166   :  { %v599_v58 = vor.u32 1.1754944e-38, %v598_v20 }
 0x167   :  { %v2092_v60 = vmul.f32 -1.442695, %v676_v23  ;;  %vm597_vm3 = vcmp.eq.f32.partialorder %v596_v18, 8.507059e+37 }
 0x169   :  { %2242 = vpow2.f32 %v2092_v60 }
 0x16a   :  { %v2239_v41 = vpop.eup %2238  ;;  %v659_v53 = vpop.f32.mrf.mxu2 }
 0x16b   :  { %v2241_v46 = vpop.eup %2240  ;;  %v588_v48 = vmul.f32 %v2239_v41, %v586_v22  ;;  %v696_v52 = vadd.f32 %v2090_v0, %v659_v53  ;;  %v672_v11 = vpop.f32.mrf.mxu3  ;;  %vm593_vm0 = vweird.f32 %v2239_v41  ;;  %v3643_v0 = vld [vmem:[#allocation15_spill] sm:$0xff]  ;;  %v618_v22 = vand.u32 2147483648, %v606_v32 }
 0x16c   :  { %v608_v49 = vmul.f32 %v2241_v46, %v606_v32  ;;  %v648_v44 = vpop.f32.mrf.mxu1  ;;  %vm594_vm2 = vmor %vm592_vm1, %vm593_vm0  ;;  %v622_v53 = vadd.f32 %v3643_v0, %v578_v61  ;;  %vm613_vm4 = vweird.f32 %v2241_v46 }
 0x16d   :  { %v589_v1 = vsub.f32 1.0, %v588_v48  ;;  %v2093_v13 = vmul.f32 -1.442695, %v696_v52  ;;  %v2085_v44 = vld [vmem:[%s3578_s0 + $0x40] sm:$0xff]  ;;  %vm614_vm6 = vmor %vm612_vm5, %vm613_vm4 }
 0x16e   :  { %v609_v29 = vsub.f32 1.0, %v608_v49 }
 0x16f   :  { %v590_v31 = vmul.f32 %v2239_v41, %v589_v1  ;;  %2244 = vpow2.f32 %v2093_v13  ;;  %v2243_v42 = vpop.eup %2242  ;;  %v616_v1 = vand.u32 2147483647, %v606_v32 }
 0x170   :  { %v610_v23 = vmul.f32 %v2241_v46, %v609_v29  ;;  %v680_v60 = vadd.f32 1.0, %v2243_v42 }
 0x171   :  { %v591_v19 = vadd.f32 %v2239_v41, %v590_v31  ;;  %vm617_vm7 = vcmp.eq.f32.partialorder %v616_v1, 8.507059e+37  ;;  %v716_v1 = vadd.f32 %v2965_v39, %v672_v11 }
 0x172   :  { %v661_v40 = vpop.f32.mrf.mxu2  ;;  %2246 = vrcp.f32 %v680_v60  ;;  %v611_v49 = vadd.f32 %v2241_v46, %v610_v23  ;;  %v692_v18 = vand.u32 2147483648, %v680_v60  ;;  %vm686_vm9 = vweird.f32 %v680_v60 }
 0x173   :  { %v595_v34 = vsel %vm594_vm2, %v2239_v41, %v591_v19  ;;  %v674_v48 = vpop.f32.mrf.mxu3  ;;  %v619_v41 = vor.u32 1.1754944e-38, %v618_v22 }
 0x174   :  { %v600_v52 = vsel %vm597_vm3, %v599_v58, %v595_v34  ;;  %v615_v19 = vsel %vm614_vm6, %v2241_v46, %v611_v49 }
 0x175   :  { %v2245_v29 = vpop.eup %2244  ;;  %v623_v31 = vmul.f32 %v622_v53, %v600_v52  ;;  %v620_v34 = vsel %vm617_vm7, %v619_v41, %v615_v19  ;;  %v690_v53 = vand.u32 2147483647, %v680_v60  ;;  %v2091_v41 = vld [vmem:[%s3578_s0 + $0x148] sm:$0xff] }
 0x176   :  { %v700_v20 = vadd.f32 1.0, %v2245_v29  ;;  %v626_v48 = vsub.f32 1.0, %v620_v34  ;;  %v628_v46 = vmul.f32 %v620_v34, %v2971_v54 }
 0x177   :  { %v624_v40 = vadd.f32 %v2085_v44, %v623_v31  ;;  %v693_v31 = vor.u32 1.1754944e-38, %v692_v18  ;;  %vm691_vm11 = vcmp.eq.f32.partialorder %v690_v53, 8.507059e+37 }
 0x178   :  { %2248 = vrcp.f32 %v700_v20  ;;  %v2247_v61 = vpop.eup %2246  ;;  %vm706_vm13 = vweird.f32 %v700_v20 }
 0x179   :  { %2250 = vtanh.f32 %v624_v40  ;;  %v682_v58 = vmul.f32 %v2247_v61, %v680_v60  ;;  %vm687_vm8 = vweird.f32 %v2247_v61  ;;  %v712_v60 = vand.u32 2147483648, %v700_v20 }
 0x17a   :  { %vm688_vm10 = vmor %vm686_vm9, %vm687_vm8 }
 0x17b   :  { %v683_v13 = vsub.f32 1.0, %v682_v58 }
 0x17d   :  { %v684_v23 = vmul.f32 %v2247_v61, %v683_v13 }
 0x17e   :  { %v2249_v42 = vpop.eup %2248 }
 0x17f   :  { %v2251_v52 = vpop.eup %2250  ;;  %v702_v32 = vmul.f32 %v2249_v42, %v700_v20  ;;  %v685_v29 = vadd.f32 %v2247_v61, %v684_v23  ;;  %vm707_vm12 = vweird.f32 %v2249_v42  ;;  %v713_v23 = vor.u32 1.1754944e-38, %v712_v60  ;;  %v3654_v60 = vld [vmem:[#allocation10_spill] sm:$0xff] }
 0x180   :  { %v627_v44 = vmul.f32 %v2251_v52, %v626_v48  ;;  %vm708_vm14 = vmor %vm706_vm13, %vm707_vm12 }
 0x181   :  { %v703_v49 = vsub.f32 1.0, %v702_v32  ;;  %v689_v22 = vsel %vm688_vm10, %v2247_v61, %v685_v29  ;;  %v710_v61 = vand.u32 2147483647, %v700_v20 }
 0x182   :  { %v3057_v40 = vadd.f32 %v628_v46, %v627_v44  ;;  %v694_v58 = vsel %vm691_vm11, %v693_v31, %v689_v22  ;;  %v3645_v44 = vld [vmem:[#allocation2_spill] sm:$0xff]  ;;  %v3646_v46 = vld [vmem:[#allocation3_spill] sm:$0xff]  ;;  %v3648_v31 = vld [vmem:[#allocation4_spill] sm:$0xff] }
 0x183   :  { %v704_v19 = vmul.f32 %v2249_v42, %v703_v49  ;;  %v717_v13 = vmul.f32 %v716_v1, %v694_v58  ;;  %vm711_vm15 = vcmp.eq.f32.partialorder %v710_v61, 8.507059e+37  ;;  %v3647_v49 = vld [vmem:[#allocation14_spill] sm:$0xff]  ;;  %v3649_v22 = vld [vmem:[#allocation5_spill] sm:$0xff] }
 0x184   :  { %2088 = vst [vmem:[%s3579_s4 + $0x10] sm:$0xff] %v3057_v40  ;;  %v730_v54 = vpack.c.bf16 %v3057_v40, %v3057_v40  ;;  %v3650_v1 = vld [vmem:[#allocation6_spill] sm:$0xff]  ;;  %v3653_v58 = vld [vmem:[#allocation9_spill] sm:$0xff] }
 0x185   :  { %v705_v11 = vadd.f32 %v2249_v42, %v704_v19  ;;  %v718_v34 = vadd.f32 %v2091_v41, %v717_v13  ;;  %v3651_v19 = vld [vmem:[#allocation7_spill] sm:$0xff]  ;;  %v3652_v41 = vld [vmem:[#allocation8_spill] sm:$0xff] }
 0x186   :  { %739 = vmatmul.bf16.vlgmr.msrb.gmra.mxu0 %v730_v54  ;;  %752 = vmatmul.bf16.vlgmr.msrb.gmra.mxu1 %v730_v54  ;;  %v3655_v13 = vld [vmem:[#allocation11_spill] sm:$0xff] }
 0x187   :  { %v709_v18 = vsel %vm708_vm14, %v2249_v42, %v705_v11  ;;  %765 = vmatmul.bf16.vlgmr.msrb.gmra.mxu2 %v730_v54  ;;  %945 = vmatpush.bf16.msrb.mxu0 %v2534_v43  ;;  %2252 = vtanh.f32 %v718_v34  ;;  %v2095_v54 = vld [vmem:[%s3578_s0 + $0x60] sm:$0xff]  ;;  %v2096_v11 = vld [vmem:[%s3578_s0 + $0x68] sm:$0xff] }
 0x188   :  { %1013 = vmatpush.bf16.msrb.mxu1 %v2428_v7  ;;  %1026 = vmatpush.bf16.msrb.mxu2 %v2680_v37  ;;  %v714_v53 = vsel %vm711_vm15, %v713_v23, %v709_v18 }
 0x189   :  { %v720_v20 = vsub.f32 1.0, %v714_v53  ;;  %v722_v52 = vmul.f32 %v714_v53, %v2995_v5  ;;  %v3644_v5 = vld [vmem:[#allocation13_spill] sm:$0xff] }
 0x18b   :  { %946 = vmatpush.bf16.msrb.mxu0 %v2546_v47 }
 0x18c   :  { %1014 = vmatpush.bf16.msrb.mxu1 %v2455_v16  ;;  %1027 = vmatpush.bf16.msrb.mxu2 %v2721_v57 }
 0x18d   :  { %v2253_v48 = vpop.eup %2252 }
 0x18e   :  { %v721_v42 = vmul.f32 %v2253_v48, %v720_v20 }
 0x18f   :  { %947 = vmatpush.bf16.msrb.mxu0 %v2582_v59 }
 0x190   :  { %1015 = vmatpush.bf16.msrb.mxu1 %v2482_v25  ;;  %1028 = vmatpush.bf16.msrb.mxu2 %v2751_v9  ;;  %v3078_v32 = vadd.f32 %v722_v52, %v721_v42 }
 0x192   :  { %2094 = vst [vmem:[%s3579_s4 + $0x68] sm:$0xff] %v3078_v32  ;;  %v824_v29 = vpack.c.bf16 %v3078_v32, %v3078_v32 }
 0x193   :  { %948 = vmatpush.bf16.msrb.mxu0 %v2618_v10 }
 0x194   :  { %1016 = vmatpush.bf16.msrb.mxu1 %v2521_v38  ;;  %1029 = vmatpush.bf16.msrb.mxu2 %v2779_v28 }
 0x195   :  { %833 = vmatmul.bf16.vlgmr.msrb.gmra.mxu3 %v824_v29 }
 0x196   :  { %846 = vmatmul.bf16.vlgmr.msra.gmra.mxu0 %v824_v29  ;;  %859 = vmatmul.bf16.vlgmr.msra.gmra.mxu1 %v824_v29 }
 0x197   :  { %949 = vmatpush.bf16.msrb.mxu0 %v2660_v30  ;;  %1039 = vmatpush.bf16.msrb.mxu3 %v2703_v50 }
 0x198   :  { %1017 = vmatpush.bf16.msrb.mxu1 %v2559_v51  ;;  %1030 = vmatpush.bf16.msrb.mxu2 %v2799_v45 }
 0x19b   :  { %950 = vmatpush.bf16.msrb.mxu0 %v2717_v56  ;;  %1040 = vmatpush.bf16.msrb.mxu3 %v2738_v2 }
 0x19c   :  { %1018 = vmatpush.bf16.msrb.mxu1 %v2595_v63  ;;  %1031 = vmatpush.bf16.msrb.mxu2 %v2819_v62 }
 0x19f   :  { %951 = vmatpush.bf16.msrb.mxu0 %v2748_v6  ;;  %1041 = vmatpush.bf16.msrb.mxu3 %v2767_v21 }
 0x1a0   :  { %1019 = vmatpush.bf16.msrb.mxu1 %v2631_v15  ;;  %1032 = vmatpush.bf16.msrb.mxu2 %v2839_v14 }
 0x1a3   :  { %952 = vmatpush.bf16.msrb.mxu0 %v2776_v27  ;;  %1042 = vmatpush.bf16.msrb.mxu3 %v2789_v35 }
 0x1a4   :  { %1020 = vmatpush.bf16.msrb.mxu1 %v2678_v36  ;;  %1033 = vmatpush.bf16.msrb.mxu2 %v2859_v33 }
 0x1a7   :  { %1106 = vmatpush.bf16.msra.mxu0 %v2417_v3  ;;  %1043 = vmatpush.bf16.msrb.mxu3 %v2810_v55 }
 0x1a8   :  { %1119 = vmatpush.bf16.msra.mxu1 %v2430_v8 }
 0x1ab   :  { %1107 = vmatpush.bf16.msra.mxu0 %v2442_v12  ;;  %1044 = vmatpush.bf16.msrb.mxu3 %v2830_v4 }
 0x1ac   :  { %1120 = vmatpush.bf16.msra.mxu1 %v2457_v17 }
 0x1af   :  { %1108 = vmatpush.bf16.msra.mxu0 %v2478_v24  ;;  %1045 = vmatpush.bf16.msrb.mxu3 %v3644_v5 }
 0x1b0   :  { %1121 = vmatpush.bf16.msra.mxu1 %v2484_v26 }
 0x1b3   :  { %1109 = vmatpush.bf16.msra.mxu0 %v3645_v44  ;;  %1046 = vmatpush.bf16.msrb.mxu3 %v3647_v49 }
 0x1b4   :  { %1122 = vmatpush.bf16.msra.mxu1 %v3646_v46 }
 0x1b7   :  { %1110 = vmatpush.bf16.msra.mxu0 %v3648_v31 }
 0x1b8   :  { %1123 = vmatpush.bf16.msra.mxu1 %v3649_v22 }
 0x1bb   :  { %1111 = vmatpush.bf16.msra.mxu0 %v3650_v1 }
 0x1bc   :  { %1124 = vmatpush.bf16.msra.mxu1 %v3651_v19 }
 0x1bf   :  { %1112 = vmatpush.bf16.msra.mxu0 %v3652_v41  ;;  %v2102_v41 = vld [vmem:[%s3578_s0 + $0x110] sm:$0xff] }
 0x1c0   :  { %1125 = vmatpush.bf16.msra.mxu1 %v3653_v58 }
 0x1c3   :  { %1113 = vmatpush.bf16.msra.mxu0 %v3654_v60 }
 0x1c4   :  { %1126 = vmatpush.bf16.msra.mxu1 %v3655_v13 }
 0x203   :  { %v740_v61 = vpop.f32.mrf.mxu0  ;;  %v753_v34 = vpop.f32.mrf.mxu1 }
 0x204   :  { %v770_v18 = vadd.f32 %v2095_v54, %v740_v61  ;;  %v790_v23 = vadd.f32 %v2096_v11, %v753_v34 }
 0x206   :  { %v2098_v53 = vmul.f32 -1.442695, %v770_v18  ;;  %v2099_v20 = vmul.f32 -1.442695, %v790_v23  ;;  %v2101_v18 = vld [vmem:[%s3578_s0 + $0x108] sm:$0xff] }
 0x208   :  { %2254 = vpow2.f32 %v2098_v53 }
 0x209   :  { %2256 = vpow2.f32 %v2099_v20 }
 0x20a   :  { %v766_v48 = vpop.f32.mrf.mxu2 }
 0x20b   :  { %v742_v42 = vpop.f32.mrf.mxu0  ;;  %v755_v52 = vpop.f32.mrf.mxu1 }
 0x20e   :  { %v2255_v29 = vpop.eup %2254 }
 0x20f   :  { %v2257_v13 = vpop.eup %2256  ;;  %v774_v60 = vadd.f32 1.0, %v2255_v29 }
 0x210   :  { %v794_v58 = vadd.f32 1.0, %v2257_v13 }
 0x211   :  { %2258 = vrcp.f32 %v774_v60  ;;  %v786_v1 = vand.u32 2147483648, %v774_v60  ;;  %vm780_vm1 = vweird.f32 %v774_v60 }
 0x212   :  { %2260 = vrcp.f32 %v794_v58  ;;  %v768_v19 = vpop.f32.mrf.mxu2  ;;  %vm800_vm5 = vweird.f32 %v794_v58 }
 0x213   :  { %v847_v54 = vpop.f32.mrf.mxu0  ;;  %v3134_v11 = vpop.f32.mrf.mxu1  ;;  %v787_v4 = vor.u32 1.1754944e-38, %v786_v1  ;;  %v804_v1 = vand.u32 2147483647, %v794_v58 }
 0x214   :  { %v884_v61 = vadd.f32 %v2102_v41, %v847_v54  ;;  %v784_v41 = vand.u32 2147483647, %v774_v60 }
 0x215   :  { %vm805_vm7 = vcmp.eq.f32.partialorder %v804_v1, 8.507059e+37 }
 0x216   :  { %v2105_v34 = vmul.f32 -1.442695, %v884_v61  ;;  %vm785_vm3 = vcmp.eq.f32.partialorder %v784_v41, 8.507059e+37 }
 0x217   :  { %v2259_v23 = vpop.eup %2258 }
 0x218   :  { %v2261_v53 = vpop.eup %2260  ;;  %v776_v20 = vmul.f32 %v2259_v23, %v774_v60  ;;  %2262 = vpow2.f32 %v2105_v34  ;;  %v834_v13 = vpop.f32.mrf.mxu3  ;;  %vm781_vm0 = vweird.f32 %v2259_v23 }
 0x219   :  { %v796_v42 = vmul.f32 %v2261_v53, %v794_v58  ;;  %v864_v52 = vadd.f32 %v2101_v18, %v834_v13  ;;  %vm782_vm2 = vmor %vm780_vm1, %vm781_vm0  ;;  %v810_v18 = vadd.f32 %v3643_v0, %v766_v48  ;;  %vm801_vm4 = vweird.f32 %v2261_v53 }
 0x21a   :  { %v777_v29 = vsub.f32 1.0, %v776_v20  ;;  %vm802_vm6 = vmor %vm800_vm5, %vm801_vm4 }
 0x21b   :  { %v797_v49 = vsub.f32 1.0, %v796_v42  ;;  %v2104_v19 = vmul.f32 -1.442695, %v864_v52  ;;  %v849_v22 = vpop.f32.mrf.mxu0  ;;  %v862_v5 = vpop.f32.mrf.mxu1 }
 0x21c   :  { %v778_v31 = vmul.f32 %v2259_v23, %v777_v29  ;;  %v2097_v5 = vld [vmem:[%s3578_s0 + $0x70] sm:$0xff]  ;;  %v806_v22 = vand.u32 2147483648, %v794_v58 }
 0x21d   :  { %v798_v54 = vmul.f32 %v2261_v53, %v797_v49  ;;  %2264 = vpow2.f32 %v2104_v19 }
 0x21e   :  { %v2263_v61 = vpop.eup %2262  ;;  %v779_v46 = vadd.f32 %v2259_v23, %v778_v31  ;;  %v807_v0 = vor.u32 1.1754944e-38, %v806_v22 }
 0x21f   :  { %v3139_v34 = vadd.f32 1.0, %v2263_v61  ;;  %v799_v13 = vadd.f32 %v2261_v53, %v798_v54 }
 0x220   :  { %v783_v44 = vsel %vm782_vm2, %v2259_v23, %v779_v46  ;;  %v836_v20 = vpop.f32.mrf.mxu3 }
 0x221   :  { %v788_v49 = vsel %vm785_vm3, %v787_v4, %v783_v44  ;;  %2266 = vrcp.f32 %v3139_v34  ;;  %v803_v23 = vsel %vm802_vm6, %v2261_v53, %v799_v13  ;;  %vm894_vm13 = vweird.f32 %v3139_v34 }
 0x222   :  { %v811_v42 = vmul.f32 %v810_v18, %v788_v49  ;;  %v808_v52 = vsel %vm805_vm7, %v807_v0, %v803_v23  ;;  %v900_v0 = vand.u32 2147483648, %v3139_v34 }
 0x223   :  { %v2265_v31 = vpop.eup %2264  ;;  %v814_v29 = vsub.f32 1.0, %v808_v52  ;;  %v816_v54 = vmul.f32 %v808_v52, %v3057_v40 }
 0x224   :  { %v812_v46 = vadd.f32 %v2097_v5, %v811_v42  ;;  %v868_v60 = vadd.f32 1.0, %v2265_v31  ;;  %v904_v31 = vadd.f32 %v2965_v39, %v3134_v11 }
 0x226   :  { %2268 = vtanh.f32 %v812_v46  ;;  %v880_v53 = vand.u32 2147483648, %v868_v60  ;;  %v878_v49 = vand.u32 2147483647, %v868_v60  ;;  %vm874_vm9 = vweird.f32 %v868_v60 }
 0x227   :  { %2270 = vrcp.f32 %v868_v60  ;;  %v2267_v48 = vpop.eup %2266 }
 0x228   :  { %v890_v4 = vmul.f32 %v2267_v48, %v3139_v34  ;;  %v881_v42 = vor.u32 1.1754944e-38, %v880_v53  ;;  %vm879_vm11 = vcmp.eq.f32.partialorder %v878_v49, 8.507059e+37  ;;  %vm895_vm12 = vweird.f32 %v2267_v48  ;;  %v3659_v53 = vld [vmem:[#allocation4_spill] sm:$0xff]  ;;  %v3662_v49 = vld [vmem:[#allocation6_spill] sm:$0xff] }
 0x229   :  { %vm896_vm14 = vmor %vm894_vm13, %vm895_vm12 }
 0x22a   :  { %v891_v58 = vsub.f32 1.0, %v890_v4  ;;  %v901_v4 = vor.u32 1.1754944e-38, %v900_v0  ;;  %v2108_v0 = vld [vmem:[%s3578_s0 + $0x98] sm:$0xff] }
 0x22c   :  { %v2269_v44 = vpop.eup %2268  ;;  %v892_v22 = vmul.f32 %v2267_v48, %v891_v58  ;;  %v3657_v58 = vld [vmem:[#allocation12_spill] sm:$0xff] }
 0x22d   :  { %v2271_v19 = vpop.eup %2270  ;;  %v815_v41 = vmul.f32 %v2269_v44, %v814_v29  ;;  %v898_v29 = vand.u32 2147483647, %v3139_v34 }
 0x22e   :  { %v870_v61 = vmul.f32 %v2271_v19, %v868_v60  ;;  %vm875_vm8 = vweird.f32 %v2271_v19  ;;  %v893_v46 = vadd.f32 %v2267_v48, %v892_v22  ;;  %v2103_v60 = vld [vmem:[%s3578_s0 + $0x118] sm:$0xff]  ;;  %v3663_v22 = vld [vmem:[#allocation14_spill] sm:$0xff] }
 0x22f   :  { %v3148_v18 = vadd.f32 %v816_v54, %v815_v41  ;;  %vm876_vm10 = vmor %vm874_vm9, %vm875_vm8  ;;  %vm899_vm15 = vcmp.eq.f32.partialorder %v898_v29, 8.507059e+37 }
 0x230   :  { %v871_v20 = vsub.f32 1.0, %v870_v61  ;;  %v897_v11 = vsel %vm896_vm14, %v2267_v48, %v893_v46  ;;  %v3668_v46 = vld [vmem:[#allocation11_spill] sm:$0xff] }
 0x231   :  { %2100 = vst [vmem:[%s3579_s4 + $0x20] sm:$0xff] %v3148_v18  ;;  %v918_v13 = vpack.c.bf16 %v3148_v18, %v3148_v18  ;;  %v902_v44 = vsel %vm899_vm15, %v901_v4, %v897_v11 }
 0x232   :  { %v872_v5 = vmul.f32 %v2271_v19, %v871_v20  ;;  %v908_v34 = vsub.f32 1.0, %v902_v44  ;;  %v910_v48 = vmul.f32 %v902_v44, %v3078_v32  ;;  %v3656_v32 = vld [vmem:[#allocation2_spill] sm:$0xff]  ;;  %v3658_v20 = vld [vmem:[#allocation3_spill] sm:$0xff] }
 0x233   :  { %927 = vmatmul.bf16.vlgmr.msra.gmra.mxu2 %v918_v13  ;;  %940 = vmatmul.bf16.vlgmr.msra.gmra.mxu3 %v918_v13 }
 0x234   :  { %v873_v40 = vadd.f32 %v2271_v19, %v872_v5  ;;  %953 = vmatmul.bf16.vlgmr.msrb.gmra.mxu0 %v918_v13  ;;  %1132 = vmatpush.bf16.msra.mxu2 %v2534_v43  ;;  %v3660_v13 = vld [vmem:[#allocation13_spill] sm:$0xff] }
 0x235   :  { %1198 = vmatpush.bf16.msra.mxu3 %v2428_v7  ;;  %1211 = vmatpush.bf16.msrb.mxu0 %v2680_v37  ;;  %v3661_v5 = vld [vmem:[#allocation5_spill] sm:$0xff] }
 0x236   :  { %v877_v1 = vsel %vm876_vm10, %v2271_v19, %v873_v40  ;;  %v3664_v40 = vld [vmem:[#allocation7_spill] sm:$0xff] }
 0x237   :  { %v882_v23 = vsel %vm879_vm11, %v881_v42, %v877_v1  ;;  %v3665_v42 = vld [vmem:[#allocation8_spill] sm:$0xff]  ;;  %v3667_v1 = vld [vmem:[#allocation10_spill] sm:$0xff] }
 0x238   :  { %v905_v52 = vmul.f32 %v904_v31, %v882_v23  ;;  %1133 = vmatpush.bf16.msra.mxu2 %v2546_v47  ;;  %v3666_v31 = vld [vmem:[#allocation9_spill] sm:$0xff] }
 0x239   :  { %1199 = vmatpush.bf16.msra.mxu3 %v2455_v16  ;;  %1212 = vmatpush.bf16.msrb.mxu0 %v2721_v57 }
 0x23a   :  { %v906_v39 = vadd.f32 %v2103_v60, %v905_v52  ;;  %v2107_v60 = vld [vmem:[%s3578_s0 + $0x90] sm:$0xff] }
 0x23c   :  { %2272 = vtanh.f32 %v906_v39  ;;  %1134 = vmatpush.bf16.msra.mxu2 %v2582_v59 }
 0x23d   :  { %1200 = vmatpush.bf16.msra.mxu3 %v2482_v25  ;;  %1213 = vmatpush.bf16.msrb.mxu0 %v2751_v9 }
 0x240   :  { %1135 = vmatpush.bf16.msra.mxu2 %v2618_v10 }
 0x241   :  { %1201 = vmatpush.bf16.msra.mxu3 %v2521_v38  ;;  %1214 = vmatpush.bf16.msrb.mxu0 %v2779_v28 }
 0x242   :  { %v2273_v19 = vpop.eup %2272 }
 0x243   :  { %v909_v41 = vmul.f32 %v2273_v19, %v908_v34 }
 0x244   :  { %1136 = vmatpush.bf16.msra.mxu2 %v2660_v30 }
 0x245   :  { %v3178_v54 = vadd.f32 %v910_v48, %v909_v41  ;;  %1202 = vmatpush.bf16.msra.mxu3 %v2559_v51  ;;  %1215 = vmatpush.bf16.msrb.mxu0 %v2799_v45 }
 0x247   :  { %2106 = vst [vmem:[%s3579_s4 + $0x58] sm:$0xff] %v3178_v54  ;;  %v1012_v61 = vpack.c.bf16 %v3178_v54, %v3178_v54 }
 0x248   :  { %1137 = vmatpush.bf16.msra.mxu2 %v2717_v56 }
 0x249   :  { %1021 = vmatmul.bf16.vlgmr.msrb.gmra.mxu1 %v1012_v61  ;;  %1034 = vmatmul.bf16.vlgmr.msrb.gmra.mxu2 %v1012_v61 }
 0x24a   :  { %1047 = vmatmul.bf16.vlgmr.msrb.gmra.mxu3 %v1012_v61  ;;  %1224 = vmatpush.bf16.msrb.mxu1 %v2703_v50 }
 0x24b   :  { %1203 = vmatpush.bf16.msra.mxu3 %v2595_v63  ;;  %1216 = vmatpush.bf16.msrb.mxu0 %v2819_v62 }
 0x24c   :  { %1138 = vmatpush.bf16.msra.mxu2 %v2748_v6 }
 0x24e   :  { %1225 = vmatpush.bf16.msrb.mxu1 %v2738_v2 }
 0x24f   :  { %1204 = vmatpush.bf16.msra.mxu3 %v2631_v15  ;;  %1217 = vmatpush.bf16.msrb.mxu0 %v2839_v14 }
 0x250   :  { %1139 = vmatpush.bf16.msra.mxu2 %v2776_v27 }
 0x252   :  { %1226 = vmatpush.bf16.msrb.mxu1 %v2767_v21 }
 0x253   :  { %1205 = vmatpush.bf16.msra.mxu3 %v2678_v36  ;;  %1218 = vmatpush.bf16.msrb.mxu0 %v2859_v33 }
 0x254   :  { %1290 = vmatpush.bf16.msrb.mxu2 %v2417_v3 }
 0x256   :  { %1227 = vmatpush.bf16.msrb.mxu1 %v2789_v35 }
 0x257   :  { %1303 = vmatpush.bf16.msrb.mxu3 %v2430_v8 }
 0x258   :  { %1291 = vmatpush.bf16.msrb.mxu2 %v2442_v12 }
 0x25a   :  { %1228 = vmatpush.bf16.msrb.mxu1 %v2810_v55 }
 0x25b   :  { %1304 = vmatpush.bf16.msrb.mxu3 %v2457_v17 }
 0x25c   :  { %1292 = vmatpush.bf16.msrb.mxu2 %v2478_v24 }
 0x25e   :  { %1229 = vmatpush.bf16.msrb.mxu1 %v3657_v58 }
 0x25f   :  { %1305 = vmatpush.bf16.msrb.mxu3 %v2484_v26 }
 0x260   :  { %1293 = vmatpush.bf16.msrb.mxu2 %v3656_v32 }
 0x262   :  { %1230 = vmatpush.bf16.msrb.mxu1 %v3660_v13 }
 0x263   :  { %1306 = vmatpush.bf16.msrb.mxu3 %v3658_v20 }
 0x264   :  { %1294 = vmatpush.bf16.msrb.mxu2 %v3659_v53 }
 0x266   :  { %1231 = vmatpush.bf16.msrb.mxu1 %v3663_v22 }
 0x267   :  { %1307 = vmatpush.bf16.msrb.mxu3 %v3661_v5 }
 0x268   :  { %1295 = vmatpush.bf16.msrb.mxu2 %v3662_v49 }
 0x26b   :  { %1308 = vmatpush.bf16.msrb.mxu3 %v3664_v40 }
 0x26c   :  { %1296 = vmatpush.bf16.msrb.mxu2 %v3665_v42 }
 0x26f   :  { %1309 = vmatpush.bf16.msrb.mxu3 %v3666_v31  ;;  %v2113_v31 = vld [vmem:[%s3578_s0 + $0xd8] sm:$0xff] }
 0x270   :  { %1297 = vmatpush.bf16.msrb.mxu2 %v3667_v1 }
 0x273   :  { %1310 = vmatpush.bf16.msrb.mxu3 %v3668_v46 }
 0x2b1   :  { %v954_v23 = vpop.f32.mrf.mxu0 }
 0x2b6   :  { %v928_v52 = vpop.f32.mrf.mxu2  ;;  %v941_v29 = vpop.f32.mrf.mxu3 }
 0x2b7   :  { %v958_v39 = vadd.f32 %v2107_v60, %v928_v52  ;;  %v978_v11 = vadd.f32 %v2108_v0, %v941_v29  ;;  %v2114_v29 = vld [vmem:[%s3578_s0 + $0xe0] sm:$0xff] }
 0x2b9   :  { %v2110_v4 = vmul.f32 -1.442695, %v958_v39  ;;  %v2111_v44 = vmul.f32 -1.442695, %v978_v11  ;;  %v956_v34 = vpop.f32.mrf.mxu0 }
 0x2bb   :  { %2274 = vpow2.f32 %v2110_v4 }
 0x2bc   :  { %2276 = vpow2.f32 %v2111_v44 }
 0x2be   :  { %v930_v19 = vpop.f32.mrf.mxu2  ;;  %v943_v41 = vpop.f32.mrf.mxu3 }
 0x2c1   :  { %v2275_v48 = vpop.eup %2274 }
 0x2c2   :  { %v2277_v61 = vpop.eup %2276  ;;  %v962_v46 = vadd.f32 1.0, %v2275_v48 }
 0x2c3   :  { %v982_v1 = vadd.f32 1.0, %v2277_v61 }
 0x2c4   :  { %2278 = vrcp.f32 %v962_v46  ;;  %v974_v48 = vand.u32 2147483648, %v962_v46  ;;  %vm968_vm1 = vweird.f32 %v962_v46 }
 0x2c5   :  { %2280 = vrcp.f32 %v982_v1  ;;  %vm988_vm5 = vweird.f32 %v982_v1 }
 0x2c6   :  { %v1022_v42 = vpop.f32.mrf.mxu1 }
 0x2c7   :  { %v1052_v60 = vadd.f32 %v2113_v31, %v1022_v42  ;;  %v972_v42 = vand.u32 2147483647, %v962_v46 }
 0x2c9   :  { %v2116_v0 = vmul.f32 -1.442695, %v1052_v60  ;;  %vm973_vm3 = vcmp.eq.f32.partialorder %v972_v42, 8.507059e+37 }
 0x2ca   :  { %v2279_v52 = vpop.eup %2278 }
 0x2cb   :  { %v2281_v39 = vpop.eup %2280  ;;  %v964_v11 = vmul.f32 %v2279_v52, %v962_v46  ;;  %2282 = vpow2.f32 %v2116_v0  ;;  %vm969_vm0 = vweird.f32 %v2279_v52  ;;  %v975_v0 = vor.u32 1.1754944e-38, %v974_v48 }
 0x2cc   :  { %v984_v4 = vmul.f32 %v2281_v39, %v982_v1  ;;  %v1035_v44 = vpop.f32.mrf.mxu2  ;;  %vm970_vm2 = vmor %vm968_vm1, %vm969_vm0  ;;  %vm989_vm4 = vweird.f32 %v2281_v39  ;;  %v992_v48 = vand.u32 2147483647, %v982_v1 }
 0x2cd   :  { %v965_v34 = vsub.f32 1.0, %v964_v11  ;;  %v1072_v19 = vadd.f32 %v2114_v29, %v1035_v44  ;;  %v3233_v41 = vpop.f32.mrf.mxu3  ;;  %v3238_v29 = vld [vmem:[%s3577_s3] ss:$0 sm:$0xff]  ;;  %vm990_vm6 = vmor %vm988_vm5, %vm989_vm4 }
 0x2ce   :  { %v985_v61 = vsub.f32 1.0, %v984_v4  ;;  %v1024_v40 = vpop.f32.mrf.mxu1  ;;  %3669 = vst [vmem:[#allocation15_spill] sm:$0xff] %v3238_v29  ;;  %v998_v11 = vadd.f32 %v3238_v29, %v954_v23  ;;  %vm993_vm7 = vcmp.eq.f32.partialorder %v992_v48, 8.507059e+37 }
 0x2cf   :  { %v966_v49 = vmul.f32 %v2279_v52, %v965_v34  ;;  %v2117_v31 = vmul.f32 -1.442695, %v1072_v19 }
 0x2d0   :  { %v986_v60 = vmul.f32 %v2281_v39, %v985_v61 }
 0x2d1   :  { %v2283_v5 = vpop.eup %2282  ;;  %v967_v53 = vadd.f32 %v2279_v52, %v966_v49  ;;  %2284 = vpow2.f32 %v2117_v31  ;;  %v2109_v49 = vld [vmem:[%s3578_s0 + $0xa0] sm:$0xff] }
 0x2d2   :  { %v1056_v22 = vadd.f32 1.0, %v2283_v5  ;;  %v987_v44 = vadd.f32 %v2281_v39, %v986_v60  ;;  %v994_v5 = vand.u32 2147483648, %v982_v1 }
 0x2d3   :  { %v971_v40 = vsel %vm970_vm2, %v2279_v52, %v967_v53 }
 0x2d4   :  { %v976_v4 = vsel %vm973_vm3, %v975_v0, %v971_v40  ;;  %2286 = vrcp.f32 %v1056_v22  ;;  %v1037_v34 = vpop.f32.mrf.mxu2  ;;  %v991_v53 = vsel %vm990_vm6, %v2281_v39, %v987_v44  ;;  %v995_v52 = vor.u32 1.1754944e-38, %v994_v5 }
 0x2d5   :  { %v999_v46 = vmul.f32 %v998_v11, %v976_v4  ;;  %v1050_v19 = vpop.f32.mrf.mxu3  ;;  %v1068_v34 = vand.u32 2147483648, %v1056_v22  ;;  %vm1062_vm9 = vweird.f32 %v1056_v22 }
 0x2d6   :  { %v996_v0 = vsel %vm993_vm7, %v995_v52, %v991_v53  ;;  %v1066_v19 = vand.u32 2147483647, %v1056_v22 }
 0x2d7   :  { %v2285_v61 = vpop.eup %2284  ;;  %v1000_v31 = vadd.f32 %v2109_v49, %v999_v46  ;;  %v1002_v29 = vsub.f32 1.0, %v996_v0  ;;  %v1004_v49 = vmul.f32 %v996_v0, %v3148_v18  ;;  %v1069_v44 = vor.u32 1.1754944e-38, %v1068_v34  ;;  %v2115_v18 = vld [vmem:[%s3578_s0 + $0xe8] sm:$0xff] }
 0x2d8   :  { %v1076_v23 = vadd.f32 1.0, %v2285_v61  ;;  %vm1067_vm11 = vcmp.eq.f32.partialorder %v1066_v19, 8.507059e+37 }
 0x2d9   :  { %2288 = vtanh.f32 %v1000_v31  ;;  %v3250_v31 = vld [vmem:[%s3577_s3 + $0x1] ss:$0 sm:$0xff] }
 0x2da   :  { %v2287_v42 = vpop.eup %2286  ;;  %2290 = vrcp.f32 %v1076_v23  ;;  %v1088_v52 = vand.u32 2147483648, %v1076_v23  ;;  %vm1082_vm13 = vweird.f32 %v1076_v23 }
 0x2db   :  { %v1058_v60 = vmul.f32 %v2287_v42, %v1056_v22  ;;  %vm1063_vm8 = vweird.f32 %v2287_v42 }
 0x2dc   :  { %vm1064_vm10 = vmor %vm1062_vm9, %vm1063_vm8 }
 0x2dd   :  { %v1059_v40 = vsub.f32 1.0, %v1058_v60  ;;  %v1086_v60 = vand.u32 2147483647, %v1076_v23 }
 0x2df   :  { %v2289_v11 = vpop.eup %2288  ;;  %v1060_v4 = vmul.f32 %v2287_v42, %v1059_v40  ;;  %v1089_v40 = vor.u32 1.1754944e-38, %v1088_v52  ;;  %vm1087_vm15 = vcmp.eq.f32.partialorder %v1086_v60, 8.507059e+37  ;;  %v2119_v52 = vld [vmem:[%s3578_s0 + $0xc0] sm:$0xff] }
 0x2e0   :  { %v2291_v1 = vpop.eup %2290  ;;  %v1003_v20 = vmul.f32 %v2289_v11, %v1002_v29  ;;  %v1092_v29 = vadd.f32 %v3250_v31, %v3233_v41 }
 0x2e1   :  { %v1078_v46 = vmul.f32 %v2291_v1, %v1076_v23  ;;  %v1061_v39 = vadd.f32 %v2287_v42, %v1060_v4  ;;  %vm1083_vm12 = vweird.f32 %v2291_v1 }
 0x2e2   :  { %v3245_v5 = vadd.f32 %v1004_v49, %v1003_v20  ;;  %vm1084_vm14 = vmor %vm1082_vm13, %vm1083_vm12 }
 0x2e3   :  { %v1079_v48 = vsub.f32 1.0, %v1078_v46  ;;  %v1065_v61 = vsel %vm1064_vm10, %v2287_v42, %v1061_v39  ;;  %v3671_v39 = vld [vmem:[#allocation14_spill] sm:$0xff] }
 0x2e4   :  { %v1070_v22 = vsel %vm1067_vm11, %v1069_v44, %v1065_v61  ;;  %2112 = vst [vmem:[%s3579_s4 + $0x30] sm:$0xff] %v3245_v5  ;;  %v1105_v20 = vpack.c.bf16 %v3245_v5, %v3245_v5  ;;  %v3672_v44 = vld [vmem:[#allocation4_spill] sm:$0xff]  ;;  %v3674_v61 = vld [vmem:[#allocation6_spill] sm:$0xff] }
 0x2e5   :  { %v1080_v53 = vmul.f32 %v2291_v1, %v1079_v48  ;;  %v1093_v42 = vmul.f32 %v1092_v29, %v1070_v22  ;;  %v3673_v48 = vld [vmem:[#allocation5_spill] sm:$0xff]  ;;  %v3675_v29 = vld [vmem:[#allocation7_spill] sm:$0xff] }
 0x2e6   :  { %1114 = vmatmul.bf16.vlgmr.msra.gmra.mxu0 %v1105_v20  ;;  %1127 = vmatmul.bf16.vlgmr.msra.gmra.mxu1 %v1105_v20  ;;  %v3677_v22 = vld [vmem:[#allocation9_spill] sm:$0xff] }
 0x2e7   :  { %v1081_v41 = vadd.f32 %v2291_v1, %v1080_v53  ;;  %v1094_v0 = vadd.f32 %v2115_v18, %v1093_v42  ;;  %1140 = vmatmul.bf16.vlgmr.msra.gmra.mxu2 %v1105_v20  ;;  %1316 = vmatpush.bf16.msra.mxu0 %v2534_v43  ;;  %v3676_v18 = vld [vmem:[#allocation8_spill] sm:$0xff]  ;;  %v3678_v20 = vld [vmem:[#allocation10_spill] sm:$0xff]  ;;  %v3679_v53 = vld [vmem:[#allocation11_spill] sm:$0xff] }
 0x2e8   :  { %1382 = vmatpush.bf16.msra.mxu1 %v2428_v7  ;;  %1395 = vmatpush.bf16.msra.mxu2 %v2680_v37  ;;  %v2120_v42 = vld [vmem:[%s3578_s0 + $0xc8] sm:$0xff] }
 0x2e9   :  { %v1085_v34 = vsel %vm1084_vm14, %v2291_v1, %v1081_v41  ;;  %2292 = vtanh.f32 %v1094_v0 }
 0x2ea   :  { %v1090_v11 = vsel %vm1087_vm15, %v1089_v40, %v1085_v34 }
 0x2eb   :  { %1317 = vmatpush.bf16.msra.mxu0 %v2546_v47  ;;  %v1096_v23 = vsub.f32 1.0, %v1090_v11  ;;  %v1098_v49 = vmul.f32 %v1090_v11, %v3178_v54  ;;  %v3670_v54 = vld [vmem:[#allocation3_spill] sm:$0xff] }
 0x2ec   :  { %1383 = vmatpush.bf16.msra.mxu1 %v2455_v16  ;;  %1396 = vmatpush.bf16.msra.mxu2 %v2721_v57 }
 0x2ef   :  { %v2293_v4 = vpop.eup %2292  ;;  %1318 = vmatpush.bf16.msra.mxu0 %v2582_v59 }
 0x2f0   :  { %v1097_v19 = vmul.f32 %v2293_v4, %v1096_v23  ;;  %1384 = vmatpush.bf16.msra.mxu1 %v2482_v25  ;;  %1397 = vmatpush.bf16.msra.mxu2 %v2751_v9 }
 0x2f2   :  { %v3273_v1 = vadd.f32 %v1098_v49, %v1097_v19 }
 0x2f3   :  { %1319 = vmatpush.bf16.msra.mxu0 %v2618_v10 }
 0x2f4   :  { %2118 = vst [vmem:[%s3579_s4 + $0x48] sm:$0xff] %v3273_v1  ;;  %v1197_v46 = vpack.c.bf16 %v3273_v1, %v3273_v1  ;;  %1385 = vmatpush.bf16.msra.mxu1 %v2521_v38  ;;  %1398 = vmatpush.bf16.msra.mxu2 %v2779_v28 }
 0x2f6   :  { %1206 = vmatmul.bf16.vlgmr.msra.gmra.mxu3 %v1197_v46  ;;  %1219 = vmatmul.bf16.vlgmr.msrb.gmra.mxu0 %v1197_v46 }
 0x2f7   :  { %1232 = vmatmul.bf16.vlgmr.msrb.gmra.mxu1 %v1197_v46  ;;  %1320 = vmatpush.bf16.msra.mxu0 %v2660_v30 }
 0x2f8   :  { %1408 = vmatpush.bf16.msra.mxu3 %v2703_v50  ;;  %1386 = vmatpush.bf16.msra.mxu1 %v2559_v51 }
 0x2f9   :  { %1399 = vmatpush.bf16.msra.mxu2 %v2799_v45 }
 0x2fb   :  { %1321 = vmatpush.bf16.msra.mxu0 %v2717_v56 }
 0x2fc   :  { %1409 = vmatpush.bf16.msra.mxu3 %v2738_v2  ;;  %1387 = vmatpush.bf16.msra.mxu1 %v2595_v63 }
 0x2fd   :  { %1400 = vmatpush.bf16.msra.mxu2 %v2819_v62 }
 0x2ff   :  { %1322 = vmatpush.bf16.msra.mxu0 %v2748_v6 }
 0x300   :  { %1410 = vmatpush.bf16.msra.mxu3 %v2767_v21  ;;  %1388 = vmatpush.bf16.msra.mxu1 %v2631_v15 }
 0x301   :  { %1401 = vmatpush.bf16.msra.mxu2 %v2839_v14 }
 0x303   :  { %1323 = vmatpush.bf16.msra.mxu0 %v2776_v27 }
 0x304   :  { %1411 = vmatpush.bf16.msra.mxu3 %v2789_v35  ;;  %1389 = vmatpush.bf16.msra.mxu1 %v2678_v36 }
 0x305   :  { %1402 = vmatpush.bf16.msra.mxu2 %v2859_v33 }
 0x307   :  { %1474 = vmatpush.bf16.msrb.mxu0 %v2417_v3 }
 0x308   :  { %1487 = vmatpush.bf16.msrb.mxu1 %v2430_v8  ;;  %1412 = vmatpush.bf16.msra.mxu3 %v2810_v55 }
 0x30b   :  { %1475 = vmatpush.bf16.msrb.mxu0 %v2442_v12 }
 0x30c   :  { %1488 = vmatpush.bf16.msrb.mxu1 %v2457_v17  ;;  %1413 = vmatpush.bf16.msra.mxu3 %v3657_v58 }
 0x30f   :  { %1476 = vmatpush.bf16.msrb.mxu0 %v2478_v24 }
 0x310   :  { %1489 = vmatpush.bf16.msrb.mxu1 %v2484_v26  ;;  %1414 = vmatpush.bf16.msra.mxu3 %v3660_v13 }
 0x313   :  { %1477 = vmatpush.bf16.msrb.mxu0 %v3656_v32 }
 0x314   :  { %1490 = vmatpush.bf16.msrb.mxu1 %v3670_v54  ;;  %1415 = vmatpush.bf16.msra.mxu3 %v3671_v39 }
 0x317   :  { %1478 = vmatpush.bf16.msrb.mxu0 %v3672_v44 }
 0x318   :  { %1491 = vmatpush.bf16.msrb.mxu1 %v3673_v48 }
 0x31b   :  { %1479 = vmatpush.bf16.msrb.mxu0 %v3674_v61 }
 0x31c   :  { %1492 = vmatpush.bf16.msrb.mxu1 %v3675_v29 }
 0x31f   :  { %1480 = vmatpush.bf16.msrb.mxu0 %v3676_v18 }
 0x320   :  { %1493 = vmatpush.bf16.msrb.mxu1 %v3677_v22  ;;  %v2126_v22 = vld [vmem:[%s3578_s0 + $0xb0] sm:$0xff] }
 0x323   :  { %1481 = vmatpush.bf16.msrb.mxu0 %v3678_v20 }
 0x324   :  { %1494 = vmatpush.bf16.msrb.mxu1 %v3679_v53 }
 0x363   :  { %v1115_v60 = vpop.f32.mrf.mxu0  ;;  %v1128_v41 = vpop.f32.mrf.mxu1 }
 0x364   :  { %v1145_v0 = vadd.f32 %v2119_v52, %v1115_v60  ;;  %v1165_v40 = vadd.f32 %v2120_v42, %v1128_v41 }
 0x366   :  { %v2122_v34 = vmul.f32 -1.442695, %v1145_v0  ;;  %v2123_v11 = vmul.f32 -1.442695, %v1165_v40  ;;  %v2125_v40 = vld [vmem:[%s3578_s0 + $0xa8] sm:$0xff] }
 0x368   :  { %2294 = vpow2.f32 %v2122_v34 }
 0x369   :  { %2296 = vpow2.f32 %v2123_v11 }
 0x36a   :  { %v1141_v23 = vpop.f32.mrf.mxu2 }
 0x36b   :  { %v1117_v4 = vpop.f32.mrf.mxu0  ;;  %v1130_v19 = vpop.f32.mrf.mxu1 }
 0x36e   :  { %v2295_v49 = vpop.eup %2294 }
 0x36f   :  { %v2297_v46 = vpop.eup %2296  ;;  %v1149_v53 = vadd.f32 1.0, %v2295_v49 }
 0x370   :  { %v1169_v20 = vadd.f32 1.0, %v2297_v46 }
 0x371   :  { %2298 = vrcp.f32 %v1149_v53  ;;  %v1161_v39 = vand.u32 2147483648, %v1149_v53  ;;  %vm1155_vm1 = vweird.f32 %v1149_v53 }
 0x372   :  { %2300 = vrcp.f32 %v1169_v20  ;;  %v1143_v18 = vpop.f32.mrf.mxu2  ;;  %vm1175_vm5 = vweird.f32 %v1169_v20 }
 0x373   :  { %v1220_v52 = vpop.f32.mrf.mxu0  ;;  %v1162_v54 = vor.u32 1.1754944e-38, %v1161_v39  ;;  %v1179_v39 = vand.u32 2147483647, %v1169_v20 }
 0x374   :  { %v1257_v42 = vadd.f32 %v2126_v22, %v1220_v52  ;;  %v3329_v60 = vpop.f32.mrf.mxu1  ;;  %v1159_v22 = vand.u32 2147483647, %v1149_v53 }
 0x375   :  { %vm1180_vm7 = vcmp.eq.f32.partialorder %v1179_v39, 8.507059e+37 }
 0x376   :  { %v2129_v41 = vmul.f32 -1.442695, %v1257_v42  ;;  %vm1160_vm3 = vcmp.eq.f32.partialorder %v1159_v22, 8.507059e+37 }
 0x377   :  { %v2299_v0 = vpop.eup %2298 }
 0x378   :  { %v2301_v34 = vpop.eup %2300  ;;  %v1151_v11 = vmul.f32 %v2299_v0, %v1149_v53  ;;  %2302 = vpow2.f32 %v2129_v41  ;;  %vm1156_vm0 = vweird.f32 %v2299_v0 }
 0x379   :  { %v1171_v4 = vmul.f32 %v2301_v34, %v1169_v20  ;;  %v1207_v19 = vpop.f32.mrf.mxu3  ;;  %vm1157_vm2 = vmor %vm1155_vm1, %vm1156_vm0  ;;  %vm1176_vm4 = vweird.f32 %v2301_v34 }
 0x37a   :  { %v1152_v49 = vsub.f32 1.0, %v1151_v11  ;;  %v1237_v46 = vadd.f32 %v2125_v40, %v1207_v19  ;;  %v3680_v40 = vld [vmem:[#allocation15_spill] sm:$0xff]  ;;  %v2121_v19 = vld [vmem:[%s3578_s0 + $0xd0] sm:$0xff]  ;;  %vm1177_vm6 = vmor %vm1175_vm5, %vm1176_vm4 }
 0x37b   :  { %v1172_v29 = vsub.f32 1.0, %v1171_v4  ;;  %v1222_v18 = vpop.f32.mrf.mxu0  ;;  %v1185_v11 = vadd.f32 %v3680_v40, %v1141_v23 }
 0x37c   :  { %v1153_v61 = vmul.f32 %v2299_v0, %v1152_v49  ;;  %v2128_v52 = vmul.f32 -1.442695, %v1237_v46  ;;  %v1235_v42 = vpop.f32.mrf.mxu1  ;;  %v1181_v46 = vand.u32 2147483648, %v1169_v20 }
 0x37d   :  { %v1173_v48 = vmul.f32 %v2301_v34, %v1172_v29 }
 0x37e   :  { %v2303_v13 = vpop.eup %2302  ;;  %v1154_v44 = vadd.f32 %v2299_v0, %v1153_v61  ;;  %2304 = vpow2.f32 %v2128_v52  ;;  %v1182_v23 = vor.u32 1.1754944e-38, %v1181_v46 }
 0x37f   :  { %v3334_v41 = vadd.f32 1.0, %v2303_v13  ;;  %v1174_v4 = vadd.f32 %v2301_v34, %v1173_v48 }
 0x380   :  { %v1158_v58 = vsel %vm1157_vm2, %v2299_v0, %v1154_v44 }
 0x381   :  { %v1163_v49 = vsel %vm1160_vm3, %v1162_v54, %v1158_v58  ;;  %v1209_v29 = vpop.f32.mrf.mxu3  ;;  %2306 = vrcp.f32 %v3334_v41  ;;  %v1178_v53 = vsel %vm1177_vm6, %v2301_v34, %v1174_v4  ;;  %vm1267_vm13 = vweird.f32 %v3334_v41 }
 0x382   :  { %v1186_v61 = vmul.f32 %v1185_v11, %v1163_v49  ;;  %v1183_v18 = vsel %vm1180_vm7, %v1182_v23, %v1178_v53 }
 0x383   :  { %v1189_v22 = vsub.f32 1.0, %v1183_v18  ;;  %v1191_v11 = vmul.f32 %v1183_v18, %v3245_v5 }
 0x384   :  { %v2305_v13 = vpop.eup %2304  ;;  %v1187_v44 = vadd.f32 %v2121_v19, %v1186_v61 }
 0x385   :  { %v1241_v0 = vadd.f32 1.0, %v2305_v13 }
 0x386   :  { %2308 = vtanh.f32 %v1187_v44  ;;  %v1277_v44 = vadd.f32 %v3250_v31, %v3329_v60 }
 0x387   :  { %2310 = vrcp.f32 %v1241_v0  ;;  %v2307_v48 = vpop.eup %2306  ;;  %v1253_v4 = vand.u32 2147483648, %v1241_v0  ;;  %v1251_v61 = vand.u32 2147483647, %v1241_v0  ;;  %vm1247_vm9 = vweird.f32 %v1241_v0 }
 0x388   :  { %v1263_v58 = vmul.f32 %v2307_v48, %v3334_v41  ;;  %vm1268_vm12 = vweird.f32 %v2307_v48 }
 0x389   :  { %v1254_v13 = vor.u32 1.1754944e-38, %v1253_v4  ;;  %vm1252_vm11 = vcmp.eq.f32.partialorder %v1251_v61, 8.507059e+37  ;;  %vm1269_vm14 = vmor %vm1267_vm13, %vm1268_vm12  ;;  %v3689_v61 = vld [vmem:[#allocation8_spill] sm:$0xff] }
 0x38a   :  { %v1264_v49 = vsub.f32 1.0, %v1263_v58 }
 0x38c   :  { %v2309_v54 = vpop.eup %2308  ;;  %v1265_v39 = vmul.f32 %v2307_v48, %v1264_v49 }
 0x38d   :  { %v2311_v52 = vpop.eup %2310  ;;  %v1190_v42 = vmul.f32 %v2309_v54, %v1189_v22  ;;  %v1273_v22 = vand.u32 2147483648, %v3334_v41  ;;  %v1271_v54 = vand.u32 2147483647, %v3334_v41 }
 0x38e   :  { %v1243_v20 = vmul.f32 %v2311_v52, %v1241_v0  ;;  %vm1248_vm8 = vweird.f32 %v2311_v52  ;;  %v1266_v23 = vadd.f32 %v2307_v48, %v1265_v39  ;;  %v2127_v0 = vld [vmem:[%s3578_s0 + $0xb8] sm:$0xff]  ;;  %v3692_v39 = vld [vmem:[#allocation11_spill] sm:$0xff] }
 0x38f   :  { %v3343_v29 = vadd.f32 %v1191_v11, %v1190_v42  ;;  %vm1249_vm10 = vmor %vm1247_vm9, %vm1248_vm8  ;;  %v1274_v42 = vor.u32 1.1754944e-38, %v1273_v22  ;;  %vm1272_vm15 = vcmp.eq.f32.partialorder %v1271_v54, 8.507059e+37 }
 0x390   :  { %v1244_v34 = vsub.f32 1.0, %v1243_v20 }
 0x391   :  { %2124 = vst [vmem:[%s3579_s4 + $0x40] sm:$0xff] %v3343_v29  ;;  %v1289_v19 = vpack.c.bf16 %v3343_v29, %v3343_v29 }
 0x392   :  { %v1245_v46 = vmul.f32 %v2311_v52, %v1244_v34 }
 0x393   :  { %1298 = vmatmul.bf16.vlgmr.msrb.gmra.mxu2 %v1289_v19  ;;  %1311 = vmatmul.bf16.vlgmr.msrb.gmra.mxu3 %v1289_v19 }
 0x394   :  { %v1246_v5 = vadd.f32 %v2311_v52, %v1245_v46  ;;  %1324 = vmatmul.bf16.vlgmr.msra.gmra.mxu0 %v1289_v19  ;;  %1500 = vmatpush.bf16.msrb.mxu2 %v2534_v43  ;;  %v3683_v19 = vld [vmem:[#allocation4_spill] sm:$0xff]  ;;  %v3686_v46 = vld [vmem:[#allocation6_spill] sm:$0xff] }
 0x395   :  { %1566 = vmatpush.bf16.msrb.mxu3 %v2428_v7  ;;  %1579 = vmatpush.bf16.msra.mxu0 %v2680_v37 }
 0x396   :  { %v1250_v53 = vsel %vm1249_vm10, %v2311_v52, %v1246_v5  ;;  %v1270_v52 = vsel %vm1269_vm14, %v2307_v48, %v1266_v23 }
 0x397   :  { %v1255_v18 = vsel %vm1252_vm11, %v1254_v13, %v1250_v53  ;;  %v1275_v11 = vsel %vm1272_vm15, %v1274_v42, %v1270_v52  ;;  %v2131_v13 = vld [vmem:[%s3578_s0 + $0xf0] sm:$0xff] }
 0x398   :  { %v1278_v58 = vmul.f32 %v1277_v44, %v1255_v18  ;;  %1501 = vmatpush.bf16.msrb.mxu2 %v2546_v47  ;;  %v1281_v41 = vsub.f32 1.0, %v1275_v11  ;;  %v1283_v48 = vmul.f32 %v1275_v11, %v3273_v1  ;;  %v3682_v1 = vld [vmem:[#allocation3_spill] sm:$0xff]  ;;  %v2132_v44 = vld [vmem:[%s3578_s0 + $0xf8] sm:$0xff] }
 0x399   :  { %1567 = vmatpush.bf16.msrb.mxu3 %v2455_v16  ;;  %1580 = vmatpush.bf16.msra.mxu0 %v2721_v57 }
 0x39a   :  { %v1279_v60 = vadd.f32 %v2127_v0, %v1278_v58 }
 0x39c   :  { %2312 = vtanh.f32 %v1279_v60  ;;  %1502 = vmatpush.bf16.msrb.mxu2 %v2582_v59 }
 0x39d   :  { %1568 = vmatpush.bf16.msrb.mxu3 %v2482_v25  ;;  %1581 = vmatpush.bf16.msra.mxu0 %v2751_v9 }
 0x3a0   :  { %1503 = vmatpush.bf16.msrb.mxu2 %v2618_v10 }
 0x3a1   :  { %1569 = vmatpush.bf16.msrb.mxu3 %v2521_v38  ;;  %1582 = vmatpush.bf16.msra.mxu0 %v2779_v28 }
 0x3a2   :  { %v2313_v20 = vpop.eup %2312 }
 0x3a3   :  { %v1282_v49 = vmul.f32 %v2313_v20, %v1281_v41 }
 0x3a4   :  { %1504 = vmatpush.bf16.msrb.mxu2 %v2660_v30 }
 0x3a5   :  { %v3373_v34 = vadd.f32 %v1283_v48, %v1282_v49  ;;  %1570 = vmatpush.bf16.msrb.mxu3 %v2559_v51  ;;  %1583 = vmatpush.bf16.msra.mxu0 %v2799_v45  ;;  %v2137_v49 = vld [vmem:[%s3578_s0 + $0x78] sm:$0xff] }
 0x3a7   :  { %2130 = vst [vmem:[%s3579_s4 + $0x38] sm:$0xff] %v3373_v34  ;;  %v1381_v4 = vpack.c.bf16 %v3373_v34, %v3373_v34 }
 0x3a8   :  { %1505 = vmatpush.bf16.msrb.mxu2 %v2717_v56 }
 0x3a9   :  { %1390 = vmatmul.bf16.vlgmr.msra.gmra.mxu1 %v1381_v4  ;;  %1403 = vmatmul.bf16.vlgmr.msra.gmra.mxu2 %v1381_v4 }
 0x3aa   :  { %1416 = vmatmul.bf16.vlgmr.msra.gmra.mxu3 %v1381_v4  ;;  %1592 = vmatpush.bf16.msra.mxu1 %v2703_v50 }
 0x3ab   :  { %1571 = vmatpush.bf16.msrb.mxu3 %v2595_v63  ;;  %1584 = vmatpush.bf16.msra.mxu0 %v2819_v62 }
 0x3ac   :  { %1506 = vmatpush.bf16.msrb.mxu2 %v2748_v6 }
 0x3ae   :  { %1593 = vmatpush.bf16.msra.mxu1 %v2738_v2 }
 0x3af   :  { %1572 = vmatpush.bf16.msrb.mxu3 %v2631_v15  ;;  %1585 = vmatpush.bf16.msra.mxu0 %v2839_v14 }
 0x3b0   :  { %1507 = vmatpush.bf16.msrb.mxu2 %v2776_v27 }
 0x3b2   :  { %1594 = vmatpush.bf16.msra.mxu1 %v2767_v21 }
 0x3b3   :  { %1573 = vmatpush.bf16.msrb.mxu3 %v2678_v36  ;;  %1586 = vmatpush.bf16.msra.mxu0 %v2859_v33 }
 0x3b4   :  { %1658 = vmatpush.bf16.msra.mxu2 %v2417_v3  ;;  %v3681_v3 = vld [vmem:[#allocation12_spill] sm:$0xff] }
 0x3b6   :  { %1595 = vmatpush.bf16.msra.mxu1 %v2789_v35 }
 0x3b7   :  { %1671 = vmatpush.bf16.msra.mxu3 %v2430_v8  ;;  %v3684_v8 = vld [vmem:[#allocation13_spill] sm:$0xff] }
 0x3b8   :  { %1659 = vmatpush.bf16.msra.mxu2 %v2442_v12  ;;  %v3685_v12 = vld [vmem:[#allocation5_spill] sm:$0xff] }
 0x3ba   :  { %1596 = vmatpush.bf16.msra.mxu1 %v2810_v55 }
 0x3bb   :  { %1672 = vmatpush.bf16.msra.mxu3 %v2457_v17  ;;  %v3687_v17 = vld [vmem:[#allocation14_spill] sm:$0xff] }
 0x3bc   :  { %1660 = vmatpush.bf16.msra.mxu2 %v2478_v24  ;;  %v3688_v24 = vld [vmem:[#allocation7_spill] sm:$0xff] }
 0x3be   :  { %1597 = vmatpush.bf16.msra.mxu1 %v3681_v3 }
 0x3bf   :  { %1673 = vmatpush.bf16.msra.mxu3 %v2484_v26  ;;  %v3690_v26 = vld [vmem:[#allocation9_spill] sm:$0xff] }
 0x3c0   :  { %1661 = vmatpush.bf16.msra.mxu2 %v3656_v32  ;;  %v3691_v32 = vld [vmem:[#allocation10_spill] sm:$0xff] }
 0x3c2   :  { %1598 = vmatpush.bf16.msra.mxu1 %v3684_v8 }
 0x3c3   :  { %1674 = vmatpush.bf16.msra.mxu3 %v3682_v1 }
 0x3c4   :  { %1662 = vmatpush.bf16.msra.mxu2 %v3683_v19 }
 0x3c6   :  { %1599 = vmatpush.bf16.msra.mxu1 %v3687_v17 }
 0x3c7   :  { %1675 = vmatpush.bf16.msra.mxu3 %v3685_v12  ;;  %v2138_v12 = vld [vmem:[%s3578_s0 + $0x80] sm:$0xff] }
 0x3c8   :  { %1663 = vmatpush.bf16.msra.mxu2 %v3686_v46 }
 0x3cb   :  { %1676 = vmatpush.bf16.msra.mxu3 %v3688_v24 }
 0x3cc   :  { %1664 = vmatpush.bf16.msra.mxu2 %v3689_v61 }
 0x3cf   :  { %1677 = vmatpush.bf16.msra.mxu3 %v3690_v26 }
 0x3d0   :  { %1665 = vmatpush.bf16.msra.mxu2 %v3691_v32 }
 0x3d3   :  { %1678 = vmatpush.bf16.msra.mxu3 %v3692_v39 }
 0x411   :  { %v1325_v5 = vpop.f32.mrf.mxu0 }
 0x416   :  { %v1299_v53 = vpop.f32.mrf.mxu2  ;;  %v1312_v23 = vpop.f32.mrf.mxu3 }
 0x417   :  { %v1329_v18 = vadd.f32 %v2131_v13, %v1299_v53  ;;  %v1349_v0 = vadd.f32 %v2132_v44, %v1312_v23 }
 0x419   :  { %v2134_v22 = vmul.f32 -1.442695, %v1329_v18  ;;  %v2135_v58 = vmul.f32 -1.442695, %v1349_v0  ;;  %v1327_v54 = vpop.f32.mrf.mxu0 }
 0x41b   :  { %2314 = vpow2.f32 %v2134_v22 }
 0x41c   :  { %2316 = vpow2.f32 %v2135_v58 }
 0x41e   :  { %v1301_v60 = vpop.f32.mrf.mxu2  ;;  %v1314_v52 = vpop.f32.mrf.mxu3 }
 0x421   :  { %v2315_v42 = vpop.eup %2314 }
 0x422   :  { %v2317_v11 = vpop.eup %2316  ;;  %v1333_v41 = vadd.f32 1.0, %v2315_v42 }
 0x423   :  { %v1353_v20 = vadd.f32 1.0, %v2317_v11  ;;  %v1369_v11 = vadd.f32 %v3680_v40, %v1325_v5 }
 0x424   :  { %2318 = vrcp.f32 %v1333_v41  ;;  %v1345_v44 = vand.u32 2147483648, %v1333_v41  ;;  %v1343_v0 = vand.u32 2147483647, %v1333_v41  ;;  %vm1339_vm1 = vweird.f32 %v1333_v41 }
 0x425   :  { %2320 = vrcp.f32 %v1353_v20  ;;  %vm1359_vm5 = vweird.f32 %v1353_v20 }
 0x426   :  { %v1391_v48 = vpop.f32.mrf.mxu1  ;;  %v1346_v52 = vor.u32 1.1754944e-38, %v1345_v44  ;;  %vm1344_vm3 = vcmp.eq.f32.partialorder %v1343_v0, 8.507059e+37 }
 0x427   :  { %v1421_v4 = vadd.f32 %v2137_v49, %v1391_v48 }
 0x429   :  { %v2140_v1 = vmul.f32 -1.442695, %v1421_v4 }
 0x42a   :  { %v2319_v19 = vpop.eup %2318 }
 0x42b   :  { %v2321_v46 = vpop.eup %2320  ;;  %v1335_v24 = vmul.f32 %v2319_v19, %v1333_v41  ;;  %2322 = vpow2.f32 %v2140_v1  ;;  %vm1340_vm0 = vweird.f32 %v2319_v19 }
 0x42c   :  { %v1355_v61 = vmul.f32 %v2321_v46, %v1353_v20  ;;  %v1404_v26 = vpop.f32.mrf.mxu2  ;;  %vm1341_vm2 = vmor %vm1339_vm1, %vm1340_vm0  ;;  %vm1360_vm4 = vweird.f32 %v2321_v46 }
 0x42d   :  { %v1336_v32 = vsub.f32 1.0, %v1335_v24  ;;  %v1441_v39 = vadd.f32 %v2138_v12, %v1404_v26  ;;  %v1417_v13 = vpop.f32.mrf.mxu3  ;;  %v2133_v12 = vld [vmem:[%s3578_s0 + $0x100] sm:$0xff]  ;;  %v1363_v26 = vand.u32 2147483647, %v1353_v20  ;;  %vm1361_vm6 = vmor %vm1359_vm5, %vm1360_vm4 }
 0x42e   :  { %v1356_v53 = vsub.f32 1.0, %v1355_v61  ;;  %v1393_v23 = vpop.f32.mrf.mxu1  ;;  %v1365_v61 = vand.u32 2147483648, %v1353_v20 }
 0x42f   :  { %v1337_v18 = vmul.f32 %v2319_v19, %v1336_v32  ;;  %v2141_v22 = vmul.f32 -1.442695, %v1441_v39  ;;  %vm1364_vm7 = vcmp.eq.f32.partialorder %v1363_v26, 8.507059e+37 }
 0x430   :  { %v1357_v58 = vmul.f32 %v2321_v46, %v1356_v53  ;;  %v1366_v44 = vor.u32 1.1754944e-38, %v1365_v61  ;;  %v1461_v61 = vadd.f32 %v3250_v31, %v1417_v13 }
 0x431   :  { %v2323_v54 = vpop.eup %2322  ;;  %v1338_v60 = vadd.f32 %v2319_v19, %v1337_v18  ;;  %2324 = vpow2.f32 %v2141_v22 }
 0x432   :  { %v1425_v42 = vadd.f32 1.0, %v2323_v54  ;;  %v1358_v4 = vadd.f32 %v2321_v46, %v1357_v58 }
 0x433   :  { %v1342_v49 = vsel %vm1341_vm2, %v2319_v19, %v1338_v60 }
 0x434   :  { %v1347_v48 = vsel %vm1344_vm3, %v1346_v52, %v1342_v49  ;;  %2326 = vrcp.f32 %v1425_v42  ;;  %v1406_v1 = vpop.f32.mrf.mxu2  ;;  %v1362_v19 = vsel %vm1361_vm6, %v2321_v46, %v1358_v4  ;;  %v1437_v22 = vand.u32 2147483648, %v1425_v42 }
 0x435   :  { %v1370_v24 = vmul.f32 %v1369_v11, %v1347_v48  ;;  %v1419_v41 = vpop.f32.mrf.mxu3  ;;  %v1367_v18 = vsel %vm1364_vm7, %v1366_v44, %v1362_v19  ;;  %v1435_v52 = vand.u32 2147483647, %v1425_v42  ;;  %vm1431_vm9 = vweird.f32 %v1425_v42 }
 0x436   :  { %v1373_v58 = vsub.f32 1.0, %v1367_v18  ;;  %v1375_v49 = vmul.f32 %v1367_v18, %v3343_v29  ;;  %v1438_v4 = vor.u32 1.1754944e-38, %v1437_v22  ;;  %v2139_v41 = vld [vmem:[%s3578_s0 + $0x88] sm:$0xff] }
 0x437   :  { %v2325_v32 = vpop.eup %2324  ;;  %v1371_v39 = vadd.f32 %v2133_v12, %v1370_v24  ;;  %vm1436_vm11 = vcmp.eq.f32.partialorder %v1435_v52, 8.507059e+37 }
 0x438   :  { %v1445_v5 = vadd.f32 1.0, %v2325_v32 }
 0x439   :  { %2328 = vtanh.f32 %v1371_v39 }
 0x43a   :  { %v2327_v53 = vpop.eup %2326  ;;  %2330 = vrcp.f32 %v1445_v5  ;;  %v1457_v32 = vand.u32 2147483648, %v1445_v5  ;;  %v1455_v19 = vand.u32 2147483647, %v1445_v5  ;;  %vm1451_vm13 = vweird.f32 %v1445_v5 }
 0x43b   :  { %v1427_v23 = vmul.f32 %v2327_v53, %v1425_v42  ;;  %vm1432_vm8 = vweird.f32 %v2327_v53 }
 0x43c   :  { %vm1433_vm10 = vmor %vm1431_vm9, %vm1432_vm8  ;;  %vm1456_vm15 = vcmp.eq.f32.partialorder %v1455_v19, 8.507059e+37 }
 0x43d   :  { %v1428_v0 = vsub.f32 1.0, %v1427_v23 }
 0x43f   :  { %v2329_v54 = vpop.eup %2328  ;;  %v1429_v60 = vmul.f32 %v2327_v53, %v1428_v0 }
 0x440   :  { %v2331_v20 = vpop.eup %2330  ;;  %v1374_v11 = vmul.f32 %v2329_v54, %v1373_v58 }
 0x441   :  { %v1447_v48 = vmul.f32 %v2331_v20, %v1445_v5  ;;  %v1430_v46 = vadd.f32 %v2327_v53, %v1429_v60  ;;  %vm1452_vm12 = vweird.f32 %v2331_v20 }
 0x442   :  { %v3433_v1 = vadd.f32 %v1375_v49, %v1374_v11  ;;  %vm1453_vm14 = vmor %vm1451_vm13, %vm1452_vm12 }
 0x443   :  { %v1448_v12 = vsub.f32 1.0, %v1447_v48  ;;  %v1434_v24 = vsel %vm1433_vm10, %v2327_v53, %v1430_v46  ;;  %v1458_v53 = vor.u32 1.1754944e-38, %v1457_v32 }
 0x444   :  { %v1439_v26 = vsel %vm1436_vm11, %v1438_v4, %v1434_v24  ;;  %2136 = vst [vmem:[%s3579_s4 + $0x50] sm:$0xff] %v3433_v1  ;;  %v1473_v29 = vpack.c.bf16 %v3433_v1, %v3433_v1 }
 0x445   :  { %v1449_v42 = vmul.f32 %v2331_v20, %v1448_v12  ;;  %v1462_v39 = vmul.f32 %v1461_v61, %v1439_v26  ;;  %v2145_v26 = vld [vmem:[%s3578_s0 + $0x130] sm:$0xff] }
 0x446   :  { %1482 = vmatmul.bf16.vlgmr.msrb.gmra.mxu0 %v1473_v29  ;;  %1495 = vmatmul.bf16.vlgmr.msrb.gmra.mxu1 %v1473_v29 }
 0x447   :  { %v1450_v13 = vadd.f32 %v2331_v20, %v1449_v42  ;;  %v1463_v44 = vadd.f32 %v2139_v41, %v1462_v39  ;;  %1508 = vmatmul.bf16.vlgmr.msrb.gmra.mxu2 %v1473_v29  ;;  %1684 = vmatpush.bf16.msrb.mxu0 %v2534_v43 }
 0x448   :  { %1750 = vmatpush.bf16.msrb.mxu1 %v2428_v7  ;;  %1763 = vmatpush.bf16.msrb.mxu2 %v2680_v37 }
 0x449   :  { %v1454_v23 = vsel %vm1453_vm14, %v2331_v20, %v1450_v13  ;;  %2332 = vtanh.f32 %v1463_v44 }
 0x44a   :  { %v1459_v18 = vsel %vm1456_vm15, %v1458_v53, %v1454_v23 }
 0x44b   :  { %1685 = vmatpush.bf16.msrb.mxu0 %v2546_v47  ;;  %v1465_v5 = vsub.f32 1.0, %v1459_v18  ;;  %v1467_v7 = vmul.f32 %v1459_v18, %v3373_v34 }
 0x44c   :  { %1751 = vmatpush.bf16.msrb.mxu1 %v2455_v16  ;;  %1764 = vmatpush.bf16.msrb.mxu2 %v2721_v57 }
 0x44f   :  { %v2333_v0 = vpop.eup %2332  ;;  %1686 = vmatpush.bf16.msrb.mxu0 %v2582_v59 }
 0x450   :  { %v1466_v43 = vmul.f32 %v2333_v0, %v1465_v5  ;;  %1752 = vmatpush.bf16.msrb.mxu1 %v2482_v25  ;;  %1765 = vmatpush.bf16.msrb.mxu2 %v2751_v9  ;;  %v2143_v25 = vld [vmem:[%s3578_s0 + $0x120] sm:$0xff]  ;;  %v2150_v9 = vld [vmem:[%s3578_s0 + $0x50] sm:$0xff] }
 0x452   :  { %v3455_v37 = vadd.f32 %v1467_v7, %v1466_v43 }
 0x453   :  { %1687 = vmatpush.bf16.msrb.mxu0 %v2618_v10 }
 0x454   :  { %2142 = vst [vmem:[%s3579_s4 + $0x28] sm:$0xff] %v3455_v37  ;;  %v1565_v16 = vpack.c.bf16 %v3455_v37, %v3455_v37  ;;  %1753 = vmatpush.bf16.msrb.mxu1 %v2521_v38  ;;  %1766 = vmatpush.bf16.msrb.mxu2 %v2779_v28  ;;  %v2144_v38 = vld [vmem:[%s3578_s0 + $0x128] sm:$0xff] }
 0x456   :  { %1574 = vmatmul.bf16.vlgmr.msrb.gmra.mxu3 %v1565_v16  ;;  %1587 = vmatmul.bf16.vlgmr.msra.gmra.mxu0 %v1565_v16 }
 0x457   :  { %1600 = vmatmul.bf16.vlgmr.msra.gmra.mxu1 %v1565_v16  ;;  %1688 = vmatpush.bf16.msrb.mxu0 %v2660_v30 }
 0x458   :  { %1776 = vmatpush.bf16.msrb.mxu3 %v2703_v50  ;;  %1754 = vmatpush.bf16.msrb.mxu1 %v2559_v51 }
 0x459   :  { %1767 = vmatpush.bf16.msrb.mxu2 %v2799_v45 }
 0x45b   :  { %1689 = vmatpush.bf16.msrb.mxu0 %v2717_v56 }
 0x45c   :  { %1777 = vmatpush.bf16.msrb.mxu3 %v2738_v2  ;;  %1755 = vmatpush.bf16.msrb.mxu1 %v2595_v63 }
 0x45d   :  { %1768 = vmatpush.bf16.msrb.mxu2 %v2819_v62  ;;  %v2149_v62 = vld [vmem:[%s3578_s0 + $0x48] sm:$0xff] }
 0x45f   :  { %1690 = vmatpush.bf16.msrb.mxu0 %v2748_v6 }
 0x460   :  { %1778 = vmatpush.bf16.msrb.mxu3 %v2767_v21  ;;  %1756 = vmatpush.bf16.msrb.mxu1 %v2631_v15 }
 0x461   :  { %1769 = vmatpush.bf16.msrb.mxu2 %v2839_v14 }
 0x463   :  { %1691 = vmatpush.bf16.msrb.mxu0 %v2776_v27 }
 0x464   :  { %1779 = vmatpush.bf16.msrb.mxu3 %v2789_v35  ;;  %1757 = vmatpush.bf16.msrb.mxu1 %v2678_v36 }
 0x465   :  { %1770 = vmatpush.bf16.msrb.mxu2 %v2859_v33 }
 0x468   :  { %1780 = vmatpush.bf16.msrb.mxu3 %v2810_v55 }
 0x46c   :  { %1781 = vmatpush.bf16.msrb.mxu3 %v3681_v3 }
 0x470   :  { %1782 = vmatpush.bf16.msrb.mxu3 %v3684_v8 }
 0x474   :  { %1783 = vmatpush.bf16.msrb.mxu3 %v3687_v17 }
 0x4c3   :  { %v1483_v47 = vpop.f32.mrf.mxu0  ;;  %v1496_v51 = vpop.f32.mrf.mxu1 }
 0x4c4   :  { %v1513_v59 = vadd.f32 %v2143_v25, %v1483_v47  ;;  %v1533_v63 = vadd.f32 %v2144_v38, %v1496_v51 }
 0x4c6   :  { %v2146_v10 = vmul.f32 -1.442695, %v1513_v59  ;;  %v2147_v15 = vmul.f32 -1.442695, %v1533_v63 }
 0x4c8   :  { %2334 = vpow2.f32 %v2146_v10 }
 0x4c9   :  { %2336 = vpow2.f32 %v2147_v15 }
 0x4ca   :  { %v1509_v30 = vpop.f32.mrf.mxu2 }
 0x4cb   :  { %v1485_v36 = vpop.f32.mrf.mxu0  ;;  %v1498_v50 = vpop.f32.mrf.mxu1  ;;  %v1553_v61 = vadd.f32 %v3680_v40, %v1509_v30 }
 0x4ce   :  { %v2335_v56 = vpop.eup %2334 }
 0x4cf   :  { %v2337_v57 = vpop.eup %2336  ;;  %v1517_v2 = vadd.f32 1.0, %v2335_v56 }
 0x4d0   :  { %v1537_v6 = vadd.f32 1.0, %v2337_v57 }
 0x4d1   :  { %2338 = vrcp.f32 %v1517_v2  ;;  %v1529_v58 = vand.u32 2147483648, %v1517_v2  ;;  %v1527_v52 = vand.u32 2147483647, %v1517_v2  ;;  %vm1523_vm1 = vweird.f32 %v1517_v2 }
 0x4d2   :  { %2340 = vrcp.f32 %v1537_v6  ;;  %v1511_v21 = vpop.f32.mrf.mxu2  ;;  %v1549_v32 = vand.u32 2147483648, %v1537_v6  ;;  %vm1543_vm5 = vweird.f32 %v1537_v6  ;;  %v1547_v19 = vand.u32 2147483647, %v1537_v6 }
 0x4d3   :  { %v1588_v27 = vpop.f32.mrf.mxu0  ;;  %v1530_v4 = vor.u32 1.1754944e-38, %v1529_v58  ;;  %vm1528_vm3 = vcmp.eq.f32.partialorder %v1527_v52, 8.507059e+37  ;;  %v2151_v21 = vld [vmem:[%s3578_s0 + $0x58] sm:$0xff]  ;;  %v2155_v58 = vld [vmem:[%s3578_s0 + $0x150] sm:$0xff] }
 0x4d4   :  { %v1625_v28 = vadd.f32 %v2150_v9, %v1588_v27  ;;  %v3495_v35 = vpop.f32.mrf.mxu1  ;;  %v1550_v40 = vor.u32 1.1754944e-38, %v1549_v32  ;;  %vm1548_vm7 = vcmp.eq.f32.partialorder %v1547_v19, 8.507059e+37  ;;  %v1747_v19 = vld [vmem:[%s3578_s0 + $0x20] sm:$0xff] }
 0x4d5   :  { %v1645_v57 = vadd.f32 %v3250_v31, %v3495_v35 }
 0x4d6   :  { %v2153_v45 = vmul.f32 -1.442695, %v1625_v28 }
 0x4d7   :  { %v2339_v55 = vpop.eup %2338 }
 0x4d8   :  { %v2341_v14 = vpop.eup %2340  ;;  %v1519_v33 = vmul.f32 %v2339_v55, %v1517_v2  ;;  %2342 = vpow2.f32 %v2153_v45  ;;  %vm1524_vm0 = vweird.f32 %v2339_v55 }
 0x4d9   :  { %v1539_v34 = vmul.f32 %v2341_v14, %v1537_v6  ;;  %v1575_v3 = vpop.f32.mrf.mxu3  ;;  %vm1525_vm2 = vmor %vm1523_vm1, %vm1524_vm0  ;;  %vm1544_vm4 = vweird.f32 %v2341_v14 }
 0x4da   :  { %v1520_v8 = vsub.f32 1.0, %v1519_v33  ;;  %v1605_v17 = vadd.f32 %v2149_v62, %v1575_v3  ;;  %vm1545_vm6 = vmor %vm1543_vm5, %vm1544_vm4 }
 0x4db   :  { %v1540_v22 = vsub.f32 1.0, %v1539_v34  ;;  %v1590_v54 = vpop.f32.mrf.mxu0 }
 0x4dc   :  { %v1521_v60 = vmul.f32 %v2339_v55, %v1520_v8  ;;  %v2152_v20 = vmul.f32 -1.442695, %v1605_v17  ;;  %v1603_v11 = vpop.f32.mrf.mxu1 }
 0x4dd   :  { %v1541_v49 = vmul.f32 %v2341_v14, %v1540_v22 }
 0x4de   :  { %v2343_v48 = vpop.eup %2342  ;;  %v1522_v46 = vadd.f32 %v2339_v55, %v1521_v60  ;;  %2344 = vpow2.f32 %v2152_v20 }
 0x4df   :  { %v3500_v12 = vadd.f32 1.0, %v2343_v48  ;;  %v1542_v41 = vadd.f32 %v2341_v14, %v1541_v49 }
 0x4e0   :  { %v1526_v24 = vsel %vm1525_vm2, %v2339_v55, %v1522_v46 }
 0x4e1   :  { %v1531_v29 = vsel %vm1528_vm3, %v1530_v4, %v1526_v24  ;;  %v1577_v42 = vpop.f32.mrf.mxu3  ;;  %2346 = vrcp.f32 %v3500_v12  ;;  %v1546_v53 = vsel %vm1545_vm6, %v2341_v14, %v1542_v41  ;;  %v1641_v27 = vand.u32 2147483648, %v3500_v12 }
 0x4e2   :  { %v1554_v39 = vmul.f32 %v1553_v61, %v1531_v29  ;;  %v1551_v5 = vsel %vm1548_vm7, %v1550_v40, %v1546_v53  ;;  %vm1635_vm13 = vweird.f32 %v3500_v12  ;;  %v1639_v45 = vand.u32 2147483647, %v3500_v12 }
 0x4e3   :  { %v1557_v0 = vsub.f32 1.0, %v1551_v5  ;;  %v1559_v38 = vmul.f32 %v1551_v5, %v3433_v1  ;;  %v1642_v31 = vor.u32 1.1754944e-38, %v1641_v27 }
 0x4e4   :  { %v2345_v13 = vpop.eup %2344  ;;  %v1555_v44 = vadd.f32 %v2145_v26, %v1554_v39  ;;  %vm1640_vm15 = vcmp.eq.f32.partialorder %v1639_v45, 8.507059e+37  ;;  %v1746_v26 = vld [vmem:[%s3578_s0 + $0x18] sm:$0xff] }
 0x4e5   :  { %v1609_v23 = vadd.f32 1.0, %v2345_v13 }
 0x4e6   :  { %2348 = vtanh.f32 %v1555_v44 }
 0x4e7   :  { %2350 = vrcp.f32 %v1609_v23  ;;  %v2347_v18 = vpop.eup %2346  ;;  %v1621_v10 = vand.u32 2147483648, %v1609_v23  ;;  %v1619_v36 = vand.u32 2147483647, %v1609_v23  ;;  %vm1615_vm9 = vweird.f32 %v1609_v23 }
 0x4e8   :  { %v1631_v43 = vmul.f32 %v2347_v18, %v3500_v12  ;;  %vm1636_vm12 = vweird.f32 %v2347_v18 }
 0x4e9   :  { %v1622_v56 = vor.u32 1.1754944e-38, %v1621_v10  ;;  %vm1620_vm11 = vcmp.eq.f32.partialorder %v1619_v36, 8.507059e+37  ;;  %vm1637_vm14 = vmor %vm1635_vm13, %vm1636_vm12 }
 0x4ea   :  { %v1632_v51 = vsub.f32 1.0, %v1631_v43 }
 0x4ec   :  { %v2349_v7 = vpop.eup %2348  ;;  %v1633_v50 = vmul.f32 %v2347_v18, %v1632_v51 }
 0x4ed   :  { %v2351_v16 = vpop.eup %2350  ;;  %v1558_v25 = vmul.f32 %v2349_v7, %v1557_v0 }
 0x4ee   :  { %v1611_v47 = vmul.f32 %v2351_v16, %v1609_v23  ;;  %vm1616_vm8 = vweird.f32 %v2351_v16  ;;  %v1634_v6 = vadd.f32 %v2347_v18, %v1633_v50 }
 0x4ef   :  { %v3509_v59 = vadd.f32 %v1559_v38, %v1558_v25  ;;  %vm1617_vm10 = vmor %vm1615_vm9, %vm1616_vm8 }
 0x4f0   :  { %v1612_v63 = vsub.f32 1.0, %v1611_v47  ;;  %v1638_v62 = vsel %vm1637_vm14, %v2347_v18, %v1634_v6 }
 0x4f1   :  { %2148 = vst [vmem:[%s3579_s4 + $0x60] sm:$0xff] %v3509_v59  ;;  %v1657_v15 = vpack.c.bf16 %v3509_v59, %v3509_v59  ;;  %v1643_v35 = vsel %vm1640_vm15, %v1642_v31, %v1638_v62 }
 0x4f2   :  { %v1613_v30 = vmul.f32 %v2351_v16, %v1612_v63  ;;  %v1649_v14 = vsub.f32 1.0, %v1643_v35  ;;  %v1651_v3 = vmul.f32 %v1643_v35, %v3455_v37  ;;  %v2156_v37 = vld [vmem:[%s3578_s0 + $0x158] sm:$0xff] }
 0x4f3   :  { %1666 = vmatmul.bf16.vlgmr.msra.gmra.mxu2 %v1657_v15  ;;  %1679 = vmatmul.bf16.vlgmr.msra.gmra.mxu3 %v1657_v15 }
 0x4f4   :  { %v1614_v1 = vadd.f32 %v2351_v16, %v1613_v30  ;;  %1692 = vmatmul.bf16.vlgmr.msrb.gmra.mxu0 %v1657_v15  ;;  %v2376_v30 = vld [vmem:[%s3577_s3] ss:$0 sm:$0xff] }
 0x4f6   :  { %v1618_v2 = vsel %vm1617_vm10, %v2351_v16, %v1614_v1  ;;  %v2157_v1 = vld [vmem:[%s3578_s0 + $0x160] sm:$0xff] }
 0x4f7   :  { %v1623_v9 = vsel %vm1620_vm11, %v1622_v56, %v1618_v2 }
 0x4f8   :  { %v1646_v28 = vmul.f32 %v1645_v57, %v1623_v9 }
 0x4fa   :  { %v1647_v55 = vadd.f32 %v2151_v21, %v1646_v28 }
 0x4fc   :  { %2352 = vtanh.f32 %v1647_v55 }
 0x502   :  { %v2353_v33 = vpop.eup %2352 }
 0x503   :  { %v1650_v34 = vmul.f32 %v2353_v33, %v1649_v14 }
 0x505   :  { %v3526_v8 = vadd.f32 %v1651_v3, %v1650_v34 }
 0x507   :  { %2154 = vst [vmem:[%s3579_s4 + $0x18] sm:$0xff] %v3526_v8  ;;  %v1749_v17 = vpack.c.bf16 %v3526_v8, %v3526_v8 }
 0x509   :  { %1758 = vmatmul.bf16.vlgmr.msrb.gmra.mxu1 %v1749_v17  ;;  %1771 = vmatmul.bf16.vlgmr.msrb.gmra.mxu2 %v1749_v17 }
 0x50a   :  { %1784 = vmatmul.bf16.vlgmr.msrb.gmra.mxu3 %v1749_v17 }
 0x571   :  { %v1693_v22 = vpop.f32.mrf.mxu0 }
 0x572   :  { %v1737_v36 = vadd.f32 %v2376_v30, %v1693_v22 }
 0x576   :  { %v1667_v54 = vpop.f32.mrf.mxu2  ;;  %v1680_v60 = vpop.f32.mrf.mxu3 }
 0x577   :  { %v1697_v52 = vadd.f32 %v2155_v58, %v1667_v54  ;;  %v1717_v20 = vadd.f32 %v2156_v37, %v1680_v60 }
 0x579   :  { %v2158_v11 = vmul.f32 -1.442695, %v1697_v52  ;;  %v2159_v49 = vmul.f32 -1.442695, %v1717_v20  ;;  %v1695_v48 = vpop.f32.mrf.mxu0 }
 0x57b   :  { %2354 = vpow2.f32 %v2158_v11 }
 0x57c   :  { %2356 = vpow2.f32 %v2159_v49 }
 0x57e   :  { %v1669_v46 = vpop.f32.mrf.mxu2  ;;  %v1682_v4 = vpop.f32.mrf.mxu3 }
 0x581   :  { %v2355_v12 = vpop.eup %2354 }
 0x582   :  { %v2357_v24 = vpop.eup %2356  ;;  %v1701_v61 = vadd.f32 1.0, %v2355_v12  ;;  %v2377_v12 = vld [vmem:[%s3577_s3 + $0x1] ss:$0 sm:$0xff] }
 0x583   :  { %v1721_v41 = vadd.f32 1.0, %v2357_v24 }
 0x584   :  { %2358 = vrcp.f32 %v1701_v61  ;;  %v1713_v0 = vand.u32 2147483648, %v1701_v61  ;;  %v1711_v25 = vand.u32 2147483647, %v1701_v61  ;;  %vm1707_vm1 = vweird.f32 %v1701_v61 }
 0x585   :  { %2360 = vrcp.f32 %v1721_v41  ;;  %v1733_v9 = vand.u32 2147483648, %v1721_v41  ;;  %vm1727_vm5 = vweird.f32 %v1721_v41  ;;  %v1731_v27 = vand.u32 2147483647, %v1721_v41 }
 0x586   :  { %v1759_v29 = vpop.f32.mrf.mxu1  ;;  %v1714_v10 = vor.u32 1.1754944e-38, %v1713_v0  ;;  %vm1712_vm3 = vcmp.eq.f32.partialorder %v1711_v25, 8.507059e+37 }
 0x587   :  { %v1789_v42 = vadd.f32 %v1759_v29, %v1746_v26  ;;  %v1734_v31 = vor.u32 1.1754944e-38, %v1733_v9  ;;  %vm1732_vm7 = vcmp.eq.f32.partialorder %v1731_v27, 8.507059e+37 }
 0x589   :  { %v2161_v32 = vmul.f32 -1.442695, %v1789_v42 }
 0x58a   :  { %v2359_v39 = vpop.eup %2358 }
 0x58b   :  { %v2361_v13 = vpop.eup %2360  ;;  %v1703_v44 = vmul.f32 %v2359_v39, %v1701_v61  ;;  %2362 = vpow2.f32 %v2161_v32  ;;  %vm1708_vm0 = vweird.f32 %v2359_v39 }
 0x58c   :  { %v1723_v53 = vmul.f32 %v2361_v13, %v1721_v41  ;;  %v1772_v23 = vpop.f32.mrf.mxu2  ;;  %vm1709_vm2 = vmor %vm1707_vm1, %vm1708_vm0  ;;  %vm1728_vm4 = vweird.f32 %v2361_v13 }
 0x58d   :  { %v1704_v40 = vsub.f32 1.0, %v1703_v44  ;;  %v1809_v18 = vadd.f32 %v1772_v23, %v1747_v19  ;;  %v3546_v5 = vpop.f32.mrf.mxu3  ;;  %vm1729_vm6 = vmor %vm1727_vm5, %vm1728_vm4 }
 0x58e   :  { %v1724_v43 = vsub.f32 1.0, %v1723_v53  ;;  %v1761_v7 = vpop.f32.mrf.mxu1  ;;  %v1829_v24 = vadd.f32 %v2377_v12, %v3546_v5 }
 0x58f   :  { %v1705_v16 = vmul.f32 %v2359_v39, %v1704_v40  ;;  %v2162_v38 = vmul.f32 -1.442695, %v1809_v18 }
 0x590   :  { %v1725_v47 = vmul.f32 %v2361_v13, %v1724_v43 }
 0x591   :  { %v2363_v51 = vpop.eup %2362  ;;  %v1706_v63 = vadd.f32 %v2359_v39, %v1705_v16  ;;  %2364 = vpow2.f32 %v2162_v38 }
 0x592   :  { %v1793_v15 = vadd.f32 1.0, %v2363_v51  ;;  %v1726_v57 = vadd.f32 %v2361_v13, %v1725_v47 }
 0x593   :  { %v1710_v50 = vsel %vm1709_vm2, %v2359_v39, %v1706_v63 }
 0x594   :  { %v1715_v56 = vsel %vm1712_vm3, %v1714_v10, %v1710_v50  ;;  %2366 = vrcp.f32 %v1793_v15  ;;  %v1774_v2 = vpop.f32.mrf.mxu2  ;;  %v1730_v55 = vsel %vm1729_vm6, %v2361_v13, %v1726_v57  ;;  %v1805_v17 = vand.u32 2147483648, %v1793_v15 }
 0x595   :  { %v1738_v6 = vmul.f32 %v1737_v36, %v1715_v56  ;;  %v1787_v21 = vpop.f32.mrf.mxu3  ;;  %v1735_v14 = vsel %vm1732_vm7, %v1734_v31, %v1730_v55  ;;  %v1803_v37 = vand.u32 2147483647, %v1793_v15  ;;  %vm1799_vm9 = vweird.f32 %v1793_v15 }
 0x596   :  { %v1741_v3 = vsub.f32 1.0, %v1735_v14  ;;  %v1743_v52 = vmul.f32 %v1735_v14, %v3509_v59  ;;  %v1806_v48 = vor.u32 1.1754944e-38, %v1805_v17  ;;  %v1748_v59 = vld [vmem:[%s3578_s0 + $0x28] sm:$0xff] }
 0x597   :  { %v2365_v28 = vpop.eup %2364  ;;  %v1739_v45 = vadd.f32 %v2157_v1, %v1738_v6  ;;  %vm1804_vm11 = vcmp.eq.f32.partialorder %v1803_v37, 8.507059e+37 }
 0x598   :  { %v1813_v62 = vadd.f32 1.0, %v2365_v28 }
 0x599   :  { %2368 = vtanh.f32 %v1739_v45 }
 0x59a   :  { %v2367_v35 = vpop.eup %2366  ;;  %2370 = vrcp.f32 %v1813_v62  ;;  %v1825_v26 = vand.u32 2147483648, %v1813_v62  ;;  %v1823_v42 = vand.u32 2147483647, %v1813_v62  ;;  %vm1819_vm13 = vweird.f32 %v1813_v62 }
 0x59b   :  { %v1795_v33 = vmul.f32 %v2367_v35, %v1793_v15  ;;  %vm1800_vm8 = vweird.f32 %v2367_v35 }
 0x59c   :  { %vm1801_vm10 = vmor %vm1799_vm9, %vm1800_vm8  ;;  %v1826_v19 = vor.u32 1.1754944e-38, %v1825_v26  ;;  %vm1824_vm15 = vcmp.eq.f32.partialorder %v1823_v42, 8.507059e+37 }
 0x59d   :  { %v1796_v34 = vsub.f32 1.0, %v1795_v33 }
 0x59f   :  { %v2369_v22 = vpop.eup %2368  ;;  %v1797_v58 = vmul.f32 %v2367_v35, %v1796_v34 }
 0x5a0   :  { %v2371_v54 = vpop.eup %2370  ;;  %v1742_v60 = vmul.f32 %v2369_v22, %v1741_v3 }
 0x5a1   :  { %v1815_v20 = vmul.f32 %v2371_v54, %v1813_v62  ;;  %v1798_v11 = vadd.f32 %v2367_v35, %v1797_v58  ;;  %vm1820_vm12 = vweird.f32 %v2371_v54 }
 0x5a2   :  { %v1744_v49 = vadd.f32 %v1743_v52, %v1742_v60  ;;  %vm1821_vm14 = vmor %vm1819_vm13, %vm1820_vm12 }
 0x5a3   :  { %v1816_v46 = vsub.f32 1.0, %v1815_v20  ;;  %v1802_v4 = vsel %vm1801_vm10, %v2367_v35, %v1798_v11 }
 0x5a4   :  { %2160 = vst [vmem:[%s3579_s4 + $0x70] sm:$0xff] %v1744_v49  ;;  %v1807_v61 = vsel %vm1804_vm11, %v1806_v48, %v1802_v4 }
 0x5a5   :  { %v1817_v41 = vmul.f32 %v2371_v54, %v1816_v46  ;;  %v1830_v29 = vmul.f32 %v1829_v24, %v1807_v61  ;;  %1838 = vst [vmem:[%s3580_s5] sm:$0xff] %v1744_v49 }
 0x5a7   :  { %v1818_v32 = vadd.f32 %v2371_v54, %v1817_v41  ;;  %v1831_v39 = vadd.f32 %v1830_v29, %v1748_v59 }
 0x5a9   :  { %v1822_v13 = vsel %vm1821_vm14, %v2371_v54, %v1818_v32  ;;  %2372 = vtanh.f32 %v1831_v39 }
 0x5aa   :  { %v1827_v44 = vsel %vm1824_vm15, %v1826_v19, %v1822_v13 }
 0x5ab   :  { %v1833_v53 = vsub.f32 1.0, %v1827_v44  ;;  %v1835_v18 = vmul.f32 %v1827_v44, %v3526_v8 }
 0x5af   :  { %v2373_v23 = vpop.eup %2372 }
 0x5b0   :  { %v1834_v40 = vmul.f32 %v2373_v23, %v1833_v53 }
 0x5b2   :  { %v1836_v5 = vadd.f32 %v1835_v18, %v1834_v40 }
 0x5b4   :  { %1837 = vst [vmem:[%s3579_s4 + $0x8] sm:$0xff] %v1836_v5 }
 0x5b5   :  { %2163 = vst [vmem:[%s3580_s5 + $0x8] sm:$0xff] %v1836_v5 }

// kernel: graph_decoder_rnn_forward.9
= control target key start
LH: loop header
LB: loop body
LE: loop exit
PB: predicated region body
PF: predicated region fallthrough
CT: control target
= control target key end

     0   :  { %8 = vsyncpa [#allocation3], 0  ;;  %s383_s15 = smov [#allocation2]   ;;  %s384_s17 = smov 64   ;;  %s484_s0 = inlined_call_operand.vmem [shape: f32[64,256], index: 0, kind: input, shape index: {}]   ;;  %s485_s1 = inlined_call_operand.hbm [shape: bf16[256,128], index: 1, kind: input, shape index: {}]   ;;  %s486_s2 = inlined_call_operand.vmem [shape: f32[1,128], index: 2, kind: input, shape index: {}]   ;;  %s487_s3 = inlined_call_operand.vmem [shape: f32[64,128], index: 3, kind: output, shape index: {}]  }
   0x1   :  { %s15_s14 = sshll.u32 %s485_s1, 4  ;;  %s17_s16 = sshll.u32 %s383_s15, 4  ;;  %s16_s14 = int_to_ptr.hbm [resolvable:$true] %s15_s14  ;;  %s18_s16 = int_to_ptr.vmem [resolvable:$true] %s17_s16 }
   0x2   :  { %s385_s18 = smov 4  }
   0x3   :  { %23 = dma.hbm_to_vmem [thread:$0]  %s16_s14, 2048, %s18_s16, [#allocation3], %s384_s17, %s384_s17, %s385_s18  }
   0x4   :  { %381 = dma.done.wait [#allocation3], 2048  }
   0x5   :  { %382 = vsyncadd [#allocation3], 4294965248  ;;  %v328_v0 = vld [vmem:[#allocation2 + $0x38] sm:$0xff]  ;;  %v327_v2 = vld [vmem:[#allocation2 + $0x30] sm:$0xff] }
   0x6   :  { %v336_v1 = vld [vmem:[#allocation2 + $0x78] sm:$0xff]  ;;  %186 = vmatpush.bf16.msra.mxu0 %v328_v0  ;;  %337 = vmatpush.bf16.msra.mxu2 %v328_v0  ;;  %v335_v3 = vld [vmem:[#allocation2 + $0x70] sm:$0xff]  ;;  %v326_v4 = vld [vmem:[#allocation2 + $0x28] sm:$0xff] }
   0x7   :  { %215 = vmatpush.bf16.msra.mxu1 %v336_v1  ;;  %345 = vmatpush.bf16.msra.mxu3 %v336_v1  ;;  %v334_v5 = vld [vmem:[#allocation2 + $0x68] sm:$0xff]  ;;  %v325_v6 = vld [vmem:[#allocation2 + $0x20] sm:$0xff]  ;;  %v324_v8 = vld [vmem:[#allocation2 + $0x18] sm:$0xff] }
   0x8   :  { %v333_v7 = vld [vmem:[#allocation2 + $0x60] sm:$0xff]  ;;  %v332_v9 = vld [vmem:[#allocation2 + $0x58] sm:$0xff]  ;;  %v323_v10 = vld [vmem:[#allocation2 + $0x10] sm:$0xff] }
   0x9   :  { %v331_v11 = vld [vmem:[#allocation2 + $0x50] sm:$0xff]  ;;  %v322_v12 = vld [vmem:[#allocation2 + $0x8] sm:$0xff]  ;;  %v321_v14 = vld [vmem:[#allocation2] sm:$0xff] }
   0xa   :  { %187 = vmatpush.bf16.msra.mxu0 %v327_v2  ;;  %338 = vmatpush.bf16.msra.mxu2 %v327_v2  ;;  %v330_v13 = vld [vmem:[#allocation2 + $0x48] sm:$0xff]  ;;  %v329_v15 = vld [vmem:[#allocation2 + $0x40] sm:$0xff]  ;;  %v32_v17 = vld [vmem:[%s484_s0 + $0x10] sm:$0xff] }
   0xb   :  { %216 = vmatpush.bf16.msra.mxu1 %v335_v3  ;;  %346 = vmatpush.bf16.msra.mxu3 %v335_v3  ;;  %v30_v16 = vld [vmem:[%s484_s0] sm:$0xff]  ;;  %v40_v19 = vld [vmem:[%s484_s0 + $0x50] sm:$0xff]  ;;  %v31_v20 = vld [vmem:[%s484_s0 + $0x8] sm:$0xff] }
   0xc   :  { %v38_v18 = vld [vmem:[%s484_s0 + $0x40] sm:$0xff]  ;;  %v33_v21 = vld [vmem:[%s484_s0 + $0x18] sm:$0xff]  ;;  %v39_v22 = vld [vmem:[%s484_s0 + $0x48] sm:$0xff]  ;;  %v46_v24 = vpack.c.bf16 %v32_v17, %v30_v16 }
   0xd   :  { %v41_v23 = vld [vmem:[%s484_s0 + $0x58] sm:$0xff]  ;;  %v50_v25 = vpack.c.bf16 %v40_v19, %v38_v18  ;;  %v47_v26 = vpack.c.bf16 %v33_v21, %v31_v20  ;;  %v34_v28 = vld [vmem:[%s484_s0 + $0x20] sm:$0xff]  ;;  %v36_v29 = vld [vmem:[%s484_s0 + $0x30] sm:$0xff] }
   0xe   :  { %188 = vmatpush.bf16.msra.mxu0 %v326_v4  ;;  %339 = vmatpush.bf16.msra.mxu2 %v326_v4  ;;  %v51_v27 = vpack.c.bf16 %v41_v23, %v39_v22  ;;  %v42_v30 = vld [vmem:[%s484_s0 + $0x60] sm:$0xff]  ;;  %v44_v31 = vld [vmem:[%s484_s0 + $0x70] sm:$0xff]  ;;  %v35_v32 = vld [vmem:[%s484_s0 + $0x28] sm:$0xff]  ;;  %v48_v36 = vpack.c.bf16 %v36_v29, %v34_v28 }
   0xf   :  { %217 = vmatpush.bf16.msra.mxu1 %v334_v5  ;;  %347 = vmatpush.bf16.msra.mxu3 %v334_v5  ;;  %v37_v33 = vld [vmem:[%s484_s0 + $0x38] sm:$0xff]  ;;  %v43_v34 = vld [vmem:[%s484_s0 + $0x68] sm:$0xff]  ;;  %v52_v37 = vpack.c.bf16 %v44_v31, %v42_v30  ;;  %v356_v40 = vld [vmem:[%s486_s2] ss:$0 sm:$0xff] }
  0x10   :  { %v45_v35 = vld [vmem:[%s484_s0 + $0x78] sm:$0xff]  ;;  %v49_v38 = vpack.c.bf16 %v37_v33, %v35_v32 }
  0x11   :  { %v53_v39 = vpack.c.bf16 %v45_v35, %v43_v34 }
  0x12   :  { %189 = vmatpush.bf16.msra.mxu0 %v325_v6  ;;  %340 = vmatpush.bf16.msra.mxu2 %v325_v6 }
  0x13   :  { %218 = vmatpush.bf16.msra.mxu1 %v333_v7  ;;  %348 = vmatpush.bf16.msra.mxu3 %v333_v7 }
  0x16   :  { %190 = vmatpush.bf16.msra.mxu0 %v324_v8  ;;  %341 = vmatpush.bf16.msra.mxu2 %v324_v8 }
  0x17   :  { %219 = vmatpush.bf16.msra.mxu1 %v332_v9  ;;  %349 = vmatpush.bf16.msra.mxu3 %v332_v9 }
  0x1a   :  { %191 = vmatpush.bf16.msra.mxu0 %v323_v10  ;;  %342 = vmatpush.bf16.msra.mxu2 %v323_v10 }
  0x1b   :  { %220 = vmatpush.bf16.msra.mxu1 %v331_v11  ;;  %350 = vmatpush.bf16.msra.mxu3 %v331_v11 }
  0x1e   :  { %192 = vmatpush.bf16.msra.mxu0 %v322_v12  ;;  %343 = vmatpush.bf16.msra.mxu2 %v322_v12 }
  0x1f   :  { %221 = vmatpush.bf16.msra.mxu1 %v330_v13  ;;  %351 = vmatpush.bf16.msra.mxu3 %v330_v13 }
  0x22   :  { %193 = vmatpush.bf16.msra.mxu0 %v321_v14  ;;  %344 = vmatpush.bf16.msra.mxu2 %v321_v14 }
  0x23   :  { %222 = vmatpush.bf16.msra.mxu1 %v329_v15  ;;  %352 = vmatpush.bf16.msra.mxu3 %v329_v15 }
  0x25   :  { %194 = vmatmul.bf16.vlgmr.msra.gmra.mxu0 %v46_v24  ;;  %204 = vmatmul.bf16.vlgmr.msra.gmra.mxu2 %v50_v25 }
  0x26   :  { %223 = vmatmul.bf16.vlgmr.msra.gmra.mxu1 %v47_v26  ;;  %233 = vmatmul.bf16.vlgmr.msra.gmra.mxu3 %v51_v27 }
  0x35   :  { %199 = vmatmul.bf16.gmra.mxu0 %v48_v36  ;;  %209 = vmatmul.bf16.gmra.mxu2 %v52_v37 }
  0x36   :  { %228 = vmatmul.bf16.gmra.mxu1 %v49_v38  ;;  %238 = vmatmul.bf16.gmra.mxu3 %v53_v39 }
  0xa2   :  { %v195_v41 = vpop.f32.mrf.mxu0 }
  0xa3   :  { %v196_v42 = vadd.f32 %v356_v40, %v195_v41  ;;  %v224_v43 = vpop.f32.mrf.mxu1 }
  0xa5   :  { %v225_v44 = vadd.f32 %v224_v43, %v196_v42 }
  0xa7   :  { %244 = vst [vmem:[%s487_s3] sm:$0xff] %v225_v44 }
  0xa8   :  { %v205_v45 = vpop.f32.mrf.mxu2 }
  0xa9   :  { %v206_v46 = vadd.f32 %v356_v40, %v205_v45  ;;  %v234_v47 = vpop.f32.mrf.mxu3 }
  0xaa   :  { %v197_v48 = vpop.f32.mrf.mxu0 }
  0xab   :  { %v235_v49 = vadd.f32 %v234_v47, %v206_v46  ;;  %v198_v50 = vadd.f32 %v356_v40, %v197_v48  ;;  %v226_v51 = vpop.f32.mrf.mxu1 }
  0xad   :  { %248 = vst [vmem:[%s487_s3 + $0x20] sm:$0xff] %v235_v49  ;;  %v227_v52 = vadd.f32 %v226_v51, %v198_v50 }
  0xaf   :  { %245 = vst [vmem:[%s487_s3 + $0x8] sm:$0xff] %v227_v52 }
  0xb0   :  { %v207_v53 = vpop.f32.mrf.mxu2 }
  0xb1   :  { %v208_v54 = vadd.f32 %v356_v40, %v207_v53  ;;  %v236_v55 = vpop.f32.mrf.mxu3 }
  0xb2   :  { %v200_v56 = vpop.f32.mrf.mxu0 }
  0xb3   :  { %v237_v57 = vadd.f32 %v236_v55, %v208_v54  ;;  %v201_v58 = vadd.f32 %v356_v40, %v200_v56  ;;  %v229_v59 = vpop.f32.mrf.mxu1 }
  0xb5   :  { %249 = vst [vmem:[%s487_s3 + $0x28] sm:$0xff] %v237_v57  ;;  %v230_v60 = vadd.f32 %v229_v59, %v201_v58 }
  0xb7   :  { %246 = vst [vmem:[%s487_s3 + $0x10] sm:$0xff] %v230_v60 }
  0xb8   :  { %v210_v61 = vpop.f32.mrf.mxu2 }
  0xb9   :  { %v211_v62 = vadd.f32 %v356_v40, %v210_v61  ;;  %v239_v63 = vpop.f32.mrf.mxu3 }
  0xba   :  { %v202_v0 = vpop.f32.mrf.mxu0 }
  0xbb   :  { %v240_v1 = vadd.f32 %v239_v63, %v211_v62  ;;  %v203_v2 = vadd.f32 %v356_v40, %v202_v0  ;;  %v231_v3 = vpop.f32.mrf.mxu1 }
  0xbd   :  { %250 = vst [vmem:[%s487_s3 + $0x30] sm:$0xff] %v240_v1  ;;  %v232_v4 = vadd.f32 %v231_v3, %v203_v2 }
  0xbf   :  { %247 = vst [vmem:[%s487_s3 + $0x18] sm:$0xff] %v232_v4 }
  0xc0   :  { %v212_v5 = vpop.f32.mrf.mxu2 }
  0xc1   :  { %v213_v6 = vadd.f32 %v356_v40, %v212_v5  ;;  %v241_v7 = vpop.f32.mrf.mxu3 }
  0xc3   :  { %v242_v8 = vadd.f32 %v241_v7, %v213_v6 }
  0xc5   :  { %251 = vst [vmem:[%s487_s3 + $0x38] sm:$0xff] %v242_v8 }
  0xc6   :  { %256 = vsyncpa [#allocation3], 1 }

</bundles_post_ra>
